<compile_context>
chip_gen: v5e
topology: v5e:2x2
jax: 0.10.0
libtpu: 0.0.40
codegen_flags: <defaults>
</compile_context>

<pallas_src>
import functools
import math

import jax
import jax.numpy as jnp
from jax.experimental import pallas as pl
from jax.experimental.pallas import tpu as pltpu


# ----------------------------------------------------------------------------
# Fused kernel: conv1(s2)+BN1+ReLU -> (virtual) concat -> conv2(s1)+BN2+ReLU,
# one batch element per grid step, everything channel-major.
# ----------------------------------------------------------------------------
def _conv2x_fused_kernel(xph_ref, rem_ref, w1_ref, w2_ref, b1_ref, b2_ref,
                         out_ref, y1pad, col1, col2, *, precision):
    # xph_ref : (1, 4*Cin, H2+1, W2+1)  pre-padded stride-2 phase planes
    # rem_ref : (1, Cout, H2p+2, W2+2)  pre-padded skip connection
    # w1_ref  : (Cout, 9*Cin)           conv1 weights, BN1 scale folded, tap-major
    # w2_ref  : (Cout, 18*Cout)         conv2 weights, BN2 folded, [y1 taps | rem taps]
    # b1_ref  : (Cout, 1) f32           folded BN1 bias
    # b2_ref  : (Cout, 1) f32           folded BN2 bias
    # out_ref : (1, Cout, H2p*W2) f32
    # y1pad   : VMEM (Cout, H2p+2, W2+2)  zero-haloed conv1 output
    # col1    : VMEM (9*Cin, H2*W2)       conv1 im2col slab
    # col2    : VMEM (18*Cout, H2p*W2)    conv2 im2col slab
    H2, W2 = xph_ref.shape[2] - 1, xph_ref.shape[3] - 1
    Cout = b1_ref.shape[0]
    Cin = xph_ref.shape[1] // 4
    H2p = y1pad.shape[1] - 2
    M, Mp = H2 * W2, H2p * W2

    # ---- conv1: 3x3, stride 2, pad 1, as ONE matmul over K = 9*Cin ---------
    # tap index (0/1/2) -> (phase, start row/col in the pre-padded phase plane)
    pr = ((1, 0), (0, 1), (1, 1))
    for kh in range(3):
        p, rh = pr[kh]
        for kw in range(3):
            q, rw = pr[kw]
            t = kh * 3 + kw
            ph = 2 * p + q
            col1[t * Cin:(t + 1) * Cin, :] = xph_ref[
                0, ph * Cin:(ph + 1) * Cin, rh:rh + H2, rw:rw + W2
            ].reshape(Cin, M)
    acc1 = jnp.dot(w1_ref[...], col1[...], precision=precision,
                   preferred_element_type=jnp.float32)
    y1 = jnp.maximum(acc1 + b1_ref[...], 0.0)            # (Cout, M), f32

    # ---- concat([y1, rem]) is never materialized: y1 goes into a zero-haloed
    #      scratch, rem is read pre-padded straight from its input block. -----
    zcol = jnp.zeros((Cout, H2p + 2, 1), y1pad.dtype)
    y1pad[:, :, 0:1] = zcol                                        # left halo
    y1pad[:, :, W2 + 1:W2 + 2] = zcol                              # right halo
    y1pad[:, 0:1, :] = jnp.zeros((Cout, 1, W2 + 2), y1pad.dtype)   # top halo
    y1pad[:, H2 + 1:, :] = jnp.zeros((Cout, H2p + 1 - H2, W2 + 2),
                                     y1pad.dtype)                  # bottom (+pad rows)
    y1pad[:, 1:H2 + 1, 1:W2 + 1] = y1.reshape(Cout, H2, W2).astype(y1pad.dtype)

    # ---- conv2: 3x3, stride 1, pad 1 over [y1 | rem], ONE matmul, K=18*Cout -
    for kh in range(3):
        for kw in range(3):
            t = kh * 3 + kw
            col2[t * Cout:(t + 1) * Cout, :] = (
                y1pad[:, kh:kh + H2p, kw:kw + W2].reshape(Cout, Mp))
            col2[(9 + t) * Cout:(10 + t) * Cout, :] = (
                rem_ref[0, :, kh:kh + H2p, kw:kw + W2].reshape(Cout, Mp))
    acc2 = jnp.dot(w2_ref[...], col2[...], precision=precision,
                   preferred_element_type=jnp.float32)
    # Channel-major result is already (Cout, Mp): lane-dense store, no transpose.
    out_ref[0] = jnp.maximum(acc2 + b2_ref[...], 0.0).astype(out_ref.dtype)


# ----------------------------------------------------------------------------
# Wrapper: BN folding, pre-padded phase layout, VMEM budgeting, pallas_call
# ----------------------------------------------------------------------------
def _fold_bn(gamma, beta, running_mean, running_var, eps=1e-5):
    scale = gamma / jnp.sqrt(running_var + eps)
    return scale, beta - running_mean * scale


def _round_up(v, m):
    return (v + m - 1) // m * m


def _tile_bytes(rows, cols, itemsize):
    # (8, 128)-tile-padded VMEM footprint of one 2D slab
    return _round_up(rows, 8) * _round_up(cols, 128) * itemsize


def conv2x_now_forward(x, rem, params, *, compute_dtype=jnp.bfloat16):
    """x: (N, Cin, H, W), rem: (N, Cout, H/2, W/2) -> (N, Cout, H/2, W/2)."""
    N, Cin, H, W = x.shape
    Cout = params["w1"].shape[0]
    assert H % 2 == 0 and W % 2 == 0, "k=3, s=2, p=1 path assumes even H, W"
    H2, W2 = H // 2, W // 2
    assert rem.shape == (N, Cout, H2, W2), (rem.shape, (N, Cout, H2, W2))

    # Pad the output row count H2 -> H2p so that the final store is lane-dense
    # (H2p*W2 % 128 == 0) whenever the extra (fake, sliced-off) rows are cheap.
    M = H2 * W2
    if M % 128 == 0:
        H2p = H2
    else:
        rows128 = 128 // math.gcd(W2, 128)
        cand = _round_up(H2, rows128)
        H2p = cand if (cand - H2) * W2 <= max(128, M // 8) else H2
    Mp = H2p * W2

    # ---- fold BN (eval mode) into weights + per-channel bias ---------------
    s1, b1 = _fold_bn(*params["bn1"])
    s2, b2 = _fold_bn(*params["bn2"])
    # conv1: (Cout, Cin, 3, 3) -> (Cout, kh, kw, Cin) -> (Cout, 9*Cin)
    w1km = (jnp.transpose(params["w1"] * s1[:, None, None, None], (0, 2, 3, 1))
            .reshape(Cout, 9 * Cin).astype(compute_dtype))
    # conv2: split the input channels into the y1 half and the rem half.
    w2s = params["w2"] * s2[:, None, None, None]
    w2y = jnp.transpose(w2s[:, :Cout], (0, 2, 3, 1)).reshape(Cout, 9 * Cout)
    w2r = jnp.transpose(w2s[:, Cout:], (0, 2, 3, 1)).reshape(Cout, 9 * Cout)
    w2km = jnp.concatenate([w2y, w2r], axis=1).astype(compute_dtype)
    b1 = b1.reshape(Cout, 1).astype(jnp.float32)
    b2 = b2.reshape(Cout, 1).astype(jnp.float32)

    # ---- space-to-depth phases (channel-major), pre-padded top-left --------
    # xph[n, (2p+q)*Cin + c, 1+i, 1+j] = x[n, c, 2i+p, 2j+q]
    xph = (x.reshape(N, Cin, H2, 2, W2, 2)
             .transpose(0, 3, 5, 1, 2, 4)
             .reshape(N, 4 * Cin, H2, W2))
    xph = jnp.pad(xph, ((0, 0), (0, 0), (1, 0), (1, 0))).astype(compute_dtype)
    # rem pre-padded for conv2's 1-pixel halo (+ zero rows for the H2p padding)
    rem_p = jnp.pad(rem, ((0, 0), (0, 0), (1, H2p - H2 + 1), (1, 1))
                    ).astype(compute_dtype)

    # ---- explicit VMEM budget ----------------------------------------------
    bpe = jnp.dtype(compute_dtype).itemsize
    est = 0
    est += 2 * 4 * Cin * _tile_bytes(H2 + 1, W2 + 1, bpe)      # xph blocks (x2 buf)
    est += 2 * Cout * _tile_bytes(H2p + 2, W2 + 2, bpe)        # rem blocks
    est += 2 * _tile_bytes(Cout, Mp, 4)                        # out blocks (f32)
    est += Cout * _tile_bytes(H2p + 2, W2 + 2, bpe)            # y1pad scratch
    est += _tile_bytes(9 * Cin, M, bpe)                        # conv1 im2col
    est += _tile_bytes(18 * Cout, Mp, bpe)                     # conv2 im2col
    est += 4 * _tile_bytes(Cout, Mp, 4)                        # f32 acc / epilogue
    est += 2 * (_tile_bytes(Cout, 9 * Cin, bpe)
                + _tile_bytes(Cout, 18 * Cout, bpe)
                + 2 * _tile_bytes(Cout, 1, 4))                 # weights + biases
    vmem_limit = int(min(max(2 * est, 32 << 20), 100 << 20))

    precision = (jax.lax.Precision.HIGHEST
                 if jnp.dtype(compute_dtype) == jnp.dtype(jnp.float32) else None)
    kernel = functools.partial(_conv2x_fused_kernel, precision=precision)

    out = pl.pallas_call(
        kernel,
        out_shape=jax.ShapeDtypeStruct((N, Cout, Mp), jnp.float32),
        grid_spec=pltpu.PrefetchScalarGridSpec(
            num_scalar_prefetch=0,
            grid=(N,),
            in_specs=[
                pl.BlockSpec((1, 4 * Cin, H2 + 1, W2 + 1),
                             lambda n: (n, 0, 0, 0)),
                pl.BlockSpec((1, Cout, H2p + 2, W2 + 2),
                             lambda n: (n, 0, 0, 0)),
                pl.BlockSpec((Cout, 9 * Cin), lambda n: (0, 0)),
                pl.BlockSpec((Cout, 18 * Cout), lambda n: (0, 0)),
                pl.BlockSpec((Cout, 1), lambda n: (0, 0)),
                pl.BlockSpec((Cout, 1), lambda n: (0, 0)),
            ],
            out_specs=pl.BlockSpec((1, Cout, Mp), lambda n: (n, 0, 0)),
            scratch_shapes=[
                pltpu.VMEM((Cout, H2p + 2, W2 + 2), compute_dtype),  # y1pad
                pltpu.VMEM((9 * Cin, M), compute_dtype),             # col1
                pltpu.VMEM((18 * Cout, Mp), compute_dtype),          # col2
            ]),
        compiler_params=pltpu.CompilerParams(
            dimension_semantics=("parallel",),
            vmem_limit_bytes=vmem_limit),
    )(xph, rem_p, w1km, w2km, b1, b2)

    out = out.reshape(N, Cout, H2p, W2)
    if H2p != H2:
        out = out[:, :, :H2, :]
    return out


# ----------------------------------------------------------------------------
# Pure-JAX reference (correctness check)
# ----------------------------------------------------------------------------
def _ref_conv_bn_relu(x, w, bn_params, stride, pad):
    y = jax.lax.conv_general_dilated(
        x, w, window_strides=(stride, stride),
        padding=((pad, pad), (pad, pad)),
        dimension_numbers=("NCHW", "OIHW", "NCHW"),
        precision=jax.lax.Precision.HIGHEST)
    scale, bias = _fold_bn(*bn_params)
    y = y * scale[None, :, None, None] + bias[None, :, None, None]
    return jnp.maximum(y, 0.0)


def _ref_forward(x, rem, params):
    y1 = _ref_conv_bn_relu(x, params["w1"], params["bn1"], 2, 1)
    cat = jnp.concatenate([y1, rem], axis=1)
    return _ref_conv_bn_relu(cat, params["w2"], params["bn2"], 1, 1)


# ----------------------------------------------------------------------------
# Main
# ----------------------------------------------------------------------------
if __name__ == "__main__":
    key = jax.random.PRNGKey(0)
    (kx, kr, kw1, kw2, kg1, kb1, km1, kv1,
     kg2, kb2, km2, kv2) = jax.random.split(key, 12)

    # Module config: in_channels=4, out_channels=8, concat=True
    N, Cin, Cout, H, W = 2, 4, 8, 16, 16
    H2, W2 = H // 2, W // 2

    x = jax.random.normal(kx, (N, Cin, H, W), jnp.float32)
    rem = jax.random.normal(kr, (N, Cout, H2, W2), jnp.float32)

    params = {
        "w1": 0.1 * jax.random.normal(kw1, (Cout, Cin, 3, 3), jnp.float32),
        "w2": 0.1 * jax.random.normal(kw2, (Cout, 2 * Cout, 3, 3), jnp.float32),
        # BN (gamma, beta, running_mean, running_var) — eval mode
        "bn1": (1.0 + 0.1 * jax.random.normal(kg1, (Cout,), jnp.float32),
                0.1 * jax.random.normal(kb1, (Cout,), jnp.float32),
                0.1 * jax.random.normal(km1, (Cout,), jnp.float32),
                jax.random.uniform(kv1, (Cout,), jnp.float32, 0.5, 1.5)),
        "bn2": (1.0 + 0.1 * jax.random.normal(kg2, (Cout,), jnp.float32),
                0.1 * jax.random.normal(kb2, (Cout,), jnp.float32),
                0.1 * jax.random.normal(km2, (Cout,), jnp.float32),
                jax.random.uniform(kv2, (Cout,), jnp.float32, 0.5, 1.5)),
    }

    ref = jax.block_until_ready(_ref_forward(x, rem, params))

    # f32 path — faithful to the PyTorch module's eval-mode numerics.
    fwd_f32 = jax.jit(functools.partial(conv2x_now_forward,
                                        compute_dtype=jnp.float32))
    out_f32 = jax.block_until_ready(fwd_f32(x, rem, params))
    assert out_f32.shape == (N, Cout, H2, W2), out_f32.shape
    err_f32 = float(jnp.max(jnp.abs(out_f32 - ref)))
    assert jnp.allclose(out_f32, ref, atol=1e-3, rtol=1e-3), err_f32

    # Default bf16 MXU-input path (f32 accumulation + epilogue), looser check.
    fwd_bf16 = jax.jit(conv2x_now_forward)
    out_bf16 = jax.block_until_ready(fwd_bf16(x, rem, params))
    err_bf16 = float(jnp.max(jnp.abs(out_bf16 - ref)))
    assert jnp.allclose(out_bf16, ref, atol=5e-2, rtol=5e-2), err_bf16

    print("KERNEL_OK")
</pallas_src>

<mosaic_0001>
module attributes {stable_mosaic.version = 11 : i64} {
  func.func @_conv2x_fused_kernel(%arg0: i32, %arg1: memref<1x16x9x9xf32, #tpu.memory_space<vmem>>, %arg2: memref<1x8x18x10xf32, #tpu.memory_space<vmem>>, %arg3: memref<8x36xf32, #tpu.memory_space<vmem>>, %arg4: memref<8x144xf32, #tpu.memory_space<vmem>>, %arg5: memref<8x1xf32, #tpu.memory_space<vmem>>, %arg6: memref<8x1xf32, #tpu.memory_space<vmem>>, %arg7: memref<1x8x128xf32, #tpu.memory_space<vmem>>, %arg8: memref<8x18x10xf32, #tpu.memory_space<vmem>>, %arg9: memref<36x64xf32, #tpu.memory_space<vmem>>, %arg10: memref<144x128xf32, #tpu.memory_space<vmem>>) attributes {dimension_semantics = [#tpu.dimension_semantics<parallel>], iteration_bounds = array<i64: 2>, scalar_prefetch = 0 : i64, scratch_operands = 3 : i64, tpu.core_type = #tpu.core_type<tc>, window_params = [{transform_indices = @transform_0, window_bounds = array<i64: 1, 16, 9, 9>}, {transform_indices = @transform_1, window_bounds = array<i64: 1, 8, 18, 10>}, {pipeline_mode = #tpu.pipeline_mode<synchronous>, transform_indices = @transform_2, window_bounds = array<i64: 8, 36>}, {pipeline_mode = #tpu.pipeline_mode<synchronous>, transform_indices = @transform_3, window_bounds = array<i64: 8, 144>}, {pipeline_mode = #tpu.pipeline_mode<synchronous>, transform_indices = @transform_4, window_bounds = array<i64: 8, 1>}, {pipeline_mode = #tpu.pipeline_mode<synchronous>, transform_indices = @transform_5, window_bounds = array<i64: 8, 1>}, {transform_indices = @transform_6, window_bounds = array<i64: 1, 8, 128>}]} {
    %c0 = arith.constant 0 : index
    %c12 = arith.constant 12 : index
    %c0_0 = arith.constant 0 : index
    %c0_1 = arith.constant 0 : index
    %0 = vector.load %arg1[%c0, %c12, %c0_0, %c0_1] : memref<1x16x9x9xf32, #tpu.memory_space<vmem>>, vector<1x4x8x8xf32>
    %1 = vector.shape_cast %0 : vector<1x4x8x8xf32> to vector<4x8x8xf32>
    %2 = vector.shape_cast %1 : vector<4x8x8xf32> to vector<4x64xf32>
    %c0_2 = arith.constant 0 : index
    %c0_3 = arith.constant 0 : index
    %3 = vector.load %arg9[%c0_2, %c0_3] : memref<36x64xf32, #tpu.memory_space<vmem>>, vector<4x64xf32>
    tpu.vector_store %arg9[%c0_2, %c0_3], %2 {strides = array<i32>} : memref<36x64xf32, #tpu.memory_space<vmem>>, vector<4x64xf32>,
    %c0_4 = arith.constant 0 : index
    %c8 = arith.constant 8 : index
    %c0_5 = arith.constant 0 : index
    %c1 = arith.constant 1 : index
    %4 = vector.load %arg1[%c0_4, %c8, %c0_5, %c1] : memref<1x16x9x9xf32, #tpu.memory_space<vmem>>, vector<1x4x8x8xf32>
    %5 = vector.shape_cast %4 : vector<1x4x8x8xf32> to vector<4x8x8xf32>
    %6 = vector.shape_cast %5 : vector<4x8x8xf32> to vector<4x64xf32>
    %c4 = arith.constant 4 : index
    %c0_6 = arith.constant 0 : index
    %7 = vector.load %arg9[%c4, %c0_6] : memref<36x64xf32, #tpu.memory_space<vmem>>, vector<4x64xf32>
    tpu.vector_store %arg9[%c4, %c0_6], %6 {strides = array<i32>} : memref<36x64xf32, #tpu.memory_space<vmem>>, vector<4x64xf32>,
    %c0_7 = arith.constant 0 : index
    %c12_8 = arith.constant 12 : index
    %c0_9 = arith.constant 0 : index
    %c1_10 = arith.constant 1 : index
    %8 = vector.load %arg1[%c0_7, %c12_8, %c0_9, %c1_10] : memref<1x16x9x9xf32, #tpu.memory_space<vmem>>, vector<1x4x8x8xf32>
    %9 = vector.shape_cast %8 : vector<1x4x8x8xf32> to vector<4x8x8xf32>
    %10 = vector.shape_cast %9 : vector<4x8x8xf32> to vector<4x64xf32>
    %c8_11 = arith.constant 8 : index
    %c0_12 = arith.constant 0 : index
    %11 = vector.load %arg9[%c8_11, %c0_12] : memref<36x64xf32, #tpu.memory_space<vmem>>, vector<4x64xf32>
    tpu.vector_store %arg9[%c8_11, %c0_12], %10 {strides = array<i32>} : memref<36x64xf32, #tpu.memory_space<vmem>>, vector<4x64xf32>,
    %c0_13 = arith.constant 0 : index
    %c4_14 = arith.constant 4 : index
    %c1_15 = arith.constant 1 : index
    %c0_16 = arith.constant 0 : index
    %12 = vector.load %arg1[%c0_13, %c4_14, %c1_15, %c0_16] : memref<1x16x9x9xf32, #tpu.memory_space<vmem>>, vector<1x4x8x8xf32>
    %13 = vector.shape_cast %12 : vector<1x4x8x8xf32> to vector<4x8x8xf32>
    %14 = vector.shape_cast %13 : vector<4x8x8xf32> to vector<4x64xf32>
    %c12_17 = arith.constant 12 : index
    %c0_18 = arith.constant 0 : index
    %15 = vector.load %arg9[%c12_17, %c0_18] : memref<36x64xf32, #tpu.memory_space<vmem>>, vector<4x64xf32>
    tpu.vector_store %arg9[%c12_17, %c0_18], %14 {strides = array<i32>} : memref<36x64xf32, #tpu.memory_space<vmem>>, vector<4x64xf32>,
    %c0_19 = arith.constant 0 : index
    %c0_20 = arith.constant 0 : index
    %c1_21 = arith.constant 1 : index
    %c1_22 = arith.constant 1 : index
    %16 = vector.load %arg1[%c0_19, %c0_20, %c1_21, %c1_22] : memref<1x16x9x9xf32, #tpu.memory_space<vmem>>, vector<1x4x8x8xf32>
    %17 = vector.shape_cast %16 : vector<1x4x8x8xf32> to vector<4x8x8xf32>
    %18 = vector.shape_cast %17 : vector<4x8x8xf32> to vector<4x64xf32>
    %c16 = arith.constant 16 : index
    %c0_23 = arith.constant 0 : index
    %19 = vector.load %arg9[%c16, %c0_23] : memref<36x64xf32, #tpu.memory_space<vmem>>, vector<4x64xf32>
    tpu.vector_store %arg9[%c16, %c0_23], %18 {strides = array<i32>} : memref<36x64xf32, #tpu.memory_space<vmem>>, vector<4x64xf32>,
    %c0_24 = arith.constant 0 : index
    %c4_25 = arith.constant 4 : index
    %c1_26 = arith.constant 1 : index
    %c1_27 = arith.constant 1 : index
    %20 = vector.load %arg1[%c0_24, %c4_25, %c1_26, %c1_27] : memref<1x16x9x9xf32, #tpu.memory_space<vmem>>, vector<1x4x8x8xf32>
    %21 = vector.shape_cast %20 : vector<1x4x8x8xf32> to vector<4x8x8xf32>
    %22 = vector.shape_cast %21 : vector<4x8x8xf32> to vector<4x64xf32>
    %c20 = arith.constant 20 : index
    %c0_28 = arith.constant 0 : index
    %23 = vector.load %arg9[%c20, %c0_28] : memref<36x64xf32, #tpu.memory_space<vmem>>, vector<4x64xf32>
    tpu.vector_store %arg9[%c20, %c0_28], %22 {strides = array<i32>} : memref<36x64xf32, #tpu.memory_space<vmem>>, vector<4x64xf32>,
    %c0_29 = arith.constant 0 : index
    %c12_30 = arith.constant 12 : index
    %c1_31 = arith.constant 1 : index
    %c0_32 = arith.constant 0 : index
    %24 = vector.load %arg1[%c0_29, %c12_30, %c1_31, %c0_32] : memref<1x16x9x9xf32, #tpu.memory_space<vmem>>, vector<1x4x8x8xf32>
    %25 = vector.shape_cast %24 : vector<1x4x8x8xf32> to vector<4x8x8xf32>
    %26 = vector.shape_cast %25 : vector<4x8x8xf32> to vector<4x64xf32>
    %c24 = arith.constant 24 : index
    %c0_33 = arith.constant 0 : index
    %27 = vector.load %arg9[%c24, %c0_33] : memref<36x64xf32, #tpu.memory_space<vmem>>, vector<4x64xf32>
    tpu.vector_store %arg9[%c24, %c0_33], %26 {strides = array<i32>} : memref<36x64xf32, #tpu.memory_space<vmem>>, vector<4x64xf32>,
    %c0_34 = arith.constant 0 : index
    %c8_35 = arith.constant 8 : index
    %c1_36 = arith.constant 1 : index
    %c1_37 = arith.constant 1 : index
    %28 = vector.load %arg1[%c0_34, %c8_35, %c1_36, %c1_37] : memref<1x16x9x9xf32, #tpu.memory_space<vmem>>, vector<1x4x8x8xf32>
    %29 = vector.shape_cast %28 : vector<1x4x8x8xf32> to vector<4x8x8xf32>
    %30 = vector.shape_cast %29 : vector<4x8x8xf32> to vector<4x64xf32>
    %c28 = arith.constant 28 : index
    %c0_38 = arith.constant 0 : index
    %31 = vector.load %arg9[%c28, %c0_38] : memref<36x64xf32, #tpu.memory_space<vmem>>, vector<4x64xf32>
    tpu.vector_store %arg9[%c28, %c0_38], %30 {strides = array<i32>} : memref<36x64xf32, #tpu.memory_space<vmem>>, vector<4x64xf32>,
    %c0_39 = arith.constant 0 : index
    %c12_40 = arith.constant 12 : index
    %c1_41 = arith.constant 1 : index
    %c1_42 = arith.constant 1 : index
    %32 = vector.load %arg1[%c0_39, %c12_40, %c1_41, %c1_42] : memref<1x16x9x9xf32, #tpu.memory_space<vmem>>, vector<1x4x8x8xf32>
    %33 = vector.shape_cast %32 : vector<1x4x8x8xf32> to vector<4x8x8xf32>
    %34 = vector.shape_cast %33 : vector<4x8x8xf32> to vector<4x64xf32>
    %c32 = arith.constant 32 : index
    %c0_43 = arith.constant 0 : index
    %35 = vector.load %arg9[%c32, %c0_43] : memref<36x64xf32, #tpu.memory_space<vmem>>, vector<4x64xf32>
    tpu.vector_store %arg9[%c32, %c0_43], %34 {strides = array<i32>} : memref<36x64xf32, #tpu.memory_space<vmem>>, vector<4x64xf32>,
    %c0_44 = arith.constant 0 : index
    %c0_45 = arith.constant 0 : index
    %36 = vector.load %arg3[%c0_44, %c0_45] : memref<8x36xf32, #tpu.memory_space<vmem>>, vector<8x36xf32>
    %c0_46 = arith.constant 0 : index
    %c0_47 = arith.constant 0 : index
    %37 = vector.load %arg9[%c0_46, %c0_47] : memref<36x64xf32, #tpu.memory_space<vmem>>, vector<36x64xf32>
    %cst = arith.constant dense<0.000000e+00> : vector<8x64xf32>
    %38 = tpu.matmul %36, %37, %cst {dimension_numbers = #tpu.dot_dimension_numbers<[1], [0], [0], [1], [0, 0, 1, 1], [], []>, precision = #tpu.contract_precision<fp32>} : vector<8x36xf32>, vector<36x64xf32>, vector<8x64xf32> -> vector<8x64xf32>
    %c0_48 = arith.constant 0 : index
    %c0_49 = arith.constant 0 : index
    %39 = vector.load %arg5[%c0_48, %c0_49] : memref<8x1xf32, #tpu.memory_space<vmem>>, vector<8x1xf32>
    %40 = vector.broadcast %39 : vector<8x1xf32> to vector<8x64xf32>
    %41 = arith.addf %38, %40 : vector<8x64xf32>
    %cst_50 = arith.constant 0.000000e+00 : f32
    %42 = vector.broadcast %cst_50 : f32 to vector<8x64xf32>
    %43 = arith.maximumf %41, %42 : vector<8x64xf32>
    %cst_51 = arith.constant 0.000000e+00 : f32
    %44 = vector.broadcast %cst_51 : f32 to vector<8x18x1xf32>
    %c0_52 = arith.constant 0 : index
    %c0_53 = arith.constant 0 : index
    %c0_54 = arith.constant 0 : index
    %45 = vector.load %arg8[%c0_52, %c0_53, %c0_54] : memref<8x18x10xf32, #tpu.memory_space<vmem>>, vector<8x18x1xf32>
    tpu.vector_store %arg8[%c0_52, %c0_53, %c0_54], %44 {strides = array<i32>} : memref<8x18x10xf32, #tpu.memory_space<vmem>>, vector<8x18x1xf32>,
    %c0_55 = arith.constant 0 : index
    %c0_56 = arith.constant 0 : index
    %c9 = arith.constant 9 : index
    %46 = vector.load %arg8[%c0_55, %c0_56, %c9] : memref<8x18x10xf32, #tpu.memory_space<vmem>>, vector<8x18x1xf32>
    tpu.vector_store %arg8[%c0_55, %c0_56, %c9], %44 {strides = array<i32>} : memref<8x18x10xf32, #tpu.memory_space<vmem>>, vector<8x18x1xf32>,
    %cst_57 = arith.constant 0.000000e+00 : f32
    %47 = vector.broadcast %cst_57 : f32 to vector<8x1x10xf32>
    %c0_58 = arith.constant 0 : index
    %c0_59 = arith.constant 0 : index
    %c0_60 = arith.constant 0 : index
    %48 = vector.load %arg8[%c0_58, %c0_59, %c0_60] : memref<8x18x10xf32, #tpu.memory_space<vmem>>, vector<8x1x10xf32>
    tpu.vector_store %arg8[%c0_58, %c0_59, %c0_60], %47 {strides = array<i32>} : memref<8x18x10xf32, #tpu.memory_space<vmem>>, vector<8x1x10xf32>,
    %cst_61 = arith.constant 0.000000e+00 : f32
    %49 = vector.broadcast %cst_61 : f32 to vector<8x9x10xf32>
    %c0_62 = arith.constant 0 : index
    %c9_63 = arith.constant 9 : index
    %c0_64 = arith.constant 0 : index
    %50 = vector.load %arg8[%c0_62, %c9_63, %c0_64] : memref<8x18x10xf32, #tpu.memory_space<vmem>>, vector<8x9x10xf32>
    tpu.vector_store %arg8[%c0_62, %c9_63, %c0_64], %49 {strides = array<i32>} : memref<8x18x10xf32, #tpu.memory_space<vmem>>, vector<8x9x10xf32>,
    %51 = vector.shape_cast %43 : vector<8x64xf32> to vector<8x8x8xf32>
    %c0_65 = arith.constant 0 : index
    %c1_66 = arith.constant 1 : index
    %c1_67 = arith.constant 1 : index
    %52 = vector.load %arg8[%c0_65, %c1_66, %c1_67] : memref<8x18x10xf32, #tpu.memory_space<vmem>>, vector<8x8x8xf32>
    tpu.vector_store %arg8[%c0_65, %c1_66, %c1_67], %51 {strides = array<i32>} : memref<8x18x10xf32, #tpu.memory_space<vmem>>, vector<8x8x8xf32>,
    %c0_68 = arith.constant 0 : index
    %c0_69 = arith.constant 0 : index
    %c0_70 = arith.constant 0 : index
    %53 = vector.load %arg8[%c0_68, %c0_69, %c0_70] : memref<8x18x10xf32, #tpu.memory_space<vmem>>, vector<8x16x8xf32>
    %54 = vector.shape_cast %53 : vector<8x16x8xf32> to vector<8x128xf32>
    %c0_71 = arith.constant 0 : index
    %c0_72 = arith.constant 0 : index
    %55 = vector.load %arg10[%c0_71, %c0_72] : memref<144x128xf32, #tpu.memory_space<vmem>>, vector<8x128xf32>
    tpu.vector_store %arg10[%c0_71, %c0_72], %54 {strides = array<i32>} : memref<144x128xf32, #tpu.memory_space<vmem>>, vector<8x128xf32>,
    %c0_73 = arith.constant 0 : index
    %c0_74 = arith.constant 0 : index
    %c0_75 = arith.constant 0 : index
    %c0_76 = arith.constant 0 : index
    %56 = vector.load %arg2[%c0_73, %c0_74, %c0_75, %c0_76] : memref<1x8x18x10xf32, #tpu.memory_space<vmem>>, vector<1x8x16x8xf32>
    %57 = vector.shape_cast %56 : vector<1x8x16x8xf32> to vector<8x16x8xf32>
    %58 = vector.shape_cast %57 : vector<8x16x8xf32> to vector<8x128xf32>
    %c72 = arith.constant 72 : index
    %c0_77 = arith.constant 0 : index
    %59 = vector.load %arg10[%c72, %c0_77] : memref<144x128xf32, #tpu.memory_space<vmem>>, vector<8x128xf32>
    tpu.vector_store %arg10[%c72, %c0_77], %58 {strides = array<i32>} : memref<144x128xf32, #tpu.memory_space<vmem>>, vector<8x128xf32>,
    %c0_78 = arith.constant 0 : index
    %c0_79 = arith.constant 0 : index
    %c1_80 = arith.constant 1 : index
    %60 = vector.load %arg8[%c0_78, %c0_79, %c1_80] : memref<8x18x10xf32, #tpu.memory_space<vmem>>, vector<8x16x8xf32>
    %61 = vector.shape_cast %60 : vector<8x16x8xf32> to vector<8x128xf32>
    %c8_81 = arith.constant 8 : index
    %c0_82 = arith.constant 0 : index
    %62 = vector.load %arg10[%c8_81, %c0_82] : memref<144x128xf32, #tpu.memory_space<vmem>>, vector<8x128xf32>
    tpu.vector_store %arg10[%c8_81, %c0_82], %61 {strides = array<i32>} : memref<144x128xf32, #tpu.memory_space<vmem>>, vector<8x128xf32>,
    %c0_83 = arith.constant 0 : index
    %c0_84 = arith.constant 0 : index
    %c0_85 = arith.constant 0 : index
    %c1_86 = arith.constant 1 : index
    %63 = vector.load %arg2[%c0_83, %c0_84, %c0_85, %c1_86] : memref<1x8x18x10xf32, #tpu.memory_space<vmem>>, vector<1x8x16x8xf32>
    %64 = vector.shape_cast %63 : vector<1x8x16x8xf32> to vector<8x16x8xf32>
    %65 = vector.shape_cast %64 : vector<8x16x8xf32> to vector<8x128xf32>
    %c80 = arith.constant 80 : index
    %c0_87 = arith.constant 0 : index
    %66 = vector.load %arg10[%c80, %c0_87] : memref<144x128xf32, #tpu.memory_space<vmem>>, vector<8x128xf32>
    tpu.vector_store %arg10[%c80, %c0_87], %65 {strides = array<i32>} : memref<144x128xf32, #tpu.memory_space<vmem>>, vector<8x128xf32>,
    %c0_88 = arith.constant 0 : index
    %c0_89 = arith.constant 0 : index
    %c2 = arith.constant 2 : index
    %67 = vector.load %arg8[%c0_88, %c0_89, %c2] : memref<8x18x10xf32, #tpu.memory_space<vmem>>, vector<8x16x8xf32>
    %68 = vector.shape_cast %67 : vector<8x16x8xf32> to vector<8x128xf32>
    %c16_90 = arith.constant 16 : index
    %c0_91 = arith.constant 0 : index
    %69 = vector.load %arg10[%c16_90, %c0_91] : memref<144x128xf32, #tpu.memory_space<vmem>>, vector<8x128xf32>
    tpu.vector_store %arg10[%c16_90, %c0_91], %68 {strides = array<i32>} : memref<144x128xf32, #tpu.memory_space<vmem>>, vector<8x128xf32>,
    %c0_92 = arith.constant 0 : index
    %c0_93 = arith.constant 0 : index
    %c0_94 = arith.constant 0 : index
    %c2_95 = arith.constant 2 : index
    %70 = vector.load %arg2[%c0_92, %c0_93, %c0_94, %c2_95] : memref<1x8x18x10xf32, #tpu.memory_space<vmem>>, vector<1x8x16x8xf32>
    %71 = vector.shape_cast %70 : vector<1x8x16x8xf32> to vector<8x16x8xf32>
    %72 = vector.shape_cast %71 : vector<8x16x8xf32> to vector<8x128xf32>
    %c88 = arith.constant 88 : index
    %c0_96 = arith.constant 0 : index
    %73 = vector.load %arg10[%c88, %c0_96] : memref<144x128xf32, #tpu.memory_space<vmem>>, vector<8x128xf32>
    tpu.vector_store %arg10[%c88, %c0_96], %72 {strides = array<i32>} : memref<144x128xf32, #tpu.memory_space<vmem>>, vector<8x128xf32>,
    %c0_97 = arith.constant 0 : index
    %c1_98 = arith.constant 1 : index
    %c0_99 = arith.constant 0 : index
    %74 = vector.load %arg8[%c0_97, %c1_98, %c0_99] : memref<8x18x10xf32, #tpu.memory_space<vmem>>, vector<8x16x8xf32>
    %75 = vector.shape_cast %74 : vector<8x16x8xf32> to vector<8x128xf32>
    %c24_100 = arith.constant 24 : index
    %c0_101 = arith.constant 0 : index
    %76 = vector.load %arg10[%c24_100, %c0_101] : memref<144x128xf32, #tpu.memory_space<vmem>>, vector<8x128xf32>
    tpu.vector_store %arg10[%c24_100, %c0_101], %75 {strides = array<i32>} : memref<144x128xf32, #tpu.memory_space<vmem>>, vector<8x128xf32>,
    %c0_102 = arith.constant 0 : index
    %c0_103 = arith.constant 0 : index
    %c1_104 = arith.constant 1 : index
    %c0_105 = arith.constant 0 : index
    %77 = vector.load %arg2[%c0_102, %c0_103, %c1_104, %c0_105] : memref<1x8x18x10xf32, #tpu.memory_space<vmem>>, vector<1x8x16x8xf32>
    %78 = vector.shape_cast %77 : vector<1x8x16x8xf32> to vector<8x16x8xf32>
    %79 = vector.shape_cast %78 : vector<8x16x8xf32> to vector<8x128xf32>
    %c96 = arith.constant 96 : index
    %c0_106 = arith.constant 0 : index
    %80 = vector.load %arg10[%c96, %c0_106] : memref<144x128xf32, #tpu.memory_space<vmem>>, vector<8x128xf32>
    tpu.vector_store %arg10[%c96, %c0_106], %79 {strides = array<i32>} : memref<144x128xf32, #tpu.memory_space<vmem>>, vector<8x128xf32>,
    %c0_107 = arith.constant 0 : index
    %c1_108 = arith.constant 1 : index
    %c1_109 = arith.constant 1 : index
    %81 = vector.load %arg8[%c0_107, %c1_108, %c1_109] : memref<8x18x10xf32, #tpu.memory_space<vmem>>, vector<8x16x8xf32>
    %82 = vector.shape_cast %81 : vector<8x16x8xf32> to vector<8x128xf32>
    %c32_110 = arith.constant 32 : index
    %c0_111 = arith.constant 0 : index
    %83 = vector.load %arg10[%c32_110, %c0_111] : memref<144x128xf32, #tpu.memory_space<vmem>>, vector<8x128xf32>
    tpu.vector_store %arg10[%c32_110, %c0_111], %82 {strides = array<i32>} : memref<144x128xf32, #tpu.memory_space<vmem>>, vector<8x128xf32>,
    %c0_112 = arith.constant 0 : index
    %c0_113 = arith.constant 0 : index
    %c1_114 = arith.constant 1 : index
    %c1_115 = arith.constant 1 : index
    %84 = vector.load %arg2[%c0_112, %c0_113, %c1_114, %c1_115] : memref<1x8x18x10xf32, #tpu.memory_space<vmem>>, vector<1x8x16x8xf32>
    %85 = vector.shape_cast %84 : vector<1x8x16x8xf32> to vector<8x16x8xf32>
    %86 = vector.shape_cast %85 : vector<8x16x8xf32> to vector<8x128xf32>
    %c104 = arith.constant 104 : index
    %c0_116 = arith.constant 0 : index
    %87 = vector.load %arg10[%c104, %c0_116] : memref<144x128xf32, #tpu.memory_space<vmem>>, vector<8x128xf32>
    tpu.vector_store %arg10[%c104, %c0_116], %86 {strides = array<i32>} : memref<144x128xf32, #tpu.memory_space<vmem>>, vector<8x128xf32>,
    %c0_117 = arith.constant 0 : index
    %c1_118 = arith.constant 1 : index
    %c2_119 = arith.constant 2 : index
    %88 = vector.load %arg8[%c0_117, %c1_118, %c2_119] : memref<8x18x10xf32, #tpu.memory_space<vmem>>, vector<8x16x8xf32>
    %89 = vector.shape_cast %88 : vector<8x16x8xf32> to vector<8x128xf32>
    %c40 = arith.constant 40 : index
    %c0_120 = arith.constant 0 : index
    %90 = vector.load %arg10[%c40, %c0_120] : memref<144x128xf32, #tpu.memory_space<vmem>>, vector<8x128xf32>
    tpu.vector_store %arg10[%c40, %c0_120], %89 {strides = array<i32>} : memref<144x128xf32, #tpu.memory_space<vmem>>, vector<8x128xf32>,
    %c0_121 = arith.constant 0 : index
    %c0_122 = arith.constant 0 : index
    %c1_123 = arith.constant 1 : index
    %c2_124 = arith.constant 2 : index
    %91 = vector.load %arg2[%c0_121, %c0_122, %c1_123, %c2_124] : memref<1x8x18x10xf32, #tpu.memory_space<vmem>>, vector<1x8x16x8xf32>
    %92 = vector.shape_cast %91 : vector<1x8x16x8xf32> to vector<8x16x8xf32>
    %93 = vector.shape_cast %92 : vector<8x16x8xf32> to vector<8x128xf32>
    %c112 = arith.constant 112 : index
    %c0_125 = arith.constant 0 : index
    %94 = vector.load %arg10[%c112, %c0_125] : memref<144x128xf32, #tpu.memory_space<vmem>>, vector<8x128xf32>
    tpu.vector_store %arg10[%c112, %c0_125], %93 {strides = array<i32>} : memref<144x128xf32, #tpu.memory_space<vmem>>, vector<8x128xf32>,
    %c0_126 = arith.constant 0 : index
    %c2_127 = arith.constant 2 : index
    %c0_128 = arith.constant 0 : index
    %95 = vector.load %arg8[%c0_126, %c2_127, %c0_128] : memref<8x18x10xf32, #tpu.memory_space<vmem>>, vector<8x16x8xf32>
    %96 = vector.shape_cast %95 : vector<8x16x8xf32> to vector<8x128xf32>
    %c48 = arith.constant 48 : index
    %c0_129 = arith.constant 0 : index
    %97 = vector.load %arg10[%c48, %c0_129] : memref<144x128xf32, #tpu.memory_space<vmem>>, vector<8x128xf32>
    tpu.vector_store %arg10[%c48, %c0_129], %96 {strides = array<i32>} : memref<144x128xf32, #tpu.memory_space<vmem>>, vector<8x128xf32>,
    %c0_130 = arith.constant 0 : index
    %c0_131 = arith.constant 0 : index
    %c2_132 = arith.constant 2 : index
    %c0_133 = arith.constant 0 : index
    %98 = vector.load %arg2[%c0_130, %c0_131, %c2_132, %c0_133] : memref<1x8x18x10xf32, #tpu.memory_space<vmem>>, vector<1x8x16x8xf32>
    %99 = vector.shape_cast %98 : vector<1x8x16x8xf32> to vector<8x16x8xf32>
    %100 = vector.shape_cast %99 : vector<8x16x8xf32> to vector<8x128xf32>
    %c120 = arith.constant 120 : index
    %c0_134 = arith.constant 0 : index
    %101 = vector.load %arg10[%c120, %c0_134] : memref<144x128xf32, #tpu.memory_space<vmem>>, vector<8x128xf32>
    tpu.vector_store %arg10[%c120, %c0_134], %100 {strides = array<i32>} : memref<144x128xf32, #tpu.memory_space<vmem>>, vector<8x128xf32>,
    %c0_135 = arith.constant 0 : index
    %c2_136 = arith.constant 2 : index
    %c1_137 = arith.constant 1 : index
    %102 = vector.load %arg8[%c0_135, %c2_136, %c1_137] : memref<8x18x10xf32, #tpu.memory_space<vmem>>, vector<8x16x8xf32>
    %103 = vector.shape_cast %102 : vector<8x16x8xf32> to vector<8x128xf32>
    %c56 = arith.constant 56 : index
    %c0_138 = arith.constant 0 : index
    %104 = vector.load %arg10[%c56, %c0_138] : memref<144x128xf32, #tpu.memory_space<vmem>>, vector<8x128xf32>
    tpu.vector_store %arg10[%c56, %c0_138], %103 {strides = array<i32>} : memref<144x128xf32, #tpu.memory_space<vmem>>, vector<8x128xf32>,
    %c0_139 = arith.constant 0 : index
    %c0_140 = arith.constant 0 : index
    %c2_141 = arith.constant 2 : index
    %c1_142 = arith.constant 1 : index
    %105 = vector.load %arg2[%c0_139, %c0_140, %c2_141, %c1_142] : memref<1x8x18x10xf32, #tpu.memory_space<vmem>>, vector<1x8x16x8xf32>
    %106 = vector.shape_cast %105 : vector<1x8x16x8xf32> to vector<8x16x8xf32>
    %107 = vector.shape_cast %106 : vector<8x16x8xf32> to vector<8x128xf32>
    %c128 = arith.constant 128 : index
    %c0_143 = arith.constant 0 : index
    %108 = vector.load %arg10[%c128, %c0_143] : memref<144x128xf32, #tpu.memory_space<vmem>>, vector<8x128xf32>
    tpu.vector_store %arg10[%c128, %c0_143], %107 {strides = array<i32>} : memref<144x128xf32, #tpu.memory_space<vmem>>, vector<8x128xf32>,
    %c0_144 = arith.constant 0 : index
    %c2_145 = arith.constant 2 : index
    %c2_146 = arith.constant 2 : index
    %109 = vector.load %arg8[%c0_144, %c2_145, %c2_146] : memref<8x18x10xf32, #tpu.memory_space<vmem>>, vector<8x16x8xf32>
    %110 = vector.shape_cast %109 : vector<8x16x8xf32> to vector<8x128xf32>
    %c64 = arith.constant 64 : index
    %c0_147 = arith.constant 0 : index
    %111 = vector.load %arg10[%c64, %c0_147] : memref<144x128xf32, #tpu.memory_space<vmem>>, vector<8x128xf32>
    tpu.vector_store %arg10[%c64, %c0_147], %110 {strides = array<i32>} : memref<144x128xf32, #tpu.memory_space<vmem>>, vector<8x128xf32>,
    %c0_148 = arith.constant 0 : index
    %c0_149 = arith.constant 0 : index
    %c2_150 = arith.constant 2 : index
    %c2_151 = arith.constant 2 : index
    %112 = vector.load %arg2[%c0_148, %c0_149, %c2_150, %c2_151] : memref<1x8x18x10xf32, #tpu.memory_space<vmem>>, vector<1x8x16x8xf32>
    %113 = vector.shape_cast %112 : vector<1x8x16x8xf32> to vector<8x16x8xf32>
    %114 = vector.shape_cast %113 : vector<8x16x8xf32> to vector<8x128xf32>
    %c136 = arith.constant 136 : index
    %c0_152 = arith.constant 0 : index
    %115 = vector.load %arg10[%c136, %c0_152] : memref<144x128xf32, #tpu.memory_space<vmem>>, vector<8x128xf32>
    tpu.vector_store %arg10[%c136, %c0_152], %114 {strides = array<i32>} : memref<144x128xf32, #tpu.memory_space<vmem>>, vector<8x128xf32>,
    %c0_153 = arith.constant 0 : index
    %c0_154 = arith.constant 0 : index
    %116 = vector.load %arg4[%c0_153, %c0_154] : memref<8x144xf32, #tpu.memory_space<vmem>>, vector<8x144xf32>
    %c0_155 = arith.constant 0 : index
    %c0_156 = arith.constant 0 : index
    %117 = vector.load %arg10[%c0_155, %c0_156] : memref<144x128xf32, #tpu.memory_space<vmem>>, vector<144x128xf32>
    %cst_157 = arith.constant dense<0.000000e+00> : vector<8x128xf32>
    %118 = tpu.matmul %116, %117, %cst_157 {dimension_numbers = #tpu.dot_dimension_numbers<[1], [0], [0], [1], [0, 0, 1, 1], [], []>, precision = #tpu.contract_precision<fp32>} : vector<8x144xf32>, vector<144x128xf32>, vector<8x128xf32> -> vector<8x128xf32>
    %c0_158 = arith.constant 0 : index
    %c0_159 = arith.constant 0 : index
    %119 = vector.load %arg6[%c0_158, %c0_159] : memref<8x1xf32, #tpu.memory_space<vmem>>, vector<8x1xf32>
    %120 = vector.broadcast %119 : vector<8x1xf32> to vector<8x128xf32>
    %121 = arith.addf %118, %120 : vector<8x128xf32>
    %cst_160 = arith.constant 0.000000e+00 : f32
    %122 = vector.broadcast %cst_160 : f32 to vector<8x128xf32>
    %123 = arith.maximumf %121, %122 : vector<8x128xf32>
    %c0_161 = arith.constant 0 : index
    %c0_162 = arith.constant 0 : index
    %c0_163 = arith.constant 0 : index
    %124 = vector.load %arg7[%c0_161, %c0_162, %c0_163] : memref<1x8x128xf32, #tpu.memory_space<vmem>>, vector<1x8x128xf32>
    %125 = vector.shape_cast %124 : vector<1x8x128xf32> to vector<8x128xf32>
    %126 = vector.shape_cast %123 : vector<8x128xf32> to vector<1x8x128xf32>
    tpu.vector_store %arg7[%c0_161, %c0_162, %c0_163], %126 {strides = array<i32>} : memref<1x8x128xf32, #tpu.memory_space<vmem>>, vector<1x8x128xf32>,
    return
  }
  func.func @transform_0(%arg0: i32) -> (i32, i32, i32, i32) {
    %c0_i32 = arith.constant 0 : i32
    %c0_i32_0 = arith.constant 0 : i32
    %c0_i32_1 = arith.constant 0 : i32
    %c0_i32_2 = arith.constant 0 : i32
    return %arg0, %c0_i32, %c0_i32_0, %c0_i32_1 : i32, i32, i32, i32
  }
  func.func @transform_1(%arg0: i32) -> (i32, i32, i32, i32) {
    %c0_i32 = arith.constant 0 : i32
    %c0_i32_0 = arith.constant 0 : i32
    %c0_i32_1 = arith.constant 0 : i32
    %c0_i32_2 = arith.constant 0 : i32
    return %arg0, %c0_i32, %c0_i32_0, %c0_i32_1 : i32, i32, i32, i32
  }
  func.func @transform_2(%arg0: i32) -> (i32, i32) {
    %c0_i32 = arith.constant 0 : i32
    %c0_i32_0 = arith.constant 0 : i32
    %c0_i32_1 = arith.constant 0 : i32
    return %c0_i32, %c0_i32_0 : i32, i32
  }
  func.func @transform_3(%arg0: i32) -> (i32, i32) {
    %c0_i32 = arith.constant 0 : i32
    %c0_i32_0 = arith.constant 0 : i32
    %c0_i32_1 = arith.constant 0 : i32
    return %c0_i32, %c0_i32_0 : i32, i32
  }
  func.func @transform_4(%arg0: i32) -> (i32, i32) {
    %c0_i32 = arith.constant 0 : i32
    %c0_i32_0 = arith.constant 0 : i32
    %c0_i32_1 = arith.constant 0 : i32
    return %c0_i32, %c0_i32_0 : i32, i32
  }
  func.func @transform_5(%arg0: i32) -> (i32, i32) {
    %c0_i32 = arith.constant 0 : i32
    %c0_i32_0 = arith.constant 0 : i32
    %c0_i32_1 = arith.constant 0 : i32
    return %c0_i32, %c0_i32_0 : i32, i32
  }
  func.func @transform_6(%arg0: i32) -> (i32, i32, i32) {
    %c0_i32 = arith.constant 0 : i32
    %c0_i32_0 = arith.constant 0 : i32
    %c0_i32_1 = arith.constant 0 : i32
    return %arg0, %c0_i32, %c0_i32_0 : i32, i32, i32
  }
}

</mosaic_0001>

<bundles_post_ra>
// kernel: conv2x_now_forward.1
= control target key start
LH: loop header
LB: loop body
LE: loop exit
PB: predicated region body
PF: predicated region fallthrough
CT: control target
= control target key end

     0   :  { %s8928_s21 = smov 0   ;;  %s14080_s0 = inlined_call_operand.vmem [shape: f32[2,16,9,9], index: 0, kind: input, shape index: {}]   ;;  %s14081_s1 = inlined_call_operand.vmem [shape: f32[2,8,18,10], index: 1, kind: input, shape index: {}]   ;;  %s14082_s2 = inlined_call_operand.vmem [shape: f32[8,36], index: 2, kind: input, shape index: {}]   ;;  %s14083_s3 = inlined_call_operand.vmem [shape: f32[8,144], index: 3, kind: input, shape index: {}]   ;;  %s14084_s4 = inlined_call_operand.vmem [shape: f32[8,1], index: 4, kind: input, shape index: {}]   ;;  %s14085_s5 = inlined_call_operand.vmem [shape: f32[8,1], index: 5, kind: input, shape index: {}]   ;;  %s14086_s6 = inlined_call_operand.vmem [shape: f32[2,8,128], index: 6, kind: output, shape index: {}]  }
   0x1 LB: > { %s8774_s22 = sadd.s32 4294967295, %s8869_s21   ;;  %p8778_p0 = scmp.ge.s32.totalorder %s8869_s21, 1  ;;  %s8869_s21 = sphi %s8928_s21, %s16_s21  }
   0x2   : > { %p222_p1 = scmp.lt.s32.totalorder %s8869_s21, 3 }
   0x4   : > { %p223_p2 = pnand %p8778_p0, %p222_p1 }
   0x6   : > { %226 = sbr.rel (%p223_p2) target bundleno = 3107 (0xc23), region = 44 }
   0xb   : > { %p256_p3 = scmp.lt.s32.totalorder %s8774_s22, 1  ;;  %v8871_v0 = vmov 1983009808   ;;  %vm276_vm0 = vcmask 1047556   ;;  %s8872_s27 = smov 127   ;;  %vm360_vm1 = vcmask 64512  }
   0xc   : > { %v281_v1 = vunpack.c.l.s4 %v8871_v0  ;;  %v8873_v10 = vmov 1934713408   ;;  %s8874_s28 = smov 32   ;;  %s8875_s29 = smov 48   ;;  %vm362_vm2 = vcmask 130048   ;;  %vm364_vm3 = vcmask 195584  }
   0xd   : > { %s14454_s22 = smov (!%p256_p3, %s8774_s22), 1  ;;  %v305_v11 = vunpack.c.l.s4 %v8873_v10  ;;  %s8876_s30 = smov 16   ;;  %vm366_vm4 = vcmask 261120   ;;  %vm368_vm5 = vcmask 326656   ;;  %vm370_vm6 = vcmask 392192  }
   0xe   : > { %s8817_s23 = sshll.u32 %s14454_s22, 8  ;;  %v8951_v5 = vunpack.c.0.s8 %v281_v1  ;;  %s8877_s7 = smov 24   ;;  %vm372_vm7 = vcmask 457728   ;;  %vm374_vm8 = vcmask 519168   ;;  %vm1254_vm9 = vcmask 293888  }
   0xf   : > { %s8942_s26 = scalar_lea.vmem %s14080_s0, %s8817_s23  ;;  %v8976_v21 = vunpack.c.0.s8 %v305_v11  ;;  %s8878_s8 = smov 40   ;;  %vm1258_vm10 = vcmask 1043456   ;;  %vm1461_vm11 = vcmask 7168   ;;  %vm1464_vm12 = vcmask 1024  }
  0x10   : > { %v8787_v2 = vld [vmem:[%s8942_s26 + $0x80] sm:$0xff]  ;;  %v8949_v4 = vld [vmem:[%s8942_s26 + $0xd0] sm:$0xff]  ;;  %s8879_s9 = smov 8   ;;  %s8880_s10 = smov 56   ;;  %vm1487_vm13 = vcmask 80968   ;;  %vm1490_vm14 = vcmask 74824  }
  0x11   : > { %v8946_v3 = vld [vmem:[%s8942_s26 + $0xc0] sm:$0xff]  ;;  %385 = vrot.lane.b32.xlu1 %v8787_v2, %s8872_s27  ;;  %v8958_v7 = vld [vmem:[%s8942_s26 + $0xf0] sm:$0xff]  ;;  %v290_v9 = vrot.slane %v8949_v4, 4  ;;  %s8818_s11 = smul.u32 192, %s14454_s22  ;;  %s8882_s17 = smov 72   ;;  %vm1522_vm15 = vcmask 80896  }
  0x12   : > { %v8955_v6 = vld [vmem:[%s8942_s26 + $0xe0] sm:$0xff]  ;;  %v278_v8 = vrot.slane %v8946_v3, 4  ;;  %v288_v13 = vrot.slane %v8958_v7, 4  ;;  %v8788_v14 = vld [vmem:[%s8942_s26 + $0x90] sm:$0xff]  ;;  %s8883_s18 = smov 64   ;;  %s8884_s19 = smov 96  }
  0x13   : > { %v275_v12 = vrot.slane %v8955_v6, 4  ;;  %v291_v16 = vsel %vm276_vm0, %v8958_v7, %v290_v9  ;;  %387 = vrot.lane.b32.xlu2 %v8788_v14, %s8872_s27  ;;  %v8995_v39 = vld [vmem:[%s8942_s26 + $0x61] sm:$0xff]  ;;  %v9005_v45 = vld [vmem:[%s8942_s26 + $0x71] sm:$0xff]  ;;  %s9414_s14 = scalar_lea.vmem %s14081_s1, %s8818_s11  ;;  %s8885_s20 = smov 88  }
  0x14   : > { %v279_v15 = vsel %vm276_vm0, %v8955_v6, %v278_v8  ;;  %v299_v18 = vperm.slane %v291_v16, %v8951_v5  ;;  %v289_v20 = vsel %vm276_vm0, %v288_v13, %v8949_v4  ;;  %v606_v42 = vrot.slane %v8995_v39, 4  ;;  %v9002_v44 = vld [vmem:[%s8942_s26 + $0x41] sm:$0xff]  ;;  %v8796_v48 = vld [vmem:[%s8942_s26 + $0x51] sm:$0xff]  ;;  %s8886_s23 = smov 80   ;;  %s8887_s24 = smov 120  }
  0x15   : > { %v287_v17 = vperm.slane %v279_v15, %v8951_v5  ;;  %v277_v19 = vsel %vm276_vm0, %v275_v12, %v8946_v3  ;;  %v295_v23 = vperm.slane %v289_v20, %v8951_v5  ;;  %v618_v47 = vrot.slane %v9005_v45, 4  ;;  %v8790_v52 = vld [vmem:[%s8942_s26 + $0xb0] sm:$0xff]  ;;  %v8789_v60 = vld [vmem:[%s8942_s26 + $0xa0] sm:$0xff]  ;;  %s8888_s25 = smov 112   ;;  %s8890_s13 = smov 126  }
  0x16   : > { %v283_v22 = vperm.slane %v277_v19, %v8951_v5  ;;  %v312_v24 = vrot.slane %v299_v18, 4  ;;  %v607_v46 = vsel %vm276_vm0, %v606_v42, %v9002_v44  ;;  %v620_v57 = vrot.slane %v8796_v48, 4  ;;  %v700_v20 = vld [vmem:[%s8942_s26 + $0x21] sm:$0xff]  ;;  %s8892_s15 = smov 1  }
  0x17   : > { %v314_v25 = vrot.slane %v287_v17, 4  ;;  %v300_v26 = vrot.slane %v295_v23, 4  ;;  %v613_v50 = vperm.slane %v607_v46, %v8951_v5  ;;  %v619_v51 = vsel %vm276_vm0, %v618_v47, %v8796_v48 }
  0x18   : > { %v302_v27 = vrot.slane %v283_v22, 4  ;;  %v313_v28 = vsel %vm276_vm0, %v312_v24, %v287_v17  ;;  %v625_v54 = vperm.slane %v619_v51, %v8951_v5  ;;  %v608_v58 = vrot.slane %v9002_v44, 4 }
  0x19   : > { %v315_v29 = vsel %vm276_vm0, %v299_v18, %v314_v25  ;;  %v319_v30 = vperm.slane %v313_v28, %v8976_v21  ;;  %v301_v32 = vsel %vm276_vm0, %v300_v26, %v283_v22  ;;  %v632_v55 = vrot.slane %v613_v50, 4  ;;  %v699_v18 = vld [vmem:[%s8942_s26 + $0x11] sm:$0xff] }
  0x1a   : > { %v303_v31 = vsel %vm276_vm0, %v295_v23, %v302_v27  ;;  %v323_v33 = vperm.slane %v315_v29, %v8976_v21  ;;  %v8988_v35 = vperm.slane %v301_v32, %v8976_v21  ;;  %v621_v61 = vsel %vm276_vm0, %v9005_v45, %v620_v57  ;;  %v701_v23 = vld [vmem:[%s8942_s26 + $0x31] sm:$0xff] }
  0x1b   : > { %v311_v34 = vperm.slane %v303_v31, %v8976_v21  ;;  %345 = vrot.lane.b32.xlu1 %v319_v30, %s8874_s28  ;;  %v328_v37 = vrot.slane %v319_v30, 4  ;;  %v633_v56 = vsel %vm276_vm0, %v625_v54, %v632_v55  ;;  %v630_v62 = vrot.slane %v625_v54, 4 }
  0x1c   : > { %353 = vrot.lane.b32.xlu2 %v323_v33, %s8875_s29  ;;  %v324_v38 = vrot.slane %v8988_v35, 4  ;;  %v330_v49 = vrot.slane %v323_v33, 4  ;;  %v641_v59 = vperm.slane %v633_v56, %v8976_v21  ;;  %v609_v63 = vsel %vm276_vm0, %v8995_v39, %v608_v58 }
  0x1d   : > { %337 = vrot.lane.b32.xlu0 %v311_v34, %s8876_s30  ;;  %v326_v36 = vrot.slane %v311_v34, 4  ;;  %v329_v41 = vsel %vm276_vm0, 0.0, %v328_v37  ;;  %v631_v1 = vsel %vm276_vm0, %v630_v62, %v613_v50  ;;  %v629_v2 = vperm.slane %v621_v61, %v8951_v5 }
  0x1e   : > { %v325_v43 = vsel %vm276_vm0, 0.0, %v324_v38  ;;  %v331_v53 = vsel %vm276_vm0, 0.0, %v330_v49  ;;  %v656_v0 = vrot.slane %v641_v59, 4  ;;  %v617_v8 = vperm.slane %v609_v63, %v8951_v5 }
  0x1f   : > { %v327_v40 = vsel %vm276_vm0, 0.0, %v326_v36  ;;  %v642_v11 = vrot.slane %v629_v2, 4 }
  0x20   : > { %v657_v10 = vsel %vm276_vm0, 0.0, %v656_v0 }
  0x21   : > { %v643_v14 = vsel %vm276_vm0, %v642_v11, %v617_v8 }
  0x22   : > { %v649_v16 = vperm.slane %v643_v14, %v8976_v21 }
  0x23   : > { %341 = vrot.lane.b32.xlu1 %v327_v40, %s8877_s7 }
  0x24   : > { %349 = vrot.lane.b32.xlu2 %v329_v41, %s8878_s8  ;;  %v658_v19 = vrot.slane %v649_v16, 4 }
  0x25   : > { %333 = vrot.lane.b32.xlu0 %v325_v43, %s8879_s9 }
  0x26   : > { %v659_v22 = vsel %vm276_vm0, 0.0, %v658_v19 }
  0x2b   : > { %391 = vrot.lane.b32.xlu1 %v8790_v52, %s8872_s27 }
  0x2c   : > { %501 = vrot.lane.b32.xlu2 %v8955_v6, %s8872_s27  ;;  %v9037_v6 = vperm.slane %v631_v1, %v8976_v21 }
  0x2d   : > { %357 = vrot.lane.b32.xlu0 %v331_v53, %s8880_s10 }
  0x2e   : > { %v654_v9 = vrot.slane %v9037_v6, 4 }
  0x30   : > { %v655_v12 = vsel %vm276_vm0, 0.0, %v654_v9 }
  0x33   : > { %499 = vrot.lane.b32.xlu1 %v8949_v4, %s8872_s27  ;;  %v644_v4 = vrot.slane %v617_v8, 4 }
  0x34   : > { %663 = vrot.lane.b32.xlu2 %v655_v12, %s8879_s9 }
  0x35   : > { %389 = vrot.lane.b32.xlu0 %v8789_v60, %s8872_s27  ;;  %v645_v13 = vsel %vm276_vm0, %v629_v2, %v644_v4 }
  0x36   : > { %v653_v15 = vperm.slane %v645_v13, %v8976_v21 }
  0x38   : > { %v660_v17 = vrot.slane %v653_v15, 4 }
  0x3b   : > { %671 = vrot.lane.b32.xlu1 %v657_v10, %s8877_s7 }
  0x3c   : > { %675 = vrot.lane.b32.xlu2 %v649_v16, %s8874_s28 }
  0x3d   : > { %497 = vrot.lane.b32.xlu0 %v8946_v3, %s8872_s27  ;;  %v661_v3 = vsel %vm276_vm0, 0.0, %v660_v17 }
  0x43   : > { %683 = vrot.lane.b32.xlu1 %v653_v15, %s8875_s29 }
  0x44   : > { %687 = vrot.lane.b32.xlu2 %v661_v3, %s8880_s10 }
  0x45   : > { %503 = vrot.lane.b32.xlu0 %v8958_v7, %s8872_s27  ;;  %v698_v7 = vld [vmem:[%s8942_s26 + $0x1] sm:$0xff] }
  0x4b   : > { %708 = vrot.lane.b32.xlu1 %v699_v18, %s8872_s27 }
  0x4c   : > { %710 = vrot.lane.b32.xlu2 %v700_v20, %s8872_s27 }
  0x4d   : > { %667 = vrot.lane.b32.xlu0 %v641_v59, %s8876_s30 }
  0x53   : > { %822 = vrot.lane.b32.xlu1 %v8995_v39, %s8872_s27 }
  0x54   : > { %818 = vrot.lane.b32.xlu2 %v9002_v44, %s8872_s27 }
  0x55   : > { %679 = vrot.lane.b32.xlu0 %v659_v22, %s8878_s8 }
  0x5c   : > { %824 = vrot.lane.b32.xlu2 %v9005_v45, %s8872_s27 }
  0x5d   : > { %706 = vrot.lane.b32.xlu0 %v698_v7, %s8872_s27 }
  0x65   : > { %712 = vrot.lane.b32.xlu0 %v701_v23, %s8872_s27 }
  0x6d   : > { %820 = vrot.lane.b32.xlu0 %v8796_v48, %s8872_s27  ;;  %v388_v25 = vpop.permute.xlu2 %387 }
  0x6e   : > { %v411_v38 = vrot.slane %v388_v25, 4 }
  0x76   : > { %v354_v28 = vpop.permute.xlu2 %353 }
  0x7e   : > { %v350_v33 = vpop.permute.xlu2 %349 }
  0x83   : > { %v386_v24 = vpop.permute.xlu1 %385 }
  0x84   : > { %v399_v45 = vrot.slane %v386_v24, 4 }
  0x86   : > { %v502_v43 = vpop.permute.xlu2 %501 }
  0x87   : > { %v509_v1 = vrot.slane %v502_v43, 4 }
  0x8d   : > { %v346_v26 = vpop.permute.xlu1 %345 }
  0x8e   : > { %v664_v62 = vpop.permute.xlu2 %663 }
  0x8f   : > { %v338_v27 = vpop.permute.xlu0 %337 }
  0x95   : > { %v342_v29 = vpop.permute.xlu1 %341 }
  0x96   : > { %v676_v17 = vpop.permute.xlu2 %675 }
  0x97   : > { %v334_v30 = vpop.permute.xlu0 %333 }
  0x98   : > { %v361_v31 = vsel %vm360_vm1, %v8988_v35, %v334_v30 }
  0x99   : > { %v363_v32 = vsel %vm362_vm2, %v361_v31, %v338_v27 }
  0x9a   : > { %v365_v34 = vsel %vm364_vm3, %v363_v32, %v342_v29 }
  0x9b   : > { %v367_v36 = vsel %vm366_vm4, %v365_v34, %v346_v26 }
  0x9c   : > { %v369_v37 = vsel %vm368_vm5, %v367_v36, %v350_v33 }
  0x9d   : > { %v371_v39 = vsel %vm370_vm6, %v369_v37, %v354_v28  ;;  %v392_v41 = vpop.permute.xlu1 %391  ;;  %v690_v28 = vsel %vm360_vm1, %v9037_v6, %v664_v62 }
  0x9e   : > { %v412_v42 = vsel %vm276_vm0, %v392_v41, %v411_v38  ;;  %v409_v46 = vrot.slane %v392_v41, 4  ;;  %v688_v33 = vpop.permute.xlu2 %687 }
  0x9f   : > { %v358_v40 = vpop.permute.xlu0 %357  ;;  %v420_v44 = vperm.slane %v412_v42, %v8951_v5 }
  0xa0   : > { %v373_v35 = vsel %vm372_vm7, %v371_v39, %v358_v40  ;;  %v410_v52 = vsel %vm276_vm0, %v409_v46, %v388_v25 }
  0xa1   : > { %375 = vst.msk [vmem:[#allocation3] sm:$0xf] %vm374_vm8, %v373_v35  ;;  %v433_v50 = vrot.slane %v420_v44, 4  ;;  %v9098_v58 = vperm.slane %v410_v52, %v8951_v5 }
  0xa5   : > { %v500_v9 = vpop.permute.xlu1 %499 }
  0xa6   : > { %v523_v11 = vrot.slane %v500_v9, 4  ;;  %v711_v35 = vpop.permute.xlu2 %710 }
  0xa7   : > { %v390_v47 = vpop.permute.xlu0 %389  ;;  %v718_v42 = vrot.slane %v711_v35, 4 }
  0xa8   : > { %v397_v48 = vrot.slane %v390_v47, 4  ;;  %v400_v49 = vsel %vm276_vm0, %v390_v47, %v399_v45 }
  0xa9   : > { %v408_v51 = vperm.slane %v400_v49, %v8951_v5 }
  0xaa   : > { %v398_v53 = vsel %vm276_vm0, %v397_v48, %v386_v24 }
  0xab   : > { %v9091_v54 = vperm.slane %v398_v53, %v8951_v5  ;;  %v435_v55 = vrot.slane %v408_v51, 4  ;;  %v434_v56 = vsel %vm276_vm0, %v433_v50, %v408_v51 }
  0xac   : > { %v9095_v57 = vperm.slane %v434_v56, %v8976_v21 }
  0xad   : > { %v436_v59 = vsel %vm276_vm0, %v420_v44, %v435_v55  ;;  %v423_v60 = vrot.slane %v9091_v54, 4  ;;  %v672_v25 = vpop.permute.xlu1 %671 }
  0xae   : > { %466 = vrot.lane.b32.xlu2 %v9095_v57, %s8874_s28  ;;  %v9105_v61 = vperm.slane %v436_v59, %v8976_v21  ;;  %v9159_v48 = vpop.permute.xlu2 %818  ;;  %v421_v59 = vrot.slane %v9098_v58, 4 }
  0xaf   : > { %v498_v63 = vpop.permute.xlu0 %497  ;;  %v424_v0 = vsel %vm276_vm0, %v9098_v58, %v423_v60 }
  0xb0   : > { %v511_v2 = vrot.slane %v498_v63, 4  ;;  %474 = vrot.lane.b32.xlu1 %v9105_v61, %s8875_s29  ;;  %v9112_v8 = vperm.slane %v424_v0, %v8976_v21  ;;  %v510_v4 = vsel %vm276_vm0, %v509_v1, %v498_v63 }
  0xb1   : > { %v9120_v13 = vperm.slane %v510_v4, %v8951_v5 }
  0xb2   : > { %v512_v10 = vsel %vm276_vm0, %v502_v43, %v511_v2  ;;  %458 = vrot.lane.b32.xlu0 %v9112_v8, %s8876_s30 }
  0xb3   : > { %v520_v12 = vperm.slane %v512_v10, %v8951_v5  ;;  %v535_v20 = vrot.slane %v9120_v13, 4 }
  0xb5   : > { %v547_v18 = vrot.slane %v520_v12, 4  ;;  %v684_v34 = vpop.permute.xlu1 %683 }
  0xb7   : > { %v504_v14 = vpop.permute.xlu0 %503 }
  0xb8   : > { %v521_v15 = vrot.slane %v504_v14, 4  ;;  %v524_v16 = vsel %vm276_vm0, %v504_v14, %v523_v11 }
  0xb9   : > { %v532_v3 = vperm.slane %v524_v16, %v8951_v5 }
  0xba   : > { %v522_v19 = vsel %vm276_vm0, %v521_v15, %v500_v9  ;;  %v422_v9 = vsel %vm276_vm0, %v421_v59, %v9091_v54  ;;  %v449_v54 = vrot.slane %v9095_v57, 4 }
  0xbb   : > { %v9127_v22 = vperm.slane %v522_v19, %v8951_v5  ;;  %v545_v7 = vrot.slane %v532_v3, 4  ;;  %v548_v23 = vsel %vm276_vm0, %v532_v3, %v547_v18  ;;  %v9183_v14 = vperm.slane %v422_v9, %v8976_v21 }
  0xbc   : > { %v9131_v24 = vperm.slane %v548_v23, %v8976_v21  ;;  %v447_v18 = vrot.slane %v9112_v8, 4 }
  0xbd   : > { %v546_v26 = vsel %vm276_vm0, %v545_v7, %v520_v12  ;;  %v536_v27 = vsel %vm276_vm0, %v9127_v22, %v535_v20  ;;  %v709_v44 = vpop.permute.xlu1 %708  ;;  %v825_v12 = vpop.permute.xlu2 %824  ;;  %v533_v15 = vrot.slane %v9127_v22, 4  ;;  %v445_v19 = vrot.slane %v9183_v14, 4 }
  0xbe   : > { %586 = vrot.lane.b32.xlu0 %v9131_v24, %s8875_s29  ;;  %v9141_v29 = vperm.slane %v546_v26, %v8976_v21  ;;  %v9144_v30 = vperm.slane %v536_v27, %v8976_v21  ;;  %v732_v47 = vrot.slane %v709_v44, 4  ;;  %v842_v16 = vrot.slane %v825_v12, 4 }
  0xbf   : > { %v668_v31 = vpop.permute.xlu0 %667  ;;  %v534_v20 = vsel %vm276_vm0, %v533_v15, %v9120_v13  ;;  %v450_v7 = vsel %vm276_vm0, 0.0, %v449_v54  ;;  %v446_v57 = vsel %vm276_vm0, 0.0, %v445_v19 }
  0xc0   : > { %578 = vrot.lane.b32.xlu1 %v9141_v29, %s8874_s28  ;;  %570 = vrot.lane.b32.xlu2 %v9144_v30, %s8876_s30  ;;  %v691_v32 = vsel %vm362_vm2, %v690_v28, %v668_v31  ;;  %v9200_v26 = vperm.slane %v534_v20, %v8976_v21  ;;  %v559_v13 = vrot.slane %v9144_v30, 4  ;;  %v451_v31 = vrot.slane %v9105_v61, 4 }
  0xc1   : > { %v692_v6 = vsel %vm364_vm3, %v691_v32, %v672_v25  ;;  %v448_v25 = vsel %vm276_vm0, 0.0, %v447_v18 }
  0xc2   : > { %v693_v36 = vsel %vm366_vm4, %v692_v6, %v676_v17  ;;  %v557_v28 = vrot.slane %v9200_v26, 4  ;;  %v560_v6 = vsel %vm276_vm0, 0.0, %v559_v13 }
  0xc5   : > { %v823_v17 = vpop.permute.xlu1 %822 }
  0xc6   : > { %v830_v22 = vrot.slane %v823_v17, 4 }
  0xc7   : > { %v680_v37 = vpop.permute.xlu0 %679 }
  0xc8   : > { %v694_v38 = vsel %vm368_vm5, %v693_v36, %v680_v37  ;;  %v831_v27 = vsel %vm276_vm0, %v830_v22, %v9159_v48  ;;  %v452_v36 = vsel %vm276_vm0, 0.0, %v451_v31 }
  0xc9   : > { %v695_v39 = vsel %vm370_vm6, %v694_v38, %v684_v34  ;;  %v837_v32 = vperm.slane %v831_v27, %v8951_v5  ;;  %v558_v34 = vsel %vm276_vm0, 0.0, %v557_v28 }
  0xca   : > { %v696_v40 = vsel %vm372_vm7, %v695_v39, %v688_v33  ;;  %v563_v39 = vrot.slane %v9131_v24, 4 }
  0xcb   : > { %697 = vst.msk [vmem:[#allocation3 + $0xc] sm:$0xf] %vm374_vm8, %v696_v40  ;;  %v832_v40 = vrot.slane %v9159_v48, 4 }
  0xcd   : > { %v833_v24 = vsel %vm276_vm0, %v823_v17, %v832_v40 }
  0xcf   : > { %v707_v41 = vpop.permute.xlu0 %706 }
  0xd0   : > { %v720_v43 = vrot.slane %v707_v41, 4  ;;  %v719_v46 = vsel %vm276_vm0, %v718_v42, %v707_v41 }
  0xd1   : > { %v725_v50 = vperm.slane %v719_v46, %v8951_v5  ;;  %v9230_v46 = vld [vmem:[%s8942_s26 + $0xe1] sm:$0xff] }
  0xd2   : > { %v721_v45 = vsel %vm276_vm0, %v711_v35, %v720_v43  ;;  %v561_v35 = vrot.slane %v9141_v29, 4 }
  0xd3   : > { %v729_v49 = vperm.slane %v721_v45, %v8951_v5  ;;  %v744_v62 = vrot.slane %v725_v50, 4  ;;  %v564_v45 = vsel %vm276_vm0, 0.0, %v563_v39 }
  0xd4   : > { %v562_v29 = vsel %vm276_vm0, 0.0, %v561_v35 }
  0xd5   : > { %v756_v56 = vrot.slane %v729_v49, 4 }
  0xd7   : > { %v713_v51 = vpop.permute.xlu0 %712 }
  0xd8   : > { %v730_v52 = vrot.slane %v713_v51, 4  ;;  %v733_v53 = vsel %vm276_vm0, %v713_v51, %v732_v47  ;;  %v926_v51 = vrot.slane %v9230_v46, 4 }
  0xd9   : > { %v741_v55 = vperm.slane %v733_v53, %v8951_v5  ;;  %v9244_v53 = vld [vmem:[%s8942_s26 + $0xc1] sm:$0xff] }
  0xda   : > { %v731_v60 = vsel %vm276_vm0, %v730_v52, %v709_v44  ;;  %v841_v52 = vperm.slane %v833_v24, %v8951_v5 }
  0xdb   : > { %v737_v63 = vperm.slane %v731_v60, %v8951_v5  ;;  %v754_v0 = vrot.slane %v741_v55, 4  ;;  %v757_v1 = vsel %vm276_vm0, %v741_v55, %v756_v56 }
  0xdc   : > { %v9170_v2 = vperm.slane %v757_v1, %v8976_v21  ;;  %v868_v1 = vrot.slane %v841_v52, 4 }
  0xdd   : > { %v755_v10 = vsel %vm276_vm0, %v754_v0, %v729_v49  ;;  %v745_v4 = vsel %vm276_vm0, %v737_v63, %v744_v62  ;;  %v742_v30 = vrot.slane %v737_v63, 4  ;;  %v856_v49 = vrot.slane %v837_v32, 4  ;;  %v9251_v62 = vld [vmem:[%s8942_s26 + $0xf1] sm:$0xff] }
  0xde   : > { %795 = vrot.lane.b32.xlu0 %v9170_v2, %s8875_s29  ;;  %v9179_v58 = vperm.slane %v755_v10, %v8976_v21  ;;  %v753_v11 = vperm.slane %v745_v4, %v8976_v21  ;;  %v927_v0 = vsel %vm276_vm0, %v926_v51, %v9244_v53 }
  0xdf   : > { %v821_v3 = vpop.permute.xlu0 %820  ;;  %v743_v42 = vsel %vm276_vm0, %v742_v30, %v725_v50 }
  0xe0   : > { %787 = vrot.lane.b32.xlu1 %v9179_v58, %s8874_s28  ;;  %779 = vrot.lane.b32.xlu2 %v753_v11, %s8876_s30  ;;  %v843_v23 = vsel %vm276_vm0, %v842_v16, %v821_v3  ;;  %v768_v61 = vrot.slane %v753_v11, 4  ;;  %v844_v38 = vrot.slane %v821_v3, 4  ;;  %v9236_v48 = vperm.slane %v743_v42, %v8976_v21  ;;  %v9263_v11 = vld [vmem:[%s8942_s26 + $0xd1] sm:$0xff] }
  0xe1   : > { %v849_v8 = vperm.slane %v843_v23, %v8951_v5  ;;  %v770_v56 = vrot.slane %v9179_v58, 4  ;;  %v938_v58 = vrot.slane %v9251_v62, 4  ;;  %v772_v16 = vrot.slane %v9170_v2, 4 }
  0xe2   : > { %v769_v43 = vsel %vm276_vm0, 0.0, %v768_v61  ;;  %v845_v44 = vsel %vm276_vm0, %v825_v12, %v844_v38  ;;  %v766_v59 = vrot.slane %v9236_v48, 4  ;;  %v933_v12 = vperm.slane %v927_v0, %v8951_v5 }
  0xe3   : > { %v854_v33 = vrot.slane %v849_v8, 4  ;;  %v853_v50 = vperm.slane %v845_v44, %v8951_v5  ;;  %v857_v60 = vsel %vm276_vm0, %v849_v8, %v856_v49  ;;  %v771_v9 = vsel %vm276_vm0, 0.0, %v770_v56  ;;  %v8808_v49 = vld [vmem:[%s8942_s26 + $0x91] sm:$0xff] }
  0xe4   : > { %v767_v10 = vsel %vm276_vm0, 0.0, %v766_v59  ;;  %v865_v4 = vperm.slane %v857_v60, %v8976_v21  ;;  %v939_v3 = vsel %vm276_vm0, %v938_v58, %v9263_v11  ;;  %v952_v19 = vrot.slane %v933_v12, 4  ;;  %v8810_v56 = vld [vmem:[%s8942_s26 + $0xb1] sm:$0xff]  ;;  %v8809_v60 = vld [vmem:[%s8942_s26 + $0xa1] sm:$0xff] }
  0xe5   : > { %v855_v37 = vsel %vm276_vm0, %v854_v33, %v837_v32  ;;  %v866_v63 = vrot.slane %v853_v50, 4  ;;  %v869_v54 = vsel %vm276_vm0, %v853_v50, %v868_v1  ;;  %v940_v22 = vrot.slane %v9263_v11, 4  ;;  %v8807_v50 = vld [vmem:[%s8942_s26 + $0x81] sm:$0xff]  ;;  %s8889_s26 = smov 104  }
  0xe6   : > { %470 = vrot.lane.b32.xlu0 %v450_v7, %s8878_s8  ;;  %v9222_v41 = vperm.slane %v855_v37, %v8976_v21  ;;  %v880_v17 = vrot.slane %v865_v4, 4  ;;  %v877_v20 = vperm.slane %v869_v54, %v8976_v21  ;;  %v945_v7 = vperm.slane %v939_v3, %v8951_v5 }
  0xe7   : > { %v867_v15 = vsel %vm276_vm0, %v866_v63, %v841_v52  ;;  %v773_v23 = vsel %vm276_vm0, 0.0, %v772_v16  ;;  %v941_v13 = vsel %vm276_vm0, %v9251_v62, %v940_v22 }
  0xe8   : > { %462 = vrot.lane.b32.xlu1 %v448_v25, %s8877_s7  ;;  %454 = vrot.lane.b32.xlu2 %v446_v57, %s8879_s9  ;;  %v878_v47 = vrot.slane %v9222_v41, 4  ;;  %v873_v18 = vperm.slane %v867_v15, %v8976_v21  ;;  %v881_v25 = vsel %vm276_vm0, 0.0, %v880_v17  ;;  %v953_v2 = vsel %vm276_vm0, %v945_v7, %v952_v19 }
  0xe9   : > { %v928_v57 = vrot.slane %v9244_v53, 4  ;;  %v884_v8 = vrot.slane %v877_v20, 4  ;;  %v961_v27 = vperm.slane %v953_v2, %v8976_v21  ;;  %v949_v32 = vperm.slane %v941_v13, %v8951_v5 }
  0xea   : > { %v879_v55 = vsel %vm276_vm0, 0.0, %v878_v47  ;;  %v950_v33 = vrot.slane %v945_v7, 4  ;;  %v882_v37 = vrot.slane %v873_v18, 4 }
  0xeb   : > { %v929_v28 = vsel %vm276_vm0, %v9230_v46, %v928_v57  ;;  %v885_v31 = vsel %vm276_vm0, 0.0, %v884_v8 }
  0xec   : > { %v951_v30 = vsel %vm276_vm0, %v950_v33, %v933_v12  ;;  %v883_v35 = vsel %vm276_vm0, 0.0, %v882_v37 }
  0xed   : > { %v9296_v39 = vperm.slane %v951_v30, %v8976_v21 }
  0xee   : > { %574 = vrot.lane.b32.xlu0 %v560_v6, %s8877_s7  ;;  %v976_v6 = vrot.slane %v961_v27, 4 }
  0xef   : > { %v974_v44 = vrot.slane %v9296_v39, 4 }
  0xf0   : > { %566 = vrot.lane.b32.xlu1 %v558_v34, %s8879_s9  ;;  %478 = vrot.lane.b32.xlu2 %v452_v36, %s8880_s10  ;;  %v937_v34 = vperm.slane %v929_v28, %v8951_v5  ;;  %v962_v36 = vrot.slane %v949_v32, 4  ;;  %v977_v61 = vsel %vm276_vm0, 0.0, %v976_v6 }
  0xf2   : > { %v964_v38 = vrot.slane %v937_v34, 4  ;;  %v963_v40 = vsel %vm276_vm0, %v962_v36, %v937_v34 }
  0xf4   : > { %v965_v42 = vsel %vm276_vm0, %v949_v32, %v964_v38 }
  0xf6   : > { %783 = vrot.lane.b32.xlu0 %v769_v43, %s8877_s7  ;;  %v969_v43 = vperm.slane %v963_v40, %v8976_v21 }
  0xf8   : > { %590 = vrot.lane.b32.xlu1 %v564_v45, %s8880_s10  ;;  %582 = vrot.lane.b32.xlu2 %v562_v29, %s8878_s8  ;;  %v973_v45 = vperm.slane %v965_v42, %v8976_v21  ;;  %v978_v24 = vrot.slane %v969_v43, 4  ;;  %v975_v29 = vsel %vm276_vm0, 0.0, %v974_v44 }
  0xfa   : > { %v979_v47 = vsel %vm276_vm0, 0.0, %v978_v24  ;;  %v980_v51 = vrot.slane %v973_v45, 4 }
  0xfe   : > { %887 = vrot.lane.b32.xlu0 %v879_v55, %s8879_s9  ;;  %v981_v55 = vsel %vm276_vm0, 0.0, %v980_v51 }
 0x100   : > { %791 = vrot.lane.b32.xlu2 %v771_v9, %s8878_s8  ;;  %775 = vrot.lane.b32.xlu1 %v767_v10, %s8879_s9 }
 0x106   : > { %899 = vrot.lane.b32.xlu0 %v873_v18, %s8874_s28 }
 0x108   : > { %799 = vrot.lane.b32.xlu1 %v773_v23, %s8880_s10  ;;  %895 = vrot.lane.b32.xlu2 %v881_v25, %s8877_s7  ;;  %v467_v52 = vpop.permute.xlu2 %466 }
 0x10e   : > { %911 = vrot.lane.b32.xlu0 %v885_v31, %s8880_s10 }
 0x110   : > { %891 = vrot.lane.b32.xlu1 %v865_v4, %s8876_s30  ;;  %907 = vrot.lane.b32.xlu2 %v877_v20, %s8875_s29 }
 0x116   : > { %991 = vrot.lane.b32.xlu0 %v977_v61, %s8877_s7 }
 0x118   : > { %903 = vrot.lane.b32.xlu1 %v883_v35, %s8878_s8  ;;  %987 = vrot.lane.b32.xlu2 %v961_v27, %s8876_s30 }
 0x11a   : > { %v571_v59 = vpop.permute.xlu2 %570 }
 0x11e   : > { %1003 = vrot.lane.b32.xlu0 %v973_v45, %s8875_s29 }
 0x120   : > { %983 = vrot.lane.b32.xlu1 %v975_v29, %s8879_s9  ;;  %999 = vrot.lane.b32.xlu2 %v979_v47, %s8878_s8 }
 0x122   : > { %v475_v1 = vpop.permute.xlu1 %474 }
 0x124   : > { %v459_v0 = vpop.permute.xlu0 %458 }
 0x126   : > { %1028 = vrot.lane.b32.xlu0 %v8808_v49, %s8872_s27 }
 0x128   : > { %995 = vrot.lane.b32.xlu1 %v969_v43, %s8874_s28  ;;  %1026 = vrot.lane.b32.xlu2 %v8807_v50, %s8872_s27 }
 0x130   : > { %1007 = vrot.lane.b32.xlu1 %v981_v55, %s8880_s10  ;;  %1032 = vrot.lane.b32.xlu2 %v8810_v56, %s8872_s27  ;;  %v587_v10 = vpop.permute.xlu0 %586 }
 0x132   : > { %v579_v4 = vpop.permute.xlu1 %578 }
 0x138   : > { %1030 = vrot.lane.b32.xlu1 %v8809_v60, %s8872_s27 }
 0x13a   : > { %v780_v63 = vpop.permute.xlu2 %779 }
 0x142   : > { %v455_v9 = vpop.permute.xlu2 %454 }
 0x143   : > { %v481_v54 = vsel %vm360_vm1, %v9183_v14, %v455_v9 }
 0x144   : > { %v482_v18 = vsel %vm362_vm2, %v481_v54, %v459_v0 }
 0x14a   : > { %v479_v58 = vpop.permute.xlu2 %478 }
 0x150   : > { %v796_v12 = vpop.permute.xlu0 %795 }
 0x152   : > { %v788_v15 = vpop.permute.xlu1 %787  ;;  %v583_v17 = vpop.permute.xlu2 %582 }
 0x158   : > { %v471_v16 = vpop.permute.xlu0 %470 }
 0x15a   : > { %v463_v3 = vpop.permute.xlu1 %462  ;;  %v792_v57 = vpop.permute.xlu2 %791 }
 0x15b   : > { %v483_v19 = vsel %vm364_vm3, %v482_v18, %v463_v3 }
 0x15c   : > { %v484_v20 = vsel %vm366_vm4, %v483_v19, %v467_v52 }
 0x15d   : > { %v485_v7 = vsel %vm368_vm5, %v484_v20, %v471_v16 }
 0x15e   : > { %v486_v22 = vsel %vm370_vm6, %v485_v7, %v475_v1 }
 0x15f   : > { %v487_v23 = vsel %vm372_vm7, %v486_v22, %v479_v58 }
 0x160   : > { %488 = vst.msk [vmem:[#allocation3 + $0x4] sm:$0xf] %vm374_vm8, %v487_v23  ;;  %v575_v25 = vpop.permute.xlu0 %574 }
 0x162   : > { %v567_v2 = vpop.permute.xlu1 %566  ;;  %v896_v34 = vpop.permute.xlu2 %895 }
 0x163   : > { %v593_v14 = vsel %vm360_vm1, %v9200_v26, %v567_v2 }
 0x164   : > { %v594_v8 = vsel %vm362_vm2, %v593_v14, %v571_v59 }
 0x165   : > { %v595_v13 = vsel %vm364_vm3, %v594_v8, %v575_v25 }
 0x166   : > { %v596_v27 = vsel %vm366_vm4, %v595_v13, %v579_v4 }
 0x167   : > { %v597_v28 = vsel %vm368_vm5, %v596_v27, %v583_v17 }
 0x168   : > { %v784_v31 = vpop.permute.xlu0 %783  ;;  %v598_v33 = vsel %vm370_vm6, %v597_v28, %v587_v10 }
 0x16a   : > { %v591_v32 = vpop.permute.xlu1 %590  ;;  %v908_v35 = vpop.permute.xlu2 %907 }
 0x16b   : > { %v599_v6 = vsel %vm372_vm7, %v598_v33, %v591_v32 }
 0x16c   : > { %600 = vst.msk [vmem:[#allocation3 + $0x8] sm:$0xf] %vm374_vm8, %v599_v6 }
 0x170   : > { %v888_v36 = vpop.permute.xlu0 %887 }
 0x172   : > { %v776_v26 = vpop.permute.xlu1 %775  ;;  %v988_v24 = vpop.permute.xlu2 %987 }
 0x173   : > { %v802_v30 = vsel %vm360_vm1, %v9236_v48, %v776_v26  ;;  %v914_v48 = vsel %vm360_vm1, %v9222_v41, %v888_v36 }
 0x174   : > { %v803_v37 = vsel %vm362_vm2, %v802_v30, %v780_v63 }
 0x175   : > { %v804_v61 = vsel %vm364_vm3, %v803_v37, %v784_v31 }
 0x176   : > { %v805_v38 = vsel %vm366_vm4, %v804_v61, %v788_v15 }
 0x177   : > { %v806_v40 = vsel %vm368_vm5, %v805_v38, %v792_v57 }
 0x178   : > { %v807_v43 = vsel %vm370_vm6, %v806_v40, %v796_v12  ;;  %v900_v44 = vpop.permute.xlu0 %899 }
 0x17a   : > { %v800_v42 = vpop.permute.xlu1 %799  ;;  %v1000_v55 = vpop.permute.xlu2 %999 }
 0x17b   : > { %v808_v45 = vsel %vm372_vm7, %v807_v43, %v800_v42 }
 0x17c   : > { %809 = vst.msk [vmem:[#allocation3 + $0x10] sm:$0xf] %vm374_vm8, %v808_v45 }
 0x180   : > { %v912_v49 = vpop.permute.xlu0 %911 }
 0x182   : > { %v892_v29 = vpop.permute.xlu1 %891  ;;  %v1027_v41 = vpop.permute.xlu2 %1026 }
 0x183   : > { %v915_v47 = vsel %vm362_vm2, %v914_v48, %v892_v29  ;;  %v1040_v23 = vrot.slane %v1027_v41, 4 }
 0x184   : > { %v916_v50 = vsel %vm364_vm3, %v915_v47, %v896_v34 }
 0x185   : > { %v917_v52 = vsel %vm366_vm4, %v916_v50, %v900_v44 }
 0x188   : > { %v992_v63 = vpop.permute.xlu0 %991 }
 0x18a   : > { %v904_v51 = vpop.permute.xlu1 %903  ;;  %v1033_v15 = vpop.permute.xlu2 %1032 }
 0x18b   : > { %v918_v56 = vsel %vm368_vm5, %v917_v52, %v904_v51  ;;  %v1050_v17 = vrot.slane %v1033_v15, 4 }
 0x18c   : > { %v919_v59 = vsel %vm370_vm6, %v918_v56, %v908_v35 }
 0x18d   : > { %v920_v60 = vsel %vm372_vm7, %v919_v59, %v912_v49 }
 0x18e   : > { %921 = vst.msk [vmem:[#allocation3 + $0x14] sm:$0xf] %vm374_vm8, %v920_v60  ;;  %v8881_v60 = vmov 0  }
 0x18f   : > { %8849 = vset.pattern.permute.xlu0 %v8881_v60  ;;  %8850 = vset.pattern.permute.xlu2 %v8881_v60 }
 0x190   : > { %v1004_v9 = vpop.permute.xlu0 %1003 }
 0x192   : > { %v984_v0 = vpop.permute.xlu1 %983 }
 0x193   : > { %v1010_v1 = vsel %vm360_vm1, %v9296_v39, %v984_v0 }
 0x194   : > { %v1011_v10 = vsel %vm362_vm2, %v1010_v1, %v988_v24 }
 0x195   : > { %v1012_v58 = vsel %vm364_vm3, %v1011_v10, %v992_v63 }
 0x198   : > { %v1029_v16 = vpop.permute.xlu0 %1028 }
 0x199   : > { %v1052_v19 = vrot.slane %v1029_v16, 4  ;;  %v1051_v39 = vsel %vm276_vm0, %v1050_v17, %v1029_v16 }
 0x19a   : > { %v996_v4 = vpop.permute.xlu1 %995  ;;  %v1057_v22 = vperm.slane %v1051_v39, %v8951_v5 }
 0x19b   : > { %v1013_v12 = vsel %vm366_vm4, %v1012_v58, %v996_v4  ;;  %v1053_v7 = vsel %vm276_vm0, %v1033_v15, %v1052_v19  ;;  %v9421_v58 = vld [vmem:[%s9414_s14 + $0x48] sm:$0xff]  ;;  %v9428_v19 = vld [vmem:[%s9414_s14] sm:$0xff] }
 0x19c   : > { %v1014_v54 = vsel %vm368_vm5, %v1013_v12, %v1000_v55  ;;  %v1061_v25 = vperm.slane %v1053_v7, %v8951_v5  ;;  %v1062_v8 = vrot.slane %v1057_v22, 4  ;;  %v2066_v7 = vrot.slane %v9421_v58, 4 }
 0x19d   : > { %v1015_v3 = vsel %vm370_vm6, %v1014_v54, %v1004_v9  ;;  %v9418_v9 = vld [vmem:[%s9414_s14 + $0x30] sm:$0xff] }
 0x19e   : > { %v1074_v13 = vrot.slane %v1061_v25, 4  ;;  %v2054_v16 = vrot.slane %v9418_v9, 4 }
 0x1a2   : > { %v1008_v18 = vpop.permute.xlu1 %1007 }
 0x1a3   : > { %v1016_v20 = vsel %vm372_vm7, %v1015_v3, %v1008_v18 }
 0x1a4   : > { %1017 = vst.msk [vmem:[#allocation3 + $0x18] sm:$0xf] %vm374_vm8, %v1016_v20  ;;  %v9431_v20 = vld [vmem:[%s9414_s14 + $0x90] sm:$0xff] }
 0x1aa   : > { %v1031_v2 = vpop.permute.xlu1 %1030 }
 0x1ab   : > { %v1038_v14 = vrot.slane %v1031_v2, 4  ;;  %v1041_v57 = vsel %vm276_vm0, %v1031_v2, %v1040_v23 }
 0x1ac   : > { %v1049_v28 = vperm.slane %v1041_v57, %v8951_v5  ;;  %v9440_v57 = vld [vmem:[%s9414_s14 + $0x18] sm:$0xff] }
 0x1ad   : > { %v1039_v27 = vsel %vm276_vm0, %v1038_v14, %v1027_v41 }
 0x1ae   : > { %v1045_v31 = vperm.slane %v1039_v27, %v8951_v5  ;;  %v1075_v34 = vsel %vm276_vm0, %v1074_v13, %v1049_v28  ;;  %v1076_v40 = vrot.slane %v1049_v28, 4  ;;  %v2078_v13 = vrot.slane %v9431_v20, 4  ;;  %v9446_v28 = vld [vmem:[%s9414_s14 + $0x60] sm:$0xff] }
 0x1af   : > { %v1081_v37 = vperm.slane %v1075_v34, %v8976_v21 }
 0x1b0   : > { %v1064_v32 = vrot.slane %v1045_v31, 4  ;;  %v1063_v33 = vsel %vm276_vm0, %v1062_v8, %v1045_v31  ;;  %v1077_v43 = vsel %vm276_vm0, %v1061_v25, %v1076_v40  ;;  %v2055_v8 = vsel %vm276_vm0, %v2054_v16, %v9428_v19  ;;  %v9449_v31 = vld [vmem:[%s9414_s14 + $0xa8] sm:$0xff]  ;;  %v9467_v40 = vld [vmem:[%s9414_s14 + $0x78] sm:$0xff] }
 0x1b1   : > { %v1069_v6 = vperm.slane %v1063_v33, %v8976_v21  ;;  %v1090_v42 = vrot.slane %v1081_v37, 4  ;;  %v1085_v45 = vperm.slane %v1077_v43, %v8976_v21  ;;  %v9454_v34 = vperm.slane %v2055_v8, %v8951_v5  ;;  %v9513_v16 = vld [vmem:[%s9414_s14 + $0x38] sm:$0xff] }
 0x1b2   : > { %v1065_v36 = vsel %vm276_vm0, %v1057_v22, %v1064_v32 }
 0x1b3   : > { %v1073_v26 = vperm.slane %v1065_v36, %v8976_v21  ;;  %v1086_v30 = vrot.slane %v1069_v6, 4  ;;  %v1091_v44 = vsel %vm276_vm0, 0.0, %v1090_v42  ;;  %v1092_v24 = vrot.slane %v1085_v45, 4 }
 0x1b4   : > { %v2067_v36 = vsel %vm276_vm0, %v2066_v7, %v9440_v57 }
 0x1b5   : > { %1099 = vrot.lane.b32.xlu1 %v1073_v26, %s8876_s30  ;;  %v1087_v61 = vsel %vm276_vm0, 0.0, %v1086_v30  ;;  %v1088_v38 = vrot.slane %v1073_v26, 4  ;;  %v1093_v29 = vsel %vm276_vm0, 0.0, %v1092_v24 }
 0x1b6   : > { %1095 = vrot.lane.b32.xlu0 %v1087_v61, %s8879_s9  ;;  %v2090_v61 = vrot.slane %v9449_v31, 4 }
 0x1b7   : > { %v1089_v35 = vsel %vm276_vm0, 0.0, %v1088_v38 }
 0x1b8   : > { %1103 = vrot.lane.b32.xlu2 %v1089_v35, %s8877_s7  ;;  %v2080_v35 = vrot.slane %v9446_v28, 4 }
 0x1bd   : > { %1111 = vrot.lane.b32.xlu1 %v1091_v44, %s8878_s8  ;;  %v2073_v44 = vperm.slane %v2067_v36, %v8951_v5 }
 0x1be   : > { %1107 = vrot.lane.b32.xlu0 %v1081_v37, %s8874_s28  ;;  %v2079_v37 = vsel %vm276_vm0, %v2078_v13, %v9446_v28 }
 0x1bf   : > { %v9475_v24 = vperm.slane %v2079_v37, %v8951_v5 }
 0x1c0   : > { %1115 = vrot.lane.b32.xlu2 %v1085_v45, %s8875_s29 }
 0x1c1   : > { %v2128_v60 = vrot.slane %v9475_v24, 4 }
 0x1c5   : > { %1138 = vrot.lane.b32.xlu1 %v9244_v53, %s8872_s27 }
 0x1c6   : > { %1119 = vrot.lane.b32.xlu0 %v1093_v29, %s8880_s10  ;;  %v2104_v29 = vrot.slane %v9454_v34, 4 }
 0x1c8   : > { %1140 = vrot.lane.b32.xlu2 %v9263_v11, %s8872_s27 }
 0x1cd   : > { %1144 = vrot.lane.b32.xlu1 %v9251_v62, %s8872_s27 }
 0x1ce   : > { %1142 = vrot.lane.b32.xlu0 %v9230_v46, %s8872_s27 }
 0x212   : > { %v1104_v48 = vpop.permute.xlu2 %1103 }
 0x21a   : > { %v1116_v55 = vpop.permute.xlu2 %1115 }
 0x222   : > { %v1141_v41 = vpop.permute.xlu2 %1140 }
 0x223   : > { %v1164_v1 = vrot.slane %v1141_v41, 4 }
 0x227   : > { %v1100_v47 = vpop.permute.xlu1 %1099 }
 0x228   : > { %v1096_v49 = vpop.permute.xlu0 %1095 }
 0x229   : > { %v1122_v50 = vsel %vm360_vm1, %v1069_v6, %v1096_v49  ;;  %v2091_v49 = vsel %vm276_vm0, %v2090_v61, %v9467_v40  ;;  %v1248_v61 = vld [vmem:[%s14084_s4] sm:$0xff] }
 0x22a   : > { %v1123_v53 = vsel %vm362_vm2, %v1122_v50, %v1100_v47  ;;  %v2068_v50 = vrot.slane %v9440_v57, 4 }
 0x22b   : > { %v1124_v56 = vsel %vm364_vm3, %v1123_v53, %v1104_v48  ;;  %v2056_v48 = vrot.slane %v9428_v19, 4 }
 0x22f   : > { %v1112_v51 = vpop.permute.xlu1 %1111 }
 0x230   : > { %v1108_v52 = vpop.permute.xlu0 %1107 }
 0x231   : > { %v1125_v11 = vsel %vm366_vm4, %v1124_v56, %v1108_v52  ;;  %v2092_v52 = vrot.slane %v9467_v40, 4 }
 0x232   : > { %v1126_v59 = vsel %vm368_vm5, %v1125_v11, %v1112_v51  ;;  %v9490_v11 = vld [vmem:[%s9414_s14 + $0x50] sm:$0xff] }
 0x233   : > { %v1127_v46 = vsel %vm370_vm6, %v1126_v59, %v1116_v55  ;;  %v2081_v55 = vsel %vm276_vm0, %v9431_v20, %v2080_v35  ;;  %v2097_v59 = vperm.slane %v2091_v49, %v8951_v5  ;;  %v9558_v49 = vld [vmem:[%s9414_s14 + $0x68] sm:$0xff] }
 0x235   : > { %v2126_v37 = vrot.slane %v2097_v59, 4 }
 0x237   : > { %v1139_v62 = vpop.permute.xlu1 %1138 }
 0x238   : > { %v1120_v63 = vpop.permute.xlu0 %1119  ;;  %v1152_v10 = vrot.slane %v1139_v62, 4 }
 0x239   : > { %v1128_v0 = vsel %vm372_vm7, %v1127_v46, %v1120_v63  ;;  %v2057_v46 = vsel %vm276_vm0, %v9418_v9, %v2056_v48  ;;  %v2069_v63 = vsel %vm276_vm0, %v9421_v58, %v2068_v50 }
 0x23a   : > { %1129 = vst.msk [vmem:[#allocation3 + $0x1c] sm:$0xf] %vm374_vm8, %v1128_v0  ;;  %v9500_v0 = vperm.slane %v2081_v55, %v8951_v5  ;;  %v2127_v55 = vsel %vm276_vm0, %v2126_v37, %v9475_v24 }
 0x23f   : > { %v1145_v4 = vpop.permute.xlu1 %1144 }
 0x240   : > { %v1162_v12 = vrot.slane %v1145_v4, 4  ;;  %v1165_v15 = vsel %vm276_vm0, %v1145_v4, %v1164_v1  ;;  %v1143_v54 = vpop.permute.xlu0 %1142  ;;  %v2093_v1 = vsel %vm276_vm0, %v9449_v31, %v2092_v52 }
 0x241   : > { %v1173_v17 = vperm.slane %v1165_v15, %v8951_v5  ;;  %v1150_v3 = vrot.slane %v1143_v54, 4  ;;  %v1153_v18 = vsel %vm276_vm0, %v1143_v54, %v1152_v10  ;;  %v2178_v10 = vrot.slane %v9490_v11, 4  ;;  %v9510_v54 = vld [vmem:[%s9414_s14 + $0x20] sm:$0xff] }
 0x242   : > { %v1163_v39 = vsel %vm276_vm0, %v1162_v12, %v1141_v41  ;;  %v1161_v2 = vperm.slane %v1153_v18, %v8951_v5  ;;  %v2065_v15 = vperm.slane %v2057_v46, %v8951_v5  ;;  %v2077_v18 = vperm.slane %v2069_v63, %v8951_v5 }
 0x243   : > { %v1169_v22 = vperm.slane %v1163_v39, %v8951_v5  ;;  %v1186_v23 = vrot.slane %v1173_v17, 4  ;;  %v1151_v25 = vsel %vm276_vm0, %v1150_v3, %v1139_v62  ;;  %v2105_v62 = vsel %vm276_vm0, %v2073_v44, %v2104_v29  ;;  %v9516_v3 = vld [vmem:[%s9414_s14 + $0xb0] sm:$0xff] }
 0x244   : > { %v1157_v14 = vperm.slane %v1151_v25, %v8951_v5  ;;  %v1188_v53 = vrot.slane %v1161_v2, 4  ;;  %v2113_v12 = vperm.slane %v2105_v62, %v8976_v21  ;;  %v2102_v39 = vrot.slane %v2073_v44, 4 }
 0x245   : > { %v1174_v27 = vrot.slane %v1169_v22, 4  ;;  %v1187_v6 = vsel %vm276_vm0, %v1186_v23, %v1161_v2  ;;  %v2140_v23 = vrot.slane %v9500_v0, 4  ;;  %v2166_v25 = vrot.slane %v9513_v16, 4 }
 0x246   : > { %v1176_v32 = vrot.slane %v1157_v14, 4  ;;  %v1193_v43 = vperm.slane %v1187_v6, %v8976_v21  ;;  %v1189_v41 = vsel %vm276_vm0, %v1173_v17, %v1188_v53  ;;  %v2129_v17 = vsel %vm276_vm0, %v2097_v59, %v2128_v60  ;;  %v9538_v6 = vld [vmem:[%s9414_s14 + $0x98] sm:$0xff] }
 0x247   : > { %v1175_v33 = vsel %vm276_vm0, %v1174_v27, %v1157_v14  ;;  %v1197_v7 = vperm.slane %v1189_v41, %v8976_v21  ;;  %v2179_v2 = vsel %vm276_vm0, %v2178_v10, %v9510_v54  ;;  %v2202_v14 = vrot.slane %v9516_v3, 4 }
 0x248   : > { %v1177_v26 = vsel %vm276_vm0, %v1169_v22, %v1176_v32  ;;  %v9460_v30 = vperm.slane %v1175_v33, %v8976_v21  ;;  %v1202_v56 = vrot.slane %v1193_v43, 4  ;;  %v2101_v22 = vperm.slane %v2093_v1, %v8951_v5  ;;  %v9532_v32 = vld [vmem:[%s9414_s14 + $0x8] sm:$0xff]  ;;  %v9535_v33 = vld [vmem:[%s9414_s14 + $0x80] sm:$0xff] }
 0x249   : > { %v1185_v38 = vperm.slane %v1177_v26, %v8976_v21  ;;  %v2137_v8 = vperm.slane %v2129_v17, %v8976_v21  ;;  %v2156_v13 = vrot.slane %v2113_v12, 4  ;;  %v2116_v27 = vrot.slane %v2065_v15, 4 }
 0x24a   : > { %v1198_v42 = vrot.slane %v9460_v30, 4  ;;  %v1203_v4 = vsel %vm276_vm0, 0.0, %v1202_v56  ;;  %v2114_v36 = vrot.slane %v2077_v18, 4  ;;  %v2103_v26 = vsel %vm276_vm0, %v2102_v39, %v9454_v34 }
 0x24b   : > { %1211 = vrot.lane.b32.xlu0 %v1185_v38, %s8876_s30  ;;  %v1200_v45 = vrot.slane %v1185_v38, 4  ;;  %v1204_v38 = vrot.slane %v1197_v7, 4  ;;  %v2141_v35 = vsel %vm276_vm0, %v2101_v22, %v2140_v23  ;;  %v2190_v44 = vrot.slane %v9538_v6, 4 }
 0x24c   : > { %v1199_v47 = vsel %vm276_vm0, 0.0, %v1198_v42  ;;  %v9547_v42 = vperm.slane %v2179_v2, %v8951_v5  ;;  %v2204_v34 = vrot.slane %v9535_v33, 4  ;;  %v2157_v29 = vsel %vm276_vm0, %v2137_v8, %v2156_v13 }
 0x24d   : > { %1207 = vrot.lane.b32.xlu2 %v1199_v47, %s8879_s9  ;;  %v1201_v51 = vsel %vm276_vm0, 0.0, %v1200_v45  ;;  %v2203_v45 = vsel %vm276_vm0, %v2202_v14, %v9535_v33  ;;  %v2154_v48 = vrot.slane %v2137_v8, 4  ;;  %v2117_v47 = vsel %vm276_vm0, %v2077_v18, %v2116_v27 }
 0x24e   : > { %1215 = vrot.lane.b32.xlu1 %v1201_v51, %s8877_s7  ;;  %v9561_v50 = vperm.slane %v2103_v26, %v8976_v21  ;;  %v9564_v53 = vperm.slane %v2141_v35, %v8976_v21  ;;  %v2115_v51 = vsel %vm276_vm0, %v2114_v36, %v2065_v15  ;;  %v2138_v52 = vrot.slane %v2101_v22, 4 }
 0x24f   : > { %v1205_v56 = vsel %vm276_vm0, 0.0, %v1204_v38  ;;  %v9572_v62 = vperm.slane %v2203_v45, %v8951_v5  ;;  %v2214_v60 = vrot.slane %v9547_v42, 4  ;;  %v2191_v46 = vsel %vm276_vm0, %v2190_v44, %v9558_v49 }
 0x250   : > { %14099 = vst [vmem:[#allocation5_spill] sm:$0xff] %v9561_v50  ;;  %v2192_v63 = vrot.slane %v9558_v49, 4  ;;  %v2180_v41 = vrot.slane %v9510_v54, 4  ;;  %v2205_v24 = vsel %vm276_vm0, %v9516_v3, %v2204_v34  ;;  %v2155_v1 = vsel %vm276_vm0, %v2154_v48, %v2113_v12 }
 0x251   : > { %v9585_v10 = vperm.slane %v2127_v55, %v8976_v21  ;;  %v2125_v15 = vperm.slane %v2117_v47, %v8976_v21  ;;  %v2162_v17 = vrot.slane %v9564_v53, 4  ;;  %v2121_v18 = vperm.slane %v2115_v51, %v8976_v21 }
 0x252   : > { %v2139_v39 = vsel %vm276_vm0, %v2138_v52, %v9500_v0  ;;  %v2238_v12 = vrot.slane %v9572_v62, 4  ;;  %v2213_v23 = vperm.slane %v2205_v24, %v8951_v5  ;;  %v2181_v2 = vsel %vm276_vm0, %v9490_v11, %v2180_v41 }
 0x253   : > { %1223 = vrot.lane.b32.xlu0 %v1203_v4, %s8878_s8  ;;  %14100 = vst [vmem:[#allocation6_spill] sm:$0xff] %v9585_v10  ;;  %v2152_v4 = vrot.slane %v9561_v50, 4  ;;  %v2193_v14 = vsel %vm276_vm0, %v9538_v6, %v2192_v63  ;;  %v2163_v0 = vsel %vm276_vm0, %v2162_v17, %v2125_v15  ;;  %v2145_v13 = vperm.slane %v2139_v39, %v8976_v21 }
 0x254   : > { %v2160_v27 = vrot.slane %v2121_v18, 4  ;;  %v2189_v37 = vperm.slane %v2181_v2, %v8951_v5  ;;  %v2250_v38 = vrot.slane %v2213_v23, 4 }
 0x255   : > { %1219 = vrot.lane.b32.xlu2 %v1193_v43, %s8874_s28  ;;  %v2167_v43 = vsel %vm276_vm0, %v2166_v25, %v9532_v32  ;;  %v2168_v25 = vrot.slane %v9532_v32, 4  ;;  %v2153_v8 = vsel %vm276_vm0, %v9585_v10, %v2152_v4 }
 0x256   : > { %1227 = vrot.lane.b32.xlu1 %v1197_v7, %s8875_s29  ;;  %v2173_v59 = vperm.slane %v2167_v43, %v8951_v5  ;;  %v2197_v7 = vperm.slane %v2191_v46, %v8951_v5  ;;  %v2158_v43 = vrot.slane %v2145_v13, 4  ;;  %v2161_v34 = vsel %vm276_vm0, %v2145_v13, %v2160_v27 }
 0x257   : > { %v2169_v35 = vsel %vm276_vm0, %v9513_v16, %v2168_v25  ;;  %v2226_v48 = vrot.slane %v2189_v37, 4 }
 0x258   : > { %v2215_v22 = vsel %vm276_vm0, %v2214_v60, %v2173_v59  ;;  %v2239_v26 = vsel %vm276_vm0, %v2238_v12, %v2197_v7  ;;  %v2216_v51 = vrot.slane %v2173_v59, 4  ;;  %v2159_v52 = vsel %vm276_vm0, %v2158_v43, %v2121_v18 }
 0x259   : > { %v2221_v36 = vperm.slane %v2215_v22, %v8976_v21  ;;  %v2245_v44 = vperm.slane %v2239_v26, %v8976_v21  ;;  %v2240_v24 = vrot.slane %v2197_v7, 4  ;;  %v2164_v59 = vrot.slane %v2125_v15, 4 }
 0x25a   : > { %v2217_v41 = vsel %vm276_vm0, %v9547_v42, %v2216_v51 }
 0x25b   : > { %1251 = vperm.xlu0 %8849, %v1248_v61   ;;  %v2201_v61 = vperm.slane %v2193_v14, %v8951_v5  ;;  %v2264_v45 = vrot.slane %v2221_v36, 4  ;;  %v2262_v60 = vrot.slane %v2245_v44, 4  ;;  %v2225_v18 = vperm.slane %v2217_v41, %v8976_v21 }
 0x25c   : > { %v2241_v42 = vsel %vm276_vm0, %v9572_v62, %v2240_v24  ;;  %v2165_v7 = vsel %vm276_vm0, %v9564_v53, %v2164_v59  ;;  %v1245_v24 = vld [vmem:[#allocation3 + $0x10] sm:$0xff] }
 0x25d   : > { %1231 = vrot.lane.b32.xlu2 %v1205_v56, %s8880_s10  ;;  %v2251_v47 = vsel %vm276_vm0, %v2250_v38, %v2201_v61  ;;  %v2265_v55 = vsel %vm276_vm0, %v2245_v44, %v2264_v45  ;;  %v2263_v17 = vsel %vm276_vm0, %v2262_v60, %v2221_v36  ;;  %v2252_v22 = vrot.slane %v2201_v61, 4 }
 0x25e   : > { %2287 = vrot.lane.b32.xlu1 %v2157_v29, %s8877_s7  ;;  %v2177_v29 = vperm.slane %v2169_v35, %v8951_v5  ;;  %v2257_v56 = vperm.slane %v2251_v47, %v8976_v21  ;;  %v2249_v25 = vperm.slane %v2241_v42, %v8976_v21  ;;  %v2268_v2 = vrot.slane %v2225_v18, 4 }
 0x25f   : > { %v2253_v14 = vsel %vm276_vm0, %v2213_v23, %v2252_v22  ;;  %v1243_v22 = vld [vmem:[#allocation3] sm:$0xff] }
 0x260   : > { %v2227_v46 = vsel %vm276_vm0, %v2226_v48, %v2177_v29  ;;  %v2228_v63 = vrot.slane %v2177_v29, 4  ;;  %v2270_v4 = vrot.slane %v2257_v56, 4  ;;  %v2266_v62 = vrot.slane %v2249_v25, 4 }
 0x261   : > { %v2261_v53 = vperm.slane %v2253_v14, %v8976_v21  ;;  %v9719_v14 = vand.u32 4294901760, %v1243_v22 }
 0x262   : > { %v2229_v39 = vsel %vm276_vm0, %v2189_v37, %v2228_v63  ;;  %v2267_v13 = vsel %vm276_vm0, %v2266_v62, %v2225_v18  ;;  %v9712_v18 = vand.u32 4294901760, %v1245_v24 }
 0x263   : > { %2283 = vrot.lane.b32.xlu0 %v2155_v1, %s8876_s30  ;;  %v2233_v1 = vperm.slane %v2227_v46, %v8976_v21  ;;  %v2237_v12 = vperm.slane %v2229_v39, %v8976_v21  ;;  %v2274_v36 = vrot.slane %v2261_v53, 4  ;;  %v1246_v46 = vld [vmem:[#allocation3 + $0x18] sm:$0xff] }
 0x264   : > { %v9706_v59 = vand.u32 4294901760, %v1246_v46 }
 0x265   : > { %2279 = vrot.lane.b32.xlu2 %v2153_v8, %s8879_s9  ;;  %v2271_v15 = vsel %vm276_vm0, %v2270_v4, %v2233_v1  ;;  %v2276_v8 = vrot.slane %v2237_v12, 4  ;;  %v2272_v23 = vrot.slane %v2233_v1, 4  ;;  %v2275_v26 = vsel %vm276_vm0, %v2274_v36, %v2237_v12  ;;  %v1244_v1 = vld [vmem:[#allocation3 + $0x8] sm:$0xff] }
 0x266   : > { %2299 = vrot.lane.b32.xlu1 %v2163_v0, %s8875_s29  ;;  %v2269_v0 = vsel %vm276_vm0, %v2249_v25, %v2268_v2  ;;  %v1316_v2 = vsub.f32 %v1245_v24, %v9712_v18 }
 0x267   : > { %v2277_v27 = vsel %vm276_vm0, %v2261_v53, %v2276_v8  ;;  %v2273_v37 = vsel %vm276_vm0, %v2257_v56, %v2272_v23 }
 0x26b   : > { %2295 = vrot.lane.b32.xlu0 %v2161_v34, %s8878_s8 }
 0x26d   : > { %2291 = vrot.lane.b32.xlu2 %v2159_v52, %s8874_s28 }
 0x26e   : > { %2311 = vrot.lane.b32.xlu1 %v2265_v55, %s8882_s17 }
 0x273   : > { %2307 = vrot.lane.b32.xlu0 %v2263_v17, %s8883_s18 }
 0x275   : > { %2303 = vrot.lane.b32.xlu2 %v2165_v7, %s8880_s10  ;;  %v1310_v7 = vsub.f32 %v1246_v46, %v9706_v59 }
 0x276   : > { %2323 = vrot.lane.b32.xlu1 %v2271_v15, %s8884_s19  ;;  %v9716_v15 = vand.u32 4294901760, %v1244_v1 }
 0x27b   : > { %2319 = vrot.lane.b32.xlu0 %v2269_v0, %s8885_s20  ;;  %v1322_v0 = vsub.f32 %v1244_v1, %v9716_v15 }
 0x27d   : > { %2315 = vrot.lane.b32.xlu2 %v2267_v13, %s8886_s23  ;;  %v1311_v13 = vand.u32 4294901760, %v1310_v7 }
 0x27e   : > { %2335 = vrot.lane.b32.xlu1 %v2277_v27, %s8887_s24 }
 0x283   : > { %2331 = vrot.lane.b32.xlu0 %v2275_v26, %s8888_s25 }
 0x285   : > { %2327 = vrot.lane.b32.xlu2 %v2273_v37, %s8889_s26  ;;  %v1328_v37 = vsub.f32 %v1243_v22, %v9719_v14 }
 0x286   : > { %2768 = vrot.lane.b32.xlu1 %v9532_v32, %s8872_s27 }
 0x28b   : > { %2766 = vrot.lane.b32.xlu0 %v9428_v19, %s8872_s27 }
 0x28d   : > { %2770 = vrot.lane.b32.xlu2 %v9440_v57, %s8872_s27 }
 0x28e   : > { %2774 = vrot.lane.b32.xlu1 %v9418_v9, %s8872_s27 }
 0x293   : > { %2772 = vrot.lane.b32.xlu0 %v9510_v54, %s8872_s27 }
 0x295   : > { %2776 = vrot.lane.b32.xlu2 %v9513_v16, %s8872_s27 }
 0x296   : > { %2780 = vrot.lane.b32.xlu1 %v9490_v11, %s8872_s27 }
 0x29b   : > { %2778 = vrot.lane.b32.xlu0 %v9421_v58, %s8872_s27 }
 0x29d   : > { %2782 = vrot.lane.b32.xlu2 %v9446_v28, %s8872_s27 }
 0x29e   : > { %2786 = vrot.lane.b32.xlu1 %v9467_v40, %s8872_s27 }
 0x2a3   : > { %2784 = vrot.lane.b32.xlu0 %v9558_v49, %s8872_s27 }
 0x2a5   : > { %2788 = vrot.lane.b32.xlu2 %v9535_v33, %s8872_s27 }
 0x2a6   : > { %2792 = vrot.lane.b32.xlu1 %v9538_v6, %s8872_s27 }
 0x2a7   : > { %v1208_v61 = vpop.permute.xlu2 %1207 }
 0x2a8   : > { %v1234_v34 = vsel %vm360_vm1, %v9460_v30, %v1208_v61  ;;  %v1317_v61 = vand.u32 4294901760, %v1316_v2 }
 0x2ab   : > { %2790 = vrot.lane.b32.xlu0 %v9431_v20, %s8872_s27 }
 0x2ad   : > { %2794 = vrot.lane.b32.xlu2 %v9449_v31, %s8872_s27  ;;  %v1242_v31 = vld [vmem:[%s14082_s2] sm:$0xff] }
 0x2ae   : > { %v1256_v30 = vsel %vm1254_vm9, %v1242_v31, 0  ;;  %vm1705_vm9 = vcmask 72712  }
 0x2af   : > { %v1220_v38 = vpop.permute.xlu2 %1219  ;;  %v9702_v63 = vand.u32 4294901760, %v1256_v30 }
 0x2b1   : > { %v1284_v39 = vsub.f32 %v1256_v30, %v9702_v63 }
 0x2b3   : > { %2796 = vrot.lane.b32.xlu0 %v9516_v3, %s8872_s27  ;;  %v1285_v62 = vand.u32 4294901760, %v1284_v39 }
 0x2b5   : > { %v1286_v26 = vsub.f32 %v1284_v39, %v1285_v62 }
 0x2b7   : > { %v1232_v35 = vpop.permute.xlu2 %1231 }
 0x2bd   : > { %v1212_v43 = vpop.permute.xlu0 %1211 }
 0x2be   : > { %v1235_v29 = vsel %vm362_vm2, %v1234_v34, %v1212_v43  ;;  %v1323_v43 = vand.u32 4294901760, %v1322_v0  ;;  %v1287_v34 = vand.u32 4294901760, %v1286_v26 }
 0x2bf   : > { %v9686_v44 = vpop.permute.xlu2 %2279 }
 0x2c0   : > { %14101 = vst [vmem:[#allocation7_spill] sm:$0xff] %v9686_v44  ;;  %v1216_v45 = vpop.permute.xlu1 %1215 }
 0x2c1   : > { %v1236_v48 = vsel %vm364_vm3, %v1235_v29, %v1216_v45  ;;  %v1318_v29 = vsub.f32 %v1316_v2, %v1317_v61 }
 0x2c2   : > { %v1237_v47 = vsel %vm366_vm4, %v1236_v48, %v1220_v38  ;;  %v1329_v48 = vand.u32 4294901760, %v1328_v37 }
 0x2c5   : > { %v1224_v20 = vpop.permute.xlu0 %1223 }
 0x2c6   : > { %v1238_v52 = vsel %vm368_vm5, %v1237_v47, %v1224_v20  ;;  %v1324_v47 = vsub.f32 %v1322_v0, %v1323_v43 }
 0x2c7   : > { %v9696_v51 = vpop.permute.xlu2 %2291 }
 0x2c8   : > { %14102 = vst [vmem:[#allocation8_spill] sm:$0xff] %v9696_v51  ;;  %v1228_v55 = vpop.permute.xlu1 %1227 }
 0x2c9   : > { %v1239_v56 = vsel %vm370_vm6, %v1238_v52, %v1228_v55  ;;  %v1319_v55 = vand.u32 4294901760, %v1318_v29 }
 0x2ca   : > { %v1240_v60 = vsel %vm372_vm7, %v1239_v56, %v1232_v35  ;;  %v1312_v35 = vsub.f32 %v1310_v7, %v1311_v13  ;;  %v1330_v56 = vsub.f32 %v1328_v37, %v1329_v48 }
 0x2cb   : > { %1241 = vst.msk [vmem:[#allocation3 + $0x20] sm:$0xf] %vm374_vm8, %v1240_v60  ;;  %v1325_v60 = vand.u32 4294901760, %v1324_v47  ;;  %vm1513_vm8 = vcmask 73728  }
 0x2cc   : > { %v1313_v31 = vand.u32 4294901760, %v1312_v35  ;;  %v1331_v46 = vand.u32 4294901760, %v1330_v56 }
 0x2cd   : > { %v9704_v41 = vpop.permute.xlu0 %1251 }
 0x2cf   : > { %v9708_v4 = vpop.permute.xlu2 %2303 }
 0x2d0   : > { %14103 = vst [vmem:[#allocation9_spill] sm:$0xff] %v9708_v4  ;;  %v9710_v17 = vpop.permute.xlu1 %2287 }
 0x2d1   : > { %14104 = vst [vmem:[#allocation10_spill] sm:$0xff] %v9710_v17 }
 0x2d2   : > { %v1247_v42 = vld [vmem:[#allocation3 + $0x20] sm:$0xf] }
 0x2d3   : > { %v1260_v12 = vsel %vm1258_vm10, %v1247_v42, 0  ;;  %vm2021_vm10 = vcmask 523264  }
 0x2d4   : > { %v1273_v25 = vand.u32 4294901760, %v1260_v12 }
 0x2d5   : > { %v9721_v53 = vpop.permute.xlu0 %2283 }
 0x2d6   : > { %14105 = vst [vmem:[#allocation11_spill] sm:$0xff] %v9721_v53  ;;  %1274 = vmatpush.msra.mxu0 %v1273_v25  ;;  %1382 = vmatpush.msra.mxu3 %v1273_v25  ;;  %v1304_v8 = vsub.f32 %v1260_v12, %v1273_v25 }
 0x2d7   : > { %v9724_v27 = vpop.permute.xlu2 %2315 }
 0x2d8   : > { %14106 = vst [vmem:[#allocation12_spill] sm:$0xff] %v9724_v27  ;;  %v9726_v36 = vpop.permute.xlu1 %2299  ;;  %1276 = vmatpush.msra.mxu0 %v9706_v59  ;;  %1351 = vmatpush.msra.mxu2 %v1304_v8  ;;  %v1305_v23 = vand.u32 4294901760, %v1304_v8 }
 0x2d9   : > { %14107 = vst [vmem:[#allocation13_spill] sm:$0xff] %v9726_v36  ;;  %1384 = vmatpush.msra.mxu3 %v9706_v59 }
 0x2da   : > { %1278 = vmatpush.msra.mxu0 %v9712_v18  ;;  %1354 = vmatpush.msra.mxu2 %v1310_v7  ;;  %v1306_v38 = vsub.f32 %v1304_v8, %v1305_v23 }
 0x2db   : > { %1386 = vmatpush.msra.mxu3 %v9712_v18 }
 0x2dc   : > { %1280 = vmatpush.msra.mxu0 %v9716_v15  ;;  %1357 = vmatpush.msra.mxu2 %v1316_v2  ;;  %v1307_v45 = vand.u32 4294901760, %v1306_v38 }
 0x2dd   : > { %1388 = vmatpush.msra.mxu3 %v9716_v15  ;;  %v9735_v20 = vpop.permute.xlu0 %2295 }
 0x2de   : > { %14108 = vst [vmem:[#allocation14_spill] sm:$0xff] %v9735_v20  ;;  %1282 = vmatpush.msra.mxu0 %v9719_v14  ;;  %1308 = vmatpush.msra.mxu1 %v1307_v45 }
 0x2df   : > { %1360 = vmatpush.msra.mxu2 %v1322_v0  ;;  %1390 = vmatpush.msra.mxu3 %v9719_v14  ;;  %v9741_v30 = vpop.permute.xlu2 %2327 }
 0x2e0   : > { %1288 = vmatmul.f32.vlgmr.msra.gmra.mxu0 %v1287_v34  ;;  %v9739_v52 = vpop.permute.xlu1 %2311  ;;  %1314 = vmatpush.msra.mxu1 %v1313_v31  ;;  %14110 = vst [vmem:[#allocation16_spill] sm:$0xff] %v9741_v30 }
 0x2e1   : > { %14109 = vst [vmem:[#allocation15_spill] sm:$0xff] %v9739_v52  ;;  %1412 = vmatpush.msrb.mxu0 %v1305_v23  ;;  %1363 = vmatpush.msra.mxu2 %v1328_v37 }
 0x2e2   : > { %1320 = vmatpush.msra.mxu1 %v1319_v55  ;;  %1366 = vmatmul.f32.vlgmr.msra.gmra.mxu2 %v1284_v39 }
 0x2e3   : > { %1416 = vmatpush.msrb.mxu0 %v1311_v13  ;;  %1394 = vmatmul.f32.vlgmr.msra.gmra.mxu3 %v1285_v62 }
 0x2e4   : > { %1326 = vmatpush.msra.mxu1 %v1325_v60 }
 0x2e5   : > { %1420 = vmatpush.msrb.mxu0 %v1317_v61  ;;  %v9743_v24 = vpop.permute.xlu0 %2307 }
 0x2e6   : > { %14111 = vst [vmem:[#allocation17_spill] sm:$0xff] %v9743_v24  ;;  %1332 = vmatpush.msra.mxu1 %v1331_v46 }
 0x2e7   : > { %1424 = vmatpush.msrb.mxu0 %v1323_v43  ;;  %1334 = vmatmul.f32.vlgmr.msra.gmra.mxu1 %v9702_v63  ;;  %v2771_v22 = vpop.permute.xlu2 %2770 }
 0x2e8   : > { %1446 = vmatpush.msrb.mxu1 %v1273_v25  ;;  %v9746_v1 = vpop.permute.xlu1 %2323  ;;  %v2828_v47 = vrot.slane %v2771_v22, 4 }
 0x2e9   : > { %14112 = vst [vmem:[#allocation18_spill] sm:$0xff] %v9746_v1  ;;  %1428 = vmatpush.msrb.mxu0 %v1329_v48 }
 0x2ea   : > { %1448 = vmatpush.msrb.mxu1 %v9706_v59  ;;  %1430 = vmatmul.f32.vlgmr.msrb.gmra.mxu0 %v9702_v63 }
 0x2ec   : > { %1450 = vmatpush.msrb.mxu1 %v9712_v18 }
 0x2ed   : > { %v9751_v39 = vpop.permute.xlu0 %2319 }
 0x2ee   : > { %14113 = vst [vmem:[#allocation19_spill] sm:$0xff] %v9751_v39  ;;  %1452 = vmatpush.msrb.mxu1 %v9716_v15 }
 0x2ef   : > { %v9758_v7 = vpop.permute.xlu2 %2776 }
 0x2f0   : > { %1454 = vmatpush.msrb.mxu1 %v9719_v14  ;;  %v9755_v42 = vpop.permute.xlu1 %2335 }
 0x2f1   : > { %14114 = vst [vmem:[#allocation20_spill] sm:$0xff] %v9755_v42  ;;  %1456 = vmatmul.f32.vlgmr.msrb.gmra.mxu1 %v9702_v63 }
 0x2f5   : > { %v9760_v12 = vpop.permute.xlu0 %2331 }
 0x2f6   : > { %14115 = vst [vmem:[#allocation21_spill] sm:$0xff] %v9760_v12 }
 0x2f7   : > { %v2783_v2 = vpop.permute.xlu2 %2782 }
 0x2f8   : > { %v9762_v25 = vpop.permute.xlu1 %2768  ;;  %v2840_v56 = vrot.slane %v2783_v2, 4 }
 0x2fd   : > { %v2767_v59 = vpop.permute.xlu0 %2766 }
 0x2fe   : > { %v2816_v60 = vrot.slane %v2767_v59, 4 }
 0x2ff   : > { %v9766_v8 = vpop.permute.xlu2 %2788 }
 0x300   : > { %v2775_v62 = vpop.permute.xlu1 %2774 }
 0x301   : > { %v2814_v26 = vrot.slane %v2775_v62, 4 }
 0x303   : > { %v2815_v43 = vsel %vm276_vm0, %v2814_v26, %v2767_v59 }
 0x304   : > { %v2821_v48 = vperm.slane %v2815_v43, %v8951_v5 }
 0x305   : > { %v9764_v18 = vpop.permute.xlu0 %2772 }
 0x306   : > { %v2864_v26 = vrot.slane %v2821_v48, 4 }
 0x307   : > { %v2795_v13 = vpop.permute.xlu2 %2794 }
 0x308   : > { %v9768_v15 = vpop.permute.xlu1 %2780  ;;  %v2850_v61 = vrot.slane %v2795_v13, 4 }
 0x30d   : > { %v2779_v14 = vpop.permute.xlu0 %2778 }
 0x30e   : > { %v2826_v0 = vrot.slane %v2779_v14, 4  ;;  %v2829_v46 = vsel %vm276_vm0, %v2779_v14, %v2828_v47  ;;  %v2817_v14 = vsel %vm276_vm0, %v2775_v62, %v2816_v60 }
 0x30f   : > { %v2837_v43 = vperm.slane %v2829_v46, %v8951_v5 }
 0x310   : > { %v2827_v63 = vsel %vm276_vm0, %v2826_v0, %v2771_v22  ;;  %v2787_v23 = vpop.permute.xlu1 %2786 }
 0x311   : > { %v2852_v37 = vrot.slane %v2787_v23, 4  ;;  %v2833_v38 = vperm.slane %v2827_v63, %v8951_v5  ;;  %v2851_v34 = vsel %vm276_vm0, %v2850_v61, %v2787_v23 }
 0x312   : > { %v2857_v55 = vperm.slane %v2851_v34, %v8951_v5  ;;  %v2938_v34 = vrot.slane %v9768_v15, 4 }
 0x313   : > { %v2853_v45 = vsel %vm276_vm0, %v2795_v13, %v2852_v37  ;;  %v2862_v29 = vrot.slane %v2833_v38, 4  ;;  %v2865_v59 = vsel %vm276_vm0, %v2833_v38, %v2864_v26 }
 0x314   : > { %v2861_v31 = vperm.slane %v2853_v45, %v8951_v5  ;;  %v2886_v37 = vrot.slane %v2857_v55, 4  ;;  %v2873_v46 = vperm.slane %v2865_v59, %v8976_v21  ;;  %v2939_v62 = vsel %vm276_vm0, %v2938_v34, %v9764_v18 }
 0x315   : > { %v9772_v35 = vpop.permute.xlu0 %2784  ;;  %v2863_v63 = vsel %vm276_vm0, %v2862_v29, %v2821_v48  ;;  %v2945_v30 = vperm.slane %v2939_v62, %v8951_v5 }
 0x316   : > { %v2898_v42 = vrot.slane %v2861_v31, 4  ;;  %v2869_v45 = vperm.slane %v2863_v63, %v8976_v21  ;;  %v2874_v63 = vrot.slane %v2837_v43, 4  ;;  %v2916_v12 = vrot.slane %v2873_v46, 4 }
 0x318   : > { %v2793_v48 = vpop.permute.xlu1 %2792  ;;  %v2912_v26 = vrot.slane %v2869_v45, 4 }
 0x319   : > { %v2950_v60 = vrot.slane %v2793_v48, 4 }
 0x31d   : > { %v2791_v0 = vpop.permute.xlu0 %2790 }
 0x31e   : > { %v2838_v13 = vrot.slane %v2791_v0, 4  ;;  %v2841_v23 = vsel %vm276_vm0, %v2791_v0, %v2840_v56 }
 0x31f   : > { %v2849_v61 = vperm.slane %v2841_v23, %v8951_v5 }
 0x320   : > { %v2839_v22 = vsel %vm276_vm0, %v2838_v13, %v2783_v2  ;;  %v2825_v2 = vperm.slane %v2817_v14, %v8951_v5  ;;  %v2926_v14 = vrot.slane %v9758_v7, 4 }
 0x321   : > { %v2845_v29 = vperm.slane %v2839_v22, %v8951_v5  ;;  %v2899_v47 = vsel %vm276_vm0, %v2898_v42, %v2849_v61  ;;  %v2900_v56 = vrot.slane %v2849_v61, 4 }
 0x322   : > { %v2905_v42 = vperm.slane %v2899_v47, %v8976_v21  ;;  %v2875_v47 = vsel %vm276_vm0, %v2874_v63, %v2825_v2 }
 0x323   : > { %v2888_v0 = vrot.slane %v2845_v29, 4  ;;  %v2887_v23 = vsel %vm276_vm0, %v2886_v37, %v2845_v29  ;;  %v2901_v59 = vsel %vm276_vm0, %v2861_v31, %v2900_v56 }
 0x324   : > { %v2893_v38 = vperm.slane %v2887_v23, %v8976_v21  ;;  %v2964_v23 = vrot.slane %v9766_v8, 4  ;;  %v2918_v62 = vrot.slane %v2905_v42, 4 }
 0x325   : > { %v2797_v13 = vpop.permute.xlu0 %2796  ;;  %v2889_v22 = vsel %vm276_vm0, %v2857_v55, %v2888_v0 }
 0x326   : > { %v2962_v61 = vrot.slane %v2797_v13, 4  ;;  %v2913_v37 = vsel %vm276_vm0, %v2893_v38, %v2912_v26  ;;  %v2910_v29 = vrot.slane %v2893_v38, 4  ;;  %v2897_v34 = vperm.slane %v2889_v22, %v8976_v21 }
 0x327   : > { %3039 = vrot.lane.b32.xlu1 %v2913_v37, %s8879_s9  ;;  %v2909_v26 = vperm.slane %v2901_v59, %v8976_v21  ;;  %v2876_v37 = vrot.slane %v2825_v2, 4  ;;  %v2951_v22 = vsel %vm276_vm0, %v2950_v60, %v9772_v35  ;;  %v2965_v63 = vsel %vm276_vm0, %v2797_v13, %v2964_v23 }
 0x328   : > { %v2963_v55 = vsel %vm276_vm0, %v2962_v61, %v9766_v8  ;;  %v9811_v0 = vsel %vm276_vm0, %v2910_v29, %v2869_v45  ;;  %v2917_v56 = vsel %vm276_vm0, %v2897_v34, %v2916_v12  ;;  %v2914_v38 = vrot.slane %v2897_v34, 4 }
 0x329   : > { %14116 = vst [vmem:[#allocation22_spill] sm:$0xff] %v9811_v0  ;;  %v2969_v31 = vperm.slane %v2963_v55, %v8951_v5  ;;  %3047 = vrot.lane.b32.xlu0 %v2917_v56, %s8877_s7  ;;  %v2927_v8 = vsel %vm276_vm0, %v2926_v14, %v9762_v25  ;;  %v2940_v45 = vrot.slane %v9764_v18, 4  ;;  %v2974_v12 = vrot.slane %v2945_v30, 4 }
 0x32a   : > { %v2915_v61 = vsel %vm276_vm0, %v2914_v38, %v2873_v46  ;;  %v2881_v2 = vperm.slane %v2875_v47, %v8976_v21  ;;  %v2877_v60 = vsel %vm276_vm0, %v2837_v43, %v2876_v37  ;;  %v2952_v59 = vrot.slane %v9772_v35, 4 }
 0x32b   : > { %v2998_v29 = vrot.slane %v2969_v31, 4  ;;  %3043 = vrot.lane.b32.xlu2 %v2915_v61, %s8876_s30  ;;  %v2957_v34 = vperm.slane %v2951_v22, %v8951_v5  ;;  %v2922_v55 = vrot.slane %v2909_v26, 4  ;;  %v2933_v14 = vperm.slane %v2927_v8, %v8951_v5 }
 0x32c   : > { %v2973_v18 = vperm.slane %v2965_v63, %v8951_v5  ;;  %v2919_v13 = vsel %vm276_vm0, %v2918_v62, %v2881_v2  ;;  %v2885_v46 = vperm.slane %v2877_v60, %v8976_v21  ;;  %v2941_v23 = vsel %vm276_vm0, %v9768_v15, %v2940_v45 }
 0x32d   : > { %v2975_v43 = vsel %vm276_vm0, %v2974_v12, %v2933_v14  ;;  %v2999_v35 = vsel %vm276_vm0, %v2998_v29, %v2957_v34  ;;  %v2953_v47 = vsel %vm276_vm0, %v2793_v48, %v2952_v59  ;;  %v3000_v56 = vrot.slane %v2957_v34, 4 }
 0x32e   : > { %v2923_v38 = vsel %vm276_vm0, %v2922_v55, %v2885_v46  ;;  %v2920_v37 = vrot.slane %v2881_v2, 4  ;;  %v2928_v22 = vrot.slane %v9762_v25, 4  ;;  %v3010_v62 = vrot.slane %v2973_v18, 4 }
 0x32f   : > { %3051 = vrot.lane.b32.xlu1 %v2919_v13, %s8874_s28  ;;  %v2981_v63 = vperm.slane %v2975_v43, %v8976_v21  ;;  %v3005_v15 = vperm.slane %v2999_v35, %v8976_v21  ;;  %v3001_v45 = vsel %vm276_vm0, %v2969_v31, %v3000_v56  ;;  %v2949_v61 = vperm.slane %v2941_v23, %v8951_v5 }
 0x330   : > { %v2921_v8 = vsel %vm276_vm0, %v2905_v42, %v2920_v37  ;;  %v2961_v48 = vperm.slane %v2953_v47, %v8951_v5  ;;  %v2924_v12 = vrot.slane %v2885_v46, 4  ;;  %v3009_v29 = vperm.slane %v3001_v45, %v8976_v21 }
 0x331   : > { %3059 = vrot.lane.b32.xlu0 %v2923_v38, %s8875_s29  ;;  %v2929_v42 = vsel %vm276_vm0, %v9758_v7, %v2928_v22  ;;  %v2976_v60 = vrot.slane %v2933_v14, 4  ;;  %v3024_v31 = vrot.slane %v2981_v63, 4  ;;  %v3022_v59 = vrot.slane %v3005_v15, 4 }
 0x332   : > { %v2925_v25 = vsel %vm276_vm0, %v2909_v26, %v2924_v12  ;;  %v3011_v2 = vsel %vm276_vm0, %v3010_v62, %v2961_v48  ;;  %v2986_v34 = vrot.slane %v2949_v61, 4  ;;  %v2937_v26 = vperm.slane %v2929_v42, %v8951_v5 }
 0x333   : > { %3055 = vrot.lane.b32.xlu2 %v2921_v8, %s8878_s8  ;;  %v3025_v55 = vsel %vm276_vm0, %v3005_v15, %v3024_v31  ;;  %v2977_v13 = vsel %vm276_vm0, %v2945_v30, %v2976_v60  ;;  %v3017_v46 = vperm.slane %v3011_v2, %v8976_v21  ;;  %v3026_v23 = vrot.slane %v3009_v29, 4  ;;  %v3506_v31 = vld [vmem:[%s9414_s14 + $0x90] sm:$0xff] }
 0x334   : > { %v3023_v43 = vsel %vm276_vm0, %v3022_v59, %v2981_v63  ;;  %v2985_v7 = vperm.slane %v2977_v13, %v8976_v21  ;;  %v2987_v14 = vsel %vm276_vm0, %v2986_v34, %v2937_v26  ;;  %v2988_v47 = vrot.slane %v2937_v26, 4 }
 0x335   : > { %v3030_v35 = vrot.slane %v3017_v46, 4  ;;  %v3012_v56 = vrot.slane %v2961_v48, 4  ;;  %v2993_v38 = vperm.slane %v2987_v14, %v8976_v21 }
 0x336   : > { %v3027_v30 = vsel %vm276_vm0, %v3026_v23, %v2985_v7  ;;  %v2989_v37 = vsel %vm276_vm0, %v2949_v61, %v2988_v47  ;;  %v3028_v8 = vrot.slane %v2985_v7, 4 }
 0x337   : > { %3063 = vrot.lane.b32.xlu1 %v2925_v25, %s8880_s10  ;;  %v3013_v22 = vsel %vm276_vm0, %v2973_v18, %v3012_v56  ;;  %v3031_v62 = vsel %vm276_vm0, %v3030_v35, %v2993_v38  ;;  %v2997_v15 = vperm.slane %v2989_v37, %v8976_v21  ;;  %v3032_v48 = vrot.slane %v2993_v38, 4 }
 0x338   : > { %v3029_v63 = vsel %vm276_vm0, %v3009_v29, %v3028_v8  ;;  %v3021_v45 = vperm.slane %v3013_v22, %v8976_v21 }
 0x339   : > { %3071 = vrot.lane.b32.xlu0 %v3025_v55, %s8882_s17  ;;  %v3033_v12 = vsel %vm276_vm0, %v3017_v46, %v3032_v48  ;;  %v3036_v61 = vrot.slane %v2997_v15, 4 }
 0x33a   : > { %v3034_v18 = vrot.slane %v3021_v45, 4 }
 0x33b   : > { %3067 = vrot.lane.b32.xlu2 %v3023_v43, %s8883_s18  ;;  %v3037_v25 = vsel %vm276_vm0, %v3021_v45, %v3036_v61 }
 0x33c   : > { %v3035_v2 = vsel %vm276_vm0, %v3034_v18, %v2997_v15 }
 0x33f   : > { %3075 = vrot.lane.b32.xlu1 %v3027_v30, %s8886_s23 }
 0x341   : > { %3083 = vrot.lane.b32.xlu0 %v3031_v62, %s8884_s19 }
 0x343   : > { %3079 = vrot.lane.b32.xlu2 %v3029_v63, %s8885_s20 }
 0x347   : > { %3087 = vrot.lane.b32.xlu1 %v3033_v12, %s8889_s26 }
 0x349   : > { %3095 = vrot.lane.b32.xlu0 %v3037_v25, %s8887_s24 }
 0x34b   : > { %3091 = vrot.lane.b32.xlu2 %v3035_v2, %s8888_s25 }
 0x34f   : > { %3530 = vrot.lane.b32.xlu1 %v9440_v57, %s8890_s13 }
 0x351   : > { %3528 = vrot.lane.b32.xlu0 %v9532_v32, %s8890_s13 }
 0x353   : > { %3526 = vrot.lane.b32.xlu2 %v9428_v19, %s8890_s13 }
 0x357   : > { %3536 = vrot.lane.b32.xlu1 %v9513_v16, %s8890_s13 }
 0x359   : > { %3534 = vrot.lane.b32.xlu0 %v9418_v9, %s8890_s13 }
 0x35b   : > { %3532 = vrot.lane.b32.xlu2 %v9510_v54, %s8890_s13 }
 0x35d   : > { %v1289_v57 = vpop.f32.mrf.mxu0 }
 0x35e   : > { %v1290_v32 = vadd.f32 %v1289_v57, %v9704_v41 }
 0x35f   : > { %3542 = vrot.lane.b32.xlu1 %v9446_v28, %s8890_s13 }
 0x361   : > { %3540 = vrot.lane.b32.xlu0 %v9490_v11, %s8890_s13  ;;  %v3508_v11 = vld [vmem:[%s9414_s14 + $0xa8] sm:$0xff] }
 0x363   : > { %3538 = vrot.lane.b32.xlu2 %v9421_v58, %s8890_s13 }
 0x364   : > { %v1335_v19 = vpop.f32.mrf.mxu1 }
 0x365   : > { %v1336_v16 = vadd.f32 %v1335_v19, %v1290_v32  ;;  %v1367_v9 = vpop.f32.mrf.mxu2 }
 0x366   : > { %v1395_v29 = vpop.f32.mrf.mxu3 }
 0x367   : > { %v1368_v42 = vadd.f32 %v1367_v9, %v1336_v16  ;;  %3548 = vrot.lane.b32.xlu1 %v9535_v33, %s8890_s13  ;;  %v1431_v28 = vpop.f32.mrf.mxu0 }
 0x369   : > { %v1396_v54 = vadd.f32 %v1395_v29, %v1368_v42  ;;  %3546 = vrot.lane.b32.xlu0 %v9467_v40, %s8890_s13 }
 0x36b   : > { %3544 = vrot.lane.b32.xlu2 %v9558_v49, %s8890_s13  ;;  %v1432_v41 = vadd.f32 %v1431_v28, %v1396_v54 }
 0x36e   : > { %v1457_v58 = vpop.f32.mrf.mxu1 }
 0x36f   : > { %3554 = vrot.lane.b32.xlu1 %v3508_v11, %s8890_s13  ;;  %v1458_v60 = vadd.f32 %v1457_v58, %v1432_v41 }
 0x371   : > { %3552 = vrot.lane.b32.xlu0 %v9538_v6, %s8890_s13  ;;  %v9912_v33 = vmax.f32 %v1458_v60, 0.0 }
 0x373   : > { %3550 = vrot.lane.b32.xlu2 %v3506_v31, %s8890_s13 }
 0x377   : > { %1540 = vrot.lane.b32.xlu1 %v9912_v33, %s8887_s24 }
 0x379   : > { %1552 = vrot.lane.b32.xlu0 %v9912_v33, %s8885_s20 }
 0x37b   : > { %3556 = vrot.lane.b32.xlu2 %v9516_v3, %s8890_s13 }
 0x37f   : > { %1546 = vrot.lane.b32.xlu1 %v9912_v33, %s8889_s26 }
 0x383   : > { %1543 = vrot.lane.b32.xlu2 %v9912_v33, %s8888_s25 }
 0x385   : > { %v9924_v40 = vpop.permute.xlu2 %3043 }
 0x386   : > { %14117 = vst [vmem:[#allocation23_spill] sm:$0xff] %v9924_v40 }
 0x38b   : > { %1549 = vrot.lane.b32.xlu2 %v9912_v33, %s8884_s19 }
 0x38d   : > { %v9928_v6 = vpop.permute.xlu2 %3055 }
 0x38e   : > { %14118 = vst [vmem:[#allocation24_spill] sm:$0xff] %v9928_v6 }
 0x393   : > { %1558 = vrot.lane.b32.xlu2 %v9912_v33, %s8882_s17 }
 0x395   : > { %v9932_v49 = vpop.permute.xlu2 %3067 }
 0x396   : > { %14119 = vst [vmem:[#allocation25_spill] sm:$0xff] %v9932_v49 }
 0x399   : > { %v9934_v59 = vpop.permute.xlu1 %3039 }
 0x39a   : > { %14120 = vst [vmem:[#allocation26_spill] sm:$0xff] %v9934_v59 }
 0x39b   : > { %v9936_v3 = vpop.permute.xlu0 %3047 }
 0x39c   : > { %14121 = vst [vmem:[#allocation27_spill] sm:$0xff] %v9936_v3 }
 0x39d   : > { %v9938_v34 = vpop.permute.xlu2 %3079 }
 0x39e   : > { %14122 = vst [vmem:[#allocation28_spill] sm:$0xff] %v9938_v34 }
 0x3a1   : > { %v9940_v55 = vpop.permute.xlu1 %3051 }
 0x3a2   : > { %14123 = vst [vmem:[#allocation29_spill] sm:$0xff] %v9940_v55 }
 0x3a3   : > { %v9942_v13 = vpop.permute.xlu0 %3059 }
 0x3a4   : > { %14124 = vst [vmem:[#allocation30_spill] sm:$0xff] %v9942_v13 }
 0x3a5   : > { %v9944_v46 = vpop.permute.xlu2 %3091 }
 0x3a6   : > { %14125 = vst [vmem:[#allocation31_spill] sm:$0xff] %v9944_v46 }
 0x3a9   : > { %v9946_v26 = vpop.permute.xlu1 %3063 }
 0x3aa   : > { %14126 = vst [vmem:[#allocation32_spill] sm:$0xff] %v9946_v26 }
 0x3ab   : > { %v9948_v23 = vpop.permute.xlu0 %3071 }
 0x3ac   : > { %14127 = vst [vmem:[#allocation33_spill] sm:$0xff] %v9948_v23 }
 0x3ad   : > { %v3527_v7 = vpop.permute.xlu2 %3526 }
 0x3ae   : > { %v3576_v42 = vrot.slane %v3527_v7, 4 }
 0x3b1   : > { %v9950_v43 = vpop.permute.xlu1 %3075 }
 0x3b2   : > { %14128 = vst [vmem:[#allocation34_spill] sm:$0xff] %v9950_v43 }
 0x3b3   : > { %v9952_v14 = vpop.permute.xlu0 %3083 }
 0x3b4   : > { %14129 = vst [vmem:[#allocation35_spill] sm:$0xff] %v9952_v14 }
 0x3b5   : > { %v9956_v47 = vpop.permute.xlu2 %3532 }
 0x3b9   : > { %v9954_v35 = vpop.permute.xlu1 %3087 }
 0x3ba   : > { %14130 = vst [vmem:[#allocation36_spill] sm:$0xff] %v9954_v35 }
 0x3bb   : > { %v9958_v56 = vpop.permute.xlu0 %3095 }
 0x3bc   : > { %14131 = vst [vmem:[#allocation37_spill] sm:$0xff] %v9958_v56 }
 0x3bd   : > { %v3539_v37 = vpop.permute.xlu2 %3538 }
 0x3be   : > { %v3586_v48 = vrot.slane %v3539_v37, 4 }
 0x3c1   : > { %v3531_v30 = vpop.permute.xlu1 %3530 }
 0x3c2   : > { %v3587_v25 = vsel %vm276_vm0, %v3586_v48, %v3531_v30  ;;  %v3588_v11 = vrot.slane %v3531_v30, 4 }
 0x3c3   : > { %v9960_v38 = vpop.permute.xlu0 %3528  ;;  %v3593_v16 = vperm.slane %v3587_v25, %v8951_v5 }
 0x3c4   : > { %v3589_v30 = vsel %vm276_vm0, %v3539_v37, %v3588_v11 }
 0x3c5   : > { %v9964_v8 = vpop.permute.xlu2 %3544  ;;  %v3622_v41 = vrot.slane %v3593_v16, 4 }
 0x3c9   : > { %v9962_v22 = vpop.permute.xlu1 %3536 }
 0x3ca   : > { %v3686_v37 = vrot.slane %v9962_v22, 4 }
 0x3cb   : > { %v3535_v62 = vpop.permute.xlu0 %3534 }
 0x3cc   : > { %v3574_v15 = vrot.slane %v3535_v62, 4  ;;  %v3577_v58 = vsel %vm276_vm0, %v3535_v62, %v3576_v42 }
 0x3cd   : > { %v3551_v2 = vpop.permute.xlu2 %3550  ;;  %v3585_v62 = vperm.slane %v3577_v58, %v8951_v5 }
 0x3ce   : > { %v3575_v12 = vsel %vm276_vm0, %v3574_v15, %v3527_v7  ;;  %v3598_v57 = vrot.slane %v3551_v2, 4 }
 0x3cf   : > { %v3581_v61 = vperm.slane %v3575_v12, %v8951_v5 }
 0x3d1   : > { %v3543_v63 = vpop.permute.xlu1 %3542  ;;  %v3624_v9 = vrot.slane %v3581_v61, 4 }
 0x3d2   : > { %v3600_v32 = vrot.slane %v3543_v63, 4  ;;  %v3599_v54 = vsel %vm276_vm0, %v3598_v57, %v3543_v63 }
 0x3d3   : > { %v9966_v45 = vpop.permute.xlu0 %3540  ;;  %v3625_v31 = vsel %vm276_vm0, %v3593_v16, %v3624_v9  ;;  %v3605_v15 = vperm.slane %v3599_v54, %v8951_v5 }
 0x3d4   : > { %v3601_v28 = vsel %vm276_vm0, %v3551_v2, %v3600_v32  ;;  %v3698_v7 = vrot.slane %v9966_v45, 4  ;;  %v3623_v2 = vsel %vm276_vm0, %v3622_v41, %v3581_v61  ;;  %v3633_v32 = vperm.slane %v3625_v31, %v8976_v21 }
 0x3d5   : > { %v3609_v48 = vperm.slane %v3601_v28, %v8951_v5  ;;  %v3557_v16 = vpop.permute.xlu2 %3556  ;;  %v3648_v54 = vrot.slane %v3605_v15, 4  ;;  %v3597_v61 = vperm.slane %v3589_v30, %v8951_v5  ;;  %v3636_v41 = vrot.slane %v3585_v62, 4 }
 0x3d6   : > { %v3722_v28 = vrot.slane %v3557_v16, 4 }
 0x3d9   : > { %v9970_v18 = vpop.permute.xlu1 %3548 }
 0x3db   : > { %v3547_v19 = vpop.permute.xlu0 %3546 }
 0x3dc   : > { %v3612_v29 = vrot.slane %v3547_v19, 4 }
 0x3e1   : > { %v3555_v60 = vpop.permute.xlu1 %3554 }
 0x3e2   : > { %v3610_v12 = vrot.slane %v3555_v60, 4  ;;  %v3613_v25 = vsel %vm276_vm0, %v3555_v60, %v3612_v29  ;;  %v3660_v29 = vrot.slane %v3609_v48, 4 }
 0x3e3   : > { %v3621_v63 = vperm.slane %v3613_v25, %v8951_v5  ;;  %v3553_v60 = vpop.permute.xlu0 %3552  ;;  %v9990_v25 = vperm.slane %v3623_v2, %v8976_v21 }
 0x3e4   : > { %v3611_v57 = vsel %vm276_vm0, %v3610_v12, %v3547_v19  ;;  %v3699_v19 = vsel %vm276_vm0, %v3698_v7, %v9956_v47  ;;  %v3676_v12 = vrot.slane %v3633_v32, 4  ;;  %v3723_v7 = vsel %vm276_vm0, %v3722_v28, %v9970_v18 }
 0x3e5   : > { %v3617_v9 = vperm.slane %v3611_v57, %v8951_v5  ;;  %v3658_v42 = vrot.slane %v3621_v63, 4  ;;  %v3661_v58 = vsel %vm276_vm0, %v3621_v63, %v3660_v29  ;;  %v3710_v57 = vrot.slane %v3553_v60, 4 }
 0x3e6   : > { %v10002_v30 = vperm.slane %v3699_v19, %v8951_v5  ;;  %v3672_v63 = vrot.slane %v9990_v25, 4  ;;  %v3687_v28 = vsel %vm276_vm0, %v3686_v37, %v9960_v38 }
 0x3e7   : > { %v3646_v11 = vrot.slane %v3617_v9, 4  ;;  %v3649_v31 = vsel %vm276_vm0, %v3617_v9, %v3648_v54  ;;  %v3659_v46 = vsel %vm276_vm0, %v3658_v42, %v3609_v48  ;;  %v3724_v9 = vrot.slane %v9970_v18, 4 }
 0x3e8   : > { %v3657_v56 = vperm.slane %v3649_v31, %v8976_v21  ;;  %v10011_v31 = vperm.slane %v3661_v58, %v8976_v21  ;;  %v10016_v48 = vperm.slane %v3659_v46, %v8976_v21  ;;  %v3634_v42 = vrot.slane %v3597_v61, 4 }
 0x3e9   : > { %v3647_v2 = vsel %vm276_vm0, %v3646_v11, %v3605_v15  ;;  %v3711_v18 = vsel %vm276_vm0, %v3710_v57, %v9964_v8  ;;  %v3729_v11 = vperm.slane %v3723_v7, %v8951_v5  ;;  %v3637_v46 = vsel %vm276_vm0, %v3597_v61, %v3636_v41 }
 0x3ea   : > { %v3653_v1 = vperm.slane %v3647_v2, %v8976_v21  ;;  %v3677_v54 = vsel %vm276_vm0, %v3657_v56, %v3676_v12  ;;  %v3674_v29 = vrot.slane %v3657_v56, 4  ;;  %v3734_v56 = vrot.slane %v10002_v30, 4 }
 0x3eb   : > { %3807 = vrot.lane.b32.xlu2 %v3677_v54, %s8877_s7  ;;  %v3712_v58 = vrot.slane %v9964_v8, 4  ;;  %v3725_v12 = vsel %vm276_vm0, %v3557_v16, %v3724_v9  ;;  %v3682_v37 = vrot.slane %v10011_v31, 4  ;;  %v3635_v57 = vsel %vm276_vm0, %v3634_v42, %v3585_v62 }
 0x3ec   : > { %v3673_v15 = vsel %vm276_vm0, %v3653_v1, %v3672_v63  ;;  %v3675_v19 = vsel %vm276_vm0, %v3674_v29, %v3633_v32  ;;  %v3693_v32 = vperm.slane %v3687_v28, %v8951_v5  ;;  %v3717_v2 = vperm.slane %v3711_v18, %v8951_v5 }
 0x3ed   : > { %3799 = vrot.lane.b32.xlu0 %v3673_v15, %s8879_s9  ;;  %3803 = vrot.lane.b32.xlu1 %v3675_v19, %s8876_s30  ;;  %v3678_v63 = vrot.slane %v10016_v48, 4  ;;  %v3700_v7 = vrot.slane %v9956_v47, 4  ;;  %v3713_v54 = vsel %vm276_vm0, %v3553_v60, %v3712_v58  ;;  %v3645_v61 = vperm.slane %v3637_v46, %v8976_v21 }
 0x3ee   : > { %v10039_v8 = vperm.slane %v3725_v12, %v8951_v5  ;;  %v3758_v16 = vrot.slane %v3729_v11, 4  ;;  %v3641_v41 = vperm.slane %v3635_v57, %v8976_v21  ;;  %v3735_v62 = vsel %vm276_vm0, %v3734_v56, %v3693_v32 }
 0x3ef   : > { %v3701_v9 = vsel %vm276_vm0, %v9966_v45, %v3700_v7  ;;  %v3683_v29 = vsel %vm276_vm0, %v3682_v37, %v3645_v61  ;;  %v3721_v15 = vperm.slane %v3713_v54, %v8951_v5  ;;  %v3670_v42 = vrot.slane %v3653_v1, 4 }
 0x3f0   : > { %v3679_v47 = vsel %vm276_vm0, %v3678_v63, %v3641_v41  ;;  %v3759_v60 = vsel %vm276_vm0, %v3758_v16, %v3717_v2  ;;  %v3688_v28 = vrot.slane %v9960_v38, 4  ;;  %v3760_v18 = vrot.slane %v3717_v2, 4 }
 0x3f1   : > { %v3741_v19 = vperm.slane %v3735_v62, %v8976_v21  ;;  %v3709_v45 = vperm.slane %v3701_v9, %v8951_v5  ;;  %v3770_v56 = vrot.slane %v10039_v8, 4  ;;  %v3765_v46 = vperm.slane %v3759_v60, %v8976_v21 }
 0x3f2   : > { %v14087_v58 = vmov 0.0   ;;  %v10065_v38 = vsel %vm276_vm0, %v3670_v42, %v9990_v25  ;;  %v3689_v12 = vsel %vm276_vm0, %v9962_v22, %v3688_v28  ;;  %v3761_v57 = vsel %vm276_vm0, %v3729_v11, %v3760_v18 }
 0x3f3   : > { %3819 = vrot.lane.b32.xlu2 %v3683_v29, %s8875_s29  ;;  %1463 = vst.msk [vmem:[#allocation2 + $0x8] sm:$0xff] %vm1461_vm11, %v14087_v58  ;;  %v3771_v1 = vsel %vm276_vm0, %v3770_v56, %v3721_v15  ;;  %v3784_v37 = vrot.slane %v3741_v19, 4  ;;  %v3746_v2 = vrot.slane %v3709_v45, 4  ;;  %v3684_v63 = vrot.slane %v3645_v61, 4 }
 0x3f4   : > { %1465 = vst.msk [vmem:[#allocation2 + $0x10] sm:$0x3] %vm1464_vm12, %v14087_v58  ;;  %v3680_v54 = vrot.slane %v3641_v41, 4  ;;  %v3777_v25 = vperm.slane %v3771_v1, %v8976_v21  ;;  %v3697_v22 = vperm.slane %v3689_v12, %v8951_v5  ;;  %v3769_v61 = vperm.slane %v3761_v57, %v8976_v21 }
 0x3f5   : > { %3811 = vrot.lane.b32.xlu0 %v3679_v47, %s8874_s28  ;;  %1555 = vrot.lane.b32.xlu1 %v9912_v33, %s8886_s23  ;;  %14132 = vst [vmem:[#allocation38_spill] sm:$0xff] %v10065_v38  ;;  %v3785_v7 = vsel %vm276_vm0, %v3765_v46, %v3784_v37  ;;  %v3685_v11 = vsel %vm276_vm0, %v10011_v31, %v3684_v63  ;;  %v3736_v16 = vrot.slane %v3693_v32, 4  ;;  %v3772_v32 = vrot.slane %v3721_v15, 4 }
 0x3f6   : > { %1467 = vst.msk [vmem:[#allocation2 + $0x20] sm:$0xff] %vm1461_vm11, %v14087_v58  ;;  %v3681_v41 = vsel %vm276_vm0, %v10016_v48, %v3680_v54  ;;  %v3747_v62 = vsel %vm276_vm0, %v3746_v2, %v3697_v22  ;;  %v3790_v31 = vrot.slane %v3777_v25, 4  ;;  %v3748_v48 = vrot.slane %v3697_v22, 4 }
 0x3f7   : > { %1468 = vst.msk [vmem:[#allocation2 + $0x28] sm:$0x3] %vm1464_vm12, %v14087_v58  ;;  %v3737_v9 = vsel %vm276_vm0, %v10002_v30, %v3736_v16  ;;  %v3786_v29 = vrot.slane %v3769_v61, 4  ;;  %v3753_v47 = vperm.slane %v3747_v62, %v8976_v21  ;;  %v3782_v60 = vrot.slane %v3765_v46, 4 }
 0x3f8   : > { %1470 = vst.msk [vmem:[#allocation2 + $0x38] sm:$0xff] %vm1461_vm11, %v14087_v58  ;;  %v3749_v42 = vsel %vm276_vm0, %v3709_v45, %v3748_v48  ;;  %v3745_v28 = vperm.slane %v3737_v9, %v8976_v21  ;;  %v3773_v18 = vsel %vm276_vm0, %v10039_v8, %v3772_v32  ;;  %v10184_v48 = vld [vmem:[%s9414_s14 + $0x49] sm:$0xff] }
 0x3f9   : > { %1471 = vst.msk [vmem:[#allocation2 + $0x40] sm:$0x3] %vm1464_vm12, %v14087_v58  ;;  %v3791_v30 = vsel %vm276_vm0, %v3790_v31, %v3753_v47  ;;  %v3783_v45 = vsel %vm276_vm0, %v3782_v60, %v3741_v19  ;;  %v3757_v56 = vperm.slane %v3749_v42, %v8976_v21  ;;  %v3781_v8 = vperm.slane %v3773_v18, %v8976_v21 }
 0x3fa   : > { %1473 = vst.msk [vmem:[#allocation2 + $0x50] sm:$0xff] %vm1461_vm11, %v14087_v58  ;;  %v3787_v15 = vsel %vm276_vm0, %v3786_v29, %v3745_v28  ;;  %v3792_v46 = vrot.slane %v3753_v47, 4  ;;  %v3788_v12 = vrot.slane %v3745_v28, 4 }
 0x3fb   : > { %3831 = vrot.lane.b32.xlu2 %v3785_v7, %s8882_s17  ;;  %1474 = vst.msk [vmem:[#allocation2 + $0x58] sm:$0x3] %vm1464_vm12, %v14087_v58  ;;  %v3796_v19 = vrot.slane %v3757_v56, 4  ;;  %v3794_v2 = vrot.slane %v3781_v8, 4 }
 0x3fc   : > { %1476 = vst.msk [vmem:[#allocation2 + $0x68] sm:$0xff] %vm1461_vm11, %v14087_v58  ;;  %v3793_v37 = vsel %vm276_vm0, %v3777_v25, %v3792_v46  ;;  %v3789_v57 = vsel %vm276_vm0, %v3769_v61, %v3788_v12  ;;  %v4218_v46 = vrot.slane %v10184_v48, 4 }
 0x3fd   : > { %3823 = vrot.lane.b32.xlu0 %v3685_v11, %s8880_s10  ;;  %3815 = vrot.lane.b32.xlu1 %v3681_v41, %s8878_s8  ;;  %1477 = vst.msk [vmem:[#allocation2 + $0x70] sm:$0x3] %vm1464_vm12, %v14087_v58  ;;  %v3797_v1 = vsel %vm276_vm0, %v3781_v8, %v3796_v19  ;;  %v3795_v63 = vsel %vm276_vm0, %v3794_v2, %v3757_v56  ;;  %v10203_v19 = vld [vmem:[%s9414_s14 + $0x31] sm:$0xff]  ;;  %v10211_v2 = vld [vmem:[%s9414_s14 + $0x19] sm:$0xff] }
 0x3fe   : > { %1479 = vst.msk [vmem:[#allocation2 + $0x80] sm:$0xff] %vm1461_vm11, %v14087_v58 }
 0x3ff   : > { %1480 = vst.msk [vmem:[#allocation2 + $0x88] sm:$0x3] %vm1464_vm12, %v14087_v58 }
 0x400   : > { %1482 = vst.msk [vmem:[#allocation2 + $0x98] sm:$0xff] %vm1461_vm11, %v14087_v58 }
 0x401   : > { %1483 = vst.msk [vmem:[#allocation2 + $0xa0] sm:$0x3] %vm1464_vm12, %v14087_v58 }
 0x402   : > { %1485 = vst.msk [vmem:[#allocation2 + $0xb0] sm:$0xff] %vm1461_vm11, %v14087_v58 }
 0x403   : > { %3843 = vrot.lane.b32.xlu2 %v3791_v30, %s8884_s19  ;;  %1486 = vst.msk [vmem:[#allocation2 + $0xb8] sm:$0x3] %vm1464_vm12, %v14087_v58  ;;  %vm2025_vm12 = vcmask 654336  }
 0x404   : > { %1489 = vst.msk [vmem:[#allocation2 + $0x8] sm:$0xff] %vm1487_vm13, %v14087_v58 }
 0x405   : > { %3835 = vrot.lane.b32.xlu0 %v3787_v15, %s8886_s23  ;;  %3827 = vrot.lane.b32.xlu1 %v3783_v45, %s8883_s18  ;;  %1491 = vst.msk [vmem:[#allocation2 + $0x10] sm:$0x3] %vm1490_vm14, %v14087_v58 }
 0x406   : > { %1493 = vst.msk [vmem:[#allocation2 + $0x20] sm:$0xff] %vm1487_vm13, %v14087_v58 }
 0x407   : > { %1494 = vst.msk [vmem:[#allocation2 + $0x28] sm:$0x3] %vm1490_vm14, %v14087_v58 }
 0x408   : > { %1496 = vst.msk [vmem:[#allocation2 + $0x38] sm:$0xff] %vm1487_vm13, %v14087_v58 }
 0x409   : > { %1497 = vst.msk [vmem:[#allocation2 + $0x40] sm:$0x3] %vm1490_vm14, %v14087_v58 }
 0x40a   : > { %1499 = vst.msk [vmem:[#allocation2 + $0x50] sm:$0xff] %vm1487_vm13, %v14087_v58 }
 0x40b   : > { %3855 = vrot.lane.b32.xlu2 %v3797_v1, %s8887_s24  ;;  %1500 = vst.msk [vmem:[#allocation2 + $0x58] sm:$0x3] %vm1490_vm14, %v14087_v58 }
 0x40c   : > { %1502 = vst.msk [vmem:[#allocation2 + $0x68] sm:$0xff] %vm1487_vm13, %v14087_v58 }
 0x40d   : > { %3847 = vrot.lane.b32.xlu0 %v3793_v37, %s8889_s26  ;;  %3839 = vrot.lane.b32.xlu1 %v3789_v57, %s8885_s20  ;;  %1503 = vst.msk [vmem:[#allocation2 + $0x70] sm:$0x3] %vm1490_vm14, %v14087_v58 }
 0x40e   : > { %1505 = vst.msk [vmem:[#allocation2 + $0x80] sm:$0xff] %vm1487_vm13, %v14087_v58 }
 0x40f   : > { %1506 = vst.msk [vmem:[#allocation2 + $0x88] sm:$0x3] %vm1490_vm14, %v14087_v58 }
 0x410   : > { %1508 = vst.msk [vmem:[#allocation2 + $0x98] sm:$0xff] %vm1487_vm13, %v14087_v58 }
 0x411   : > { %1509 = vst.msk [vmem:[#allocation2 + $0xa0] sm:$0x3] %vm1490_vm14, %v14087_v58 }
 0x412   : > { %1511 = vst.msk [vmem:[#allocation2 + $0xb0] sm:$0xff] %vm1487_vm13, %v14087_v58 }
 0x413   : > { %1512 = vst.msk [vmem:[#allocation2 + $0xb8] sm:$0x3] %vm1490_vm14, %v14087_v58  ;;  %vm2029_vm14 = vcmask 785408  }
 0x414   : > { %1523 = vst.msk [vmem:[#allocation2 + $0x9] sm:$0xff] %vm1522_vm15, %v14087_v58 }
 0x415   : > { %3851 = vrot.lane.b32.xlu1 %v3795_v63, %s8888_s25  ;;  %1525 = vst.msk [vmem:[#allocation2 + $0x21] sm:$0xff] %vm1522_vm15, %v14087_v58 }
 0x416   : > { %1527 = vst.msk [vmem:[#allocation2 + $0x39] sm:$0xff] %vm1522_vm15, %v14087_v58 }
 0x417   : > { %1529 = vst.msk [vmem:[#allocation2 + $0x51] sm:$0xff] %vm1522_vm15, %v14087_v58 }
 0x418   : > { %1531 = vst.msk [vmem:[#allocation2 + $0x69] sm:$0xff] %vm1522_vm15, %v14087_v58 }
 0x419   : > { %1533 = vst.msk [vmem:[#allocation2 + $0x81] sm:$0xff] %vm1522_vm15, %v14087_v58 }
 0x41a   : > { %1535 = vst.msk [vmem:[#allocation2 + $0x99] sm:$0xff] %vm1522_vm15, %v14087_v58 }
 0x41b   : > { %1537 = vst.msk [vmem:[#allocation2 + $0xb1] sm:$0xff] %vm1522_vm15, %v14087_v58  ;;  %v3875_v7 = vld [vmem:[#allocation2 + $0x9] sm:$0xff]  ;;  %vm2031_vm15 = vcmask 850944  }
 0x41c   : > { %v3877_v54 = vld [vmem:[#allocation2 + $0x21] sm:$0xff]  ;;  %v4004_v25 = vrot.slane %v3875_v7, 4  ;;  %1462 = vst.msk [vmem:[#allocation2] sm:$0xff] %vm1461_vm11, %v14087_v58 }
 0x41d   : > { %v3879_v22 = vld [vmem:[#allocation2 + $0x39] sm:$0xff]  ;;  %v4016_v11 = vrot.slane %v3877_v54, 4  ;;  %1466 = vst.msk [vmem:[#allocation2 + $0x18] sm:$0xff] %vm1461_vm11, %v14087_v58 }
 0x41e   : > { %v3881_v61 = vld [vmem:[#allocation2 + $0x51] sm:$0xff]  ;;  %v4002_v16 = vrot.slane %v3879_v22, 4  ;;  %1469 = vst.msk [vmem:[#allocation2 + $0x30] sm:$0xff] %vm1461_vm11, %v14087_v58  ;;  %v4005_v31 = vsel %vm276_vm0, %v3879_v22, %v4004_v25 }
 0x41f   : > { %v3883_v41 = vld [vmem:[#allocation2 + $0x69] sm:$0xff]  ;;  %v4014_v62 = vrot.slane %v3881_v61, 4  ;;  %1472 = vst.msk [vmem:[#allocation2 + $0x48] sm:$0xff] %vm1461_vm11, %v14087_v58  ;;  %v4017_v9 = vsel %vm276_vm0, %v3881_v61, %v4016_v11  ;;  %v10200_v8 = vperm.slane %v4005_v31, %v8951_v5  ;;  %v4206_v61 = vrot.slane %v10203_v19, 4 }
 0x420   : > { %v3885_v32 = vld [vmem:[#allocation2 + $0x81] sm:$0xff]  ;;  %v4003_v29 = vsel %vm276_vm0, %v4002_v16, %v3875_v7  ;;  %1475 = vst.msk [vmem:[#allocation2 + $0x60] sm:$0xff] %vm1461_vm11, %v14087_v58  ;;  %v10190_v47 = vperm.slane %v4017_v9, %v8951_v5  ;;  %v4028_v60 = vrot.slane %v3883_v41, 4  ;;  %v4219_v31 = vsel %vm276_vm0, %v4218_v46, %v10211_v2 }
 0x421   : > { %v3887_v42 = vld [vmem:[#allocation2 + $0x99] sm:$0xff]  ;;  %v4009_v28 = vperm.slane %v4003_v29, %v8951_v5  ;;  %v4015_v30 = vsel %vm276_vm0, %v4014_v62, %v3877_v54  ;;  %1478 = vst.msk [vmem:[#allocation2 + $0x78] sm:$0xff] %vm1461_vm11, %v14087_v58  ;;  %v4040_v15 = vrot.slane %v3885_v32, 4  ;;  %v4202_v62 = vld [vmem:[%s9414_s14 + $0x91] sm:$0xff] }
 0x422   : > { %v3889_v18 = vld [vmem:[#allocation2 + $0xb1] sm:$0xff]  ;;  %v4021_v45 = vperm.slane %v4015_v30, %v8951_v5  ;;  %v4026_v56 = vrot.slane %v3887_v42, 4  ;;  %1481 = vst.msk [vmem:[#allocation2 + $0x90] sm:$0xff] %vm1461_vm11, %v14087_v58  ;;  %v4029_v37 = vsel %vm276_vm0, %v3887_v42, %v4028_v60  ;;  %v4062_v25 = vrot.slane %v10190_v47, 4 }
 0x423   : > { %v4038_v1 = vrot.slane %v3889_v18, 4  ;;  %1484 = vst.msk [vmem:[#allocation2 + $0xa8] sm:$0xff] %vm1461_vm11, %v14087_v58  ;;  %v4052_v12 = vrot.slane %v4009_v28, 4  ;;  %v4041_v57 = vsel %vm276_vm0, %v3889_v18, %v4040_v15  ;;  %v4037_v29 = vperm.slane %v4029_v37, %v8951_v5 }
 0x424   : > { %v4027_v63 = vsel %vm276_vm0, %v4026_v56, %v3883_v41  ;;  %v4050_v7 = vrot.slane %v4021_v45, 4  ;;  %1488 = vst.msk [vmem:[#allocation2] sm:$0xff] %vm1487_vm13, %v14087_v58  ;;  %v4049_v54 = vperm.slane %v4041_v57, %v8951_v5  ;;  %v10227_v41 = vld [vmem:[%s9414_s14 + $0x1] sm:$0xff]  ;;  %v4063_v30 = vsel %vm276_vm0, %v4062_v25, %v10200_v8 }
 0x425   : > { %v4033_v22 = vperm.slane %v4027_v63, %v8951_v5  ;;  %v4039_v11 = vsel %vm276_vm0, %v4038_v1, %v3885_v32  ;;  %1492 = vst.msk [vmem:[#allocation2 + $0x18] sm:$0xff] %vm1487_vm13, %v14087_v58  ;;  %v4053_v9 = vsel %vm276_vm0, %v4021_v45, %v4052_v12  ;;  %v4204_v45 = vld [vmem:[%s9414_s14 + $0xa9] sm:$0xff]  ;;  %v4207_v56 = vsel %vm276_vm0, %v4206_v61, %v10227_v41  ;;  %v4198_v63 = vld [vmem:[%s9414_s14 + $0x61] sm:$0xff]  ;;  %v4200_v61 = vld [vmem:[%s9414_s14 + $0x79] sm:$0xff] }
 0x426   : > { %v4045_v16 = vperm.slane %v4039_v11, %v8951_v5  ;;  %1495 = vst.msk [vmem:[#allocation2 + $0x30] sm:$0xff] %vm1487_vm13, %v14087_v58  ;;  %v4051_v60 = vsel %vm276_vm0, %v4050_v7, %v4009_v28  ;;  %v4086_v15 = vrot.slane %v4049_v54, 4  ;;  %v10248_v28 = vperm.slane %v4219_v31, %v8951_v5 }
 0x427   : > { %v4076_v32 = vrot.slane %v4033_v22, 4  ;;  %1498 = vst.msk [vmem:[#allocation2 + $0x48] sm:$0xff] %vm1487_vm13, %v14087_v58  ;;  %v4230_v46 = vrot.slane %v4202_v62, 4  ;;  %v4061_v12 = vperm.slane %v4053_v9, %v8976_v21  ;;  %v4064_v57 = vrot.slane %v10200_v8, 4 }
 0x428   : > { %v4074_v42 = vrot.slane %v4045_v16, 4  ;;  %1501 = vst.msk [vmem:[#allocation2 + $0x60] sm:$0xff] %vm1487_vm13, %v14087_v58  ;;  %v4057_v7 = vperm.slane %v4051_v60, %v8976_v21  ;;  %v4069_v11 = vperm.slane %v4063_v30, %v8976_v21  ;;  %v4087_v31 = vsel %vm276_vm0, %v4086_v15, %v4037_v29 }
 0x429   : > { %v4077_v18 = vsel %vm276_vm0, %v4045_v16, %v4076_v32  ;;  %1504 = vst.msk [vmem:[#allocation2 + $0x78] sm:$0xff] %vm1487_vm13, %v14087_v58  ;;  %v4213_v9 = vperm.slane %v4207_v56, %v8951_v5  ;;  %v4242_v32 = vrot.slane %v4204_v45, 4  ;;  %v4231_v8 = vsel %vm276_vm0, %v4230_v46, %v4198_v63 }
 0x42a   : > { %v4075_v1 = vsel %vm276_vm0, %v4074_v42, %v4033_v22  ;;  %v4085_v37 = vperm.slane %v4077_v18, %v8976_v21  ;;  %1507 = vst.msk [vmem:[#allocation2 + $0x90] sm:$0xff] %vm1487_vm13, %v14087_v58  ;;  %v4088_v22 = vrot.slane %v4037_v29, 4  ;;  %v4254_v60 = vrot.slane %v10248_v28, 4 }
 0x42b   : > { %v4081_v25 = vperm.slane %v4075_v1, %v8976_v21  ;;  %1510 = vst.msk [vmem:[#allocation2 + $0xa8] sm:$0xff] %vm1487_vm13, %v14087_v58  ;;  %v4100_v18 = vrot.slane %v4057_v7, 4  ;;  %v4232_v35 = vrot.slane %v4198_v63, 4  ;;  %v4243_v58 = vsel %vm276_vm0, %v4242_v32, %v4200_v61 }
 0x42c   : > { %v4102_v16 = vrot.slane %v4085_v37, 4  ;;  %v4244_v30 = vrot.slane %v4200_v61, 4  ;;  %v4089_v29 = vsel %vm276_vm0, %v4049_v54, %v4088_v22  ;;  %v4249_v15 = vperm.slane %v4243_v58, %v8951_v5 }
 0x42d   : > { %v4098_v42 = vrot.slane %v4081_v25, 4  ;;  %v4101_v56 = vsel %vm276_vm0, %v4081_v25, %v4100_v18  ;;  %v4104_v46 = vrot.slane %v4061_v12, 4  ;;  %v4093_v39 = vperm.slane %v4087_v31, %v8976_v21 }
 0x42e   : > { %v4103_v1 = vsel %vm276_vm0, %v4102_v16, %v4061_v12  ;;  %v4108_v16 = vrot.slane %v4069_v11, 4  ;;  %v4255_v63 = vsel %vm276_vm0, %v4254_v60, %v4213_v9  ;;  %4147 = vrot.lane.b32.xlu2 %v4101_v56, %s8882_s17  ;;  %v4237_v61 = vperm.slane %v4231_v8, %v8951_v5 }
 0x42f   : > { %v4099_v14 = vsel %vm276_vm0, %v4098_v42, %v4057_v7  ;;  %4151 = vrot.lane.b32.xlu0 %v4103_v1, %s8886_s23  ;;  %v4065_v7 = vsel %vm276_vm0, %v10190_v47, %v4064_v57  ;;  %v4278_v54 = vrot.slane %v4249_v15, 4  ;;  %v4220_v58 = vrot.slane %v10211_v2, 4 }
 0x430   : > { %4143 = vrot.lane.b32.xlu1 %v4099_v14, %s8883_s18  ;;  %v4097_v25 = vperm.slane %v4089_v29, %v8976_v21  ;;  %v4208_v14 = vrot.slane %v10227_v41, 4  ;;  %v4233_v12 = vsel %vm276_vm0, %v4202_v62, %v4232_v35  ;;  %v4245_v22 = vsel %vm276_vm0, %v4204_v45, %v4244_v30 }
 0x431   : > { %v10287_v31 = vperm.slane %v4255_v63, %v8976_v21  ;;  %v4221_v32 = vsel %vm276_vm0, %v10184_v48, %v4220_v58  ;;  %v4105_v47 = vsel %vm276_vm0, %v4085_v37, %v4104_v46  ;;  %v4109_v57 = vsel %vm276_vm0, %v4093_v39, %v4108_v16  ;;  %v10311_v46 = vld [vmem:[%s9414_s14 + $0x99] sm:$0xff]  ;;  %v4205_v16 = vld [vmem:[%s9414_s14 + $0xb1] sm:$0xff] }
 0x432   : > { %v4073_v2 = vperm.slane %v4065_v7, %v8976_v21  ;;  %v4279_v42 = vsel %vm276_vm0, %v4278_v54, %v4237_v61  ;;  %v4229_v41 = vperm.slane %v4221_v32, %v8951_v5  ;;  %v4241_v35 = vperm.slane %v4233_v12, %v8951_v5  ;;  %v4197_v7 = vld [vmem:[%s9414_s14 + $0x51] sm:$0xff]  ;;  %v4195_v12 = vld [vmem:[%s9414_s14 + $0x39] sm:$0xff] }
 0x433   : > { %v4253_v62 = vperm.slane %v4245_v22, %v8951_v5  ;;  %v4106_v45 = vrot.slane %v4093_v39, 4  ;;  %v4110_v8 = vrot.slane %v4097_v25, 4  ;;  %v4256_v60 = vrot.slane %v4213_v9, 4  ;;  %v4201_v22 = vld [vmem:[%s9414_s14 + $0x81] sm:$0xff] }
 0x434   : > { %v4280_v48 = vrot.slane %v4237_v61, 4  ;;  %v4209_v37 = vsel %vm276_vm0, %v10203_v19, %v4208_v14  ;;  %v10302_v18 = vperm.slane %v4279_v42, %v8976_v21  ;;  %v4304_v1 = vrot.slane %v10287_v31, 4  ;;  %v10329_v42 = vld [vmem:[%s9414_s14 + $0x69] sm:$0xff] }
 0x435   : > { %v4290_v30 = vrot.slane %v4253_v62, 4  ;;  %v4107_v29 = vsel %vm276_vm0, %v4106_v45, %v4069_v11  ;;  %v4217_v39 = vperm.slane %v4209_v37, %v8951_v5  ;;  %v4266_v9 = vrot.slane %v4229_v41, 4 }
 0x436   : > { %4159 = vrot.lane.b32.xlu2 %v4107_v29, %s8884_s19  ;;  %v4112_v56 = vrot.slane %v4073_v2, 4  ;;  %v4281_v63 = vsel %vm276_vm0, %v4249_v15, %v4280_v48  ;;  %v4111_v11 = vsel %vm276_vm0, %v4110_v8, %v4073_v2  ;;  %v4305_v61 = vsel %vm276_vm0, %v10302_v18, %v4304_v1  ;;  %v10331_v8 = vpop.permute.xlu2 %1543 }
 0x437   : > { %4163 = vrot.lane.b32.xlu0 %v4109_v57, %s8889_s26  ;;  %v4291_v19 = vsel %vm276_vm0, %v4290_v30, %v4241_v35  ;;  %v4257_v54 = vsel %vm276_vm0, %v10248_v28, %v4256_v60  ;;  %v4268_v14 = vrot.slane %v4217_v39, 4  ;;  %v4342_v32 = vrot.slane %v10311_v46, 4  ;;  %v4193_v28 = vld [vmem:[%s9414_s14 + $0x21] sm:$0xff] }
 0x438   : > { %4155 = vrot.lane.b32.xlu1 %v4105_v47, %s8885_s20  ;;  %v4297_v58 = vperm.slane %v4291_v19, %v8976_v21  ;;  %v4354_v47 = vrot.slane %v4205_v16, 4  ;;  %v4289_v15 = vperm.slane %v4281_v63, %v8976_v21  ;;  %v4267_v57 = vsel %vm276_vm0, %v4266_v9, %v4217_v39  ;;  %v4191_v39 = vld [vmem:[%s9414_s14 + $0x9] sm:$0xff] }
 0x439   : > { %v4113_v2 = vsel %vm276_vm0, %v4097_v25, %v4112_v56  ;;  %v4330_v45 = vrot.slane %v4197_v7, 4  ;;  %v4265_v60 = vperm.slane %v4257_v54, %v8976_v21  ;;  %v4292_v48 = vrot.slane %v4241_v35, 4 }
 0x43a   : > { %v4318_v37 = vrot.slane %v4195_v12, 4  ;;  %v4355_v1 = vsel %vm276_vm0, %v4354_v47, %v4201_v22  ;;  %v4273_v30 = vperm.slane %v4267_v57, %v8976_v21  ;;  %v4310_v29 = vrot.slane %v4297_v58, 4 }
 0x43b   : > { %v4269_v25 = vsel %vm276_vm0, %v4229_v41, %v4268_v14  ;;  %v4343_v9 = vsel %vm276_vm0, %v4342_v32, %v10329_v42  ;;  %v4306_v19 = vrot.slane %v4289_v15, 4  ;;  %v4331_v56 = vsel %vm276_vm0, %v4330_v45, %v4193_v28 }
 0x43c   : > { %v4308_v35 = vrot.slane %v4265_v60, 4  ;;  %v4332_v63 = vrot.slane %v4193_v28, 4  ;;  %v4319_v54 = vsel %vm276_vm0, %v4318_v37, %v4191_v39  ;;  %v4349_v47 = vperm.slane %v4343_v9, %v8951_v5 }
 0x43d   : > { %v4311_v41 = vsel %vm276_vm0, %v4310_v29, %v4273_v30  ;;  %v4293_v14 = vsel %vm276_vm0, %v4253_v62, %v4292_v48  ;;  %v4337_v57 = vperm.slane %v4331_v56, %v8951_v5  ;;  %v4307_v32 = vsel %vm276_vm0, %v4306_v19, %v4265_v60 }
 0x43e   : > { %4171 = vrot.lane.b32.xlu2 %v4113_v2, %s8887_s24  ;;  %v4392_v2 = vrot.slane %v4349_v47, 4  ;;  %v4309_v45 = vsel %vm276_vm0, %v4289_v15, %v4308_v35  ;;  %v4356_v28 = vrot.slane %v4201_v22, 4  ;;  %v4320_v27 = vrot.slane %v4191_v39, 4  ;;  %v10358_v48 = vpop.permute.xlu2 %1549  ;;  %v1541_v35 = vpop.permute.xlu1 %1540 }
 0x43f   : > { %4431 = vrot.lane.b32.xlu0 %v4305_v61, %s8879_s9  ;;  %v4361_v61 = vperm.slane %v4355_v1, %v8951_v5  ;;  %v4325_v1 = vperm.slane %v4319_v54, %v8951_v5  ;;  %v4333_v37 = vsel %vm276_vm0, %v4197_v7, %v4332_v63  ;;  %v4312_v9 = vrot.slane %v4273_v30, 4 }
 0x440   : > { %4167 = vrot.lane.b32.xlu1 %v4111_v11, %s8888_s25  ;;  %v4277_v11 = vperm.slane %v4269_v25, %v8976_v21  ;;  %v4301_v29 = vperm.slane %v4293_v14, %v8976_v21  ;;  %v4366_v60 = vrot.slane %v4337_v57, 4  ;;  %v4341_v15 = vperm.slane %v4333_v37, %v8951_v5 }
 0x441   : > { %v4390_v25 = vrot.slane %v4361_v61, 4  ;;  %v4368_v19 = vrot.slane %v4325_v1, 4  ;;  %v4393_v22 = vsel %vm276_vm0, %v4361_v61, %v4392_v2  ;;  %v4357_v7 = vsel %vm276_vm0, %v4205_v16, %v4356_v28 }
 0x442   : > { %v4316_v62 = vrot.slane %v4277_v11, 4  ;;  %v4314_v39 = vrot.slane %v4301_v29, 4  ;;  %v4321_v56 = vsel %vm276_vm0, %v4195_v12, %v4320_v27  ;;  %v4313_v63 = vsel %vm276_vm0, %v4297_v58, %v4312_v9 }
 0x443   : > { %v4391_v30 = vsel %vm276_vm0, %v4390_v25, %v4349_v47  ;;  %v4367_v14 = vsel %vm276_vm0, %v4366_v60, %v4325_v1  ;;  %v4369_v61 = vsel %vm276_vm0, %v4337_v57, %v4368_v19  ;;  %v4365_v16 = vperm.slane %v4357_v7, %v8951_v5 }
 0x444   : > { %v4317_v54 = vsel %vm276_vm0, %v4301_v29, %v4316_v62  ;;  %v4397_v2 = vperm.slane %v4391_v30, %v8976_v21  ;;  %v4329_v47 = vperm.slane %v4321_v56, %v8951_v5  ;;  %v4378_v27 = vrot.slane %v4341_v15, 4 }
 0x445   : > { %v4315_v12 = vsel %vm276_vm0, %v4314_v39, %v4277_v11  ;;  %v4373_v58 = vperm.slane %v4367_v14, %v8976_v21  ;;  %v4377_v57 = vperm.slane %v4369_v61, %v8976_v21  ;;  %v4402_v28 = vrot.slane %v4365_v16, 4 }
 0x446   : > { %4439 = vrot.lane.b32.xlu2 %v4309_v45, %s8877_s7  ;;  %v4414_v1 = vrot.slane %v4397_v2, 4  ;;  %v4379_v25 = vsel %vm276_vm0, %v4378_v27, %v4329_v47  ;;  %v1559_v11 = vpop.permute.xlu2 %1558  ;;  %v1547_v60 = vpop.permute.xlu1 %1546  ;;  %v4380_v56 = vrot.slane %v4329_v47, 4  ;;  %v1575_v27 = vrot.slane %v1541_v35, 4 }
 0x447   : > { %4443 = vrot.lane.b32.xlu0 %v4311_v41, %s8874_s28  ;;  %v4344_v41 = vrot.slane %v10329_v42, 4  ;;  %v4416_v37 = vrot.slane %v4373_v58, 4  ;;  %v4385_v62 = vperm.slane %v4379_v25, %v8976_v21  ;;  %v1561_v25 = vrot.slane %v10331_v8, 4 }
 0x448   : > { %4435 = vrot.lane.b32.xlu1 %v4307_v32, %s8876_s30  ;;  %v4401_v32 = vperm.slane %v4393_v22, %v8976_v21  ;;  %v4415_v19 = vsel %vm276_vm0, %v4414_v1, %v4373_v58  ;;  %v1597_v1 = vrot.slane %v1559_v11, 4  ;;  %vm2023_vm11 = vcmask 588800  }
 0x449   : > { %v4345_v42 = vsel %vm276_vm0, %v10311_v46, %v4344_v41  ;;  %v4417_v22 = vsel %vm276_vm0, %v4397_v2, %v4416_v37  ;;  %v4424_v30 = vrot.slane %v4385_v62, 4  ;;  %vm2027_vm13 = vcmask 719872  }
 0x44a   : > { %v4418_v45 = vrot.slane %v4401_v32, 4  ;;  %v4353_v9 = vperm.slane %v4345_v42, %v8951_v5  ;;  %v4381_v42 = vsel %vm276_vm0, %v4341_v15, %v4380_v56 }
 0x44b   : > { %v4389_v15 = vperm.slane %v4381_v42, %v8976_v21 }
 0x44c   : > { %v4419_v29 = vsel %vm276_vm0, %v4418_v45, %v4377_v57  ;;  %v4403_v46 = vsel %vm276_vm0, %v4402_v28, %v4353_v9  ;;  %v4404_v7 = vrot.slane %v4353_v9, 4  ;;  %v1553_v9 = vpop.permute.xlu0 %1552 }
 0x44d   : > { %v4409_v39 = vperm.slane %v4403_v46, %v8976_v21  ;;  %v4428_v46 = vrot.slane %v4389_v15, 4 }
 0x44e   : > { %4451 = vrot.lane.b32.xlu2 %v4315_v12, %s8875_s29  ;;  %v10396_v14 = vpop.permute.xlu2 %3807  ;;  %v4405_v61 = vsel %vm276_vm0, %v4365_v16, %v4404_v7  ;;  %v1573_v12 = vrot.slane %v1547_v60, 4  ;;  %v1576_v16 = vsel %vm276_vm0, %v1547_v60, %v1575_v27  ;;  %v1599_v60 = vrot.slane %v1553_v9, 4 }
 0x44f   : > { %4455 = vrot.lane.b32.xlu0 %v4317_v54, %s8880_s10  ;;  %v4420_v54 = vrot.slane %v4377_v57, 4  ;;  %v4422_v41 = vrot.slane %v4409_v39, 4  ;;  %14133 = vst [vmem:[#allocation39_spill] sm:$0xff] %v10396_v14  ;;  %v4425_v58 = vsel %vm276_vm0, %v4409_v39, %v4424_v30  ;;  %v4413_v45 = vperm.slane %v4405_v61, %v8976_v21 }
 0x450   : > { %4447 = vrot.lane.b32.xlu1 %v4313_v63, %s8878_s8  ;;  %v1563_v63 = vrot.slane %v9912_v33, 4  ;;  %v1587_v39 = vrot.slane %v10358_v48, 4 }
 0x451   : > { %v4421_v47 = vsel %vm276_vm0, %v4401_v32, %v4420_v54  ;;  %v4423_v57 = vsel %vm276_vm0, %v4422_v41, %v4385_v62  ;;  %v1574_v32 = vsel %vm276_vm0, %v1573_v12, %v1541_v35  ;;  %v4426_v62 = vrot.slane %v4413_v45, 4 }
 0x452   : > { %v1564_v2 = vsel %vm276_vm0, %v10331_v8, %v1563_v63  ;;  %v1598_v8 = vsel %vm276_vm0, %v1597_v1, %v1553_v9  ;;  %v1580_v7 = vperm.slane %v1574_v32, %v8951_v5  ;;  %v4429_v41 = vsel %vm276_vm0, %v4413_v45, %v4428_v46 }
 0x453   : > { %v1572_v37 = vperm.slane %v1564_v2, %v8951_v5  ;;  %v1604_v30 = vperm.slane %v1598_v8, %v8951_v5  ;;  %v4427_v63 = vsel %vm276_vm0, %v4426_v62, %v4389_v15 }
 0x454   : > { %v1609_v12 = vrot.slane %v1580_v7, 4 }
 0x456   : > { %4463 = vrot.lane.b32.xlu2 %v4417_v22, %s8882_s17  ;;  %v1623_v22 = vrot.slane %v1572_v37, 4  ;;  %v10422_v35 = vpop.permute.xlu2 %3819 }
 0x457   : > { %4467 = vrot.lane.b32.xlu0 %v4419_v29, %s8886_s23  ;;  %v1584_v29 = vperm.slane %v1576_v16, %v8951_v5  ;;  %14135 = vst [vmem:[#allocation41_spill] sm:$0xff] %v10422_v35 }
 0x458   : > { %4459 = vrot.lane.b32.xlu1 %v4415_v19, %s8883_s18  ;;  %v1562_v19 = vsel %vm276_vm0, %v1561_v25, %v9912_v33  ;;  %v1600_v33 = vsel %vm276_vm0, %v1559_v11, %v1599_v60 }
 0x459   : > { %v1624_v56 = vsel %vm276_vm0, %v1584_v29, %v1623_v22  ;;  %v1568_v61 = vperm.slane %v1562_v19, %v8951_v5  ;;  %v1608_v45 = vperm.slane %v1600_v33, %v8951_v5  ;;  %v1621_v60 = vrot.slane %v1584_v29, 4 }
 0x45b   : > { %v1611_v16 = vrot.slane %v1568_v61, 4  ;;  %v1610_v15 = vsel %vm276_vm0, %v1609_v12, %v1568_v61 }
 0x45d   : > { %v1612_v8 = vsel %vm276_vm0, %v1580_v7, %v1611_v16  ;;  %v1645_v7 = vrot.slane %v1608_v45, 4 }
 0x45e   : > { %4475 = vrot.lane.b32.xlu2 %v4423_v57, %s8884_s19  ;;  %v1633_v57 = vrot.slane %v1604_v30, 4  ;;  %v10446_v22 = vpop.permute.xlu2 %3831  ;;  %v1620_v29 = vperm.slane %v1612_v8, %v8976_v21 }
 0x45f   : > { %v10405_v28 = vpop.permute.xlu1 %3803  ;;  %4479 = vrot.lane.b32.xlu0 %v4425_v58, %s8889_s26  ;;  %14136 = vst [vmem:[#allocation42_spill] sm:$0xff] %v10446_v22  ;;  %v10454_v33 = vpop.permute.xlu0 %3799 }
 0x460   : > { %14134 = vst [vmem:[#allocation40_spill] sm:$0xff] %v10405_v28  ;;  %4471 = vrot.lane.b32.xlu1 %v4421_v47, %s8885_s20  ;;  %v1632_v47 = vperm.slane %v1624_v56, %v8976_v21  ;;  %v1616_v56 = vperm.slane %v1610_v15, %v8976_v21 }
 0x461   : > { %14137 = vst [vmem:[#allocation43_spill] sm:$0xff] %v10454_v33 }
 0x462   : > { %v1671_v62 = vrot.slane %v1632_v47, 4 }
 0x466   : > { %4487 = vrot.lane.b32.xlu2 %v4429_v41, %s8887_s24 }
 0x467   : > { %v1556_v54 = vpop.permute.xlu1 %1555 }
 0x468   : > { %v1585_v2 = vrot.slane %v1556_v54, 4  ;;  %v1588_v27 = vsel %vm276_vm0, %v1556_v54, %v1587_v39  ;;  %4483 = vrot.lane.b32.xlu1 %v4427_v63, %s8888_s25 }
 0x469   : > { %v1596_v58 = vperm.slane %v1588_v27, %v8951_v5 }
 0x46a   : > { %v1586_v42 = vsel %vm276_vm0, %v1585_v2, %v10358_v48 }
 0x46b   : > { %v1592_v11 = vperm.slane %v1586_v42, %v8951_v5  ;;  %v1647_v1 = vrot.slane %v1596_v58, 4  ;;  %v1646_v27 = vsel %vm276_vm0, %v1645_v7, %v1596_v58  ;;  %v1659_v42 = vrot.slane %v1616_v56, 4 }
 0x46d   : > { %v1635_v25 = vrot.slane %v1592_v11, 4  ;;  %v1648_v9 = vsel %vm276_vm0, %v1608_v45, %v1647_v1  ;;  %v1634_v32 = vsel %vm276_vm0, %v1633_v57, %v1592_v11  ;;  %v1663_v57 = vrot.slane %v1620_v29, 4  ;;  %v10464_v1 = vpop.permute.xlu2 %3843 }
 0x46e   : > { %v1656_v48 = vperm.slane %v1648_v9, %v8976_v21  ;;  %v1640_v46 = vperm.slane %v1634_v32, %v8976_v21  ;;  %v1652_v11 = vperm.slane %v1646_v27, %v8976_v21  ;;  %14138 = vst [vmem:[#allocation44_spill] sm:$0xff] %v10464_v1  ;;  %v10472_v9 = vpop.permute.xlu0 %3811 }
 0x46f   : > { %v1636_v19 = vsel %vm276_vm0, %v1604_v30, %v1635_v25  ;;  %v1622_v30 = vsel %vm276_vm0, %v1621_v60, %v1572_v37  ;;  %v10469_v25 = vpop.permute.xlu1 %3815  ;;  %14140 = vst [vmem:[#allocation46_spill] sm:$0xff] %v10472_v9 }
 0x470   : > { %v1672_v39 = vsel %vm276_vm0, %v1656_v48, %v1671_v62  ;;  %v1657_v63 = vrot.slane %v1640_v46, 4  ;;  %v1644_v54 = vperm.slane %v1636_v19, %v8976_v21  ;;  %v1628_v12 = vperm.slane %v1622_v30, %v8976_v21  ;;  %14139 = vst [vmem:[#allocation45_spill] sm:$0xff] %v10469_v25 }
 0x471   : > { %1695 = vrot.lane.b32.xlu1 %v1672_v39, %s8892_s15  ;;  %v1660_v45 = vsel %vm276_vm0, %v1640_v46, %v1659_v42  ;;  %v1665_v15 = vrot.slane %v1652_v11, 4  ;;  %v1669_v32 = vrot.slane %v1656_v48, 4 }
 0x472   : > { %v1658_v41 = vsel %vm276_vm0, %v1657_v63, %v1616_v56  ;;  %v1661_v61 = vrot.slane %v1644_v54, 4  ;;  %v1664_v37 = vsel %vm276_vm0, %v1644_v54, %v1663_v57  ;;  %v1667_v16 = vrot.slane %v1628_v12, 4 }
 0x473   : > { %1681 = vrot.lane.b32.xlu0 %v1658_v41, %s8892_s15  ;;  %v1666_v62 = vsel %vm276_vm0, %v1665_v15, %v1628_v12  ;;  %v1670_v46 = vsel %vm276_vm0, %v1669_v32, %v1632_v47 }
 0x474   : > { %v1662_v2 = vsel %vm276_vm0, %v1661_v61, %v1620_v29  ;;  %v1668_v58 = vsel %vm276_vm0, %v1652_v11, %v1667_v16  ;;  %v14163_v16 = vmov 0.0  }
 0x475   : > { %1685 = vrot.lane.b32.xlu2 %v1662_v2, %s8892_s15  ;;  %v10479_v60 = vpop.permute.xlu2 %3855  ;;  %1516 = vst.msk [vmem:[#allocation2 + $0x30] sm:$0x1] %vm1513_vm8, %v14163_v16 }
 0x476   : > { %14141 = vst [vmem:[#allocation47_spill] sm:$0xff] %v10479_v60  ;;  %v10483_v19 = vpop.permute.xlu0 %3823 }
 0x477   : > { %v10481_v8 = vpop.permute.xlu1 %3827  ;;  %14143 = vst [vmem:[#allocation49_spill] sm:$0xff] %v10483_v19 }
 0x478   : > { %14142 = vst [vmem:[#allocation48_spill] sm:$0xff] %v10481_v8 }
 0x479   : > { %1683 = vrot.lane.b32.xlu1 %v1660_v45, %s8892_s15  ;;  %1514 = vst.msk [vmem:[#allocation2] sm:$0x1] %vm1513_vm8, %v14163_v16 }
 0x47a   : > { %1515 = vst.msk [vmem:[#allocation2 + $0x18] sm:$0x1] %vm1513_vm8, %v14163_v16 }
 0x47b   : > { %1687 = vrot.lane.b32.xlu0 %v1664_v37, %s8892_s15  ;;  %1517 = vst.msk [vmem:[#allocation2 + $0x48] sm:$0x1] %vm1513_vm8, %v14163_v16 }
 0x47c   : > { %1518 = vst.msk [vmem:[#allocation2 + $0x60] sm:$0x1] %vm1513_vm8, %v14163_v16 }
 0x47d   : > { %1691 = vrot.lane.b32.xlu2 %v1668_v58, %s8892_s15  ;;  %1519 = vst.msk [vmem:[#allocation2 + $0x78] sm:$0x1] %vm1513_vm8, %v14163_v16 }
 0x47e   : > { %v10489_v63 = vpop.permute.xlu0 %3835  ;;  %1520 = vst.msk [vmem:[#allocation2 + $0x90] sm:$0x1] %vm1513_vm8, %v14163_v16 }
 0x47f   : > { %v10487_v56 = vpop.permute.xlu1 %3839  ;;  %14146 = vst [vmem:[#allocation52_spill] sm:$0xff] %v10489_v63 }
 0x480   : > { %14145 = vst [vmem:[#allocation51_spill] sm:$0xff] %v10487_v56 }
 0x481   : > { %1689 = vrot.lane.b32.xlu1 %v1666_v62, %s8892_s15  ;;  %1521 = vst.msk [vmem:[#allocation2 + $0xa8] sm:$0x1] %vm1513_vm8, %v14163_v16 }
 0x482   : > { %1524 = vst.msk [vmem:[#allocation2 + $0x11] sm:$0x1] %vm1513_vm8, %v14163_v16 }
 0x483   : > { %1693 = vrot.lane.b32.xlu0 %v1670_v46, %s8892_s15  ;;  %1526 = vst.msk [vmem:[#allocation2 + $0x29] sm:$0x1] %vm1513_vm8, %v14163_v16 }
 0x484   : > { %1528 = vst.msk [vmem:[#allocation2 + $0x41] sm:$0x1] %vm1513_vm8, %v14163_v16 }
 0x485   : > { %1530 = vst.msk [vmem:[#allocation2 + $0x59] sm:$0x1] %vm1513_vm8, %v14163_v16 }
 0x486   : > { %v10495_v41 = vpop.permute.xlu0 %3847  ;;  %1532 = vst.msk [vmem:[#allocation2 + $0x71] sm:$0x1] %vm1513_vm8, %v14163_v16 }
 0x487   : > { %v10493_v54 = vpop.permute.xlu1 %3851  ;;  %14149 = vst [vmem:[#allocation55_spill] sm:$0xff] %v10495_v41 }
 0x488   : > { %v10485_v39 = vpop.permute.xlu2 %4147  ;;  %14148 = vst [vmem:[#allocation54_spill] sm:$0xff] %v10493_v54 }
 0x489   : > { %14144 = vst [vmem:[#allocation50_spill] sm:$0xff] %v10485_v39 }
 0x48a   : > { %1534 = vst.msk [vmem:[#allocation2 + $0x89] sm:$0x1] %vm1513_vm8, %v14163_v16 }
 0x48b   : > { %1536 = vst.msk [vmem:[#allocation2 + $0xa1] sm:$0x1] %vm1513_vm8, %v14163_v16 }
 0x48c   : > { %1538 = vst.msk [vmem:[#allocation2 + $0xb9] sm:$0x1] %vm1513_vm8, %v14163_v16  ;;  %vm2033_vm8 = vcmask 916480  }
 0x490   : > { %v10491_v48 = vpop.permute.xlu2 %4159 }
 0x491   : > { %14147 = vst [vmem:[#allocation53_spill] sm:$0xff] %v10491_v48 }
 0x498   : > { %v10497_v47 = vpop.permute.xlu2 %4171 }
 0x499   : > { %14150 = vst [vmem:[#allocation56_spill] sm:$0xff] %v10497_v47 }
 0x4a0   : > { %v10503_v7 = vpop.permute.xlu2 %4439 }
 0x4a1   : > { %v10499_v29 = vpop.permute.xlu0 %4151  ;;  %14153 = vst [vmem:[#allocation59_spill] sm:$0xff] %v10503_v7 }
 0x4a2   : > { %14151 = vst [vmem:[#allocation57_spill] sm:$0xff] %v10499_v29  ;;  %v10501_v61 = vpop.permute.xlu1 %4143 }
 0x4a3   : > { %14152 = vst [vmem:[#allocation58_spill] sm:$0xff] %v10501_v61 }
 0x4a8   : > { %v10509_v27 = vpop.permute.xlu2 %4451 }
 0x4a9   : > { %v10505_v30 = vpop.permute.xlu0 %4163  ;;  %14156 = vst [vmem:[#allocation62_spill] sm:$0xff] %v10509_v27 }
 0x4aa   : > { %14154 = vst [vmem:[#allocation60_spill] sm:$0xff] %v10505_v30  ;;  %v10507_v2 = vpop.permute.xlu1 %4155 }
 0x4ab   : > { %14155 = vst [vmem:[#allocation61_spill] sm:$0xff] %v10507_v2 }
 0x4b0   : > { %v10513_v42 = vpop.permute.xlu2 %4463 }
 0x4b1   : > { %14158 = vst [vmem:[#allocation64_spill] sm:$0xff] %v10513_v42  ;;  %v10515_v57 = vpop.permute.xlu0 %4431 }
 0x4b2   : > { %v10511_v12 = vpop.permute.xlu1 %4167  ;;  %14159 = vst [vmem:[#allocation65_spill] sm:$0xff] %v10515_v57 }
 0x4b3   : > { %14157 = vst [vmem:[#allocation63_spill] sm:$0xff] %v10511_v12 }
 0x4b8   : > { %v10519_v45 = vpop.permute.xlu2 %4475 }
 0x4b9   : > { %14161 = vst [vmem:[#allocation67_spill] sm:$0xff] %v10519_v45  ;;  %v10521_v37 = vpop.permute.xlu0 %4443 }
 0x4ba   : > { %v10517_v11 = vpop.permute.xlu1 %4435  ;;  %14162 = vst [vmem:[#allocation68_spill] sm:$0xff] %v10521_v37 }
 0x4bb   : > { %14160 = vst [vmem:[#allocation66_spill] sm:$0xff] %v10517_v11 }
 0x4c0   : > { %v10535_v15 = vpop.permute.xlu2 %4487 }
 0x4c1   : > { %14165 = vst [vmem:[#allocation70_spill] sm:$0xff] %v10535_v15  ;;  %v10545_v32 = vpop.permute.xlu0 %4455 }
 0x4c2   : > { %v10531_v58 = vpop.permute.xlu1 %4447  ;;  %14166 = vst [vmem:[#allocation71_spill] sm:$0xff] %v10545_v32 }
 0x4c3   : > { %14164 = vst [vmem:[#allocation69_spill] sm:$0xff] %v10531_v58 }
 0x4c9   : > { %v10564_v47 = vpop.permute.xlu0 %4467 }
 0x4ca   : > { %v10553_v62 = vpop.permute.xlu1 %4459  ;;  %14168 = vst [vmem:[#allocation73_spill] sm:$0xff] %v10564_v47 }
 0x4cb   : > { %14167 = vst [vmem:[#allocation72_spill] sm:$0xff] %v10553_v62 }
 0x4cf   : > { %v1686_v46 = vpop.permute.xlu2 %1685 }
 0x4d0   : > { %1708 = vst.msk [vmem:[#allocation2 + $0x31] sm:$0xff] %vm1705_vm9, %v1686_v46 }
 0x4d1   : > { %v10571_v2 = vpop.permute.xlu0 %4479 }
 0x4d2   : > { %v10566_v12 = vpop.permute.xlu1 %4471  ;;  %14171 = vst [vmem:[#allocation76_spill] sm:$0xff] %v10571_v2 }
 0x4d3   : > { %14169 = vst [vmem:[#allocation74_spill] sm:$0xff] %v10566_v12 }
 0x4d7   : > { %v1692_v30 = vpop.permute.xlu2 %1691  ;;  %v10577_v46 = vld [vmem:[#allocation2 + $0x30] sm:$0xff]  ;;  %v10579_v61 = vld [vmem:[#allocation2 + $0x38] sm:$0xff] }
 0x4d8   : > { %1711 = vst.msk [vmem:[#allocation2 + $0x79] sm:$0xff] %vm1705_vm9, %v1692_v30 }
 0x4da   : > { %v10569_v48 = vpop.permute.xlu1 %4483 }
 0x4db   : > { %14170 = vst [vmem:[#allocation75_spill] sm:$0xff] %v10569_v48  ;;  %v1842_v48 = vrot.slane %v10579_v61, 4 }
 0x4df   : > { %v10575_v16 = vld [vmem:[#allocation2 + $0x78] sm:$0xff]  ;;  %v10581_v60 = vld [vmem:[#allocation2 + $0x80] sm:$0xff] }
 0x4e0   : > { %v1768_v30 = vrot.slane %v10575_v16, 4  ;;  %v1880_v56 = vrot.slane %v10581_v60, 4 }
 0x4e3   : > { %v1696_v29 = vpop.permute.xlu1 %1695 }
 0x4e4   : > { %1713 = vst.msk [vmem:[#allocation2 + $0xa9] sm:$0xff] %vm1705_vm9, %v1696_v29  ;;  %v1730_v29 = vrot.slane %v10577_v46, 4 }
 0x4e5   : > { %v1682_v39 = vpop.permute.xlu0 %1681 }
 0x4e6   : > { %1706 = vst.msk [vmem:[#allocation2 + $0x1] sm:$0xff] %vm1705_vm9, %v1682_v39 }
 0x4eb   : > { %v1684_v15 = vpop.permute.xlu1 %1683  ;;  %v3128_v54 = vld [vmem:[#allocation2 + $0xa8] sm:$0xff]  ;;  %v2369_v41 = vld [vmem:[#allocation2 + $0xb0] sm:$0xff] }
 0x4ec   : > { %1707 = vst.msk [vmem:[#allocation2 + $0x19] sm:$0xff] %vm1705_vm9, %v1684_v15  ;;  %3174 = vrot.lane.b32.xlu0 %v3128_v54, %s8890_s13  ;;  %2416 = vrot.lane.b32.xlu2 %v2369_v41, %s8872_s27  ;;  %v1878_v34 = vrot.slane %v2369_v41, 4  ;;  %v1766_v52 = vrot.slane %v3128_v54, 4  ;;  %v1769_v45 = vsel %vm276_vm0, %v3128_v54, %v1768_v30  ;;  %v10622_v22 = vld [vmem:[#allocation2 + $0xa9] sm:$0xff] }
 0x4ed   : > { %v1688_v39 = vpop.permute.xlu0 %1687  ;;  %v10589_v1 = vld [vmem:[#allocation2 + $0x8] sm:$0xff]  ;;  %v10591_v2 = vld [vmem:[#allocation2] sm:$0xff]  ;;  %2414 = vrot.lane.b32.xlu1 %v3128_v54, %s8872_s27  ;;  %v3926_v4 = vrot.slane %v10622_v22, 4 }
 0x4ee   : > { %1709 = vst.msk [vmem:[#allocation2 + $0x49] sm:$0xff] %vm1705_vm9, %v1688_v39  ;;  %v1843_v15 = vsel %vm276_vm0, %v1842_v48, %v10589_v1  ;;  %v1844_v63 = vrot.slane %v10589_v1, 4  ;;  %v1731_v43 = vsel %vm276_vm0, %v1730_v29, %v10591_v2  ;;  %v1732_v23 = vrot.slane %v10591_v2, 4 }
 0x4ef   : > { %v10604_v24 = vperm.slane %v1843_v15, %v8951_v5  ;;  %v1879_v30 = vsel %vm276_vm0, %v1878_v34, %v10581_v60  ;;  %v1767_v54 = vsel %vm276_vm0, %v1766_v52, %v10575_v16  ;;  %v1881_v39 = vsel %vm276_vm0, %v2369_v41, %v1880_v56 }
 0x4f0   : > { %v10612_v48 = vperm.slane %v1879_v30, %v8951_v5  ;;  %v10615_v12 = vperm.slane %v1731_v43, %v8951_v5  ;;  %v10618_v29 = vperm.slane %v1767_v54, %v8951_v5  ;;  %v1733_v15 = vsel %vm276_vm0, %v10577_v46, %v1732_v23  ;;  %v10634_v54 = vld [vmem:[#allocation2 + $0x79] sm:$0xff] }
 0x4f1   : > { %v10625_v34 = vperm.slane %v1769_v45, %v8951_v5  ;;  %v1845_v52 = vsel %vm276_vm0, %v10579_v61, %v1844_v63  ;;  %v1741_v56 = vperm.slane %v1733_v15, %v8951_v5  ;;  %v10632_v43 = vperm.slane %v1881_v39, %v8951_v5 }
 0x4f2   : > { %v1853_v30 = vperm.slane %v1845_v52, %v8951_v5  ;;  %v1780_v63 = vrot.slane %v10615_v12, 4  ;;  %v1892_v52 = vrot.slane %v10604_v24, 4  ;;  %v3927_v35 = vsel %vm276_vm0, %v3926_v4, %v10634_v54 }
 0x4f3   : > { %v1690_v23 = vpop.permute.xlu1 %1689  ;;  %v10637_v49 = vld [vmem:[#allocation2 + $0x20] sm:$0xff]  ;;  %v10639_v47 = vld [vmem:[#allocation2 + $0x18] sm:$0xff]  ;;  %v1814_v15 = vrot.slane %v10625_v34, 4  ;;  %v1792_v42 = vrot.slane %v1741_v56, 4 }
 0x4f4   : > { %1710 = vst.msk [vmem:[#allocation2 + $0x61] sm:$0xff] %vm1705_vm9, %v1690_v23  ;;  %2388 = vrot.lane.b32.xlu0 %v10589_v1, %s8872_s27  ;;  %2386 = vrot.lane.b32.xlu2 %v10591_v2, %s8872_s27  ;;  %v1856_v45 = vrot.slane %v10637_v49, 4  ;;  %v1744_v36 = vrot.slane %v10639_v47, 4  ;;  %v1904_v62 = vrot.slane %v1853_v30, 4  ;;  %v6028_v37 = vld [vmem:[#allocation2 + $0x1a] sm:$0xff] }
 0x4f5   : > { %v1694_v39 = vpop.permute.xlu0 %1693  ;;  %v10650_v8 = vld [vmem:[#allocation2 + $0x50] sm:$0xff]  ;;  %v10652_v19 = vld [vmem:[#allocation2 + $0x48] sm:$0xff]  ;;  %3176 = vrot.lane.b32.xlu1 %v2369_v41, %s8890_s13 }
 0x4f6   : > { %1712 = vst.msk [vmem:[#allocation2 + $0x91] sm:$0xff] %vm1705_vm9, %v1694_v39  ;;  %v1854_v23 = vrot.slane %v10650_v8, 4  ;;  %v1742_v26 = vrot.slane %v10652_v19, 4  ;;  %v10661_v13 = vld [vmem:[#allocation2 + $0x49] sm:$0xff]  ;;  %v1745_v20 = vsel %vm276_vm0, %v10652_v19, %v1744_v36  ;;  %v1857_v51 = vsel %vm276_vm0, %v10650_v8, %v1856_v45 }
 0x4f7   : > { %v1753_v25 = vperm.slane %v1745_v20, %v8951_v5  ;;  %v1865_v9 = vperm.slane %v1857_v51, %v8951_v5  ;;  %v10680_v45 = vperm.slane %v3927_v35, %v8951_v5  ;;  %vm2035_vm9 = vcmask 982016  }
 0x4f8   : > { %v1855_v39 = vsel %vm276_vm0, %v1854_v23, %v10637_v49  ;;  %v1743_v6 = vsel %vm276_vm0, %v1742_v26, %v10639_v47 }
 0x4f9   : > { %v1861_v4 = vperm.slane %v1855_v39, %v8951_v5  ;;  %v1749_v36 = vperm.slane %v1743_v6, %v8951_v5  ;;  %v1793_v41 = vsel %vm276_vm0, %v1753_v25, %v1792_v42  ;;  %v1790_v32 = vrot.slane %v1753_v25, 4 }
 0x4fa   : > { %v1902_v23 = vrot.slane %v1865_v9, 4  ;;  %v10684_v14 = vsel %vm276_vm0, %v1865_v9, %v1904_v62  ;;  %v10688_v39 = vperm.slane %v1793_v41, %v8976_v21 }
 0x4fb   : > { %v1890_v26 = vrot.slane %v1861_v4, 4  ;;  %v1781_v20 = vsel %vm276_vm0, %v1749_v36, %v1780_v63  ;;  %v1778_v51 = vrot.slane %v1749_v36, 4  ;;  %v10690_v6 = vld [vmem:[#allocation2 + $0x68] sm:$0xff]  ;;  %v10692_v17 = vld [vmem:[#allocation2 + $0x60] sm:$0xff]  ;;  %v1791_v25 = vsel %vm276_vm0, %v1790_v32, %v1741_v56 }
 0x4fc   : > { %v10695_v35 = vperm.slane %v1781_v20, %v8976_v21  ;;  %v1893_v42 = vsel %vm276_vm0, %v1861_v4, %v1892_v52  ;;  %v10700_v9 = vsel %vm276_vm0, %v1902_v23, %v1853_v30  ;;  %2394 = vrot.lane.b32.xlu0 %v10577_v46, %s8872_s27  ;;  %2392 = vrot.lane.b32.xlu2 %v10637_v49, %s8872_s27  ;;  %v1868_v41 = vrot.slane %v10690_v6, 4  ;;  %v6034_v10 = vld [vmem:[#allocation2 + $0x62] sm:$0xff] }
 0x4fd   : > { %v10706_v62 = vld [vmem:[#allocation2 + $0x98] sm:$0xff]  ;;  %v10708_v63 = vld [vmem:[#allocation2 + $0x90] sm:$0xff]  ;;  %v1891_v32 = vsel %vm276_vm0, %v1890_v26, %v10604_v24  ;;  %v1756_v56 = vrot.slane %v10692_v17, 4  ;;  %v1779_v30 = vsel %vm276_vm0, %v1778_v51, %v10615_v12  ;;  %2390 = vrot.lane.b32.xlu1 %v10639_v47, %s8872_s27  ;;  %v1797_v26 = vperm.slane %v1791_v25, %v8976_v21 }
 0x4fe   : > { %v1866_v52 = vrot.slane %v10706_v62, 4  ;;  %v1897_v4 = vperm.slane %v1891_v32, %v8976_v21  ;;  %v1754_v36 = vrot.slane %v10708_v63, 4  ;;  %v1832_v23 = vrot.slane %v10695_v35, 4 }
 0x4ff   : > { %v10723_v20 = vperm.slane %v1779_v30, %v8976_v21  ;;  %v1757_v24 = vsel %vm276_vm0, %v10708_v63, %v1756_v56  ;;  %v1901_v12 = vperm.slane %v1893_v42, %v8976_v21  ;;  %v1836_v56 = vrot.slane %v1797_v26, 4 }
 0x500   : > { %v1867_v51 = vsel %vm276_vm0, %v1866_v52, %v10690_v6  ;;  %v1755_v32 = vsel %vm276_vm0, %v1754_v36, %v10692_v17  ;;  %v1765_v55 = vperm.slane %v1757_v24, %v8951_v5  ;;  %v1940_v3 = vrot.slane %v1897_v4, 4 }
 0x501   : > { %v1873_v53 = vperm.slane %v1867_v51, %v8951_v5  ;;  %v1761_v30 = vperm.slane %v1755_v32, %v8951_v5  ;;  %v1828_v27 = vrot.slane %v10723_v20, 4  ;;  %v1944_v42 = vrot.slane %v1901_v12, 4 }
 0x502   : > { %v1816_v28 = vrot.slane %v1765_v55, 4  ;;  %v1815_v25 = vsel %vm276_vm0, %v1814_v15, %v1765_v55  ;;  %v1840_v40 = vrot.slane %v10688_v39, 4  ;;  %v14172_v52 = vrot.slane %v10612_v48, 4 }
 0x503   : > { %v1804_v44 = vrot.slane %v1761_v30, 4  ;;  %v14173_v24 = vrot.slane %v10618_v29, 4  ;;  %v1821_v32 = vperm.slane %v1815_v25, %v8976_v21  ;;  %v1916_v15 = vrot.slane %v1873_v53, 4 }
 0x504   : > { %v1915_v36 = vsel %vm276_vm0, %v14172_v52, %v1873_v53  ;;  %v1817_v55 = vsel %vm276_vm0, %v10625_v34, %v1816_v28  ;;  %2400 = vrot.lane.b32.xlu0 %v10650_v8, %s8872_s27  ;;  %2398 = vrot.lane.b32.xlu2 %v10652_v19, %s8872_s27 }
 0x505   : > { %v1803_v51 = vsel %vm276_vm0, %v14173_v24, %v1761_v30  ;;  %v1921_v58 = vperm.slane %v1915_v36, %v8976_v21  ;;  %v1805_v30 = vsel %vm276_vm0, %v10618_v29, %v1804_v44  ;;  %v1825_v25 = vperm.slane %v1817_v55, %v8976_v21  ;;  %2396 = vrot.lane.b32.xlu1 %v10579_v61, %s8872_s27 }
 0x506   : > { %v10748_v38 = vperm.slane %v1803_v51, %v8976_v21  ;;  %v10760_v52 = vsel %vm276_vm0, %v1821_v32, %v1836_v56  ;;  %v1834_v36 = vrot.slane %v1821_v32, 4  ;;  %v1813_v53 = vperm.slane %v1805_v30, %v8976_v21  ;;  %v10789_v30 = vld [vmem:[#allocation2 + $0x31] sm:$0xff] }
 0x507   : > { %v1938_v28 = vrot.slane %v1921_v58, 4  ;;  %v10770_v24 = vsel %vm276_vm0, %v1921_v58, %v1940_v3  ;;  %v1838_v44 = vrot.slane %v1825_v25, 4  ;;  %v1917_v56 = vsel %vm276_vm0, %v10612_v48, %v1916_v15  ;;  %v10787_v58 = vld [vmem:[#allocation2 + $0x19] sm:$0xff] }
 0x508   : > { %v10767_v34 = vsel %vm276_vm0, %v10748_v38, %v1828_v27  ;;  %v10773_v29 = vsel %vm276_vm0, %v1834_v36, %v1797_v26  ;;  %v10778_v51 = vsel %vm276_vm0, %v1825_v25, %v1840_v40  ;;  %v10784_v55 = vsel %vm276_vm0, %v1813_v53, %v1832_v23  ;;  %v10791_v26 = vld [vmem:[#allocation2 + $0x91] sm:$0xff] }
 0x509   : > { %v10781_v32 = vsel %vm276_vm0, %v1938_v28, %v1897_v4  ;;  %v1830_v27 = vrot.slane %v1813_v53, 4  ;;  %v1925_v3 = vperm.slane %v1917_v56, %v8976_v21  ;;  %v10795_v48 = vsel %vm276_vm0, %v1838_v44, %v10688_v39  ;;  %v10815_v53 = vld [vmem:[#allocation2 + $0x1] sm:$0xff] }
 0x50a   : > { %v1869_v40 = vsel %vm276_vm0, %v10706_v62, %v1868_v41  ;;  %v1909_v4 = vperm.slane %v10700_v9, %v8976_v21  ;;  %v14174_v23 = vrot.slane %v10661_v13, 4  ;;  %v1913_v41 = vperm.slane %v10684_v14, %v8976_v21 }
 0x50b   : > { %v10807_v25 = vsel %vm276_vm0, %v1830_v27, %v10695_v35  ;;  %v10810_v36 = vsel %vm276_vm0, %v1925_v3, %v1944_v42  ;;  %v1877_v39 = vperm.slane %v1869_v40, %v8951_v5  ;;  %v1942_v28 = vrot.slane %v1925_v3, 4 }
 0x50c   : > { %v3903_v15 = vsel %vm276_vm0, %v14174_v23, %v10787_v58  ;;  %v3890_v9 = vrot.slane %v10789_v30, 4  ;;  %v3914_v44 = vrot.slane %v10791_v26, 4  ;;  %v14175_v56 = vrot.slane %v10632_v43, 4  ;;  %v10825_v23 = vld [vmem:[#allocation2 + $0x61] sm:$0xff]  ;;  %2406 = vrot.lane.b32.xlu0 %v10575_v16, %s8872_s27  ;;  %2404 = vrot.lane.b32.xlu2 %v10690_v6, %s8872_s27 }
 0x50d   : > { %v1928_v27 = vrot.slane %v1877_v39, 4  ;;  %v10823_v42 = vsel %vm276_vm0, %v1942_v28, %v1901_v12  ;;  %v10828_v3 = vperm.slane %v3903_v15, %v8951_v5  ;;  %2402 = vrot.lane.b32.xlu1 %v10692_v17, %s8872_s27  ;;  %v1952_v0 = vrot.slane %v1913_v41, 4 }
 0x50e   : > { %v1927_v35 = vsel %vm276_vm0, %v14175_v56, %v1877_v39  ;;  %v3915_v40 = vsel %vm276_vm0, %v3914_v44, %v10825_v23  ;;  %v1948_v39 = vrot.slane %v1909_v4, 4  ;;  %v3891_v15 = vsel %vm276_vm0, %v3890_v9, %v10815_v53 }
 0x50f   : > { %v1933_v14 = vperm.slane %v1927_v35, %v8976_v21  ;;  %v1929_v12 = vsel %vm276_vm0, %v10632_v43, %v1928_v27  ;;  %v10844_v28 = vperm.slane %v3915_v40, %v8951_v5  ;;  %v3962_v56 = vrot.slane %v10680_v45, 4 }
 0x510   : > { %v1937_v35 = vperm.slane %v1929_v12, %v8976_v21  ;;  %v3938_v59 = vrot.slane %v10828_v3, 4  ;;  %v10861_v50 = vperm.slane %v3891_v15, %v8951_v5  ;;  %v6038_v15 = vld [vmem:[#allocation2 + $0x92] sm:$0xff] }
 0x511   : > { %v1946_v33 = vrot.slane %v1933_v14, 4  ;;  %v10849_v44 = vsel %vm276_vm0, %v1933_v14, %v1948_v39  ;;  %v3963_v43 = vsel %vm276_vm0, %v3962_v56, %v10844_v28  ;;  %v6066_v7 = vrot.slane %v6038_v15, 4 }
 0x512   : > { %v1950_v9 = vrot.slane %v1937_v35, 4  ;;  %v10858_v40 = vsel %vm276_vm0, %v1937_v35, %v1952_v0  ;;  %v10864_v12 = vperm.slane %v3963_v43, %v8976_v21  ;;  %v3939_v39 = vsel %vm276_vm0, %v3938_v59, %v10861_v50  ;;  %v6030_v35 = vld [vmem:[#allocation2 + $0x32] sm:$0xff] }
 0x513   : > { %v10855_v27 = vsel %vm276_vm0, %v1946_v33, %v1909_v4  ;;  %v1826_v0 = vrot.slane %v10748_v38, 4  ;;  %v10880_v4 = vperm.slane %v3939_v39, %v8976_v21  ;;  %v6040_v38 = vld [vmem:[#allocation2 + $0xaa] sm:$0xff]  ;;  %v6042_v11 = vrot.slane %v6030_v35, 4 }
 0x514   : > { %v10867_v14 = vsel %vm276_vm0, %v1950_v9, %v1913_v41  ;;  %2412 = vrot.lane.b32.xlu0 %v10706_v62, %s8872_s27  ;;  %2410 = vrot.lane.b32.xlu2 %v10708_v63, %s8872_s27  ;;  %v3986_v33 = vrot.slane %v10864_v12, 4  ;;  %v6032_v41 = vld [vmem:[#allocation2 + $0x4a] sm:$0xff]  ;;  %v6026_v9 = vld [vmem:[#allocation2 + $0x2] sm:$0xff]  ;;  %v6078_v57 = vrot.slane %v6040_v38, 4 }
 0x515   : > { %2408 = vrot.lane.b32.xlu1 %v10581_v60, %s8872_s27  ;;  %v10884_v59 = vsel %vm276_vm0, %v1826_v0, %v10723_v20  ;;  %v6054_v43 = vrot.slane %v6032_v41, 4  ;;  %v6036_v20 = vld [vmem:[#allocation2 + $0x7a] sm:$0xff]  ;;  %v6043_v41 = vsel %vm276_vm0, %v6042_v11, %v6026_v9 }
 0x516   : > { %14176 = vst [vmem:[#allocation77_spill] sm:$0xff] %v10884_v59  ;;  %v10888_v56 = vsel %vm276_vm0, %v3986_v33, %v10880_v4  ;;  %v6067_v33 = vsel %vm276_vm0, %v6066_v7, %v6034_v10  ;;  %v10911_v35 = vperm.slane %v6043_v41, %v8951_v5 }
 0x517   : > { %14177 = vst [vmem:[#allocation78_spill] sm:$0xff] %v10888_v56  ;;  %v6055_v39 = vsel %vm276_vm0, %v6054_v43, %v6028_v37  ;;  %v6079_v37 = vsel %vm276_vm0, %v6078_v57, %v6036_v20  ;;  %v10904_v15 = vperm.slane %v6067_v33, %v8951_v5 }
 0x518   : > { %v10896_v0 = vperm.slane %v6055_v39, %v8951_v5 }
 0x51c   : > { %3150 = vrot.lane.b32.xlu0 %v10639_v47, %s8890_s13  ;;  %3148 = vrot.lane.b32.xlu2 %v10589_v1, %s8890_s13  ;;  %v10907_v47 = vperm.slane %v6079_v37, %v8951_v5  ;;  %v6090_v1 = vrot.slane %v10896_v0, 4 }
 0x51d   : > { %3146 = vrot.lane.b32.xlu1 %v10591_v2, %s8890_s13 }
 0x51e   : > { %v6114_v10 = vrot.slane %v10907_v47, 4  ;;  %v6091_v7 = vsel %vm276_vm0, %v6090_v1, %v10911_v35 }
 0x51f   : > { %v10928_v11 = vperm.slane %v6091_v7, %v8976_v21 }
 0x520   : > { %v6115_v2 = vsel %vm276_vm0, %v6114_v10, %v10904_v15 }
 0x521   : > { %v10919_v57 = vperm.slane %v6115_v2, %v8976_v21 }
 0x523   : > { %v6138_v38 = vrot.slane %v10919_v57, 4 }
 0x524   : > { %3156 = vrot.lane.b32.xlu0 %v10579_v61, %s8890_s13  ;;  %3154 = vrot.lane.b32.xlu2 %v10577_v46, %s8890_s13  ;;  %v3904_v61 = vrot.slane %v10787_v58, 4 }
 0x525   : > { %3152 = vrot.lane.b32.xlu1 %v10637_v49, %s8890_s13  ;;  %v10933_v43 = vsel %vm276_vm0, %v6138_v38, %v10928_v11 }
 0x52c   : > { %3162 = vrot.lane.b32.xlu0 %v10692_v17, %s8890_s13  ;;  %3160 = vrot.lane.b32.xlu2 %v10650_v8, %s8890_s13  ;;  %v3928_v8 = vrot.slane %v10634_v54, 4 }
 0x52d   : > { %3158 = vrot.lane.b32.xlu1 %v10652_v19, %s8890_s13 }
 0x534   : > { %3168 = vrot.lane.b32.xlu0 %v10581_v60, %s8890_s13  ;;  %3166 = vrot.lane.b32.xlu2 %v10575_v16, %s8890_s13  ;;  %v3916_v60 = vrot.slane %v10825_v23, 4  ;;  %v3929_v16 = vsel %vm276_vm0, %v10622_v22, %v3928_v8 }
 0x535   : > { %3164 = vrot.lane.b32.xlu1 %v10690_v6, %s8890_s13  ;;  %v3937_v6 = vperm.slane %v3929_v16, %v8951_v5 }
 0x536   : > { %v3917_v46 = vsel %vm276_vm0, %v10791_v26, %v3916_v60 }
 0x53c   : > { %3172 = vrot.lane.b32.xlu2 %v10706_v62, %s8890_s13  ;;  %1983 = vrot.lane.b32.xlu0 %v10781_v32, %s8883_s18  ;;  %v3905_v62 = vsel %vm276_vm0, %v10661_v13, %v3904_v61  ;;  %v3974_v32 = vrot.slane %v3937_v6, 4 }
 0x53d   : > { %3170 = vrot.lane.b32.xlu1 %v10708_v63, %s8890_s13  ;;  %v3925_v63 = vperm.slane %v3917_v46, %v8951_v5 }
 0x544   : > { %1959 = vrot.lane.b32.xlu0 %v10807_v25, %s8876_s30  ;;  %1955 = vrot.lane.b32.xlu2 %v10767_v34, %s8879_s9  ;;  %v3892_v34 = vrot.slane %v10815_v53, 4  ;;  %v3975_v25 = vsel %vm276_vm0, %v3974_v32, %v3925_v63 }
 0x545   : > { %1963 = vrot.lane.b32.xlu1 %v10784_v55, %s8877_s7  ;;  %v3981_v39 = vperm.slane %v3975_v25, %v8976_v21 }
 0x546   : > { %v10959_v17 = vpop.permute.xlu2 %2416 }
 0x547   : > { %v3994_v37 = vrot.slane %v3981_v39, 4 }
 0x54c   : > { %1971 = vrot.lane.b32.xlu0 %v10760_v52, %s8878_s8  ;;  %1967 = vrot.lane.b32.xlu2 %v10773_v29, %s8874_s28  ;;  %v3964_v52 = vrot.slane %v10844_v28, 4  ;;  %v3893_v28 = vsel %vm276_vm0, %v10789_v30, %v3892_v34 }
 0x54d   : > { %1975 = vrot.lane.b32.xlu1 %v10795_v48, %s8875_s29  ;;  %v3940_v48 = vrot.slane %v10861_v50, 4 }
 0x54e   : > { %v10967_v49 = vpop.permute.xlu2 %2386 }
 0x554   : > { %1995 = vrot.lane.b32.xlu0 %v10810_v36, %s8885_s20  ;;  %1979 = vrot.lane.b32.xlu2 %v10778_v51, %s8880_s10  ;;  %v3913_v51 = vperm.slane %v3905_v62, %v8951_v5  ;;  %v3988_v36 = vrot.slane %v10880_v4, 4  ;;  %v3976_v4 = vrot.slane %v3925_v63, 4 }
 0x555   : > { %1987 = vrot.lane.b32.xlu1 %v10770_v24, %s8882_s17 }
 0x556   : > { %v10977_v19 = vpop.permute.xlu2 %2392  ;;  %v3989_v9 = vsel %vm276_vm0, %v10864_v12, %v3988_v36  ;;  %v3977_v10 = vsel %vm276_vm0, %v3937_v6, %v3976_v4  ;;  %v4511_v4 = vld [vmem:[#allocation2 + $0x39] sm:$0xff] }
 0x557   : > { %v3985_v8 = vperm.slane %v3977_v10, %v8976_v21 }
 0x559   : > { %v3998_v63 = vrot.slane %v3985_v8, 4 }
 0x55c   : > { %2007 = vrot.lane.b32.xlu0 %v10867_v14, %s8888_s25  ;;  %1991 = vrot.lane.b32.xlu2 %v10823_v42, %s8886_s23  ;;  %v3965_v42 = vsel %vm276_vm0, %v10680_v45, %v3964_v52  ;;  %v3950_v14 = vrot.slane %v3913_v51, 4  ;;  %v3901_v45 = vperm.slane %v3893_v28, %v8951_v5  ;;  %v4507_v28 = vld [vmem:[#allocation2 + $0x9] sm:$0xff] }
 0x55d   : > { %1999 = vrot.lane.b32.xlu1 %v10855_v27, %s8884_s19  ;;  %v3941_v27 = vsel %vm276_vm0, %v10828_v3, %v3940_v48  ;;  %v3973_v50 = vperm.slane %v3965_v42, %v8976_v21 }
 0x55e   : > { %v10996_v24 = vpop.permute.xlu0 %3174  ;;  %v10998_v29 = vpop.permute.xlu2 %2398  ;;  %v3949_v3 = vperm.slane %v3941_v27, %v8976_v21  ;;  %v3951_v33 = vsel %vm276_vm0, %v3950_v14, %v3901_v45  ;;  %v3952_v1 = vrot.slane %v3901_v45, 4  ;;  %v4509_v45 = vld [vmem:[#allocation2 + $0x21] sm:$0xff] }
 0x55f   : > { %v11001_v55 = vpop.permute.xlu1 %2414  ;;  %v3957_v7 = vperm.slane %v3951_v33, %v8976_v21 }
 0x560   : > { %v3992_v2 = vrot.slane %v3949_v3, 4  ;;  %v2470_v27 = vrot.slane %v11001_v55, 4 }
 0x561   : > { %v3995_v38 = vsel %vm276_vm0, %v3994_v37, %v3957_v7  ;;  %v3996_v34 = vrot.slane %v3957_v7, 4 }
 0x562   : > { %v3993_v60 = vsel %vm276_vm0, %v3973_v50, %v3992_v2 }
 0x563   : > { %v3997_v48 = vsel %vm276_vm0, %v3981_v39, %v3996_v34 }
 0x564   : > { %4115 = vrot.lane.b32.xlu0 %v3989_v9, %s8879_s9  ;;  %2003 = vrot.lane.b32.xlu2 %v10849_v44, %s8889_s26  ;;  %v3990_v44 = vrot.slane %v3973_v50, 4 }
 0x565   : > { %2011 = vrot.lane.b32.xlu1 %v10858_v40, %s8887_s24  ;;  %v3953_v40 = vsel %vm276_vm0, %v3913_v51, %v3952_v1 }
 0x566   : > { %v11023_v20 = vpop.permute.xlu0 %2388  ;;  %v11025_v12 = vpop.permute.xlu2 %2404  ;;  %v3991_v61 = vsel %vm276_vm0, %v3990_v44, %v3949_v3  ;;  %v3961_v16 = vperm.slane %v3953_v40, %v8976_v21 }
 0x567   : > { %v11028_v41 = vpop.permute.xlu1 %3176 }
 0x568   : > { %v4000_v52 = vrot.slane %v3961_v16, 4  ;;  %v3999_v32 = vsel %vm276_vm0, %v3998_v63, %v3961_v16 }
 0x56a   : > { %v4001_v51 = vsel %vm276_vm0, %v3985_v8, %v4000_v52 }
 0x56c   : > { %4127 = vrot.lane.b32.xlu0 %v3995_v38, %s8874_s28  ;;  %4123 = vrot.lane.b32.xlu2 %v3993_v60, %s8877_s7  ;;  %v4513_v60 = vld [vmem:[#allocation2 + $0x51] sm:$0xff] }
 0x56d   : > { %4119 = vrot.lane.b32.xlu1 %v3991_v61, %s8876_s30  ;;  %v2582_v61 = vrot.slane %v10959_v17, 4 }
 0x56e   : > { %v11041_v46 = vpop.permute.xlu0 %2394  ;;  %v11043_v6 = vpop.permute.xlu2 %2410 }
 0x56f   : > { %v11045_v62 = vpop.permute.xlu1 %2390  ;;  %v2434_v33 = vrot.slane %v11041_v46, 4 }
 0x574   : > { %4139 = vrot.lane.b32.xlu0 %v4001_v51, %s8880_s10  ;;  %4135 = vrot.lane.b32.xlu2 %v3999_v32, %s8875_s29 }
 0x575   : > { %4131 = vrot.lane.b32.xlu1 %v3997_v48, %s8878_s8 }
 0x576   : > { %v11053_v25 = vpop.permute.xlu0 %2400  ;;  %v11055_v36 = vpop.permute.xlu2 %3148 }
 0x577   : > { %v11057_v42 = vpop.permute.xlu1 %2396 }
 0x57c   : > { %4538 = vrot.lane.b32.xlu0 %v10815_v53, %s8872_s27  ;;  %4542 = vrot.lane.b32.xlu2 %v10787_v58, %s8872_s27  ;;  %v2446_v53 = vrot.slane %v10998_v29, 4  ;;  %v2458_v58 = vrot.slane %v11043_v6, 4 }
 0x57d   : > { %4540 = vrot.lane.b32.xlu1 %v4507_v28, %s8872_s27 }
 0x57e   : > { %v11065_v14 = vpop.permute.xlu0 %2406  ;;  %v11067_v9 = vpop.permute.xlu2 %3154  ;;  %v2447_v37 = vsel %vm276_vm0, %v2446_v53, %v11045_v62 }
 0x57f   : > { %v2403_v39 = vpop.permute.xlu1 %2402  ;;  %v2471_v50 = vsel %vm276_vm0, %v2470_v27, %v11065_v14  ;;  %v2453_v40 = vperm.slane %v2447_v37, %v8951_v5 }
 0x580   : > { %v11072_v3 = vperm.slane %v2471_v50, %v8951_v5  ;;  %v2459_v44 = vsel %vm276_vm0, %v2458_v58, %v2403_v39  ;;  %v2460_v28 = vrot.slane %v2403_v39, 4  ;;  %v4515_v50 = vld [vmem:[#allocation2 + $0x69] sm:$0xff] }
 0x581   : > { %v2465_v38 = vperm.slane %v2459_v44, %v8951_v5  ;;  %v2482_v63 = vrot.slane %v2453_v40, 4 }
 0x582   : > { %v2506_v7 = vrot.slane %v11072_v3, 4  ;;  %v2461_v37 = vsel %vm276_vm0, %v11043_v6, %v2460_v28 }
 0x584   : > { %4544 = vrot.lane.b32.xlu0 %v4509_v45, %s8872_s27  ;;  %4548 = vrot.lane.b32.xlu2 %v4511_v4, %s8872_s27  ;;  %v2507_v8 = vsel %vm276_vm0, %v2506_v7, %v2465_v38  ;;  %v4517_v45 = vld [vmem:[#allocation2 + $0x81] sm:$0xff] }
 0x585   : > { %4546 = vrot.lane.b32.xlu1 %v10789_v30, %s8872_s27  ;;  %v2435_v30 = vsel %vm276_vm0, %v2434_v33, %v10967_v49  ;;  %v11111_v48 = vperm.slane %v2507_v8, %v8976_v21 }
 0x586   : > { %v11084_v1 = vpop.permute.xlu0 %2412  ;;  %v11086_v10 = vpop.permute.xlu2 %3160  ;;  %v2441_v16 = vperm.slane %v2435_v30, %v8951_v5 }
 0x587   : > { %v11089_v2 = vpop.permute.xlu1 %2408  ;;  %v2570_v52 = vrot.slane %v11084_v1, 4  ;;  %v2530_v58 = vrot.slane %v11111_v48, 4 }
 0x588   : > { %v2583_v34 = vsel %vm276_vm0, %v2582_v61, %v11089_v2  ;;  %v2483_v4 = vsel %vm276_vm0, %v2482_v63, %v2441_v16  ;;  %v2484_v30 = vrot.slane %v2441_v16, 4  ;;  %v2508_v16 = vrot.slane %v2465_v38, 4 }
 0x589   : > { %v11117_v27 = vperm.slane %v2583_v34, %v8951_v5  ;;  %v2571_v53 = vsel %vm276_vm0, %v2570_v52, %v11025_v12  ;;  %v11128_v39 = vperm.slane %v2483_v4, %v8976_v21  ;;  %v2472_v52 = vrot.slane %v11065_v14, 4  ;;  %v4519_v4 = vld [vmem:[#allocation2 + $0x99] sm:$0xff] }
 0x58a   : > { %v11133_v44 = vperm.slane %v2571_v53, %v8951_v5  ;;  %v2448_v53 = vrot.slane %v11045_v62, 4 }
 0x58b   : > { %v2618_v7 = vrot.slane %v11117_v27, 4  ;;  %v11145_v63 = vsel %vm276_vm0, %v2530_v58, %v11128_v39  ;;  %v2473_v38 = vsel %vm276_vm0, %v11001_v55, %v2472_v52 }
 0x58c   : > { %4550 = vrot.lane.b32.xlu0 %v10661_v13, %s8872_s27  ;;  %4554 = vrot.lane.b32.xlu2 %v10825_v23, %s8872_s27  ;;  %v2558_v23 = vrot.slane %v11053_v25, 4  ;;  %14178 = vst [vmem:[#allocation79_spill] sm:$0xff] %v11145_v63 }
 0x58d   : > { %4552 = vrot.lane.b32.xlu1 %v4513_v60, %s8872_s27  ;;  %v2546_v60 = vrot.slane %v11057_v42, 4  ;;  %v2619_v28 = vsel %vm276_vm0, %v2618_v7, %v11133_v44  ;;  %v3318_v7 = vrot.slane %v11086_v10, 4 }
 0x58e   : > { %v11106_v51 = vpop.permute.xlu0 %3150  ;;  %v11108_v32 = vpop.permute.xlu2 %3166  ;;  %v2559_v33 = vsel %vm276_vm0, %v2558_v23, %v10977_v19  ;;  %v2436_v23 = vrot.slane %v10967_v49, 4 }
 0x58f   : > { %v11113_v13 = vpop.permute.xlu1 %3146  ;;  %v11148_v6 = vperm.slane %v2559_v33, %v8951_v5 }
 0x590   : > { %v2437_v14 = vsel %vm276_vm0, %v11041_v46, %v2436_v23  ;;  %v11176_v46 = vperm.slane %v2619_v28, %v8976_v21 }
 0x591   : > { %v2594_v58 = vrot.slane %v11148_v6, 4  ;;  %v2445_v33 = vperm.slane %v2437_v14, %v8951_v5 }
 0x592   : > { %v2642_v23 = vrot.slane %v11176_v46, 4 }
 0x594   : > { %4556 = vrot.lane.b32.xlu0 %v4515_v50, %s8872_s27  ;;  %4560 = vrot.lane.b32.xlu2 %v4517_v45, %s8872_s27  ;;  %v2485_v50 = vsel %vm276_vm0, %v2453_v40, %v2484_v30  ;;  %v2547_v45 = vsel %vm276_vm0, %v2546_v60, %v11023_v20  ;;  %v2509_v40 = vsel %vm276_vm0, %v11072_v3, %v2508_v16  ;;  %v2584_v16 = vrot.slane %v11089_v2, 4 }
 0x595   : > { %4558 = vrot.lane.b32.xlu1 %v10634_v54, %s8872_s27  ;;  %v11154_v54 = vperm.slane %v2461_v37, %v8951_v5  ;;  %v11179_v62 = vperm.slane %v2547_v45, %v8951_v5  ;;  %v2493_v55 = vperm.slane %v2485_v50, %v8976_v21  ;;  %v2449_v3 = vsel %vm276_vm0, %v10998_v29, %v2448_v53 }
 0x596   : > { %v11139_v8 = vpop.permute.xlu0 %3156  ;;  %v11141_v61 = vpop.permute.xlu2 %3172  ;;  %v2517_v60 = vperm.slane %v2509_v40, %v8976_v21  ;;  %v2457_v14 = vperm.slane %v2449_v3, %v8951_v5  ;;  %v2560_v3 = vrot.slane %v10977_v19, 4 }
 0x597   : > { %v11151_v34 = vpop.permute.xlu1 %3152  ;;  %v2520_v49 = vrot.slane %v11154_v54, 4  ;;  %v2595_v52 = vsel %vm276_vm0, %v2594_v58, %v11179_v62  ;;  %v3306_v50 = vrot.slane %v11139_v8, 4  ;;  %v2536_v45 = vrot.slane %v2493_v55, 4 }
 0x598   : > { %v3319_v29 = vsel %vm276_vm0, %v3318_v7, %v11151_v34  ;;  %v11208_v53 = vperm.slane %v2595_v52, %v8976_v21  ;;  %v3342_v7 = vrot.slane %v11028_v41, 4 }
 0x599   : > { %v2537_v58 = vsel %vm276_vm0, %v2517_v60, %v2536_v45  ;;  %v3307_v52 = vsel %vm276_vm0, %v3306_v50, %v11055_v36 }
 0x59a   : > { %v2643_v40 = vsel %vm276_vm0, %v2642_v23, %v11208_v53  ;;  %v11243_v63 = vperm.slane %v3307_v52, %v8951_v5 }
 0x59c   : > { %4562 = vrot.lane.b32.xlu0 %v10791_v26, %s8872_s27  ;;  %4566 = vrot.lane.b32.xlu2 %v10622_v22, %s8872_s27  ;;  %v11185_v26 = vperm.slane %v2473_v38, %v8951_v5  ;;  %v2585_v38 = vsel %vm276_vm0, %v10959_v17, %v2584_v16  ;;  %v2494_v17 = vrot.slane %v2457_v14, 4  ;;  %v3330_v16 = vrot.slane %v11141_v61, 4 }
 0x59d   : > { %4564 = vrot.lane.b32.xlu1 %v4519_v4, %s8872_s27  ;;  %v2496_v4 = vrot.slane %v2445_v33, 4  ;;  %v11235_v19 = vperm.slane %v2585_v38, %v8951_v5  ;;  %v2572_v38 = vrot.slane %v11025_v12, 4 }
 0x59e   : > { %v11187_v37 = vpop.permute.xlu0 %3162  ;;  %v11189_v22 = vpop.permute.xlu2 %1955  ;;  %v2521_v28 = vsel %vm276_vm0, %v11185_v26, %v2520_v49  ;;  %v11217_v49 = vperm.slane %v3319_v29, %v8951_v5 }
 0x59f   : > { %14179 = vst [vmem:[#allocation80_spill] sm:$0xff] %v11189_v22  ;;  %v11194_v30 = vpop.permute.xlu1 %3158  ;;  %v11212_v2 = vperm.slane %v2521_v28, %v8976_v21  ;;  %v2548_v28 = vrot.slane %v11023_v20, 4  ;;  %v2497_v23 = vsel %vm276_vm0, %v2457_v14, %v2496_v4  ;;  %v2534_v20 = vrot.slane %v2517_v60, 4 }
 0x5a0   : > { %v3354_v59 = vrot.slane %v11217_v49, 4  ;;  %v3230_v14 = vrot.slane %v10996_v24, 4  ;;  %v11255_v22 = vperm.slane %v2497_v23, %v8976_v21  ;;  %v2561_v60 = vsel %vm276_vm0, %v11053_v25, %v2560_v3 }
 0x5a1   : > { %v2549_v52 = vsel %vm276_vm0, %v11057_v42, %v2548_v28  ;;  %v3206_v12 = vrot.slane %v11194_v30, 4  ;;  %v2495_v23 = vsel %vm276_vm0, %v2494_v17, %v2445_v33  ;;  %v2630_v25 = vrot.slane %v11235_v19, 4 }
 0x5a2   : > { %v2535_v3 = vsel %vm276_vm0, %v2534_v20, %v2493_v55  ;;  %v3355_v28 = vsel %vm276_vm0, %v3354_v59, %v11243_v63 }
 0x5a4   : > { %2667 = vrot.lane.b32.xlu2 %v2537_v58, %s8877_s7 }
 0x5a5   : > { %2687 = vrot.lane.b32.xlu1 %v2643_v40, %s8883_s18  ;;  %v2542_v40 = vrot.slane %v11212_v2, 4 }
 0x5a6   : > { %v11229_v29 = vpop.permute.xlu0 %3168  ;;  %v11231_v45 = vpop.permute.xlu2 %1967 }
 0x5a7   : > { %14180 = vst [vmem:[#allocation81_spill] sm:$0xff] %v11231_v45  ;;  %v3343_v58 = vsel %vm276_vm0, %v3342_v7, %v11229_v29  ;;  %v11239_v50 = vpop.permute.xlu1 %3164  ;;  %v2518_v7 = vrot.slane %v11185_v26, 4  ;;  %v2543_v26 = vsel %vm276_vm0, %v2542_v40, %v11255_v22  ;;  %v2557_v40 = vperm.slane %v2549_v52, %v8951_v5 }
 0x5a8   : > { %v11247_v45 = vperm.slane %v3343_v58, %v8951_v5  ;;  %v3331_v4 = vsel %vm276_vm0, %v3330_v16, %v11239_v50  ;;  %v2573_v16 = vsel %vm276_vm0, %v11084_v1, %v2572_v38  ;;  %v2569_v1 = vperm.slane %v2561_v60, %v8951_v5 }
 0x5a9   : > { %v11263_v56 = vperm.slane %v3331_v4, %v8951_v5  ;;  %v3231_v4 = vsel %vm276_vm0, %v3230_v14, %v11108_v32  ;;  %v2519_v17 = vsel %vm276_vm0, %v2518_v7, %v11154_v54  ;;  %v2581_v55 = vperm.slane %v2573_v16, %v8951_v5 }
 0x5aa   : > { %v3378_v58 = vrot.slane %v11247_v45, 4  ;;  %v11294_v38 = vperm.slane %v2495_v23, %v8976_v21  ;;  %v2596_v14 = vrot.slane %v11179_v62, 4  ;;  %v3207_v60 = vsel %vm276_vm0, %v3206_v12, %v11106_v51 }
 0x5ab   : > { %v11304_v7 = vperm.slane %v3231_v4, %v8951_v5  ;;  %v11307_v16 = vperm.slane %v2519_v17, %v8976_v21  ;;  %v2631_v23 = vsel %vm276_vm0, %v2630_v25, %v2581_v55  ;;  %v2620_v62 = vrot.slane %v11133_v44, 4 }
 0x5ac   : > { %v3379_v42 = vsel %vm276_vm0, %v3378_v58, %v11263_v56  ;;  %2679 = vrot.lane.b32.xlu2 %v2543_v26, %s8875_s29  ;;  %v11300_v26 = vperm.slane %v3355_v28, %v8976_v21  ;;  %v3194_v28 = vrot.slane %v11067_v9, 4  ;;  %v2540_v25 = vrot.slane %v11294_v38, 4 }
 0x5ad   : > { %2663 = vrot.lane.b32.xlu1 %v2535_v3, %s8876_s30  ;;  %v11283_v33 = vperm.slane %v3379_v42, %v8976_v21  ;;  %v2606_v42 = vrot.slane %v2569_v1, 4  ;;  %v2644_v3 = vrot.slane %v11208_v53, 4  ;;  %v11328_v53 = vperm.slane %v2631_v23, %v8976_v21 }
 0x5ae   : > { %v11289_v20 = vpop.permute.xlu0 %1983  ;;  %v11291_v59 = vpop.permute.xlu2 %1979  ;;  %v2621_v23 = vsel %vm276_vm0, %v11117_v27, %v2620_v62 }
 0x5af   : > { %14181 = vst [vmem:[#allocation82_spill] sm:$0xff] %v11289_v20  ;;  %v3171_v58 = vpop.permute.xlu1 %3170  ;;  %v3402_v54 = vrot.slane %v11283_v33, 4  ;;  %v11316_v20 = vperm.slane %v3207_v60, %v8951_v5  ;;  %v2645_v44 = vsel %vm276_vm0, %v11176_v46, %v2644_v3  ;;  %v2597_v60 = vsel %vm276_vm0, %v11148_v6, %v2596_v14 }
 0x5b0   : > { %14182 = vst [vmem:[#allocation83_spill] sm:$0xff] %v11291_v59  ;;  %v3218_v52 = vrot.slane %v3171_v58, 4  ;;  %v3266_v59 = vrot.slane %v11304_v7, 4  ;;  %v2607_v46 = vsel %vm276_vm0, %v2606_v42, %v2557_v40  ;;  %v11361_v62 = vperm.slane %v2621_v23, %v8976_v21 }
 0x5b1   : > { %v3403_v12 = vsel %vm276_vm0, %v3402_v54, %v11300_v26  ;;  %v2608_v54 = vrot.slane %v2557_v40, 4  ;;  %v3242_v6 = vrot.slane %v11316_v20, 4  ;;  %v2650_v40 = vrot.slane %v11328_v53, 4 }
 0x5b2   : > { %v3219_v4 = vsel %vm276_vm0, %v3218_v52, %v11187_v37  ;;  %3447 = vrot.lane.b32.xlu0 %v3403_v12, %s8883_s18  ;;  %v2541_v52 = vsel %vm276_vm0, %v11307_v16, %v2540_v25  ;;  %v2632_v12 = vrot.slane %v2581_v55, 4  ;;  %v2532_v25 = vrot.slane %v11128_v39, 4 }
 0x5b3   : > { %v11323_v17 = vperm.slane %v3219_v4, %v8951_v5  ;;  %v3195_v4 = vsel %vm276_vm0, %v3194_v28, %v11113_v13  ;;  %v11358_v42 = vperm.slane %v2607_v46, %v8976_v21 }
 0x5b4   : > { %2691 = vrot.lane.b32.xlu2 %v2645_v44, %s8882_s17  ;;  %v11348_v44 = vperm.slane %v2597_v60, %v8976_v21  ;;  %v3201_v27 = vperm.slane %v3195_v4, %v8951_v5  ;;  %v2533_v60 = vsel %vm276_vm0, %v11111_v48, %v2532_v25  ;;  %v3220_v48 = vrot.slane %v11187_v37, 4 }
 0x5b5   : > { %2675 = vrot.lane.b32.xlu1 %v2541_v52, %s8878_s8  ;;  %v3267_v55 = vsel %vm276_vm0, %v3266_v59, %v11323_v17  ;;  %v2609_v52 = vsel %vm276_vm0, %v2569_v1, %v2608_v54  ;;  %v2633_v59 = vsel %vm276_vm0, %v11235_v19, %v2632_v12  ;;  %v2651_v23 = vsel %vm276_vm0, %v2650_v40, %v11358_v42 }
 0x5b6   : > { %v11343_v14 = vpop.permute.xlu0 %1959  ;;  %v11345_v3 = vpop.permute.xlu2 %1991  ;;  %v3273_v39 = vperm.slane %v3267_v55, %v8976_v21  ;;  %v2648_v4 = vrot.slane %v11348_v44, 4  ;;  %v3243_v46 = vsel %vm276_vm0, %v3242_v6, %v3201_v27  ;;  %v2617_v1 = vperm.slane %v2609_v52, %v8976_v21 }
 0x5b7   : > { %14183 = vst [vmem:[#allocation84_spill] sm:$0xff] %v11343_v14  ;;  %v11352_v28 = vpop.permute.xlu1 %1963  ;;  %v2641_v54 = vperm.slane %v2633_v59, %v8976_v21  ;;  %v2538_v12 = vrot.slane %v11307_v16, 4  ;;  %v3221_v55 = vsel %vm276_vm0, %v3171_v58, %v3220_v48  ;;  %v3208_v52 = vrot.slane %v11106_v51, 4 }
 0x5b8   : > { %14184 = vst [vmem:[#allocation85_spill] sm:$0xff] %v11345_v3  ;;  %v3232_v3 = vrot.slane %v11108_v32, 4  ;;  %v2649_v19 = vsel %vm276_vm0, %v11361_v62, %v2648_v4  ;;  %v3249_v32 = vperm.slane %v3243_v46, %v8976_v21  ;;  %v3290_v6 = vrot.slane %v3273_v39, 4 }
 0x5b9   : > { %14185 = vst [vmem:[#allocation86_spill] sm:$0xff] %v11352_v28  ;;  %v2656_v16 = vrot.slane %v2617_v1, 4  ;;  %v2654_v4 = vrot.slane %v2641_v54, 4  ;;  %v3244_v46 = vrot.slane %v3201_v27, 4  ;;  %v3268_v58 = vrot.slane %v11323_v17, 4 }
 0x5ba   : > { %2659 = vrot.lane.b32.xlu0 %v2533_v60, %s8879_s9  ;;  %v3233_v37 = vsel %vm276_vm0, %v10996_v24, %v3232_v3  ;;  %v11392_v60 = vsel %vm276_vm0, %v3290_v6, %v3249_v32  ;;  %v2539_v48 = vsel %vm276_vm0, %v2538_v12, %v11294_v38  ;;  %v3196_v3 = vrot.slane %v11113_v13, 4 }
 0x5bb   : > { %14188 = vst [vmem:[#allocation89_spill] sm:$0xff] %v11392_v60  ;;  %v3241_v24 = vperm.slane %v3233_v37, %v8951_v5  ;;  %v3209_v51 = vsel %vm276_vm0, %v11194_v30, %v3208_v52  ;;  %v3245_v27 = vsel %vm276_vm0, %v11316_v20, %v3244_v46  ;;  %v2655_v17 = vsel %vm276_vm0, %v2654_v4, %v2617_v1 }
 0x5bc   : > { %2703 = vrot.lane.b32.xlu2 %v2651_v23, %s8884_s19  ;;  %v3229_v23 = vperm.slane %v3221_v55, %v8951_v5  ;;  %v3269_v13 = vsel %vm276_vm0, %v11304_v7, %v3268_v58  ;;  %v3197_v12 = vsel %vm276_vm0, %v11067_v9, %v3196_v3  ;;  %v3217_v30 = vperm.slane %v3209_v51, %v8951_v5 }
 0x5bd   : > { %2699 = vrot.lane.b32.xlu1 %v2649_v19, %s8885_s20  ;;  %v2657_v19 = vsel %vm276_vm0, %v2641_v54, %v2656_v16  ;;  %v3278_v38 = vrot.slane %v3241_v24, 4  ;;  %v11420_v20 = vperm.slane %v3245_v27, %v8976_v21  ;;  %v2544_v1 = vrot.slane %v11255_v22, 4 }
 0x5be   : > { %v11385_v25 = vpop.permute.xlu0 %1971  ;;  %v11395_v59 = vpop.permute.xlu2 %2003  ;;  %v3280_v6 = vrot.slane %v3229_v23, 4  ;;  %v11427_v52 = vperm.slane %v3269_v13, %v8976_v21  ;;  %v3205_v7 = vperm.slane %v3197_v12, %v8951_v5  ;;  %v3292_v16 = vrot.slane %v3249_v32, 4 }
 0x5bf   : > { %14186 = vst [vmem:[#allocation87_spill] sm:$0xff] %v11385_v25  ;;  %v11389_v40 = vpop.permute.xlu1 %1975  ;;  %v3279_v37 = vsel %vm276_vm0, %v3278_v38, %v3229_v23  ;;  %v2545_v9 = vsel %vm276_vm0, %v11212_v2, %v2544_v1  ;;  %v3254_v46 = vrot.slane %v3217_v30, 4  ;;  %v3344_v58 = vrot.slane %v11229_v29, 4 }
 0x5c0   : > { %14187 = vst [vmem:[#allocation88_spill] sm:$0xff] %v11389_v40  ;;  %v3281_v4 = vsel %vm276_vm0, %v3241_v24, %v3280_v6  ;;  %v3296_v22 = vrot.slane %v11420_v20, 4  ;;  %v3293_v23 = vsel %vm276_vm0, %v3273_v39, %v3292_v16  ;;  %v11440_v3 = vperm.slane %v3279_v37, %v8976_v21 }
 0x5c1   : > { %14189 = vst [vmem:[#allocation90_spill] sm:$0xff] %v11395_v59  ;;  %v3289_v32 = vperm.slane %v3281_v4, %v8976_v21  ;;  %v3256_v24 = vrot.slane %v3205_v7, 4  ;;  %v2646_v29 = vrot.slane %v11361_v62, 4  ;;  %v3345_v51 = vsel %vm276_vm0, %v11028_v41, %v3344_v58 }
 0x5c2   : > { %2671 = vrot.lane.b32.xlu0 %v2539_v48, %s8874_s28  ;;  %v3297_v2 = vsel %vm276_vm0, %v11427_v52, %v3296_v22  ;;  %v3255_v39 = vsel %vm276_vm0, %v3254_v46, %v3205_v7  ;;  %v3298_v6 = vrot.slane %v11440_v3, 4  ;;  %v3320_v13 = vrot.slane %v11151_v34, 4 }
 0x5c3   : > { %v3332_v38 = vrot.slane %v11239_v50, 4  ;;  %v3302_v12 = vrot.slane %v3289_v32, 4  ;;  %v3353_v62 = vperm.slane %v3345_v51, %v8951_v5  ;;  %v2647_v41 = vsel %vm276_vm0, %v2646_v29, %v11348_v44 }
 0x5c4   : > { %2715 = vrot.lane.b32.xlu2 %v2657_v19, %s8887_s24  ;;  %v3261_v1 = vperm.slane %v3255_v39, %v8976_v21  ;;  %v3321_v7 = vsel %vm276_vm0, %v11086_v10, %v3320_v13  ;;  %v3380_v50 = vrot.slane %v11263_v56, 4  ;;  %v3308_v4 = vrot.slane %v11055_v36, 4 }
 0x5c5   : > { %2711 = vrot.lane.b32.xlu1 %v2655_v17, %s8888_s25  ;;  %v3257_v17 = vsel %vm276_vm0, %v3217_v30, %v3256_v24  ;;  %v3333_v34 = vsel %vm276_vm0, %v11141_v61, %v3332_v38  ;;  %v3390_v16 = vrot.slane %v3353_v62, 4  ;;  %v3329_v10 = vperm.slane %v3321_v7, %v8951_v5 }
 0x5c6   : > { %v11417_v54 = vpop.permute.xlu0 %1995  ;;  %v11434_v48 = vpop.permute.xlu2 %4123  ;;  %v3265_v37 = vperm.slane %v3257_v17, %v8976_v21  ;;  %v3299_v30 = vsel %vm276_vm0, %v3298_v6, %v3261_v1  ;;  %v3341_v58 = vperm.slane %v3333_v34, %v8951_v5  ;;  %v2652_v56 = vrot.slane %v11358_v42, 4 }
 0x5c7   : > { %14190 = vst [vmem:[#allocation91_spill] sm:$0xff] %v11417_v54  ;;  %v11422_v55 = vpop.permute.xlu1 %1987  ;;  %v3309_v22 = vsel %vm276_vm0, %v11139_v8, %v3308_v4  ;;  %v3356_v29 = vrot.slane %v11243_v63, 4  ;;  %v3404_v51 = vrot.slane %v11300_v26, 4  ;;  %v3366_v39 = vrot.slane %v3329_v10, 4 }
 0x5c8   : > { %14191 = vst [vmem:[#allocation92_spill] sm:$0xff] %v11422_v55  ;;  %v3303_v44 = vsel %vm276_vm0, %v3302_v12, %v3265_v37  ;;  %v3304_v36 = vrot.slane %v3265_v37, 4  ;;  %v3391_v24 = vsel %vm276_vm0, %v3390_v16, %v3341_v58  ;;  %v3317_v42 = vperm.slane %v3309_v22, %v8951_v5 }
 0x5c9   : > { %14192 = vst [vmem:[#allocation93_spill] sm:$0xff] %v11434_v48  ;;  %v3294_v63 = vrot.slane %v11427_v52, 4  ;;  %v3392_v37 = vrot.slane %v3341_v58, 4  ;;  %v3300_v58 = vrot.slane %v3261_v1, 4 }
 0x5ca   : > { %2683 = vrot.lane.b32.xlu0 %v2545_v9, %s8880_s10  ;;  %v3305_v8 = vsel %vm276_vm0, %v3289_v32, %v3304_v36  ;;  %v3357_v32 = vsel %vm276_vm0, %v11217_v49, %v3356_v29  ;;  %v3368_v13 = vrot.slane %v3317_v42, 4 }
 0x5cb   : > { %v3365_v52 = vperm.slane %v3357_v32, %v8976_v21 }
 0x5cc   : > { %3419 = vrot.lane.b32.xlu2 %v3293_v23, %s8879_s9  ;;  %v3381_v23 = vsel %vm276_vm0, %v11247_v45, %v3380_v50  ;;  %v3405_v45 = vsel %vm276_vm0, %v11283_v33, %v3404_v51  ;;  %v3367_v33 = vsel %vm276_vm0, %v3366_v39, %v3317_v42  ;;  %v3369_v49 = vsel %vm276_vm0, %v3329_v10, %v3368_v13 }
 0x5cd   : > { %3427 = vrot.lane.b32.xlu1 %v3297_v2, %s8877_s7  ;;  %v2653_v2 = vsel %vm276_vm0, %v11328_v53, %v2652_v56  ;;  %v3389_v17 = vperm.slane %v3381_v23, %v8976_v21  ;;  %v3397_v53 = vperm.slane %v3391_v24, %v8976_v21  ;;  %v3373_v7 = vperm.slane %v3367_v33, %v8976_v21  ;;  %v11550_v33 = vld [vmem:[#allocation2 + $0xb1] sm:$0xff] }
 0x5ce   : > { %v11450_v19 = vpop.permute.xlu0 %2007  ;;  %v11471_v9 = vpop.permute.xlu2 %4135  ;;  %v3301_v10 = vsel %vm276_vm0, %v11440_v3, %v3300_v58  ;;  %v3408_v29 = vrot.slane %v3365_v52, 4 }
 0x5cf   : > { %14193 = vst [vmem:[#allocation94_spill] sm:$0xff] %v11450_v19  ;;  %v11453_v27 = vpop.permute.xlu1 %1999  ;;  %v3406_v12 = vrot.slane %v3389_v17, 4  ;;  %v3412_v23 = vrot.slane %v3373_v7, 4 }
 0x5d0   : > { %14194 = vst [vmem:[#allocation95_spill] sm:$0xff] %v11453_v27  ;;  %v3409_v51 = vsel %vm276_vm0, %v3389_v17, %v3408_v29 }
 0x5d1   : > { %14195 = vst [vmem:[#allocation96_spill] sm:$0xff] %v11471_v9  ;;  %v3407_v34 = vsel %vm276_vm0, %v3406_v12, %v3365_v52 }
 0x5d2   : > { %2695 = vrot.lane.b32.xlu0 %v2647_v41, %s8886_s23  ;;  %v3410_v41 = vrot.slane %v3397_v53, 4 }
 0x5d4   : > { %3431 = vrot.lane.b32.xlu2 %v3299_v30, %s8874_s28  ;;  %v3295_v30 = vsel %vm276_vm0, %v3294_v63, %v11420_v20  ;;  %v3411_v50 = vsel %vm276_vm0, %v3410_v41, %v3373_v7  ;;  %v3377_v20 = vperm.slane %v3369_v49, %v8976_v21 }
 0x5d5   : > { %3439 = vrot.lane.b32.xlu1 %v3303_v44, %s8875_s29  ;;  %v3393_v44 = vsel %vm276_vm0, %v3353_v62, %v3392_v37  ;;  %v3413_v62 = vsel %vm276_vm0, %v3397_v53, %v3412_v23 }
 0x5d6   : > { %v11477_v46 = vpop.permute.xlu0 %4115  ;;  %v11503_v6 = vpop.permute.xlu2 %4542  ;;  %v3401_v22 = vperm.slane %v3393_v44, %v8976_v21 }
 0x5d7   : > { %14196 = vst [vmem:[#allocation97_spill] sm:$0xff] %v11477_v46  ;;  %v11481_v61 = vpop.permute.xlu1 %2011 }
 0x5d8   : > { %14197 = vst [vmem:[#allocation98_spill] sm:$0xff] %v11481_v61  ;;  %v3414_v3 = vrot.slane %v3401_v22, 4 }
 0x5da   : > { %2707 = vrot.lane.b32.xlu0 %v2653_v2, %s8889_s26  ;;  %v3416_v2 = vrot.slane %v3377_v20, 4 }
 0x5dc   : > { %3443 = vrot.lane.b32.xlu2 %v3305_v8, %s8880_s10  ;;  %v3417_v36 = vsel %vm276_vm0, %v3401_v22, %v3416_v2  ;;  %v4600_v22 = vrot.slane %v11503_v6, 4 }
 0x5dd   : > { %3451 = vrot.lane.b32.xlu1 %v3405_v45, %s8882_s17  ;;  %v3415_v45 = vsel %vm276_vm0, %v3414_v3, %v3377_v20 }
 0x5de   : > { %v11505_v26 = vpop.permute.xlu0 %4127  ;;  %v11528_v56 = vpop.permute.xlu2 %4548 }
 0x5df   : > { %14198 = vst [vmem:[#allocation99_spill] sm:$0xff] %v11505_v26  ;;  %v11509_v38 = vpop.permute.xlu1 %4119 }
 0x5e0   : > { %14199 = vst [vmem:[#allocation100_spill] sm:$0xff] %v11509_v38 }
 0x5e2   : > { %3423 = vrot.lane.b32.xlu0 %v3295_v30, %s8876_s30 }
 0x5e4   : > { %3455 = vrot.lane.b32.xlu2 %v3407_v34, %s8886_s23 }
 0x5e5   : > { %3463 = vrot.lane.b32.xlu1 %v3411_v50, %s8884_s19 }
 0x5e6   : > { %v11523_v16 = vpop.permute.xlu0 %4139  ;;  %v4555_v42 = vpop.permute.xlu2 %4554 }
 0x5e7   : > { %14200 = vst [vmem:[#allocation101_spill] sm:$0xff] %v11523_v16  ;;  %v11526_v4 = vpop.permute.xlu1 %4131 }
 0x5e8   : > { %14201 = vst [vmem:[#allocation102_spill] sm:$0xff] %v11526_v4 }
 0x5ea   : > { %3435 = vrot.lane.b32.xlu0 %v3301_v10, %s8878_s8  ;;  %v4612_v10 = vrot.slane %v4555_v42, 4 }
 0x5ec   : > { %3467 = vrot.lane.b32.xlu2 %v3413_v62, %s8889_s26 }
 0x5ed   : > { %3475 = vrot.lane.b32.xlu1 %v3417_v36, %s8887_s24 }
 0x5ee   : > { %v4539_v1 = vpop.permute.xlu0 %4538  ;;  %v11546_v53 = vpop.permute.xlu2 %4560 }
 0x5ef   : > { %v11538_v24 = vpop.permute.xlu1 %4540 }
 0x5f2   : > { %3459 = vrot.lane.b32.xlu0 %v3409_v51, %s8885_s20 }
 0x5f6   : > { %v11542_v39 = vpop.permute.xlu0 %4544  ;;  %v4567_v41 = vpop.permute.xlu2 %4566 }
 0x5f7   : > { %v4547_v8 = vpop.permute.xlu1 %4546  ;;  %v4622_v49 = vrot.slane %v4567_v41, 4 }
 0x5f8   : > { %v4586_v17 = vrot.slane %v4547_v8, 4 }
 0x5fa   : > { %3471 = vrot.lane.b32.xlu0 %v3415_v45, %s8888_s25  ;;  %v4587_v37 = vsel %vm276_vm0, %v4586_v17, %v4539_v1 }
 0x5fb   : > { %v4593_v50 = vperm.slane %v4587_v37, %v8951_v5 }
 0x5fd   : > { %v4636_v23 = vrot.slane %v4593_v50, 4 }
 0x5fe   : > { %v4551_v63 = vpop.permute.xlu0 %4550 }
 0x5ff   : > { %v4598_v32 = vrot.slane %v4551_v63, 4  ;;  %v11548_v13 = vpop.permute.xlu1 %4552  ;;  %v4601_v2 = vsel %vm276_vm0, %v4551_v63, %v4600_v22 }
 0x601   : > { %v4599_v12 = vsel %vm276_vm0, %v4598_v32, %v11503_v6  ;;  %v4609_v6 = vperm.slane %v4601_v2, %v8951_v5 }
 0x602   : > { %4568 = vrot.lane.b32.xlu0 %v11550_v33, %s8872_s27  ;;  %v4605_v30 = vperm.slane %v4599_v12, %v8951_v5  ;;  %v4588_v12 = vrot.slane %v4539_v1, 4 }
 0x604   : > { %v4634_v44 = vrot.slane %v4605_v30, 4  ;;  %v4637_v17 = vsel %vm276_vm0, %v4605_v30, %v4636_v23 }
 0x606   : > { %v11558_v52 = vpop.permute.xlu0 %4556  ;;  %v4635_v51 = vsel %vm276_vm0, %v4634_v44, %v4593_v50  ;;  %v4589_v50 = vsel %vm276_vm0, %v4547_v8, %v4588_v12  ;;  %v4645_v44 = vperm.slane %v4637_v17, %v8976_v21 }
 0x607   : > { %v4559_v7 = vpop.permute.xlu1 %4558  ;;  %v4641_v63 = vperm.slane %v4635_v51, %v8976_v21 }
 0x608   : > { %v4624_v34 = vrot.slane %v4559_v7, 4  ;;  %v4623_v20 = vsel %vm276_vm0, %v4622_v49, %v4559_v7  ;;  %v4688_v51 = vrot.slane %v4645_v44, 4 }
 0x609   : > { %v4629_v62 = vperm.slane %v4623_v20, %v8951_v5  ;;  %v4684_v22 = vrot.slane %v4641_v63, 4 }
 0x60a   : > { %v4625_v58 = vsel %vm276_vm0, %v4567_v41, %v4624_v34 }
 0x60b   : > { %v4633_v36 = vperm.slane %v4625_v58, %v8951_v5  ;;  %v4658_v37 = vrot.slane %v4629_v62, 4 }
 0x60d   : > { %v4670_v7 = vrot.slane %v4633_v36, 4 }
 0x60e   : > { %v4563_v29 = vpop.permute.xlu0 %4562 }
 0x60f   : > { %v4610_v3 = vrot.slane %v4563_v29, 4  ;;  %v4613_v45 = vsel %vm276_vm0, %v4563_v29, %v4612_v10  ;;  %v4646_v10 = vrot.slane %v4609_v6, 4 }
 0x610   : > { %v4621_v32 = vperm.slane %v4613_v45, %v8951_v5 }
 0x611   : > { %v4611_v41 = vsel %vm276_vm0, %v4610_v3, %v4555_v42  ;;  %v4597_v42 = vperm.slane %v4589_v50, %v8951_v5 }
 0x612   : > { %v4617_v34 = vperm.slane %v4611_v41, %v8951_v5  ;;  %v4672_v49 = vrot.slane %v4621_v32, 4  ;;  %v4671_v58 = vsel %vm276_vm0, %v4670_v7, %v4621_v32 }
 0x613   : > { %v4677_v3 = vperm.slane %v4671_v58, %v8976_v21  ;;  %v4648_v12 = vrot.slane %v4597_v42, 4 }
 0x614   : > { %v4660_v20 = vrot.slane %v4617_v34, 4  ;;  %v4659_v1 = vsel %vm276_vm0, %v4658_v37, %v4617_v34  ;;  %v4673_v2 = vsel %vm276_vm0, %v4633_v36, %v4672_v49 }
 0x615   : > { %v4665_v30 = vperm.slane %v4659_v1, %v8976_v21  ;;  %v4681_v17 = vperm.slane %v4673_v2, %v8976_v21  ;;  %v4690_v41 = vrot.slane %v4677_v3, 4  ;;  %v4649_v37 = vsel %vm276_vm0, %v4609_v6, %v4648_v12 }
 0x616   : > { %v4661_v23 = vsel %vm276_vm0, %v4629_v62, %v4660_v20  ;;  %v4647_v62 = vsel %vm276_vm0, %v4646_v10, %v4597_v42  ;;  %v4657_v20 = vperm.slane %v4649_v37, %v8976_v21 }
 0x617   : > { %v4685_v29 = vsel %vm276_vm0, %v4665_v30, %v4684_v22  ;;  %v4669_v8 = vperm.slane %v4661_v23, %v8976_v21  ;;  %v4653_v7 = vperm.slane %v4647_v62, %v8976_v21  ;;  %v4694_v34 = vrot.slane %v4681_v17, 4 }
 0x618   : > { %4811 = vrot.lane.b32.xlu1 %v4685_v29, %s8879_s9  ;;  %v4682_v49 = vrot.slane %v4665_v30, 4  ;;  %v4696_v30 = vrot.slane %v4657_v20, 4 }
 0x619   : > { %v4689_v45 = vsel %vm276_vm0, %v4669_v8, %v4688_v51  ;;  %v4686_v32 = vrot.slane %v4669_v8, 4  ;;  %v4691_v50 = vsel %vm276_vm0, %v4690_v41, %v4653_v7  ;;  %v4692_v1 = vrot.slane %v4653_v7, 4 }
 0x61a   : > { %4819 = vrot.lane.b32.xlu0 %v4689_v45, %s8877_s7  ;;  %v11598_v58 = vsel %vm276_vm0, %v4682_v49, %v4641_v63  ;;  %v4697_v42 = vsel %vm276_vm0, %v4681_v17, %v4696_v30  ;;  %v4710_v45 = vrot.slane %v11548_v13, 4  ;;  %v4698_v17 = vrot.slane %v11528_v56, 4 }
 0x61b   : > { %v4687_v36 = vsel %vm276_vm0, %v4686_v32, %v4645_v44  ;;  %14202 = vst [vmem:[#allocation103_spill] sm:$0xff] %v11598_v58  ;;  %v4695_v44 = vsel %vm276_vm0, %v4694_v34, %v4657_v20  ;;  %v4693_v6 = vsel %vm276_vm0, %v4677_v3, %v4692_v1  ;;  %v4565_v32 = vpop.permute.xlu1 %4564  ;;  %v4712_v41 = vrot.slane %v11542_v39, 4  ;;  %v11641_v1 = vpop.permute.xlu2 %2667 }
 0x61c   : > { %4815 = vrot.lane.b32.xlu2 %v4687_v36, %s8876_s30  ;;  %v4711_v12 = vsel %vm276_vm0, %v4710_v45, %v11542_v39  ;;  %v4722_v36 = vrot.slane %v4565_v32, 4  ;;  %v4699_v7 = vsel %vm276_vm0, %v4698_v17, %v11538_v24  ;;  %14213 = vst [vmem:[#allocation114_spill] sm:$0xff] %v11641_v1  ;;  %v4724_v39 = vrot.slane %v11558_v52, 4 }
 0x61d   : > { %v4717_v37 = vperm.slane %v4711_v12, %v8951_v5  ;;  %v4705_v49 = vperm.slane %v4699_v7, %v8951_v5  ;;  %v4700_v45 = vrot.slane %v11538_v24, 4 }
 0x61e   : > { %v4723_v34 = vsel %vm276_vm0, %v4722_v36, %v11558_v52  ;;  %v4725_v61 = vsel %vm276_vm0, %v4565_v32, %v4724_v39 }
 0x61f   : > { %v4746_v20 = vrot.slane %v4717_v37, 4  ;;  %v4701_v24 = vsel %vm276_vm0, %v11528_v56, %v4700_v45 }
 0x620   : > { %4823 = vrot.lane.b32.xlu1 %v4691_v50, %s8874_s28  ;;  %v4713_v50 = vsel %vm276_vm0, %v11548_v13, %v4712_v41  ;;  %v4748_v13 = vrot.slane %v4705_v49, 4 }
 0x621   : > { %v4721_v17 = vperm.slane %v4713_v50, %v8951_v5  ;;  %v4747_v7 = vsel %vm276_vm0, %v4746_v20, %v4705_v49 }
 0x622   : > { %4831 = vrot.lane.b32.xlu0 %v4695_v44, %s8875_s29  ;;  %v4736_v44 = vrot.slane %v11546_v53, 4  ;;  %v4749_v49 = vsel %vm276_vm0, %v4717_v37, %v4748_v13 }
 0x623   : > { %v11645_v30 = vpop.permute.xlu1 %2687  ;;  %v4758_v50 = vrot.slane %v4721_v17, 4  ;;  %v4757_v56 = vperm.slane %v4749_v49, %v8976_v21 }
 0x624   : > { %v11604_v22 = vpop.permute.xlu0 %3447  ;;  %4827 = vrot.lane.b32.xlu2 %v4693_v6, %s8878_s8  ;;  %v4729_v6 = vperm.slane %v4723_v34, %v8951_v5  ;;  %14214 = vst [vmem:[#allocation115_spill] sm:$0xff] %v11645_v30 }
 0x625   : > { %14203 = vst [vmem:[#allocation104_spill] sm:$0xff] %v11604_v22 }
 0x626   : > { %v4772_v34 = vrot.slane %v4729_v6, 4 }
 0x628   : > { %4835 = vrot.lane.b32.xlu1 %v4697_v42, %s8880_s10 }
 0x62c   : > { %v11609_v63 = vpop.permute.xlu0 %2659 }
 0x62d   : > { %14204 = vst [vmem:[#allocation105_spill] sm:$0xff] %v11609_v63 }
 0x634   : > { %v11611_v10 = vpop.permute.xlu0 %2671 }
 0x635   : > { %14205 = vst [vmem:[#allocation106_spill] sm:$0xff] %v11611_v10 }
 0x63c   : > { %v11613_v23 = vpop.permute.xlu0 %2683 }
 0x63d   : > { %14206 = vst [vmem:[#allocation107_spill] sm:$0xff] %v11613_v23 }
 0x644   : > { %v11615_v2 = vpop.permute.xlu0 %2695 }
 0x645   : > { %14207 = vst [vmem:[#allocation108_spill] sm:$0xff] %v11615_v2 }
 0x64c   : > { %v11617_v29 = vpop.permute.xlu0 %2707 }
 0x64d   : > { %14208 = vst [vmem:[#allocation109_spill] sm:$0xff] %v11617_v29  ;;  %v11787_v29 = vld [vmem:[%s9414_s14 + $0x99] sm:$0xff] }
 0x654   : > { %v11619_v8 = vpop.permute.xlu0 %3423 }
 0x655   : > { %14209 = vst [vmem:[#allocation110_spill] sm:$0xff] %v11619_v8 }
 0x65c   : > { %v11621_v51 = vpop.permute.xlu0 %3435 }
 0x65d   : > { %14210 = vst [vmem:[#allocation111_spill] sm:$0xff] %v11621_v51 }
 0x664   : > { %v11623_v3 = vpop.permute.xlu0 %3459 }
 0x665   : > { %14211 = vst [vmem:[#allocation112_spill] sm:$0xff] %v11623_v3 }
 0x66c   : > { %v11629_v62 = vpop.permute.xlu0 %3471 }
 0x66d   : > { %14212 = vst [vmem:[#allocation113_spill] sm:$0xff] %v11629_v62  ;;  %v11670_v62 = vpop.permute.xlu1 %2663 }
 0x66e   : > { %14216 = vst [vmem:[#allocation117_spill] sm:$0xff] %v11670_v62 }
 0x674   : > { %v4569_v42 = vpop.permute.xlu0 %4568 }
 0x675   : > { %v4734_v12 = vrot.slane %v4569_v42, 4  ;;  %v4737_v36 = vsel %vm276_vm0, %v4569_v42, %v4736_v44  ;;  %v4753_v44 = vperm.slane %v4747_v7, %v8976_v21  ;;  %v4733_v42 = vperm.slane %v4725_v61, %v8951_v5 }
 0x676   : > { %v4745_v41 = vperm.slane %v4737_v36, %v8951_v5 }
 0x677   : > { %v4735_v52 = vsel %vm276_vm0, %v4734_v12, %v11546_v53  ;;  %v4709_v53 = vperm.slane %v4701_v24, %v8951_v5  ;;  %v4796_v7 = vrot.slane %v4753_v44, 4 }
 0x678   : > { %v4741_v19 = vperm.slane %v4735_v52, %v8951_v5  ;;  %v4782_v59 = vrot.slane %v4745_v41, 4  ;;  %v11666_v52 = vpop.permute.xlu2 %2679 }
 0x679   : > { %14215 = vst [vmem:[#allocation116_spill] sm:$0xff] %v11666_v52 }
 0x67a   : > { %v4770_v36 = vrot.slane %v4741_v19, 4  ;;  %v4773_v32 = vsel %vm276_vm0, %v4741_v19, %v4772_v34  ;;  %v4783_v12 = vsel %vm276_vm0, %v4782_v59, %v4733_v42  ;;  %v4759_v19 = vsel %vm276_vm0, %v4758_v50, %v4709_v53 }
 0x67b   : > { %v4781_v20 = vperm.slane %v4773_v32, %v8976_v21  ;;  %v4765_v24 = vperm.slane %v4759_v19, %v8976_v21  ;;  %v4784_v50 = vrot.slane %v4733_v42, 4 }
 0x67c   : > { %v4771_v39 = vsel %vm276_vm0, %v4770_v36, %v4729_v6  ;;  %v4789_v6 = vperm.slane %v4783_v12, %v8976_v21  ;;  %v4760_v36 = vrot.slane %v4709_v53, 4  ;;  %v11696_v53 = vld [vmem:[%s9414_s14 + $0x1] sm:$0xff] }
 0x67d   : > { %v4798_v45 = vrot.slane %v4781_v20, 4  ;;  %v4777_v61 = vperm.slane %v4771_v39, %v8976_v21  ;;  %v4804_v32 = vrot.slane %v4765_v24, 4 }
 0x67e   : > { %v4802_v49 = vrot.slane %v4789_v6, 4  ;;  %v4761_v39 = vsel %vm276_vm0, %v4721_v17, %v4760_v36  ;;  %v11715_v36 = vld [vmem:[%s9414_s14 + $0x9] sm:$0xff] }
 0x67f   : > { %v4799_v37 = vsel %vm276_vm0, %v4798_v45, %v4757_v56  ;;  %v4797_v13 = vsel %vm276_vm0, %v4777_v61, %v4796_v7  ;;  %v4794_v34 = vrot.slane %v4777_v61, 4  ;;  %v4785_v45 = vsel %vm276_vm0, %v4745_v41, %v4784_v50 }
 0x680   : > { %4847 = vrot.lane.b32.xlu1 %v4799_v37, %s8886_s23  ;;  %4843 = vrot.lane.b32.xlu0 %v4797_v13, %s8882_s17  ;;  %v11683_v12 = vpop.permute.xlu2 %2691  ;;  %v4805_v61 = vsel %vm276_vm0, %v4789_v6, %v4804_v32  ;;  %v4803_v7 = vsel %vm276_vm0, %v4802_v49, %v4765_v24  ;;  %v11687_v37 = vpop.permute.xlu1 %2675  ;;  %v4769_v17 = vperm.slane %v4761_v39, %v8976_v21  ;;  %v11712_v24 = vld [vmem:[%s9414_s14 + $0x19] sm:$0xff]  ;;  %v11728_v32 = vld [vmem:[%s9414_s14 + $0x49] sm:$0xff] }
 0x681   : > { %v4795_v59 = vsel %vm276_vm0, %v4794_v34, %v4753_v44  ;;  %14217 = vst [vmem:[#allocation118_spill] sm:$0xff] %v11683_v12  ;;  %v4800_v44 = vrot.slane %v4757_v56, 4  ;;  %v4793_v41 = vperm.slane %v4785_v45, %v8976_v21  ;;  %v11731_v39 = vld [vmem:[%s9414_s14 + $0x39] sm:$0xff]  ;;  %v11734_v45 = vld [vmem:[%s9414_s14 + $0x31] sm:$0xff] }
 0x682   : > { %4839 = vrot.lane.b32.xlu2 %v4795_v59, %s8883_s18  ;;  %14218 = vst [vmem:[#allocation119_spill] sm:$0xff] %v11687_v37  ;;  %v4808_v56 = vrot.slane %v4769_v17, 4  ;;  %v11709_v59 = vld [vmem:[%s9414_s14 + $0x21] sm:$0xff] }
 0x683   : > { %v4801_v42 = vsel %vm276_vm0, %v4781_v20, %v4800_v44  ;;  %v4806_v19 = vrot.slane %v4793_v41, 4  ;;  %v11748_v44 = vld [vmem:[%s9414_s14 + $0x61] sm:$0xff] }
 0x684   : > { %v4809_v13 = vsel %vm276_vm0, %v4793_v41, %v4808_v56  ;;  %v11762_v41 = vld [vmem:[%s9414_s14 + $0x91] sm:$0xff]  ;;  %v11765_v56 = vld [vmem:[%s9414_s14 + $0x81] sm:$0xff] }
 0x685   : > { %v4807_v34 = vsel %vm276_vm0, %v4806_v19, %v4769_v17  ;;  %v11753_v17 = vld [vmem:[%s9414_s14 + $0x51] sm:$0xff] }
 0x688   : > { %4859 = vrot.lane.b32.xlu1 %v4805_v61, %s8889_s26  ;;  %4855 = vrot.lane.b32.xlu0 %v4803_v7, %s8884_s19  ;;  %v11702_v20 = vpop.permute.xlu2 %2703  ;;  %v11705_v6 = vpop.permute.xlu1 %2699  ;;  %v11745_v7 = vld [vmem:[%s9414_s14 + $0x69] sm:$0xff] }
 0x689   : > { %14219 = vst [vmem:[#allocation120_spill] sm:$0xff] %v11702_v20 }
 0x68a   : > { %4851 = vrot.lane.b32.xlu2 %v4801_v42, %s8885_s20  ;;  %14220 = vst [vmem:[#allocation121_spill] sm:$0xff] %v11705_v6 }
 0x68c   : > { %v11813_v22 = vpop.permute.xlu0 %4819 }
 0x68d   : > { %14236 = vst [vmem:[#allocation137_spill] sm:$0xff] %v11813_v22 }
 0x690   : > { %4918 = vrot.lane.b32.xlu1 %v11696_v53, %s8872_s27  ;;  %4867 = vrot.lane.b32.xlu0 %v4809_v13, %s8887_s24  ;;  %v11723_v49 = vpop.permute.xlu2 %2715  ;;  %v11725_v50 = vpop.permute.xlu1 %2711  ;;  %v11770_v13 = vld [vmem:[%s9414_s14 + $0x79] sm:$0xff] }
 0x691   : > { %14221 = vst [vmem:[#allocation122_spill] sm:$0xff] %v11723_v49  ;;  %v11781_v49 = vld [vmem:[%s9414_s14 + $0xb1] sm:$0xff] }
 0x692   : > { %4863 = vrot.lane.b32.xlu2 %v4807_v34, %s8888_s25  ;;  %14222 = vst [vmem:[#allocation123_spill] sm:$0xff] %v11725_v50  ;;  %v11784_v50 = vld [vmem:[%s9414_s14 + $0xa9] sm:$0xff] }
 0x698   : > { %4924 = vrot.lane.b32.xlu1 %v11709_v59, %s8872_s27  ;;  %4922 = vrot.lane.b32.xlu0 %v11712_v24, %s8872_s27  ;;  %v11742_v61 = vpop.permute.xlu2 %3419  ;;  %v11750_v42 = vpop.permute.xlu1 %3427 }
 0x699   : > { %14223 = vst [vmem:[#allocation124_spill] sm:$0xff] %v11742_v61 }
 0x69a   : > { %4920 = vrot.lane.b32.xlu2 %v11715_v36, %s8872_s27  ;;  %14224 = vst [vmem:[#allocation125_spill] sm:$0xff] %v11750_v42 }
 0x6a0   : > { %4930 = vrot.lane.b32.xlu1 %v11728_v32, %s8872_s27  ;;  %4928 = vrot.lane.b32.xlu0 %v11731_v39, %s8872_s27  ;;  %v11767_v19 = vpop.permute.xlu2 %3431  ;;  %v11772_v34 = vpop.permute.xlu1 %3439 }
 0x6a1   : > { %14225 = vst [vmem:[#allocation126_spill] sm:$0xff] %v11767_v19 }
 0x6a2   : > { %4926 = vrot.lane.b32.xlu2 %v11734_v45, %s8872_s27  ;;  %14226 = vst [vmem:[#allocation127_spill] sm:$0xff] %v11772_v34 }
 0x6a8   : > { %4936 = vrot.lane.b32.xlu1 %v11745_v7, %s8872_s27  ;;  %4934 = vrot.lane.b32.xlu0 %v11748_v44, %s8872_s27  ;;  %v11793_v20 = vpop.permute.xlu2 %3443  ;;  %v11795_v27 = vpop.permute.xlu1 %3451 }
 0x6a9   : > { %14227 = vst [vmem:[#allocation128_spill] sm:$0xff] %v11793_v20  ;;  %v11819_v20 = vpop.permute.xlu0 %4831 }
 0x6aa   : > { %4932 = vrot.lane.b32.xlu2 %v11753_v17, %s8872_s27  ;;  %14228 = vst [vmem:[#allocation129_spill] sm:$0xff] %v11795_v27 }
 0x6ab   : > { %14239 = vst [vmem:[#allocation140_spill] sm:$0xff] %v11819_v20 }
 0x6b0   : > { %4942 = vrot.lane.b32.xlu1 %v11762_v41, %s8872_s27  ;;  %4940 = vrot.lane.b32.xlu0 %v11765_v56, %s8872_s27  ;;  %v11799_v54 = vpop.permute.xlu2 %3455  ;;  %v11801_v6 = vpop.permute.xlu1 %3463 }
 0x6b1   : > { %14229 = vst [vmem:[#allocation130_spill] sm:$0xff] %v11799_v54 }
 0x6b2   : > { %4938 = vrot.lane.b32.xlu2 %v11770_v13, %s8872_s27  ;;  %14230 = vst [vmem:[#allocation131_spill] sm:$0xff] %v11801_v6 }
 0x6b8   : > { %4948 = vrot.lane.b32.xlu1 %v11781_v49, %s8872_s27  ;;  %4946 = vrot.lane.b32.xlu0 %v11784_v50, %s8872_s27  ;;  %v11803_v3 = vpop.permute.xlu2 %3467  ;;  %v11805_v2 = vpop.permute.xlu1 %3475 }
 0x6b9   : > { %14231 = vst [vmem:[#allocation132_spill] sm:$0xff] %v11803_v3 }
 0x6ba   : > { %4944 = vrot.lane.b32.xlu2 %v11787_v29, %s8872_s27  ;;  %14232 = vst [vmem:[#allocation133_spill] sm:$0xff] %v11805_v2 }
 0x6c0   : > { %v11807_v12 = vpop.permute.xlu2 %4815  ;;  %v11809_v55 = vpop.permute.xlu1 %4811 }
 0x6c1   : > { %14233 = vst [vmem:[#allocation134_spill] sm:$0xff] %v11807_v12 }
 0x6c2   : > { %14234 = vst [vmem:[#allocation135_spill] sm:$0xff] %v11809_v55 }
 0x6c8   : > { %v11811_v30 = vpop.permute.xlu2 %4827  ;;  %v11815_v27 = vpop.permute.xlu1 %4823 }
 0x6c9   : > { %14235 = vst [vmem:[#allocation136_spill] sm:$0xff] %v11811_v30 }
 0x6ca   : > { %14237 = vst [vmem:[#allocation138_spill] sm:$0xff] %v11815_v27 }
 0x6d0   : > { %v11821_v54 = vpop.permute.xlu1 %4835 }
 0x6d1   : > { %14240 = vst [vmem:[#allocation141_spill] sm:$0xff] %v11821_v54 }
 0x6dc   : > { %v11817_v23 = vpop.permute.xlu2 %4839 }
 0x6dd   : > { %14238 = vst [vmem:[#allocation139_spill] sm:$0xff] %v11817_v23 }
 0x6e4   : > { %v11823_v6 = vpop.permute.xlu2 %4851 }
 0x6e5   : > { %14241 = vst [vmem:[#allocation142_spill] sm:$0xff] %v11823_v6 }
 0x6ec   : > { %v11833_v34 = vpop.permute.xlu2 %4863 }
 0x6ed   : > { %14246 = vst [vmem:[#allocation147_spill] sm:$0xff] %v11833_v34 }
 0x6f2   : > { %v11825_v3 = vpop.permute.xlu0 %4843  ;;  %v11827_v2 = vpop.permute.xlu1 %4847 }
 0x6f3   : > { %14242 = vst [vmem:[#allocation143_spill] sm:$0xff] %v11825_v3 }
 0x6f4   : > { %14243 = vst [vmem:[#allocation144_spill] sm:$0xff] %v11827_v2  ;;  %v11837_v23 = vpop.permute.xlu2 %4920 }
 0x6fa   : > { %v11829_v52 = vpop.permute.xlu0 %4855  ;;  %v11831_v40 = vpop.permute.xlu1 %4859 }
 0x6fb   : > { %14244 = vst [vmem:[#allocation145_spill] sm:$0xff] %v11829_v52 }
 0x6fc   : > { %14245 = vst [vmem:[#allocation146_spill] sm:$0xff] %v11831_v40  ;;  %v4927_v54 = vpop.permute.xlu2 %4926 }
 0x6fd   : > { %v4966_v27 = vrot.slane %v4927_v54, 4 }
 0x702   : > { %v11835_v30 = vpop.permute.xlu0 %4867  ;;  %v4919_v37 = vpop.permute.xlu1 %4918 }
 0x703   : > { %14247 = vst [vmem:[#allocation148_spill] sm:$0xff] %v11835_v30  ;;  %v4967_v30 = vsel %vm276_vm0, %v4966_v27, %v4919_v37 }
 0x704   : > { %v11843_v51 = vpop.permute.xlu2 %4932  ;;  %v4973_v28 = vperm.slane %v4967_v30, %v8951_v5 }
 0x705   : > { %v5090_v27 = vrot.slane %v11843_v51, 4 }
 0x706   : > { %v5016_v14 = vrot.slane %v4973_v28, 4 }
 0x70a   : > { %v4923_v20 = vpop.permute.xlu0 %4922  ;;  %v11839_v25 = vpop.permute.xlu1 %4924 }
 0x70b   : > { %v4980_v58 = vrot.slane %v4923_v20, 4 }
 0x70c   : > { %v4939_v19 = vpop.permute.xlu2 %4938 }
 0x70d   : > { %v5004_v55 = vrot.slane %v4939_v19, 4 }
 0x712   : > { %v11841_v6 = vpop.permute.xlu0 %4928  ;;  %v4931_v3 = vpop.permute.xlu1 %4930 }
 0x713   : > { %v4978_v40 = vrot.slane %v4931_v3, 4 }
 0x715   : > { %v4979_v34 = vsel %vm276_vm0, %v4978_v40, %v4923_v20  ;;  %v4968_v40 = vrot.slane %v4919_v37, 4 }
 0x716   : > { %v4985_v10 = vperm.slane %v4979_v34, %v8951_v5  ;;  %v4981_v34 = vsel %vm276_vm0, %v4931_v3, %v4980_v58  ;;  %v4945_v3 = vpop.permute.xlu2 %4944 }
 0x717   : > { %v4989_v58 = vperm.slane %v4981_v34, %v8951_v5 }
 0x718   : > { %v5014_v42 = vrot.slane %v4985_v10, 4  ;;  %v5017_v61 = vsel %vm276_vm0, %v4985_v10, %v5016_v14 }
 0x71a   : > { %v4935_v2 = vpop.permute.xlu0 %4934  ;;  %v11845_v52 = vpop.permute.xlu1 %4936  ;;  %v5015_v20 = vsel %vm276_vm0, %v5014_v42, %v4973_v28  ;;  %v5025_v28 = vperm.slane %v5017_v61, %v8976_v21 }
 0x71b   : > { %v4992_v12 = vrot.slane %v4935_v2, 4  ;;  %v5021_v10 = vperm.slane %v5015_v20, %v8976_v21 }
 0x71c   : > { %v5068_v26 = vrot.slane %v5025_v28, 4 }
 0x722   : > { %v11850_v22 = vpop.permute.xlu0 %4940  ;;  %v4943_v1 = vpop.permute.xlu1 %4942 }
 0x723   : > { %v4990_v16 = vrot.slane %v4943_v1, 4  ;;  %v4993_v9 = vsel %vm276_vm0, %v4943_v1, %v4992_v12  ;;  %v4969_v1 = vsel %vm276_vm0, %v4927_v54, %v4968_v40  ;;  %v5091_v12 = vsel %vm276_vm0, %v5090_v27, %v11839_v25 }
 0x724   : > { %v5001_v63 = vperm.slane %v4993_v9, %v8951_v5  ;;  %v4977_v42 = vperm.slane %v4969_v1, %v8951_v5  ;;  %v11874_v40 = vperm.slane %v5091_v12, %v8951_v5  ;;  %v5102_v27 = vrot.slane %v4945_v3, 4 }
 0x725   : > { %v4991_v62 = vsel %vm276_vm0, %v4990_v16, %v4935_v2  ;;  %v5064_v1 = vrot.slane %v5021_v10, 4  ;;  %v5116_v12 = vrot.slane %v11850_v22, 4 }
 0x726   : > { %v4997_v8 = vperm.slane %v4991_v62, %v8951_v5  ;;  %v5078_v62 = vrot.slane %v11841_v6, 4 }
 0x728   : > { %v5079_v20 = vsel %vm276_vm0, %v5078_v62, %v11837_v23  ;;  %v5028_v62 = vrot.slane %v4977_v42, 4 }
 0x72a   : > { %v4947_v60 = vpop.permute.xlu0 %4946  ;;  %v4949_v30 = vpop.permute.xlu1 %4948 }
 0x72b   : > { %v5002_v4 = vrot.slane %v4947_v60, 4  ;;  %v5005_v16 = vsel %vm276_vm0, %v4947_v60, %v5004_v55  ;;  %v5114_v2 = vrot.slane %v4949_v30, 4  ;;  %v5040_v60 = vrot.slane %v4997_v8, 4 }
 0x72c   : > { %v5013_v9 = vperm.slane %v5005_v16, %v8951_v5  ;;  %v5052_v55 = vrot.slane %v5001_v63, 4  ;;  %v5026_v16 = vrot.slane %v4989_v58, 4 }
 0x72d   : > { %v5003_v14 = vsel %vm276_vm0, %v5002_v4, %v4939_v19  ;;  %v5115_v34 = vsel %vm276_vm0, %v5114_v2, %v11850_v22 }
 0x72e   : > { %v5009_v54 = vperm.slane %v5003_v14, %v8951_v5  ;;  %v5050_v37 = vrot.slane %v5013_v9, 4  ;;  %v5053_v61 = vsel %vm276_vm0, %v5013_v9, %v5052_v55  ;;  %v5121_v48 = vperm.slane %v5115_v34, %v8951_v5 }
 0x72f   : > { %v5061_v55 = vperm.slane %v5053_v61, %v8976_v21  ;;  %v5027_v22 = vsel %vm276_vm0, %v5026_v16, %v4977_v42  ;;  %v5104_v42 = vrot.slane %v11845_v52, 4 }
 0x730   : > { %v5038_v4 = vrot.slane %v5009_v54, 4  ;;  %v5041_v19 = vsel %vm276_vm0, %v5009_v54, %v5040_v60  ;;  %v5051_v2 = vsel %vm276_vm0, %v5050_v37, %v5001_v63  ;;  %v5085_v54 = vperm.slane %v5079_v20, %v8951_v5 }
 0x731   : > { %v5049_v14 = vperm.slane %v5041_v19, %v8976_v21  ;;  %v5103_v19 = vsel %vm276_vm0, %v5102_v27, %v11845_v52  ;;  %v5092_v37 = vrot.slane %v11839_v25, 4  ;;  %v5150_v34 = vrot.slane %v5121_v48, 4 }
 0x732   : > { %v5039_v38 = vsel %vm276_vm0, %v5038_v4, %v4997_v8  ;;  %v5117_v8 = vsel %vm276_vm0, %v4949_v30, %v5116_v12  ;;  %v5029_v27 = vsel %vm276_vm0, %v4989_v58, %v5028_v62  ;;  %v5074_v30 = vrot.slane %v5061_v55, 4 }
 0x733   : > { %v5069_v46 = vsel %vm276_vm0, %v5049_v14, %v5068_v26  ;;  %v5066_v9 = vrot.slane %v5049_v14, 4  ;;  %v5045_v60 = vperm.slane %v5039_v38, %v8976_v21  ;;  %v5057_v38 = vperm.slane %v5051_v2, %v8976_v21 }
 0x734   : > { %5199 = vrot.lane.b32.xlu1 %v5069_v46, %s8877_s7  ;;  %v5126_v46 = vrot.slane %v11874_v40, 4  ;;  %v5109_v16 = vperm.slane %v5103_v19, %v8951_v5  ;;  %v5125_v4 = vperm.slane %v5117_v8, %v8951_v5  ;;  %v5037_v25 = vperm.slane %v5029_v27, %v8976_v21 }
 0x735   : > { %v5067_v63 = vsel %vm276_vm0, %v5066_v9, %v5025_v28  ;;  %v5065_v26 = vsel %vm276_vm0, %v5045_v60, %v5064_v1  ;;  %v5033_v28 = vperm.slane %v5027_v22, %v8976_v21  ;;  %v5070_v61 = vrot.slane %v5057_v38, 4 }
 0x736   : > { %5195 = vrot.lane.b32.xlu0 %v5067_v63, %s8876_s30  ;;  %5191 = vrot.lane.b32.xlu2 %v5065_v26, %s8879_s9  ;;  %v5127_v20 = vsel %vm276_vm0, %v5126_v46, %v5085_v54  ;;  %v5080_v14 = vrot.slane %v11837_v23, 4  ;;  %v5093_v58 = vsel %vm276_vm0, %v11843_v51, %v5092_v37  ;;  %v5151_v1 = vsel %vm276_vm0, %v5150_v34, %v5109_v16 }
 0x737   : > { %v5105_v52 = vsel %vm276_vm0, %v4945_v3, %v5104_v42  ;;  %v5075_v12 = vsel %vm276_vm0, %v5074_v30, %v5037_v25  ;;  %v5072_v2 = vrot.slane %v5033_v28, 4  ;;  %v5062_v9 = vrot.slane %v5045_v60, 4 }
 0x738   : > { %v5162_v62 = vrot.slane %v5125_v4, 4  ;;  %v5133_v19 = vperm.slane %v5127_v20, %v8976_v21  ;;  %v5071_v23 = vsel %vm276_vm0, %v5070_v61, %v5033_v28  ;;  %v5157_v8 = vperm.slane %v5151_v1, %v8976_v21 }
 0x739   : > { %v5073_v22 = vsel %vm276_vm0, %v5057_v38, %v5072_v2  ;;  %v11922_v51 = vsel %vm276_vm0, %v5062_v9, %v5021_v10  ;;  %v5101_v3 = vperm.slane %v5093_v58, %v8951_v5  ;;  %v5113_v63 = vperm.slane %v5105_v52, %v8951_v5 }
 0x73a   : > { %14248 = vst [vmem:[#allocation149_spill] sm:$0xff] %v11922_v51  ;;  %v5081_v60 = vsel %vm276_vm0, %v11841_v6, %v5080_v14  ;;  %v5128_v26 = vrot.slane %v5085_v54, 4  ;;  %v5152_v38 = vrot.slane %v5109_v16, 4  ;;  %v5176_v34 = vrot.slane %v5133_v19, 4 }
 0x73b   : > { %v5163_v37 = vsel %vm276_vm0, %v5162_v62, %v5113_v63  ;;  %v5174_v27 = vrot.slane %v5157_v8, 4  ;;  %v5138_v46 = vrot.slane %v5101_v3, 4  ;;  %v5089_v10 = vperm.slane %v5081_v60, %v8951_v5 }
 0x73c   : > { %5211 = vrot.lane.b32.xlu1 %v5075_v12, %s8875_s29  ;;  %v5153_v42 = vsel %vm276_vm0, %v5121_v48, %v5152_v38  ;;  %v5177_v30 = vsel %vm276_vm0, %v5157_v8, %v5176_v34  ;;  %v5076_v28 = vrot.slane %v5037_v25, 4  ;;  %v5169_v61 = vperm.slane %v5163_v37, %v8976_v21  ;;  %v5268_v38 = vld [vmem:[#allocation2 + $0x19] sm:$0xff]  ;;  %v5267_v37 = vld [vmem:[#allocation2 + $0x9] sm:$0xff]  ;;  %v5266_v34 = vld [vmem:[#allocation2 + $0x1] sm:$0xff] }
 0x73d   : > { %v5129_v6 = vsel %vm276_vm0, %v11874_v40, %v5128_v26  ;;  %v5175_v16 = vsel %vm276_vm0, %v5174_v27, %v5133_v19  ;;  %v5161_v20 = vperm.slane %v5153_v42, %v8976_v21  ;;  %v5140_v14 = vrot.slane %v5089_v10, 4  ;;  %v5271_v27 = vld [vmem:[#allocation2 + $0x39] sm:$0xff]  ;;  %v5274_v42 = vld [vmem:[#allocation2 + $0x61] sm:$0xff] }
 0x73e   : > { %5207 = vrot.lane.b32.xlu0 %v5073_v22, %s8878_s8  ;;  %5203 = vrot.lane.b32.xlu2 %v5071_v23, %s8874_s28  ;;  %v5077_v54 = vsel %vm276_vm0, %v5061_v55, %v5076_v28  ;;  %v5139_v48 = vsel %vm276_vm0, %v5138_v46, %v5089_v10  ;;  %v5182_v25 = vrot.slane %v5169_v61, 4  ;;  %v5137_v58 = vperm.slane %v5129_v6, %v8976_v21  ;;  %v5269_v46 = vld [vmem:[#allocation2 + $0x21] sm:$0xff]  ;;  %v5270_v10 = vld [vmem:[#allocation2 + $0x31] sm:$0xff]  ;;  %v5272_v28 = vld [vmem:[#allocation2 + $0x49] sm:$0xff] }
 0x73f   : > { %v5164_v1 = vrot.slane %v5113_v63, 4  ;;  %v5145_v52 = vperm.slane %v5139_v48, %v8976_v21  ;;  %v5178_v40 = vrot.slane %v5161_v20, 4  ;;  %v5141_v55 = vsel %vm276_vm0, %v5101_v3, %v5140_v14  ;;  %v5275_v6 = vld [vmem:[#allocation2 + $0x69] sm:$0xff]  ;;  %v5278_v14 = vld [vmem:[#allocation2 + $0x91] sm:$0xff] }
 0x740   : > { %v5180_v9 = vrot.slane %v5137_v58, 4  ;;  %v5149_v22 = vperm.slane %v5141_v55, %v8976_v21 }
 0x741   : > { %v5165_v12 = vsel %vm276_vm0, %v5125_v4, %v5164_v1  ;;  %v5183_v2 = vsel %vm276_vm0, %v5182_v25, %v5145_v52  ;;  %v5179_v62 = vsel %vm276_vm0, %v5178_v40, %v5137_v58  ;;  %v5184_v63 = vrot.slane %v5145_v52, 4 }
 0x742   : > { %v5181_v19 = vsel %vm276_vm0, %v5161_v20, %v5180_v9  ;;  %v5173_v23 = vperm.slane %v5165_v12, %v8976_v21  ;;  %v5188_v8 = vrot.slane %v5149_v22, 4  ;;  %v5279_v20 = vld [vmem:[#allocation2 + $0x99] sm:$0xff] }
 0x743   : > { %v5185_v60 = vsel %vm276_vm0, %v5169_v61, %v5184_v63  ;;  %v5277_v61 = vld [vmem:[#allocation2 + $0x81] sm:$0xff] }
 0x744   : > { %5223 = vrot.lane.b32.xlu1 %v5177_v30, %s8882_s17  ;;  %v5186_v3 = vrot.slane %v5173_v23, 4  ;;  %v5189_v4 = vsel %vm276_vm0, %v5173_v23, %v5188_v8  ;;  %v5273_v30 = vld [vmem:[#allocation2 + $0x51] sm:$0xff] }
 0x746   : > { %5215 = vrot.lane.b32.xlu2 %v5077_v54, %s8880_s10  ;;  %5219 = vrot.lane.b32.xlu0 %v5175_v16, %s8883_s18  ;;  %v5187_v26 = vsel %vm276_vm0, %v5186_v3, %v5149_v22  ;;  %v5276_v54 = vld [vmem:[#allocation2 + $0x79] sm:$0xff]  ;;  %v5280_v16 = vld [vmem:[#allocation2 + $0xa9] sm:$0xff] }
 0x74c   : > { %5235 = vrot.lane.b32.xlu1 %v5183_v2, %s8884_s19 }
 0x74e   : > { %5227 = vrot.lane.b32.xlu2 %v5179_v62, %s8886_s23  ;;  %5231 = vrot.lane.b32.xlu0 %v5181_v19, %s8885_s20 }
 0x754   : > { %5247 = vrot.lane.b32.xlu1 %v5189_v4, %s8887_s24 }
 0x756   : > { %5239 = vrot.lane.b32.xlu2 %v5185_v60, %s8889_s26  ;;  %5243 = vrot.lane.b32.xlu0 %v5187_v26, %s8888_s25 }
 0x75c   : > { %5302 = vrot.lane.b32.xlu1 %v5268_v38, %s8890_s13 }
 0x75e   : > { %5298 = vrot.lane.b32.xlu2 %v5266_v34, %s8890_s13  ;;  %5300 = vrot.lane.b32.xlu0 %v5267_v37, %s8890_s13 }
 0x764   : > { %5308 = vrot.lane.b32.xlu1 %v5271_v27, %s8890_s13 }
 0x766   : > { %5304 = vrot.lane.b32.xlu2 %v5269_v46, %s8890_s13  ;;  %5306 = vrot.lane.b32.xlu0 %v5270_v10, %s8890_s13 }
 0x76c   : > { %5314 = vrot.lane.b32.xlu1 %v5274_v42, %s8890_s13 }
 0x76e   : > { %5310 = vrot.lane.b32.xlu2 %v5272_v28, %s8890_s13  ;;  %5312 = vrot.lane.b32.xlu0 %v5273_v30, %s8890_s13 }
 0x774   : > { %5320 = vrot.lane.b32.xlu1 %v5277_v61, %s8890_s13 }
 0x776   : > { %5316 = vrot.lane.b32.xlu2 %v5275_v6, %s8890_s13  ;;  %5318 = vrot.lane.b32.xlu0 %v5276_v54, %s8890_s13 }
 0x77c   : > { %5326 = vrot.lane.b32.xlu1 %v5280_v16, %s8890_s13 }
 0x77e   : > { %5322 = vrot.lane.b32.xlu2 %v5278_v14, %s8890_s13  ;;  %5324 = vrot.lane.b32.xlu0 %v5279_v20, %s8890_s13 }
 0x786   : > { %5328 = vrot.lane.b32.xlu2 %v11550_v33, %s8890_s13 }
 0x790   : > { %v11979_v48 = vpop.permute.xlu2 %5191 }
 0x798   : > { %v11981_v25 = vpop.permute.xlu2 %5203 }
 0x799   : > { %14249 = vst [vmem:[#allocation150_spill] sm:$0xff] %v11981_v25 }
 0x7a0   : > { %v11983_v58 = vpop.permute.xlu2 %5215 }
 0x7a1   : > { %14250 = vst [vmem:[#allocation151_spill] sm:$0xff] %v11983_v58 }
 0x7a6   : > { %v11985_v1 = vpop.permute.xlu1 %5199 }
 0x7a7   : > { %14251 = vst [vmem:[#allocation152_spill] sm:$0xff] %v11985_v1 }
 0x7a8   : > { %v11987_v52 = vpop.permute.xlu0 %5195  ;;  %v11989_v40 = vpop.permute.xlu2 %5227 }
 0x7a9   : > { %14252 = vst [vmem:[#allocation153_spill] sm:$0xff] %v11987_v52 }
 0x7aa   : > { %14253 = vst [vmem:[#allocation154_spill] sm:$0xff] %v11989_v40 }
 0x7ae   : > { %v11991_v55 = vpop.permute.xlu1 %5211 }
 0x7af   : > { %14254 = vst [vmem:[#allocation155_spill] sm:$0xff] %v11991_v55 }
 0x7b0   : > { %v11993_v12 = vpop.permute.xlu0 %5207  ;;  %v11995_v2 = vpop.permute.xlu2 %5239 }
 0x7b1   : > { %14255 = vst [vmem:[#allocation156_spill] sm:$0xff] %v11993_v12 }
 0x7b2   : > { %14256 = vst [vmem:[#allocation157_spill] sm:$0xff] %v11995_v2 }
 0x7b6   : > { %v11997_v9 = vpop.permute.xlu1 %5223 }
 0x7b7   : > { %14257 = vst [vmem:[#allocation158_spill] sm:$0xff] %v11997_v9 }
 0x7b8   : > { %v11999_v33 = vpop.permute.xlu0 %5219  ;;  %v5299_v19 = vpop.permute.xlu2 %5298 }
 0x7b9   : > { %14258 = vst [vmem:[#allocation159_spill] sm:$0xff] %v11999_v33 }
 0x7be   : > { %v12001_v62 = vpop.permute.xlu1 %5235 }
 0x7bf   : > { %14259 = vst [vmem:[#allocation160_spill] sm:$0xff] %v12001_v62  ;;  %v5348_v62 = vrot.slane %v5299_v19, 4 }
 0x7c0   : > { %v12003_v22 = vpop.permute.xlu0 %5231  ;;  %v12009_v3 = vpop.permute.xlu2 %5304 }
 0x7c1   : > { %14260 = vst [vmem:[#allocation161_spill] sm:$0xff] %v12003_v22 }
 0x7c6   : > { %v12005_v23 = vpop.permute.xlu1 %5247 }
 0x7c7   : > { %14261 = vst [vmem:[#allocation162_spill] sm:$0xff] %v12005_v23 }
 0x7c8   : > { %v12007_v8 = vpop.permute.xlu0 %5243  ;;  %v5311_v60 = vpop.permute.xlu2 %5310 }
 0x7c9   : > { %14262 = vst [vmem:[#allocation163_spill] sm:$0xff] %v12007_v8  ;;  %v5358_v42 = vrot.slane %v5311_v60, 4 }
 0x7ce   : > { %v5303_v4 = vpop.permute.xlu1 %5302 }
 0x7cf   : > { %v5359_v61 = vsel %vm276_vm0, %v5358_v42, %v5303_v4  ;;  %v5360_v6 = vrot.slane %v5303_v4, 4 }
 0x7d0   : > { %v12011_v63 = vpop.permute.xlu0 %5300  ;;  %v12015_v37 = vpop.permute.xlu2 %5316  ;;  %v5365_v14 = vperm.slane %v5359_v61, %v8951_v5 }
 0x7d1   : > { %v5361_v2 = vsel %vm276_vm0, %v5311_v60, %v5360_v6 }
 0x7d2   : > { %v5369_v40 = vperm.slane %v5361_v2, %v8951_v5  ;;  %v5394_v9 = vrot.slane %v5365_v14, 4 }
 0x7d6   : > { %v12013_v26 = vpop.permute.xlu1 %5308 }
 0x7d8   : > { %v5307_v38 = vpop.permute.xlu0 %5306  ;;  %v5323_v54 = vpop.permute.xlu2 %5322 }
 0x7d9   : > { %v5346_v27 = vrot.slane %v5307_v38, 4  ;;  %v5370_v23 = vrot.slane %v5323_v54, 4  ;;  %v5349_v4 = vsel %vm276_vm0, %v5307_v38, %v5348_v62 }
 0x7da   : > { %v5357_v6 = vperm.slane %v5349_v4, %v8951_v5 }
 0x7db   : > { %v5347_v10 = vsel %vm276_vm0, %v5346_v27, %v5299_v19 }
 0x7dc   : > { %v5353_v30 = vperm.slane %v5347_v10, %v8951_v5 }
 0x7de   : > { %v5315_v34 = vpop.permute.xlu1 %5314  ;;  %v5396_v8 = vrot.slane %v5353_v30, 4  ;;  %v5395_v2 = vsel %vm276_vm0, %v5394_v9, %v5353_v30 }
 0x7df   : > { %v5372_v16 = vrot.slane %v5315_v34, 4  ;;  %v5371_v27 = vsel %vm276_vm0, %v5370_v23, %v5315_v34 }
 0x7e0   : > { %v12017_v46 = vpop.permute.xlu0 %5312  ;;  %v5397_v33 = vsel %vm276_vm0, %v5365_v14, %v5396_v8  ;;  %v5377_v61 = vperm.slane %v5371_v27, %v8951_v5  ;;  %v5329_v55 = vpop.permute.xlu2 %5328  ;;  %v5406_v14 = vrot.slane %v5369_v40, 4 }
 0x7e1   : > { %v5373_v22 = vsel %vm276_vm0, %v5323_v54, %v5372_v16  ;;  %v5470_v23 = vrot.slane %v12017_v46, 4  ;;  %v5405_v8 = vperm.slane %v5397_v33, %v8976_v21  ;;  %v5494_v54 = vrot.slane %v5329_v55, 4 }
 0x7e2   : > { %v5381_v58 = vperm.slane %v5373_v22, %v8951_v5  ;;  %v5420_v27 = vrot.slane %v5377_v61, 4 }
 0x7e3   : > { %v5471_v9 = vsel %vm276_vm0, %v5470_v23, %v12009_v3  ;;  %v5448_v12 = vrot.slane %v5405_v8, 4 }
 0x7e4   : > { %v12053_v52 = vperm.slane %v5471_v9, %v8951_v5 }
 0x7e6   : > { %v12021_v28 = vpop.permute.xlu1 %5320 }
 0x7e7   : > { %v5496_v23 = vrot.slane %v12021_v28, 4 }
 0x7e8   : > { %v5319_v20 = vpop.permute.xlu0 %5318 }
 0x7e9   : > { %v5384_v10 = vrot.slane %v5319_v20, 4 }
 0x7ee   : > { %v5327_v42 = vpop.permute.xlu1 %5326 }
 0x7ef   : > { %v5382_v60 = vrot.slane %v5327_v42, 4  ;;  %v5385_v19 = vsel %vm276_vm0, %v5327_v42, %v5384_v10  ;;  %v5432_v10 = vrot.slane %v5381_v58, 4  ;;  %v5401_v42 = vperm.slane %v5395_v2, %v8976_v21 }
 0x7f0   : > { %v5393_v34 = vperm.slane %v5385_v19, %v8951_v5  ;;  %v5325_v38 = vpop.permute.xlu0 %5324  ;;  %v5458_v19 = vrot.slane %v12013_v26, 4 }
 0x7f1   : > { %v5383_v62 = vsel %vm276_vm0, %v5382_v60, %v5319_v20  ;;  %v5482_v4 = vrot.slane %v5325_v38, 4  ;;  %v5408_v20 = vrot.slane %v5357_v6, 4 }
 0x7f2   : > { %v5389_v22 = vperm.slane %v5383_v62, %v8951_v5  ;;  %v5430_v16 = vrot.slane %v5393_v34, 4  ;;  %v5433_v60 = vsel %vm276_vm0, %v5393_v34, %v5432_v10  ;;  %v5495_v62 = vsel %vm276_vm0, %v5494_v54, %v12021_v28 }
 0x7f3   : > { %v5444_v34 = vrot.slane %v5401_v42, 4  ;;  %v5441_v10 = vperm.slane %v5433_v60, %v8976_v21  ;;  %v5459_v9 = vsel %vm276_vm0, %v5458_v19, %v12011_v63 }
 0x7f4   : > { %v5418_v30 = vrot.slane %v5389_v22, 4  ;;  %v5421_v33 = vsel %vm276_vm0, %v5389_v22, %v5420_v27  ;;  %v5431_v1 = vsel %vm276_vm0, %v5430_v16, %v5381_v58  ;;  %v5483_v22 = vsel %vm276_vm0, %v5482_v4, %v12015_v37 }
 0x7f5   : > { %v5429_v25 = vperm.slane %v5421_v33, %v8976_v21  ;;  %v5501_v58 = vperm.slane %v5495_v62, %v8951_v5  ;;  %v5437_v28 = vperm.slane %v5431_v1, %v8976_v21  ;;  %v5497_v4 = vsel %vm276_vm0, %v5329_v55, %v5496_v23 }
 0x7f6   : > { %v5419_v2 = vsel %vm276_vm0, %v5418_v30, %v5377_v61  ;;  %v5407_v61 = vsel %vm276_vm0, %v5406_v14, %v5357_v6  ;;  %v5409_v6 = vsel %vm276_vm0, %v5369_v40, %v5408_v20  ;;  %v5484_v14 = vrot.slane %v12015_v37, 4 }
 0x7f7   : > { %v5425_v51 = vperm.slane %v5419_v2, %v8976_v21  ;;  %v5449_v27 = vsel %vm276_vm0, %v5429_v25, %v5448_v12  ;;  %v5446_v54 = vrot.slane %v5429_v25, 4  ;;  %v5506_v25 = vrot.slane %v12053_v52, 4 }
 0x7f8   : > { %5579 = vrot.lane.b32.xlu2 %v5449_v27, %s8877_s7  ;;  %v5489_v12 = vperm.slane %v5483_v22, %v8951_v5  ;;  %v5454_v1 = vrot.slane %v5441_v10, 4  ;;  %v5413_v60 = vperm.slane %v5407_v61, %v8976_v21  ;;  %v5465_v19 = vperm.slane %v5459_v9, %v8951_v5 }
 0x7f9   : > { %v5445_v16 = vsel %vm276_vm0, %v5425_v51, %v5444_v34  ;;  %v5447_v30 = vsel %vm276_vm0, %v5446_v54, %v5405_v8  ;;  %v5530_v8 = vrot.slane %v5501_v58, 4  ;;  %v5450_v33 = vrot.slane %v5437_v28, 4 }
 0x7fa   : > { %5571 = vrot.lane.b32.xlu0 %v5445_v16, %s8879_s9  ;;  %5575 = vrot.lane.b32.xlu1 %v5447_v30, %s8876_s30  ;;  %v5472_v62 = vrot.slane %v12009_v3, 4  ;;  %v5485_v2 = vsel %vm276_vm0, %v5325_v38, %v5484_v14  ;;  %v5417_v34 = vperm.slane %v5409_v6, %v8976_v21  ;;  %v5505_v22 = vperm.slane %v5497_v4, %v8951_v5 }
 0x7fb   : > { %v5507_v40 = vsel %vm276_vm0, %v5506_v25, %v5465_v19  ;;  %v5531_v37 = vsel %vm276_vm0, %v5530_v8, %v5489_v12  ;;  %v5442_v55 = vrot.slane %v5425_v51, 4  ;;  %v5452_v27 = vrot.slane %v5413_v60, 4 }
 0x7fc   : > { %v5473_v20 = vsel %vm276_vm0, %v12017_v46, %v5472_v62  ;;  %v5455_v23 = vsel %vm276_vm0, %v5454_v1, %v5417_v34  ;;  %v5460_v54 = vrot.slane %v12011_v63, 4  ;;  %v5493_v3 = vperm.slane %v5485_v2, %v8951_v5 }
 0x7fd   : > { %v5451_v38 = vsel %vm276_vm0, %v5450_v33, %v5413_v60  ;;  %v12092_v61 = vsel %vm276_vm0, %v5442_v55, %v5401_v42  ;;  %v5532_v16 = vrot.slane %v5489_v12, 4  ;;  %v5453_v51 = vsel %vm276_vm0, %v5437_v28, %v5452_v27 }
 0x7fe   : > { %v5513_v46 = vperm.slane %v5507_v40, %v8976_v21  ;;  %v5537_v9 = vperm.slane %v5531_v37, %v8976_v21  ;;  %v5481_v63 = vperm.slane %v5473_v20, %v8951_v5  ;;  %v5542_v30 = vrot.slane %v5505_v22, 4 }
 0x7ff   : > { %v5461_v42 = vsel %vm276_vm0, %v12013_v26, %v5460_v54  ;;  %v5533_v28 = vsel %vm276_vm0, %v5501_v58, %v5532_v16  ;;  %v5508_v14 = vrot.slane %v5465_v19, 4  ;;  %v5456_v1 = vrot.slane %v5417_v34, 4 }
 0x800   : > { %5591 = vrot.lane.b32.xlu2 %v5455_v23, %s8875_s29  ;;  %v5543_v25 = vsel %vm276_vm0, %v5542_v30, %v5493_v3  ;;  %v5556_v6 = vrot.slane %v5513_v46, 4  ;;  %v5554_v12 = vrot.slane %v5537_v9, 4  ;;  %v5518_v4 = vrot.slane %v5481_v63, 4 }
 0x801   : > { %v5549_v8 = vperm.slane %v5543_v25, %v8976_v21  ;;  %v5469_v33 = vperm.slane %v5461_v42, %v8951_v5  ;;  %v5457_v62 = vsel %vm276_vm0, %v5441_v10, %v5456_v1  ;;  %v5509_v26 = vsel %vm276_vm0, %v12053_v52, %v5508_v14 }
 0x802   : > { %5583 = vrot.lane.b32.xlu0 %v5451_v38, %s8874_s28  ;;  %5587 = vrot.lane.b32.xlu1 %v5453_v51, %s8878_s8  ;;  %v5557_v60 = vsel %vm276_vm0, %v5537_v9, %v5556_v6  ;;  %v5541_v2 = vperm.slane %v5533_v28, %v8976_v21  ;;  %v5555_v58 = vsel %vm276_vm0, %v5554_v12, %v5513_v46  ;;  %v5544_v19 = vrot.slane %v5493_v3, 4 }
 0x803   : > { %v5519_v34 = vsel %vm276_vm0, %v5518_v4, %v5469_v33  ;;  %v5562_v40 = vrot.slane %v5549_v8, 4  ;;  %v5517_v37 = vperm.slane %v5509_v26, %v8976_v21  ;;  %v5520_v55 = vrot.slane %v5469_v33, 4 }
 0x804   : > { %v5558_v20 = vrot.slane %v5541_v2, 4  ;;  %v5525_v10 = vperm.slane %v5519_v34, %v8976_v21  ;;  %v5545_v23 = vsel %vm276_vm0, %v5505_v22, %v5544_v19 }
 0x805   : > { %v5521_v52 = vsel %vm276_vm0, %v5481_v63, %v5520_v55  ;;  %v5560_v54 = vrot.slane %v5517_v37, 4  ;;  %v5553_v51 = vperm.slane %v5545_v23, %v8976_v21 }
 0x806   : > { %v5563_v27 = vsel %vm276_vm0, %v5562_v40, %v5525_v10  ;;  %v5559_v3 = vsel %vm276_vm0, %v5558_v20, %v5517_v37  ;;  %v5529_v16 = vperm.slane %v5521_v52, %v8976_v21  ;;  %v5564_v22 = vrot.slane %v5525_v10, 4 }
 0x807   : > { %v5561_v38 = vsel %vm276_vm0, %v5541_v2, %v5560_v54  ;;  %v5566_v9 = vrot.slane %v5553_v51, 4 }
 0x808   : > { %5603 = vrot.lane.b32.xlu2 %v5557_v60, %s8882_s17  ;;  %v5568_v46 = vrot.slane %v5529_v16, 4  ;;  %v5565_v30 = vsel %vm276_vm0, %v5549_v8, %v5564_v22 }
 0x809   : > { %v5567_v25 = vsel %vm276_vm0, %v5566_v9, %v5529_v16 }
 0x80a   : > { %5595 = vrot.lane.b32.xlu0 %v5457_v62, %s8880_s10  ;;  %5599 = vrot.lane.b32.xlu1 %v5555_v58, %s8883_s18  ;;  %v5569_v63 = vsel %vm276_vm0, %v5553_v51, %v5568_v46 }
 0x810   : > { %5615 = vrot.lane.b32.xlu2 %v5563_v27, %s8884_s19 }
 0x812   : > { %5607 = vrot.lane.b32.xlu0 %v5559_v3, %s8886_s23  ;;  %5611 = vrot.lane.b32.xlu1 %v5561_v38, %s8885_s20 }
 0x818   : > { %5627 = vrot.lane.b32.xlu2 %v5569_v63, %s8887_s24 }
 0x81a   : > { %5619 = vrot.lane.b32.xlu0 %v5565_v30, %s8889_s26  ;;  %5623 = vrot.lane.b32.xlu1 %v5567_v25, %s8888_s25 }
 0x820   : > { %5682 = vrot.lane.b32.xlu2 %v11712_v24, %s8890_s13 }
 0x822   : > { %5678 = vrot.lane.b32.xlu0 %v11696_v53, %s8890_s13  ;;  %5680 = vrot.lane.b32.xlu1 %v11715_v36, %s8890_s13 }
 0x828   : > { %5688 = vrot.lane.b32.xlu2 %v11731_v39, %s8890_s13 }
 0x82a   : > { %5684 = vrot.lane.b32.xlu0 %v11709_v59, %s8890_s13  ;;  %5686 = vrot.lane.b32.xlu1 %v11734_v45, %s8890_s13 }
 0x830   : > { %5694 = vrot.lane.b32.xlu2 %v11748_v44, %s8890_s13 }
 0x832   : > { %5690 = vrot.lane.b32.xlu0 %v11728_v32, %s8890_s13  ;;  %5692 = vrot.lane.b32.xlu1 %v11753_v17, %s8890_s13 }
 0x838   : > { %5700 = vrot.lane.b32.xlu2 %v11765_v56, %s8890_s13 }
 0x83a   : > { %5696 = vrot.lane.b32.xlu0 %v11745_v7, %s8890_s13  ;;  %5698 = vrot.lane.b32.xlu1 %v11770_v13, %s8890_s13 }
 0x840   : > { %5706 = vrot.lane.b32.xlu2 %v11784_v50, %s8890_s13 }
 0x842   : > { %5702 = vrot.lane.b32.xlu0 %v11762_v41, %s8890_s13  ;;  %5704 = vrot.lane.b32.xlu1 %v11787_v29, %s8890_s13 }
 0x84a   : > { %5708 = vrot.lane.b32.xlu0 %v11781_v49, %s8890_s13 }
 0x852   : > { %v12166_v53 = vpop.permute.xlu2 %5579 }
 0x85a   : > { %v12168_v59 = vpop.permute.xlu2 %5591 }
 0x85b   : > { %14263 = vst [vmem:[#allocation164_spill] sm:$0xff] %v12168_v59 }
 0x862   : > { %v12170_v24 = vpop.permute.xlu2 %5603 }
 0x863   : > { %14264 = vst [vmem:[#allocation165_spill] sm:$0xff] %v12170_v24 }
 0x86a   : > { %v12176_v50 = vpop.permute.xlu2 %5615 }
 0x86b   : > { %14265 = vst [vmem:[#allocation166_spill] sm:$0xff] %v12176_v50 }
 0x86c   : > { %v12172_v36 = vpop.permute.xlu0 %5571  ;;  %v12174_v32 = vpop.permute.xlu1 %5575 }
 0x872   : > { %v12182_v29 = vpop.permute.xlu2 %5627 }
 0x873   : > { %14267 = vst [vmem:[#allocation168_spill] sm:$0xff] %v12182_v29 }
 0x874   : > { %v12178_v39 = vpop.permute.xlu0 %5583  ;;  %v12180_v45 = vpop.permute.xlu1 %5587 }
 0x875   : > { %14266 = vst [vmem:[#allocation167_spill] sm:$0xff] %v12180_v45 }
 0x87a   : > { %v5683_v44 = vpop.permute.xlu2 %5682 }
 0x87b   : > { %v5740_v27 = vrot.slane %v5683_v44, 4 }
 0x87c   : > { %v12184_v7 = vpop.permute.xlu0 %5595  ;;  %v12186_v49 = vpop.permute.xlu1 %5599 }
 0x87d   : > { %14268 = vst [vmem:[#allocation169_spill] sm:$0xff] %v12184_v7 }
 0x87e   : > { %14269 = vst [vmem:[#allocation170_spill] sm:$0xff] %v12186_v49 }
 0x882   : > { %v12192_v56 = vpop.permute.xlu2 %5688 }
 0x884   : > { %v12188_v17 = vpop.permute.xlu0 %5607  ;;  %v12190_v41 = vpop.permute.xlu1 %5611 }
 0x885   : > { %14270 = vst [vmem:[#allocation171_spill] sm:$0xff] %v12188_v17 }
 0x886   : > { %14271 = vst [vmem:[#allocation172_spill] sm:$0xff] %v12190_v41 }
 0x88a   : > { %v5695_v12 = vpop.permute.xlu2 %5694 }
 0x88b   : > { %v5752_v16 = vrot.slane %v5695_v12, 4 }
 0x88c   : > { %v12194_v13 = vpop.permute.xlu0 %5619  ;;  %v12196_v42 = vpop.permute.xlu1 %5623 }
 0x88d   : > { %14272 = vst [vmem:[#allocation173_spill] sm:$0xff] %v12194_v13 }
 0x88e   : > { %14273 = vst [vmem:[#allocation174_spill] sm:$0xff] %v12196_v42 }
 0x892   : > { %v12202_v1 = vpop.permute.xlu2 %5700 }
 0x894   : > { %v5679_v6 = vpop.permute.xlu0 %5678  ;;  %v12198_v28 = vpop.permute.xlu1 %5680 }
 0x895   : > { %v5728_v51 = vrot.slane %v5679_v6, 4 }
 0x89a   : > { %v5707_v26 = vpop.permute.xlu2 %5706 }
 0x89b   : > { %v5762_v58 = vrot.slane %v5707_v26, 4 }
 0x89c   : > { %v12200_v14 = vpop.permute.xlu0 %5684  ;;  %v5687_v4 = vpop.permute.xlu1 %5686 }
 0x89d   : > { %v5726_v62 = vrot.slane %v5687_v4, 4 }
 0x89f   : > { %v5727_v19 = vsel %vm276_vm0, %v5726_v62, %v5679_v6 }
 0x8a0   : > { %v5733_v20 = vperm.slane %v5727_v19, %v8951_v5 }
 0x8a2   : > { %v5776_v38 = vrot.slane %v5733_v20, 4 }
 0x8a4   : > { %v5691_v60 = vpop.permute.xlu0 %5690  ;;  %v12204_v8 = vpop.permute.xlu1 %5692 }
 0x8a5   : > { %v5738_v33 = vrot.slane %v5691_v60, 4  ;;  %v5741_v46 = vsel %vm276_vm0, %v5691_v60, %v5740_v27 }
 0x8a6   : > { %v5749_v6 = vperm.slane %v5741_v46, %v8951_v5 }
 0x8a7   : > { %v5739_v2 = vsel %vm276_vm0, %v5738_v33, %v5683_v44  ;;  %v5729_v33 = vsel %vm276_vm0, %v5687_v4, %v5728_v51  ;;  %v5838_v4 = vrot.slane %v12192_v56, 4 }
 0x8a8   : > { %v5745_v34 = vperm.slane %v5739_v2, %v8951_v5  ;;  %v5850_v2 = vrot.slane %v12204_v8, 4  ;;  %v5786_v27 = vrot.slane %v5749_v6, 4 }
 0x8aa   : > { %v5774_v52 = vrot.slane %v5745_v34, 4  ;;  %v5777_v25 = vsel %vm276_vm0, %v5745_v34, %v5776_v38 }
 0x8ab   : > { %v5785_v34 = vperm.slane %v5777_v25, %v8976_v21 }
 0x8ac   : > { %v12209_v40 = vpop.permute.xlu0 %5696  ;;  %v5699_v37 = vpop.permute.xlu1 %5698  ;;  %v5775_v22 = vsel %vm276_vm0, %v5774_v52, %v5733_v20  ;;  %v5737_v20 = vperm.slane %v5729_v33, %v8951_v5 }
 0x8ad   : > { %v5764_v55 = vrot.slane %v5699_v37, 4  ;;  %v5763_v10 = vsel %vm276_vm0, %v5762_v58, %v5699_v37  ;;  %v12226_v58 = vperm.slane %v5775_v22, %v8976_v21  ;;  %v5828_v22 = vrot.slane %v5785_v34, 4 }
 0x8ae   : > { %v5769_v54 = vperm.slane %v5763_v10, %v8951_v5 }
 0x8af   : > { %v5765_v23 = vsel %vm276_vm0, %v5707_v26, %v5764_v55 }
 0x8b0   : > { %v5773_v3 = vperm.slane %v5765_v23, %v8951_v5  ;;  %v5798_v44 = vrot.slane %v5769_v54, 4 }
 0x8b2   : > { %v5810_v62 = vrot.slane %v5773_v3, 4 }
 0x8b4   : > { %v5703_v9 = vpop.permute.xlu0 %5702  ;;  %v5705_v55 = vpop.permute.xlu1 %5704 }
 0x8b5   : > { %v5750_v63 = vrot.slane %v5703_v9, 4  ;;  %v5753_v30 = vsel %vm276_vm0, %v5703_v9, %v5752_v16  ;;  %v5824_v16 = vrot.slane %v12226_v58, 4  ;;  %v5862_v51 = vrot.slane %v5705_v55, 4 }
 0x8b6   : > { %v5761_v26 = vperm.slane %v5753_v30, %v8951_v5 }
 0x8b7   : > { %v5751_v60 = vsel %vm276_vm0, %v5750_v63, %v5695_v12  ;;  %v5851_v12 = vsel %vm276_vm0, %v5850_v2, %v12200_v14 }
 0x8b8   : > { %v5757_v19 = vperm.slane %v5751_v60, %v8951_v5  ;;  %v5812_v37 = vrot.slane %v5761_v26, 4  ;;  %v5811_v52 = vsel %vm276_vm0, %v5810_v62, %v5761_v26  ;;  %v5857_v62 = vperm.slane %v5851_v12, %v8951_v5 }
 0x8b9   : > { %v5876_v26 = vrot.slane %v12202_v1, 4 }
 0x8ba   : > { %v5800_v10 = vrot.slane %v5757_v19, 4  ;;  %v5799_v23 = vsel %vm276_vm0, %v5798_v44, %v5757_v19  ;;  %v5813_v63 = vsel %vm276_vm0, %v5773_v3, %v5812_v37  ;;  %v5817_v44 = vperm.slane %v5811_v52, %v8976_v21 }
 0x8bb   : > { %v12237_v38 = vperm.slane %v5799_v23, %v8976_v21  ;;  %v5821_v60 = vperm.slane %v5813_v63, %v8976_v21  ;;  %v5839_v19 = vsel %vm276_vm0, %v5838_v4, %v12198_v28  ;;  %v5788_v37 = vrot.slane %v5737_v20, 4 }
 0x8bc   : > { %v5709_v46 = vpop.permute.xlu0 %5708  ;;  %v5801_v9 = vsel %vm276_vm0, %v5769_v54, %v5800_v10  ;;  %v5787_v52 = vsel %vm276_vm0, %v5786_v27, %v5737_v20  ;;  %v5863_v23 = vsel %vm276_vm0, %v5862_v51, %v12209_v40  ;;  %v5852_v51 = vrot.slane %v12200_v14, 4 }
 0x8bd   : > { %v5874_v30 = vrot.slane %v5709_v46, 4  ;;  %v5825_v25 = vsel %vm276_vm0, %v12237_v38, %v5824_v16  ;;  %v5809_v33 = vperm.slane %v5801_v9, %v8976_v21  ;;  %v5830_v16 = vrot.slane %v5817_v44, 4 }
 0x8be   : > { %5951 = vrot.lane.b32.xlu1 %v5825_v25, %s8879_s9  ;;  %v5886_v9 = vrot.slane %v5857_v62, 4  ;;  %v5789_v4 = vsel %vm276_vm0, %v5749_v6, %v5788_v37  ;;  %v5793_v63 = vperm.slane %v5787_v52, %v8976_v21  ;;  %v5845_v25 = vperm.slane %v5839_v19, %v8951_v5 }
 0x8bf   : > { %v5875_v54 = vsel %vm276_vm0, %v5874_v30, %v12202_v1  ;;  %v5829_v2 = vsel %vm276_vm0, %v5809_v33, %v5828_v22  ;;  %v5826_v3 = vrot.slane %v5809_v33, 4  ;;  %v5877_v1 = vsel %vm276_vm0, %v5709_v46, %v5876_v26 }
 0x8c0   : > { %v5881_v10 = vperm.slane %v5875_v54, %v8951_v5  ;;  %5959 = vrot.lane.b32.xlu0 %v5829_v2, %s8877_s7  ;;  %v5834_v30 = vrot.slane %v5821_v60, 4  ;;  %v5869_v20 = vperm.slane %v5863_v23, %v8951_v5  ;;  %v5885_v27 = vperm.slane %v5877_v1, %v8951_v5 }
 0x8c1   : > { %v5827_v12 = vsel %vm276_vm0, %v5826_v3, %v5785_v34  ;;  %v5864_v34 = vrot.slane %v12209_v40, 4  ;;  %v5831_v46 = vsel %vm276_vm0, %v5830_v16, %v5793_v63  ;;  %v5797_v33 = vperm.slane %v5789_v4, %v8976_v21 }
 0x8c2   : > { %v5910_v22 = vrot.slane %v5881_v10, 4  ;;  %5955 = vrot.lane.b32.xlu2 %v5827_v12, %s8876_s30  ;;  %v5887_v6 = vsel %vm276_vm0, %v5886_v9, %v5845_v25  ;;  %v5853_v54 = vsel %vm276_vm0, %v12204_v8, %v5852_v51  ;;  %v5832_v14 = vrot.slane %v5793_v63, 4 }
 0x8c3   : > { %v5865_v2 = vsel %vm276_vm0, %v5705_v55, %v5864_v34  ;;  %v5835_v3 = vsel %vm276_vm0, %v5834_v30, %v5797_v33  ;;  %v5840_v40 = vrot.slane %v12198_v28, 4  ;;  %v5912_v19 = vrot.slane %v5869_v20, 4 }
 0x8c4   : > { %v5911_v26 = vsel %vm276_vm0, %v5910_v22, %v5869_v20  ;;  %v5922_v37 = vrot.slane %v5885_v27, 4  ;;  %v5833_v52 = vsel %vm276_vm0, %v5817_v44, %v5832_v14  ;;  %v5893_v23 = vperm.slane %v5887_v6, %v8976_v21 }
 0x8c5   : > { %v5917_v1 = vperm.slane %v5911_v26, %v8976_v21  ;;  %v5861_v12 = vperm.slane %v5853_v54, %v8951_v5  ;;  %v5873_v8 = vperm.slane %v5865_v2, %v8951_v5  ;;  %v5913_v55 = vsel %vm276_vm0, %v5881_v10, %v5912_v19  ;;  %v12303_v26 = vld [vmem:[#allocation2 + $0x62] sm:$0xff] }
 0x8c6   : > { %5963 = vrot.lane.b32.xlu1 %v5831_v46, %s8874_s28  ;;  %v5836_v16 = vrot.slane %v5797_v33, 4  ;;  %v5841_v28 = vsel %vm276_vm0, %v12192_v56, %v5840_v40  ;;  %v5936_v22 = vrot.slane %v5893_v23, 4  ;;  %v5921_v63 = vperm.slane %v5913_v55, %v8976_v21  ;;  %v12315_v55 = vld [vmem:[#allocation2 + $0x1a] sm:$0xff] }
 0x8c7   : > { %v5923_v9 = vsel %vm276_vm0, %v5922_v37, %v5873_v8  ;;  %v5934_v4 = vrot.slane %v5917_v1, 4  ;;  %v5888_v30 = vrot.slane %v5845_v25, 4  ;;  %v5898_v20 = vrot.slane %v5861_v12, 4  ;;  %v12311_v37 = vld [vmem:[#allocation2 + $0x7a] sm:$0xff] }
 0x8c8   : > { %5971 = vrot.lane.b32.xlu0 %v5835_v3, %s8875_s29  ;;  %v5837_v44 = vsel %vm276_vm0, %v5821_v60, %v5836_v16  ;;  %v5937_v51 = vsel %vm276_vm0, %v5917_v1, %v5936_v22  ;;  %v5929_v10 = vperm.slane %v5923_v9, %v8976_v21  ;;  %v5849_v34 = vperm.slane %v5841_v28, %v8951_v5  ;;  %v12318_v16 = vld [vmem:[#allocation2 + $0x92] sm:$0xff]  ;;  %v12323_v28 = vld [vmem:[#allocation2 + $0x2] sm:$0xff]  ;;  %v12326_v9 = vld [vmem:[#allocation2 + $0xaa] sm:$0xff] }
 0x8c9   : > { %v5889_v56 = vsel %vm276_vm0, %v5857_v62, %v5888_v30  ;;  %v5935_v60 = vsel %vm276_vm0, %v5934_v4, %v5893_v23  ;;  %v5938_v46 = vrot.slane %v5921_v63, 4  ;;  %v6068_v54 = vrot.slane %v12303_v26, 4  ;;  %v12330_v22 = vld [vmem:[#allocation2 + $0x52] sm:$0xff] }
 0x8ca   : > { %5967 = vrot.lane.b32.xlu2 %v5833_v52, %s8878_s8  ;;  %v5899_v25 = vsel %vm276_vm0, %v5898_v20, %v5849_v34  ;;  %v5897_v33 = vperm.slane %v5889_v56, %v8976_v21  ;;  %v5942_v6 = vrot.slane %v5929_v10, 4  ;;  %v5900_v2 = vrot.slane %v5849_v34, 4 }
 0x8cb   : > { %v5924_v3 = vrot.slane %v5873_v8, 4  ;;  %v5905_v62 = vperm.slane %v5899_v25, %v8976_v21  ;;  %v6080_v52 = vrot.slane %v12311_v37, 4  ;;  %v6056_v8 = vrot.slane %v12315_v55, 4 }
 0x8cc   : > { %v5939_v14 = vsel %vm276_vm0, %v5938_v46, %v5897_v33  ;;  %v5901_v40 = vsel %vm276_vm0, %v5861_v12, %v5900_v2  ;;  %v5940_v1 = vrot.slane %v5897_v33, 4  ;;  %v6069_v12 = vsel %vm276_vm0, %v12318_v16, %v6068_v54  ;;  %v12340_v46 = vld [vmem:[#allocation2 + $0xb2] sm:$0xff]  ;;  %v12342_v33 = vld [vmem:[#allocation2 + $0x4a] sm:$0xff] }
 0x8cd   : > { %v5925_v19 = vsel %vm276_vm0, %v5885_v27, %v5924_v3  ;;  %v5943_v23 = vsel %vm276_vm0, %v5942_v6, %v5905_v62  ;;  %v6044_v27 = vrot.slane %v12323_v28, 4  ;;  %v5909_v30 = vperm.slane %v5901_v40, %v8976_v21  ;;  %v12358_v3 = vld [vmem:[#allocation2 + $0x22] sm:$0xff] }
 0x8ce   : > { %5975 = vrot.lane.b32.xlu1 %v5837_v44, %s8880_s10  ;;  %v6081_v44 = vsel %vm276_vm0, %v12326_v9, %v6080_v52  ;;  %v5941_v4 = vsel %vm276_vm0, %v5921_v63, %v5940_v1  ;;  %v5933_v20 = vperm.slane %v5925_v19, %v8976_v21  ;;  %v6092_v34 = vrot.slane %v10911_v35, 4  ;;  %v12370_v1 = vld [vmem:[#allocation2 + $0x9a] sm:$0xff] }
 0x8cf   : > { %v6116_v56 = vrot.slane %v10904_v15, 4  ;;  %v5944_v25 = vrot.slane %v5905_v62, 4  ;;  %v6057_v63 = vsel %vm276_vm0, %v12342_v33, %v6056_v8  ;;  %v6166_v6 = vrot.slane %v12330_v22, 4  ;;  %v12353_v15 = vld [vmem:[#allocation2 + $0x32] sm:$0xff] }
 0x8d0   : > { %5983 = vrot.lane.b32.xlu0 %v5937_v51, %s8882_s17  ;;  %v5822_v51 = vrot.slane %v12237_v38, 4  ;;  %v6093_v35 = vsel %vm276_vm0, %v10896_v0, %v6092_v34  ;;  %v6045_v54 = vsel %vm276_vm0, %v12353_v15, %v6044_v27  ;;  %v6089_v2 = vperm.slane %v6081_v44, %v8951_v5 }
 0x8d1   : > { %v5945_v62 = vsel %vm276_vm0, %v5929_v10, %v5944_v25  ;;  %v5948_v40 = vrot.slane %v5909_v30, 4  ;;  %v5946_v19 = vrot.slane %v5933_v20, 4  ;;  %v6117_v0 = vsel %vm276_vm0, %v10907_v47, %v6116_v56 }
 0x8d2   : > { %5979 = vrot.lane.b32.xlu2 %v5935_v60, %s8883_s18  ;;  %v6077_v60 = vperm.slane %v6069_v12, %v8951_v5  ;;  %v12349_v38 = vsel %vm276_vm0, %v5822_v51, %v12226_v58  ;;  %v6190_v58 = vrot.slane %v12340_v46, 4  ;;  %v6065_v52 = vperm.slane %v6057_v63, %v8951_v5  ;;  %v12379_v51 = vld [vmem:[#allocation2 + $0xa] sm:$0xff] }
 0x8d3   : > { %v5949_v8 = vsel %vm276_vm0, %v5933_v20, %v5948_v40  ;;  %v6167_v27 = vsel %vm276_vm0, %v6166_v6, %v12358_v3  ;;  %v6101_v44 = vperm.slane %v6093_v35, %v8976_v21  ;;  %v6053_v47 = vperm.slane %v6045_v54, %v8951_v5  ;;  %v12389_v35 = vld [vmem:[#allocation2 + $0x6a] sm:$0xff] }
 0x8d4   : > { %v6128_v12 = vrot.slane %v6077_v60, 4  ;;  %v5947_v34 = vsel %vm276_vm0, %v5946_v19, %v5909_v30  ;;  %v6125_v56 = vperm.slane %v6117_v0, %v8976_v21  ;;  %v6178_v20 = vrot.slane %v12370_v1, 4 }
 0x8d5   : > { %v6140_v63 = vrot.slane %v10928_v11, 4  ;;  %v6173_v54 = vperm.slane %v6167_v27, %v8951_v5  ;;  %v6144_v0 = vrot.slane %v6101_v44, 4  ;;  %v6180_v29 = vrot.slane %v12389_v35, 4 }
 0x8d6   : > { %5987 = vrot.lane.b32.xlu1 %v5939_v14, %s8886_s23  ;;  %v12360_v14 = vld [vmem:[#allocation2 + $0x3a] sm:$0xff]  ;;  %v6129_v30 = vsel %vm276_vm0, %v6089_v2, %v6128_v12  ;;  %v6179_v27 = vsel %vm276_vm0, %v6178_v20, %v12389_v35 }
 0x8d7   : > { %v6154_v10 = vrot.slane %v12360_v14, 4  ;;  %v6141_v11 = vsel %vm276_vm0, %v10919_v57, %v6140_v63  ;;  %v6137_v12 = vperm.slane %v6129_v30, %v8976_v21  ;;  %v6168_v57 = vrot.slane %v12358_v3, 4 }
 0x8d8   : > { %5995 = vrot.lane.b32.xlu0 %v5943_v23, %s8884_s19  ;;  %v12368_v23 = vld [vmem:[#allocation2 + $0x82] sm:$0xff]  ;;  %v6185_v20 = vperm.slane %v6179_v27, %v8951_v5  ;;  %v6156_v27 = vrot.slane %v12379_v51, 4 }
 0x8d9   : > { %v6191_v25 = vsel %vm276_vm0, %v6190_v58, %v12368_v23  ;;  %v6155_v40 = vsel %vm276_vm0, %v6154_v10, %v12379_v51  ;;  %v6192_v19 = vrot.slane %v12368_v23, 4  ;;  %v6104_v58 = vrot.slane %v6053_v47, 4 }
 0x8da   : > { %5991 = vrot.lane.b32.xlu2 %v5941_v4, %s8885_s20  ;;  %v6126_v4 = vrot.slane %v6089_v2, 4  ;;  %v6145_v2 = vsel %vm276_vm0, %v6125_v56, %v6144_v0  ;;  %v6161_v10 = vperm.slane %v6155_v40, %v8951_v5 }
 0x8db   : > { %v6193_v63 = vsel %vm276_vm0, %v12340_v46, %v6192_v19  ;;  %v6105_v40 = vsel %vm276_vm0, %v6065_v52, %v6104_v58 }
 0x8dc   : > { %v6127_v6 = vsel %vm276_vm0, %v6126_v4, %v6077_v60  ;;  %v6142_v60 = vrot.slane %v6125_v56, 4  ;;  %v12419_v19 = vperm.slane %v6193_v63, %v8951_v5  ;;  %v12431_v63 = vld [vmem:[%s9414_s14 + $0x4a] sm:$0xff] }
 0x8dd   : > { %v6133_v4 = vperm.slane %v6127_v6, %v8976_v21 }
 0x8de   : > { %5999 = vrot.lane.b32.xlu1 %v5945_v62, %s8889_s26  ;;  %v6102_v62 = vrot.slane %v6065_v52, 4  ;;  %v6143_v56 = vsel %vm276_vm0, %v6142_v60, %v6101_v44  ;;  %v6169_v44 = vsel %vm276_vm0, %v12330_v22, %v6168_v57  ;;  %v6181_v60 = vsel %vm276_vm0, %v12370_v1, %v6180_v29 }
 0x8df   : > { %v6146_v30 = vrot.slane %v6133_v4, 4  ;;  %v6177_v29 = vperm.slane %v6169_v44, %v8951_v5  ;;  %v6370_v44 = vrot.slane %v12431_v63, 4 }
 0x8e0   : > { %6007 = vrot.lane.b32.xlu0 %v5949_v8, %s8887_s24  ;;  %v6197_v8 = vperm.slane %v6191_v25, %v8951_v5  ;;  %v6103_v25 = vsel %vm276_vm0, %v6102_v62, %v6053_v47  ;;  %v6150_v62 = vrot.slane %v6137_v12, 4 }
 0x8e1   : > { %v6109_v47 = vperm.slane %v6103_v25, %v8976_v21  ;;  %v6204_v25 = vrot.slane %v6161_v10, 4 }
 0x8e2   : > { %6003 = vrot.lane.b32.xlu2 %v5947_v34, %s8888_s25  ;;  %v6202_v34 = vrot.slane %v6173_v54, 4  ;;  %v6226_v6 = vrot.slane %v6197_v8, 4 }
 0x8e3   : > { %v6147_v58 = vsel %vm276_vm0, %v6146_v30, %v6109_v47  ;;  %v6148_v57 = vrot.slane %v6109_v47, 4  ;;  %v12447_v47 = vld [vmem:[%s9414_s14 + $0x92] sm:$0xff] }
 0x8e4   : > { %v6203_v0 = vsel %vm276_vm0, %v6202_v34, %v6161_v10  ;;  %v6227_v52 = vsel %vm276_vm0, %v6226_v6, %v6185_v20  ;;  %v6238_v6 = vrot.slane %v12419_v19, 4  ;;  %v6157_v10 = vsel %vm276_vm0, %v12360_v14, %v6156_v27 }
 0x8e5   : > { %v6209_v34 = vperm.slane %v6203_v0, %v8976_v21  ;;  %v6233_v30 = vperm.slane %v6227_v52, %v8976_v21  ;;  %v12444_v0 = vld [vmem:[%s9414_s14 + $0x32] sm:$0xff]  ;;  %v6205_v52 = vsel %vm276_vm0, %v6173_v54, %v6204_v25  ;;  %v6165_v27 = vperm.slane %v6157_v10, %v8951_v5  ;;  %v6350_v54 = vld [vmem:[%s9414_s14 + $0x62] sm:$0xff] }
 0x8e6   : > { %6267 = vrot.lane.b32.xlu1 %v6141_v11, %s8879_s9  ;;  %v6228_v11 = vrot.slane %v6185_v20, 4  ;;  %v6189_v20 = vperm.slane %v6181_v60, %v8951_v5  ;;  %v6149_v60 = vsel %vm276_vm0, %v6133_v4, %v6148_v57  ;;  %v6358_v41 = vrot.slane %v12444_v0, 4  ;;  %v12461_v57 = vld [vmem:[%s9414_s14 + $0x2] sm:$0xff] }
 0x8e7   : > { %v6250_v50 = vrot.slane %v6233_v30, 4  ;;  %v6382_v4 = vrot.slane %v12447_v47, 4  ;;  %v6213_v10 = vperm.slane %v6205_v52, %v8976_v21  ;;  %v6216_v7 = vrot.slane %v6165_v27, 4 }
 0x8e8   : > { %6275 = vrot.lane.b32.xlu0 %v6145_v2, %s8877_s7  ;;  %v6113_v2 = vperm.slane %v6105_v40, %v8976_v21  ;;  %v6229_v40 = vsel %vm276_vm0, %v6197_v8, %v6228_v11  ;;  %v6356_v8 = vld [vmem:[%s9414_s14 + $0xaa] sm:$0xff]  ;;  %v6239_v42 = vsel %vm276_vm0, %v6238_v6, %v6189_v20  ;;  %v6240_v59 = vrot.slane %v6189_v20, 4 }
 0x8e9   : > { %v6237_v11 = vperm.slane %v6229_v40, %v8976_v21  ;;  %v6245_v6 = vperm.slane %v6239_v42, %v8976_v21  ;;  %v6251_v45 = vsel %vm276_vm0, %v6250_v50, %v6209_v34  ;;  %v6256_v52 = vrot.slane %v6213_v10, 4 }
 0x8ea   : > { %6271 = vrot.lane.b32.xlu2 %v6143_v56, %s8876_s30  ;;  %v6151_v56 = vsel %vm276_vm0, %v6150_v62, %v6113_v2  ;;  %v6252_v62 = vrot.slane %v6209_v34, 4  ;;  %v6152_v13 = vrot.slane %v6113_v2, 4  ;;  %v6352_v2 = vld [vmem:[%s9414_s14 + $0x7a] sm:$0xff]  ;;  %v6217_v50 = vsel %vm276_vm0, %v6177_v29, %v6216_v7 }
 0x8eb   : > { %v6254_v24 = vrot.slane %v6237_v11, 4  ;;  %v6225_v7 = vperm.slane %v6217_v50, %v8976_v21 }
 0x8ec   : > { %v6153_v40 = vsel %vm276_vm0, %v6137_v12, %v6152_v13  ;;  %v6253_v17 = vsel %vm276_vm0, %v6233_v30, %v6252_v62  ;;  %v6383_v12 = vsel %vm276_vm0, %v6382_v4, %v6350_v54  ;;  %v6258_v62 = vrot.slane %v6245_v6, 4 }
 0x8ed   : > { %v6389_v20 = vperm.slane %v6383_v12, %v8951_v5 }
 0x8ee   : > { %6279 = vrot.lane.b32.xlu1 %v6147_v58, %s8874_s28  ;;  %v6344_v58 = vld [vmem:[%s9414_s14 + $0x1a] sm:$0xff] }
 0x8ef   : > { %v6371_v25 = vsel %vm276_vm0, %v6370_v44, %v6344_v58  ;;  %v6359_v44 = vsel %vm276_vm0, %v6358_v41, %v12461_v57  ;;  %v6241_v41 = vsel %vm276_vm0, %v12419_v19, %v6240_v59  ;;  %v6257_v19 = vsel %vm276_vm0, %v6237_v11, %v6256_v52  ;;  %v12503_v11 = vld [vmem:[%s9414_s14 + $0x52] sm:$0xff] }
 0x8f0   : > { %6287 = vrot.lane.b32.xlu0 %v6151_v56, %s8875_s29  ;;  %v6214_v56 = vrot.slane %v6177_v29, 4  ;;  %v6377_v13 = vperm.slane %v6371_v25, %v8951_v5  ;;  %v6365_v34 = vperm.slane %v6359_v44, %v8951_v5  ;;  %v6249_v29 = vperm.slane %v6241_v41, %v8976_v21  ;;  %v6357_v52 = vld [vmem:[%s9414_s14 + $0xb2] sm:$0xff] }
 0x8f1   : > { %v6482_v41 = vrot.slane %v12503_v11, 4 }
 0x8f2   : > { %6283 = vrot.lane.b32.xlu2 %v6149_v60, %s8878_s8  ;;  %v6394_v60 = vrot.slane %v6356_v8, 4  ;;  %v6215_v49 = vsel %vm276_vm0, %v6214_v56, %v6165_v27  ;;  %v6396_v56 = vrot.slane %v6352_v2, 4  ;;  %v6384_v27 = vrot.slane %v6350_v54, 4 }
 0x8f3   : > { %v6221_v30 = vperm.slane %v6215_v49, %v8976_v21  ;;  %v6406_v49 = vrot.slane %v6377_v13, 4  ;;  %v6432_v54 = vrot.slane %v6389_v20, 4 }
 0x8f4   : > { %v6395_v42 = vsel %vm276_vm0, %v6394_v60, %v6352_v2  ;;  %v6372_v60 = vrot.slane %v6344_v58, 4  ;;  %v6397_v59 = vsel %vm276_vm0, %v6356_v8, %v6396_v56  ;;  %v6360_v58 = vrot.slane %v12461_v57, 4 }
 0x8f5   : > { %v6401_v4 = vperm.slane %v6395_v42, %v8951_v5  ;;  %v6260_v25 = vrot.slane %v6221_v30, 4  ;;  %v6385_v2 = vsel %vm276_vm0, %v12447_v47, %v6384_v27  ;;  %v6405_v44 = vperm.slane %v6397_v59, %v8951_v5  ;;  %v12521_v27 = vld [vmem:[%s9414_s14 + $0x3a] sm:$0xff]  ;;  %v6353_v59 = vld [vmem:[%s9414_s14 + $0x82] sm:$0xff] }
 0x8f6   : > { %6291 = vrot.lane.b32.xlu1 %v6153_v40, %s8880_s10  ;;  %v6407_v40 = vsel %vm276_vm0, %v6406_v49, %v6365_v34  ;;  %v6373_v8 = vsel %vm276_vm0, %v12431_v63, %v6372_v60  ;;  %v6264_v42 = vrot.slane %v6225_v7, 4  ;;  %v6393_v63 = vperm.slane %v6385_v2, %v8951_v5 }
 0x8f7   : > { %v6261_v12 = vsel %vm276_vm0, %v6245_v6, %v6260_v25  ;;  %v12508_v57 = vperm.slane %v6407_v40, %v8976_v21  ;;  %v6361_v6 = vsel %vm276_vm0, %v12444_v0, %v6360_v58  ;;  %v6381_v50 = vperm.slane %v6373_v8, %v8951_v5  ;;  %v6343_v58 = vld [vmem:[%s9414_s14 + $0xa] sm:$0xff] }
 0x8f8   : > { %6299 = vrot.lane.b32.xlu0 %v6253_v17, %s8882_s17  ;;  %v6255_v17 = vsel %vm276_vm0, %v6254_v24, %v6213_v10  ;;  %v6408_v24 = vrot.slane %v6365_v34, 4  ;;  %v6430_v10 = vrot.slane %v6401_v4, 4  ;;  %v6442_v34 = vrot.slane %v6405_v44, 4 }
 0x8f9   : > { %v6506_v49 = vrot.slane %v6357_v52, 4  ;;  %v6456_v25 = vrot.slane %v12508_v57, 4  ;;  %v6369_v60 = vperm.slane %v6361_v6, %v8951_v5 }
 0x8fa   : > { %6295 = vrot.lane.b32.xlu2 %v6251_v45, %s8883_s18  ;;  %v6259_v45 = vsel %vm276_vm0, %v6258_v62, %v6221_v30  ;;  %v6262_v30 = vrot.slane %v6249_v29, 4  ;;  %v6409_v47 = vsel %vm276_vm0, %v6377_v13, %v6408_v24  ;;  %v6433_v62 = vsel %vm276_vm0, %v6401_v4, %v6432_v54 }
 0x8fb   : > { %v6431_v56 = vsel %vm276_vm0, %v6430_v10, %v6389_v20  ;;  %v6265_v13 = vsel %vm276_vm0, %v6249_v29, %v6264_v42  ;;  %v6417_v4 = vperm.slane %v6409_v47, %v8976_v21  ;;  %v6441_v20 = vperm.slane %v6433_v62, %v8976_v21  ;;  %v6351_v62 = vld [vmem:[%s9414_s14 + $0x6a] sm:$0xff] }
 0x8fc   : > { %v12528_v0 = vperm.slane %v6431_v56, %v8976_v21  ;;  %v6263_v29 = vsel %vm276_vm0, %v6262_v30, %v6225_v7  ;;  %v6418_v24 = vrot.slane %v6381_v50, 4  ;;  %v6470_v54 = vrot.slane %v12521_v27, 4 }
 0x8fd   : > { %v6443_v10 = vsel %vm276_vm0, %v6442_v34, %v6393_v63  ;;  %v6460_v2 = vrot.slane %v6417_v4, 4  ;;  %v6458_v8 = vrot.slane %v6441_v20, 4  ;;  %v6507_v42 = vsel %vm276_vm0, %v6506_v49, %v6353_v59 }
 0x8fe   : > { %6303 = vrot.lane.b32.xlu1 %v6255_v17, %s8886_s23  ;;  %v6345_v17 = vld [vmem:[%s9414_s14 + $0x22] sm:$0xff]  ;;  %v6457_v7 = vsel %vm276_vm0, %v12528_v0, %v6456_v25  ;;  %v6420_v30 = vrot.slane %v6369_v60, 4  ;;  %v6419_v6 = vsel %vm276_vm0, %v6418_v24, %v6369_v60  ;;  %v6508_v34 = vrot.slane %v6353_v59, 4 }
 0x8ff   : > { %v6483_v40 = vsel %vm276_vm0, %v6482_v41, %v6345_v17  ;;  %v6471_v41 = vsel %vm276_vm0, %v6470_v54, %v6343_v58  ;;  %v6461_v49 = vsel %vm276_vm0, %v6441_v20, %v6460_v2 }
 0x900   : > { %6311 = vrot.lane.b32.xlu0 %v6259_v45, %s8884_s19  ;;  %v6444_v45 = vrot.slane %v6393_v63, 4  ;;  %v6489_v56 = vperm.slane %v6483_v40, %v8951_v5  ;;  %v6449_v63 = vperm.slane %v6443_v10, %v8976_v21  ;;  %v6421_v60 = vsel %vm276_vm0, %v6381_v50, %v6420_v30 }
 0x901   : > { %v6477_v24 = vperm.slane %v6471_v41, %v8951_v5  ;;  %v6496_v40 = vrot.slane %v6351_v62, 4  ;;  %v6484_v10 = vrot.slane %v6345_v17, 4  ;;  %v6509_v20 = vsel %vm276_vm0, %v6357_v52, %v6508_v34 }
 0x902   : > { %6307 = vrot.lane.b32.xlu2 %v6257_v19, %s8885_s20  ;;  %v6355_v19 = vld [vmem:[%s9414_s14 + $0x9a] sm:$0xff]  ;;  %v6445_v47 = vsel %vm276_vm0, %v6405_v44, %v6444_v45  ;;  %v6425_v45 = vperm.slane %v6419_v6, %v8976_v21  ;;  %v6518_v54 = vrot.slane %v6489_v56, 4  ;;  %v6462_v59 = vrot.slane %v6449_v63, 4 }
 0x903   : > { %v6453_v25 = vperm.slane %v6445_v47, %v8976_v21  ;;  %v6472_v17 = vrot.slane %v6343_v58, 4  ;;  %v6485_v52 = vsel %vm276_vm0, %v12503_v11, %v6484_v10  ;;  %v6497_v47 = vsel %vm276_vm0, %v6355_v19, %v6496_v40 }
 0x904   : > { %v6519_v50 = vsel %vm276_vm0, %v6518_v54, %v6477_v24  ;;  %v6463_v30 = vsel %vm276_vm0, %v6462_v59, %v6425_v45 }
 0x905   : > { %v6525_v34 = vperm.slane %v6519_v50, %v8976_v21 }
 0x906   : > { %6315 = vrot.lane.b32.xlu1 %v6261_v12, %s8889_s26  ;;  %v6494_v12 = vrot.slane %v6355_v19, 4  ;;  %v6473_v19 = vsel %vm276_vm0, %v12521_v27, %v6472_v17 }
 0x907   : > { %v6568_v59 = vrot.slane %v6525_v34, 4  ;;  %v6481_v40 = vperm.slane %v6473_v19, %v8951_v5 }
 0x908   : > { %6323 = vrot.lane.b32.xlu0 %v6265_v13, %s8887_s24  ;;  %v6513_v13 = vperm.slane %v6507_v42, %v8951_v5  ;;  %v6495_v44 = vsel %vm276_vm0, %v6494_v12, %v6351_v62  ;;  %v6466_v12 = vrot.slane %v6453_v25, 4  ;;  %v6464_v42 = vrot.slane %v6425_v45, 4 }
 0x90a   : > { %6319 = vrot.lane.b32.xlu2 %v6263_v29, %s8888_s25  ;;  %v6459_v29 = vsel %vm276_vm0, %v6458_v8, %v6417_v4  ;;  %v6501_v4 = vperm.slane %v6495_v44, %v8951_v5  ;;  %v6542_v2 = vrot.slane %v6513_v13, 4  ;;  %v6429_v8 = vperm.slane %v6421_v60, %v8976_v21 }
 0x90b   : > { %v6465_v58 = vsel %vm276_vm0, %v6449_v63, %v6464_v42  ;;  %v6520_v60 = vrot.slane %v6477_v24, 4  ;;  %v6532_v42 = vrot.slane %v6481_v40, 4 }
 0x90c   : > { %v6543_v62 = vsel %vm276_vm0, %v6542_v2, %v6501_v4  ;;  %v6544_v6 = vrot.slane %v6501_v4, 4  ;;  %v6467_v41 = vsel %vm276_vm0, %v6466_v12, %v6429_v8  ;;  %v6468_v45 = vrot.slane %v6429_v8, 4 }
 0x90d   : > { %v6549_v11 = vperm.slane %v6543_v62, %v8976_v21  ;;  %v6521_v27 = vsel %vm276_vm0, %v6489_v56, %v6520_v60 }
 0x90e   : > { %6583 = vrot.lane.b32.xlu1 %v6457_v7, %s8879_s9  ;;  %v6517_v7 = vperm.slane %v6509_v20, %v8951_v5  ;;  %v6545_v54 = vsel %vm276_vm0, %v6513_v13, %v6544_v6  ;;  %v6469_v63 = vsel %vm276_vm0, %v6453_v25, %v6468_v45  ;;  %v6529_v25 = vperm.slane %v6521_v27, %v8976_v21 }
 0x90f   : > { %v6566_v4 = vrot.slane %v6549_v11, 4  ;;  %v6553_v2 = vperm.slane %v6545_v54, %v8976_v21  ;;  %v6569_v24 = vsel %vm276_vm0, %v6549_v11, %v6568_v59 }
 0x910   : > { %6591 = vrot.lane.b32.xlu0 %v6461_v49, %s8877_s7  ;;  %v6493_v49 = vperm.slane %v6485_v52, %v8951_v5  ;;  %v6554_v44 = vrot.slane %v6517_v7, 4  ;;  %v6572_v6 = vrot.slane %v6529_v25, 4 }
 0x911   : > { %v6567_v50 = vsel %vm276_vm0, %v6566_v4, %v6525_v34 }
 0x912   : > { %6587 = vrot.lane.b32.xlu2 %v6459_v29, %s8876_s30  ;;  %v6505_v29 = vperm.slane %v6497_v47, %v8951_v5  ;;  %v6530_v10 = vrot.slane %v6493_v49, 4  ;;  %v6533_v47 = vsel %vm276_vm0, %v6493_v49, %v6532_v42 }
 0x914   : > { %v6555_v20 = vsel %vm276_vm0, %v6554_v44, %v6505_v29  ;;  %v6531_v12 = vsel %vm276_vm0, %v6530_v10, %v6481_v40  ;;  %v6556_v17 = vrot.slane %v6505_v29, 4  ;;  %v6573_v29 = vsel %vm276_vm0, %v6553_v2, %v6572_v6 }
 0x915   : > { %v6561_v13 = vperm.slane %v6555_v20, %v8976_v21  ;;  %v6537_v52 = vperm.slane %v6531_v12, %v8976_v21 }
 0x916   : > { %6595 = vrot.lane.b32.xlu1 %v6463_v30, %s8874_s28  ;;  %v6570_v30 = vrot.slane %v6553_v2, 4  ;;  %v6557_v34 = vsel %vm276_vm0, %v6517_v7, %v6556_v17 }
 0x917   : > { %v6574_v56 = vrot.slane %v6561_v13, 4  ;;  %v6576_v45 = vrot.slane %v6537_v52, 4  ;;  %v6565_v11 = vperm.slane %v6557_v34, %v8976_v21 }
 0x918   : > { %6603 = vrot.lane.b32.xlu0 %v6467_v41, %s8875_s29  ;;  %v6571_v62 = vsel %vm276_vm0, %v6570_v30, %v6529_v25 }
 0x919   : > { %v6575_v44 = vsel %vm276_vm0, %v6574_v56, %v6537_v52  ;;  %v6577_v19 = vsel %vm276_vm0, %v6561_v13, %v6576_v45  ;;  %v6578_v60 = vrot.slane %v6565_v11, 4  ;;  %v4302_v52 = vrot.slane %v10302_v18, 4  ;;  %v14275_v18 = vld [vmem:[#allocation66_spill] sm:$0xff] }
 0x91a   : > { %6599 = vrot.lane.b32.xlu2 %v6465_v58, %s8878_s8  ;;  %v6541_v58 = vperm.slane %v6533_v47, %v8976_v21 }
 0x91c   : > { %v12587_v8 = vpop.permute.xlu2 %5955  ;;  %v6580_v49 = vrot.slane %v6541_v58, 4  ;;  %v6579_v59 = vsel %vm276_vm0, %v6578_v60, %v6541_v58  ;;  %v14274_v58 = vld [vmem:[#allocation65_spill] sm:$0xff] }
 0x91e   : > { %6607 = vrot.lane.b32.xlu1 %v6469_v63, %s8880_s10  ;;  %v6581_v54 = vsel %vm276_vm0, %v6565_v11, %v6580_v49 }
 0x920   : > { %6615 = vrot.lane.b32.xlu0 %v6569_v24, %s8882_s17 }
 0x922   : > { %6611 = vrot.lane.b32.xlu2 %v6567_v50, %s8883_s18 }
 0x924   : > { %v12601_v41 = vpop.permute.xlu2 %5967 }
 0x926   : > { %6619 = vrot.lane.b32.xlu1 %v6571_v62, %s8886_s23  ;;  %v4303_v62 = vsel %vm276_vm0, %v4302_v52, %v10287_v31 }
 0x928   : > { %6627 = vrot.lane.b32.xlu0 %v6575_v44, %s8884_s19 }
 0x92a   : > { %6623 = vrot.lane.b32.xlu2 %v6573_v29, %s8885_s20  ;;  %v4490_v29 = vsel %vm360_vm1, %v4303_v62, %v14274_v58 }
 0x92b   : > { %v4491_v11 = vsel %vm362_vm2, %v4490_v29, %v14275_v18  ;;  %v14290_v29 = vld [vmem:[#allocation40_spill] sm:$0xff] }
 0x92c   : > { %v12612_v7 = vpop.permute.xlu2 %5979 }
 0x92e   : > { %6631 = vrot.lane.b32.xlu1 %v6577_v19, %s8889_s26 }
 0x930   : > { %v12617_v40 = vpop.permute.xlu1 %5951  ;;  %6639 = vrot.lane.b32.xlu0 %v6581_v54, %s8887_s24 }
 0x931   : > { %v6010_v19 = vsel %vm360_vm1, %v12349_v38, %v12617_v40  ;;  %v14279_v40 = vld [vmem:[#allocation68_spill] sm:$0xff] }
 0x932   : > { %6635 = vrot.lane.b32.xlu2 %v6579_v59, %s8888_s25  ;;  %v12621_v10 = vpop.permute.xlu0 %5959  ;;  %v14276_v59 = vld [vmem:[#allocation6_spill] sm:$0xff] }
 0x934   : > { %v12623_v20 = vpop.permute.xlu2 %5991 }
 0x936   : > { %6690 = vrot.lane.b32.xlu1 %v12323_v28, %s8872_s27 }
 0x938   : > { %v12627_v63 = vpop.permute.xlu1 %5963  ;;  %6694 = vrot.lane.b32.xlu0 %v12315_v55, %s8872_s27 }
 0x93a   : > { %6692 = vrot.lane.b32.xlu2 %v12379_v51, %s8872_s27  ;;  %v12633_v4 = vpop.permute.xlu0 %5971 }
 0x93c   : > { %v12635_v2 = vpop.permute.xlu2 %6003 }
 0x93e   : > { %6696 = vrot.lane.b32.xlu1 %v12358_v3, %s8872_s27 }
 0x940   : > { %v12639_v27 = vpop.permute.xlu1 %5975  ;;  %6700 = vrot.lane.b32.xlu0 %v12360_v14, %s8872_s27 }
 0x942   : > { %6698 = vrot.lane.b32.xlu2 %v12353_v15, %s8872_s27  ;;  %v12645_v28 = vpop.permute.xlu0 %5983 }
 0x944   : > { %v6272_v55 = vpop.permute.xlu2 %6271 }
 0x946   : > { %6702 = vrot.lane.b32.xlu1 %v12342_v33, %s8872_s27 }
 0x948   : > { %v12649_v51 = vpop.permute.xlu1 %5987  ;;  %6706 = vrot.lane.b32.xlu0 %v12303_v26, %s8872_s27 }
 0x94a   : > { %6704 = vrot.lane.b32.xlu2 %v12330_v22, %s8872_s27  ;;  %v12655_v3 = vpop.permute.xlu0 %5995 }
 0x94c   : > { %v6284_v14 = vpop.permute.xlu2 %6283 }
 0x94e   : > { %6708 = vrot.lane.b32.xlu1 %v12389_v35, %s8872_s27 }
 0x950   : > { %v12659_v15 = vpop.permute.xlu1 %5999  ;;  %6712 = vrot.lane.b32.xlu0 %v12368_v23, %s8872_s27 }
 0x952   : > { %6710 = vrot.lane.b32.xlu2 %v12311_v37, %s8872_s27  ;;  %v12665_v33 = vpop.permute.xlu0 %6007 }
 0x954   : > { %v6296_v26 = vpop.permute.xlu2 %6295 }
 0x956   : > { %6714 = vrot.lane.b32.xlu1 %v12318_v16, %s8872_s27 }
 0x958   : > { %v6268_v22 = vpop.permute.xlu1 %6267  ;;  %6718 = vrot.lane.b32.xlu0 %v12326_v9, %s8872_s27 }
 0x959   : > { %v6326_v23 = vsel %vm360_vm1, %v10933_v43, %v6268_v22 }
 0x95a   : > { %v6276_v24 = vpop.permute.xlu0 %6275  ;;  %6716 = vrot.lane.b32.xlu2 %v12370_v1, %s8872_s27  ;;  %v6327_v35 = vsel %vm362_vm2, %v6326_v23, %v6272_v55  ;;  %v2150_v55 = vrot.slane %v14276_v59, 4  ;;  %v14278_v23 = vld [vmem:[#allocation149_spill] sm:$0xff] }
 0x95b   : > { %v6328_v16 = vsel %vm364_vm3, %v6327_v35, %v6276_v24  ;;  %v6011_v24 = vsel %vm362_vm2, %v6010_v19, %v12587_v8  ;;  %v5250_v38 = vsel %vm360_vm1, %v14278_v23, %v11979_v48  ;;  %v14282_v8 = vld [vmem:[#allocation26_spill] sm:$0xff] }
 0x95c   : > { %v6308_v13 = vpop.permute.xlu2 %6307  ;;  %v14292_v19 = vld [vmem:[#allocation150_spill] sm:$0xff] }
 0x95e   : > { %6720 = vrot.lane.b32.xlu1 %v12340_v46, %s8872_s27 }
 0x960   : > { %v6280_v37 = vpop.permute.xlu1 %6279 }
 0x961   : > { %v6329_v12 = vsel %vm366_vm4, %v6328_v16, %v6280_v37  ;;  %v14280_v37 = vld [vmem:[#allocation153_spill] sm:$0xff] }
 0x962   : > { %v6288_v42 = vpop.permute.xlu0 %6287  ;;  %v6330_v9 = vsel %vm368_vm5, %v6329_v12, %v6284_v14  ;;  %v14277_v14 = vld [vmem:[#allocation59_spill] sm:$0xff]  ;;  %v5251_v16 = vsel %vm362_vm2, %v5250_v38, %v14280_v37  ;;  %v14281_v12 = vld [vmem:[#allocation5_spill] sm:$0xff] }
 0x963   : > { %v6331_v50 = vsel %vm370_vm6, %v6330_v9, %v6288_v42  ;;  %v2151_v42 = vsel %vm276_vm0, %v2150_v55, %v14281_v12  ;;  %v6012_v9 = vsel %vm364_vm3, %v6011_v24, %v12621_v10  ;;  %v14288_v10 = vld [vmem:[#allocation7_spill] sm:$0xff]  ;;  %v14296_v24 = vld [vmem:[#allocation29_spill] sm:$0xff] }
 0x964   : > { %v6320_v46 = vpop.permute.xlu2 %6319  ;;  %v6013_v48 = vsel %vm366_vm4, %v6012_v9, %v12627_v63  ;;  %v2338_v62 = vsel %vm360_vm1, %v2151_v42, %v14288_v10  ;;  %v14297_v38 = vld [vmem:[#allocation39_spill] sm:$0xff]  ;;  %v14300_v42 = vld [vmem:[#allocation46_spill] sm:$0xff] }
 0x965   : > { %v6014_v58 = vsel %vm368_vm5, %v6013_v48, %v12601_v41  ;;  %v14302_v48 = vld [vmem:[#allocation45_spill] sm:$0xff] }
 0x968   : > { %v6292_v1 = vpop.permute.xlu1 %6291 }
 0x969   : > { %v6332_v43 = vsel %vm372_vm7, %v6331_v50, %v6292_v1  ;;  %v14283_v1 = vld [vmem:[#allocation22_spill] sm:$0xff] }
 0x96a   : > { %v6333_v25 = vsel %vm2021_vm10, %v6332_v43, %v6296_v26  ;;  %v6300_v30 = vpop.permute.xlu0 %6299  ;;  %v4492_v26 = vsel %vm364_vm3, %v4491_v11, %v14277_v14  ;;  %v3098_v43 = vsel %vm360_vm1, %v14283_v1, %v14282_v8  ;;  %v14291_v11 = vld [vmem:[#allocation62_spill] sm:$0xff]  ;;  %v14295_v14 = vld [vmem:[#allocation27_spill] sm:$0xff] }
 0x96b   : > { %v6334_v17 = vsel %vm2023_vm11, %v6333_v25, %v6300_v30  ;;  %v4493_v35 = vsel %vm366_vm4, %v4492_v26, %v14279_v40  ;;  %v14284_v30 = vld [vmem:[#allocation43_spill] sm:$0xff]  ;;  %v6015_v26 = vsel %vm370_vm6, %v6014_v58, %v12633_v4  ;;  %v14308_v58 = vld [vmem:[#allocation41_spill] sm:$0xff] }
 0x96c   : > { %v6588_v45 = vpop.permute.xlu2 %6587  ;;  %v14301_v8 = vld [vmem:[#allocation155_spill] sm:$0xff] }
 0x970   : > { %v6304_v56 = vpop.permute.xlu1 %6303 }
 0x971   : > { %v6335_v47 = vsel %vm2025_vm12, %v6334_v17, %v6304_v56  ;;  %v14287_v56 = vld [vmem:[#allocation152_spill] sm:$0xff] }
 0x972   : > { %v6336_v6 = vsel %vm2027_vm13, %v6335_v47, %v6308_v13  ;;  %v6312_v34 = vpop.permute.xlu0 %6311  ;;  %v6454_v13 = vrot.slane %v12528_v0, 4  ;;  %v14286_v0 = vld [vmem:[#allocation69_spill] sm:$0xff]  ;;  %v5252_v47 = vsel %vm364_vm3, %v5251_v16, %v14287_v56  ;;  %v6016_v16 = vsel %vm372_vm7, %v6015_v26, %v12639_v27  ;;  %v14304_v27 = vld [vmem:[#allocation72_spill] sm:$0xff] }
 0x973   : > { %v6337_v44 = vsel %vm2029_vm14, %v6336_v6, %v6312_v34  ;;  %v4494_v52 = vsel %vm368_vm5, %v4493_v35, %v14286_v0  ;;  %v14298_v35 = vld [vmem:[#allocation71_spill] sm:$0xff] }
 0x974   : > { %v6600_v50 = vpop.permute.xlu2 %6599  ;;  %v6455_v6 = vsel %vm276_vm0, %v6454_v13, %v12508_v57  ;;  %v14294_v57 = vld [vmem:[#allocation156_spill] sm:$0xff]  ;;  %v14299_v13 = vld [vmem:[#allocation10_spill] sm:$0xff] }
 0x978   : > { %v6316_v49 = vpop.permute.xlu1 %6315 }
 0x979   : > { %v6338_v31 = vsel %vm2031_vm15, %v6337_v44, %v6316_v49  ;;  %v14289_v44 = vld [vmem:[#allocation23_spill] sm:$0xff]  ;;  %v4495_v49 = vsel %vm370_vm6, %v4494_v52, %v14291_v11  ;;  %v6017_v52 = vsel %vm2021_vm10, %v6016_v16, %v12612_v7 }
 0x97a   : > { %v6339_v60 = vsel %vm2033_vm8, %v6338_v31, %v6320_v46  ;;  %v6324_v54 = vpop.permute.xlu0 %6323  ;;  %v14285_v46 = vld [vmem:[#allocation38_spill] sm:$0xff]  ;;  %v3099_v63 = vsel %vm362_vm2, %v3098_v43, %v14289_v44  ;;  %v5253_v31 = vsel %vm366_vm4, %v5252_v47, %v14292_v19  ;;  %v4496_v37 = vsel %vm372_vm7, %v4495_v49, %v14298_v35  ;;  %v14305_v47 = vld [vmem:[#allocation8_spill] sm:$0xff]  ;;  %v14317_v35 = vld [vmem:[#allocation73_spill] sm:$0xff] }
 0x97b   : > { %v12704_v22 = vsel %vm2035_vm9, %v6339_v60, %v6324_v54  ;;  %v3858_v17 = vsel %vm360_vm1, %v14285_v46, %v14284_v30  ;;  %v14293_v60 = vld [vmem:[#allocation11_spill] sm:$0xff]  ;;  %v5254_v59 = vsel %vm368_vm5, %v5253_v31, %v14294_v57  ;;  %v3100_v41 = vsel %vm364_vm3, %v3099_v63, %v14295_v14  ;;  %v14303_v46 = vld [vmem:[#allocation24_spill] sm:$0xff]  ;;  %v14307_v44 = vld [vmem:[#allocation14_spill] sm:$0xff] }
 0x97c   : > { %v3859_v18 = vsel %vm362_vm2, %v3858_v17, %v14290_v29  ;;  %v2339_v54 = vsel %vm362_vm2, %v2338_v62, %v14293_v60  ;;  %v3101_v23 = vsel %vm366_vm4, %v3100_v41, %v14296_v24  ;;  %v5255_v4 = vsel %vm370_vm6, %v5254_v59, %v14301_v8  ;;  %v6612_v30 = vpop.permute.xlu2 %6611  ;;  %v14306_v62 = vld [vmem:[#allocation151_spill] sm:$0xff]  ;;  %v14310_v49 = vld [vmem:[#allocation30_spill] sm:$0xff]  ;;  %v14311_v31 = vld [vmem:[#allocation64_spill] sm:$0xff] }
 0x97d   : > { %v3860_v40 = vsel %vm364_vm3, %v3859_v18, %v14297_v38  ;;  %v2340_v12 = vsel %vm364_vm3, %v2339_v54, %v14299_v13  ;;  %v3102_v17 = vsel %vm368_vm5, %v3101_v23, %v14303_v46  ;;  %v4497_v0 = vsel %vm2021_vm10, %v4496_v37, %v14304_v27  ;;  %v14309_v18 = vld [vmem:[#allocation159_spill] sm:$0xff]  ;;  %v14312_v54 = vld [vmem:[#allocation32_spill] sm:$0xff]  ;;  %v14314_v41 = vld [vmem:[#allocation49_spill] sm:$0xff] }
 0x97e   : > { %v3861_v9 = vsel %vm366_vm4, %v3860_v40, %v14300_v42  ;;  %v2341_v10 = vsel %vm366_vm4, %v2340_v12, %v14305_v47  ;;  %v3103_v19 = vsel %vm370_vm6, %v3102_v17, %v14310_v49  ;;  %v4498_v60 = vsel %vm2023_vm11, %v4497_v0, %v14311_v31  ;;  %v14315_v24 = vld [vmem:[#allocation158_spill] sm:$0xff]  ;;  %v14316_v40 = vld [vmem:[#allocation48_spill] sm:$0xff]  ;;  %v14318_v13 = vld [vmem:[#allocation25_spill] sm:$0xff] }
 0x97f   : > { %v2342_v63 = vsel %vm368_vm5, %v2341_v10, %v14307_v44  ;;  %v3104_v57 = vsel %vm372_vm7, %v3103_v19, %v14312_v54  ;;  %v4499_v37 = vsel %vm2025_vm12, %v4498_v60, %v14317_v35  ;;  %v14319_v42 = vld [vmem:[#allocation9_spill] sm:$0xff]  ;;  %v14320_v8 = vld [vmem:[#allocation154_spill] sm:$0xff]  ;;  %v14330_v19 = vld [vmem:[#allocation15_spill] sm:$0xff] }
 0x980   : > { %v6584_v25 = vpop.permute.xlu1 %6583  ;;  %v14323_v17 = vld [vmem:[#allocation161_spill] sm:$0xff]  ;;  %v14331_v31 = vld [vmem:[#allocation51_spill] sm:$0xff]  ;;  %v14332_v54 = vld [vmem:[#allocation28_spill] sm:$0xff] }
 0x981   : > { %v6642_v55 = vsel %vm360_vm1, %v6455_v6, %v6584_v25  ;;  %v3862_v25 = vsel %vm368_vm5, %v3861_v9, %v14302_v48  ;;  %v14325_v10 = vld [vmem:[#allocation33_spill] sm:$0xff] }
 0x982   : > { %v6592_v34 = vpop.permute.xlu0 %6591  ;;  %v6643_v1 = vsel %vm362_vm2, %v6642_v55, %v6588_v45  ;;  %v5256_v45 = vsel %vm372_vm7, %v5255_v4, %v14306_v62  ;;  %v3863_v29 = vsel %vm370_vm6, %v3862_v25, %v14308_v58  ;;  %v14313_v55 = vld [vmem:[#allocation13_spill] sm:$0xff]  ;;  %v14322_v25 = vld [vmem:[#allocation74_spill] sm:$0xff] }
 0x983   : > { %v6644_v6 = vsel %vm364_vm3, %v6643_v1, %v6592_v34  ;;  %v5257_v11 = vsel %vm2021_vm10, %v5256_v45, %v14309_v18  ;;  %v6018_v34 = vsel %vm2023_vm11, %v6017_v52, %v12645_v28  ;;  %v2343_v14 = vsel %vm370_vm6, %v2342_v63, %v14313_v55  ;;  %v14324_v52 = vld [vmem:[#allocation17_spill] sm:$0xff]  ;;  %v14326_v45 = vld [vmem:[#allocation34_spill] sm:$0xff]  ;;  %v14327_v63 = vld [vmem:[#allocation52_spill] sm:$0xff] }
 0x984   : > { %v6019_v59 = vsel %vm2025_vm12, %v6018_v34, %v12649_v51  ;;  %v3864_v26 = vsel %vm372_vm7, %v3863_v29, %v14314_v41  ;;  %v5258_v23 = vsel %vm2023_vm11, %v5257_v11, %v14315_v24  ;;  %v3105_v51 = vsel %vm2021_vm10, %v3104_v57, %v14318_v13  ;;  %v6624_v0 = vpop.permute.xlu2 %6623  ;;  %v14328_v29 = vld [vmem:[#allocation67_spill] sm:$0xff]  ;;  %v14329_v11 = vld [vmem:[#allocation160_spill] sm:$0xff] }
 0x985   : > { %v3865_v28 = vsel %vm2021_vm10, %v3864_v26, %v14316_v40  ;;  %v6020_v12 = vsel %vm2027_vm13, %v6019_v59, %v12623_v20  ;;  %v2344_v9 = vsel %vm372_vm7, %v2343_v14, %v14319_v42  ;;  %v5259_v4 = vsel %vm2025_vm12, %v5258_v23, %v14320_v8  ;;  %v14333_v59 = vld [vmem:[#allocation76_spill] sm:$0xff]  ;;  %v14334_v14 = vld [vmem:[#allocation157_spill] sm:$0xff]  ;;  %v14337_v40 = vld [vmem:[#allocation163_spill] sm:$0xff] }
 0x986   : > { %v4500_v46 = vsel %vm2027_vm13, %v4499_v37, %v14322_v25  ;;  %v5260_v27 = vsel %vm2027_vm13, %v5259_v4, %v14323_v17  ;;  %v2345_v47 = vsel %vm2021_vm10, %v2344_v9, %v14324_v52  ;;  %v3106_v62 = vsel %vm2023_vm11, %v3105_v51, %v14325_v10  ;;  %v14335_v26 = vld [vmem:[#allocation12_spill] sm:$0xff]  ;;  %v14338_v37 = vld [vmem:[#allocation19_spill] sm:$0xff]  ;;  %v14344_v17 = vld [vmem:[#allocation18_spill] sm:$0xff] }
 0x987   : > { %v4501_v18 = vsel %vm2029_vm14, %v4500_v46, %v14328_v29  ;;  %v14336_v23 = vld [vmem:[#allocation44_spill] sm:$0xff]  ;;  %v14339_v51 = vld [vmem:[#allocation35_spill] sm:$0xff] }
 0x988   : > { %v6596_v43 = vpop.permute.xlu1 %6595  ;;  %v4502_v55 = vsel %vm2031_vm15, %v4501_v18, %v14333_v59  ;;  %v14340_v42 = vld [vmem:[#allocation75_spill] sm:$0xff]  ;;  %v14341_v8 = vld [vmem:[#allocation36_spill] sm:$0xff] }
 0x989   : > { %v6645_v7 = vsel %vm366_vm4, %v6644_v6, %v6596_v43  ;;  %v14321_v43 = vld [vmem:[#allocation42_spill] sm:$0xff]  ;;  %v3107_v6 = vsel %vm2025_vm12, %v3106_v62, %v14326_v45  ;;  %v4503_v9 = vsel %vm2033_vm8, %v4502_v55, %v14340_v42  ;;  %v14347_v62 = vld [vmem:[#allocation31_spill] sm:$0xff]  ;;  %v14352_v55 = vld [vmem:[#allocation20_spill] sm:$0xff] }
 0x98a   : > { %v6604_v56 = vpop.permute.xlu0 %6603  ;;  %v6646_v38 = vsel %vm368_vm5, %v6645_v7, %v6600_v50  ;;  %v3866_v48 = vsel %vm2023_vm11, %v3865_v28, %v14321_v43  ;;  %v5261_v7 = vsel %vm2029_vm14, %v5260_v27, %v14329_v11  ;;  %v3108_v57 = vsel %vm2027_vm13, %v3107_v6, %v14332_v54  ;;  %v14343_v43 = vld [vmem:[#allocation162_spill] sm:$0xff]  ;;  %v14350_v11 = vld [vmem:[#allocation21_spill] sm:$0xff] }
 0x98b   : > { %v6647_v50 = vsel %vm370_vm6, %v6646_v38, %v6604_v56  ;;  %v6021_v56 = vsel %vm2029_vm14, %v6020_v12, %v12655_v3  ;;  %v3867_v58 = vsel %vm2025_vm12, %v3866_v48, %v14327_v63  ;;  %v2346_v3 = vsel %vm2023_vm11, %v2345_v47, %v14330_v19  ;;  %v14345_v27 = vld [vmem:[#allocation54_spill] sm:$0xff] }
 0x98c   : > { %v6022_v44 = vsel %vm2031_vm15, %v6021_v56, %v12659_v15  ;;  %v3868_v60 = vsel %vm2027_vm13, %v3867_v58, %v14331_v31  ;;  %v5262_v41 = vsel %vm2031_vm15, %v5261_v7, %v14334_v14  ;;  %v2347_v24 = vsel %vm2025_vm12, %v2346_v3, %v14335_v26  ;;  %v6636_v25 = vpop.permute.xlu2 %6635  ;;  %v14346_v47 = vld [vmem:[#allocation70_spill] sm:$0xff]  ;;  %v14349_v58 = vld [vmem:[#allocation47_spill] sm:$0xff] }
 0x98d   : > { %v6023_v15 = vsel %vm2033_vm8, %v6022_v44, %v12635_v2  ;;  %v3869_v38 = vsel %vm2029_vm14, %v3868_v60, %v14336_v23  ;;  %v5263_v2 = vsel %vm2033_vm8, %v5262_v41, %v14337_v40  ;;  %v3109_v12 = vsel %vm2029_vm14, %v3108_v57, %v14339_v51  ;;  %v14351_v60 = vld [vmem:[#allocation37_spill] sm:$0xff] }
 0x98e   : > { %v6024_v13 = vsel %vm2035_vm9, %v6023_v15, %v12665_v33  ;;  %v3110_v4 = vsel %vm2031_vm15, %v3109_v12, %v14341_v8  ;;  %v5264_v48 = vsel %vm2035_vm9, %v5263_v2, %v14343_v43  ;;  %v4504_v10 = vsel %vm2035_vm9, %v4503_v9, %v14346_v47 }
 0x98f   : > { %v12883_v52 = vand.u32 4294901760, %v6024_v13  ;;  %v3111_v56 = vsel %vm2033_vm8, %v3110_v4, %v14347_v62  ;;  %v12889_v45 = vand.u32 4294901760, %v5264_v48 }
 0x990   : > { %v6608_v16 = vpop.permute.xlu1 %6607  ;;  %v3112_v15 = vsel %vm2035_vm9, %v3111_v56, %v14351_v60 }
 0x991   : > { %v6648_v20 = vsel %vm372_vm7, %v6647_v50, %v6608_v16  ;;  %v2348_v16 = vsel %vm2027_vm13, %v2347_v24, %v14338_v37  ;;  %v14342_v50 = vld [vmem:[#allocation55_spill] sm:$0xff]  ;;  %v12902_v19 = vsub.f32 %v6024_v13, %v12883_v52  ;;  %v12913_v59 = vsub.f32 %v5264_v48, %v12889_v45 }
 0x992   : > { %v6616_v1 = vpop.permute.xlu0 %6615  ;;  %v6649_v49 = vsel %vm2021_vm10, %v6648_v20, %v6612_v30  ;;  %v2349_v33 = vsel %vm2029_vm14, %v2348_v16, %v14344_v17  ;;  %v12917_v41 = vand.u32 4294901760, %v3112_v15 }
 0x993   : > { %v6650_v30 = vsel %vm2023_vm11, %v6649_v49, %v6616_v1  ;;  %v3870_v1 = vsel %vm2031_vm15, %v3869_v38, %v14342_v50  ;;  %v12899_v49 = vand.u32 4294901760, %v4504_v10  ;;  %v14096_v24 = vand.u32 4294901760, %v12902_v19 }
 0x994   : > { %v3871_v20 = vsel %vm2033_vm8, %v3870_v1, %v14345_v27  ;;  %v12928_v23 = vpop.permute.xlu2 %6692  ;;  %v12943_v37 = vsub.f32 %v3112_v15, %v12917_v41 }
 0x995   : > { %v3872_v29 = vsel %vm2035_vm9, %v3871_v20, %v14349_v58  ;;  %v12925_v26 = vsub.f32 %v4504_v10, %v12899_v49  ;;  %v8257_v51 = vsub.f32 %v12902_v19, %v14096_v24 }
 0x996   : > { %v12908_v54 = vand.u32 4294901760, %v3872_v29  ;;  %v14092_v43 = vand.u32 4294901760, %v12943_v37 }
 0x997   : > { %v14094_v12 = vand.u32 4294901760, %v12925_v26  ;;  %v8258_v50 = vand.u32 4294901760, %v8257_v51 }
 0x998   : > { %v6620_v34 = vpop.permute.xlu1 %6619  ;;  %v8281_v47 = vsub.f32 %v12943_v37, %v14092_v43 }
 0x999   : > { %v6651_v28 = vsel %vm2025_vm12, %v6650_v30, %v6620_v34  ;;  %v8269_v1 = vsub.f32 %v12925_v26, %v14094_v12 }
 0x99a   : > { %v6628_v35 = vpop.permute.xlu0 %6627  ;;  %v6652_v46 = vsel %vm2027_vm13, %v6651_v28, %v6624_v0  ;;  %v14348_v0 = vld [vmem:[#allocation16_spill] sm:$0xff]  ;;  %v12938_v28 = vsub.f32 %v3872_v29, %v12908_v54  ;;  %v8282_v56 = vand.u32 4294901760, %v8281_v47 }
 0x99b   : > { %v6653_v6 = vsel %vm2029_vm14, %v6652_v46, %v6628_v35  ;;  %v2350_v63 = vsel %vm2031_vm15, %v2349_v33, %v14348_v0  ;;  %v14095_v35 = vand.u32 4294901760, %v12913_v59  ;;  %v8270_v20 = vand.u32 4294901760, %v8269_v1 }
 0x99c   : > { %v2351_v7 = vsel %vm2033_vm8, %v2350_v63, %v14350_v11  ;;  %v14093_v4 = vand.u32 4294901760, %v12938_v28  ;;  %v6699_v33 = vpop.permute.xlu2 %6698 }
 0x99d   : > { %v2352_v14 = vsel %vm2035_vm9, %v2351_v7, %v14352_v55  ;;  %v8263_v9 = vsub.f32 %v12913_v59, %v14095_v35  ;;  %v6738_v29 = vrot.slane %v6699_v33, 4 }
 0x99e   : > { %v12930_v38 = vand.u32 4294901760, %v2352_v14  ;;  %v8275_v46 = vsub.f32 %v12938_v28, %v14093_v4 }
 0x9a0   : > { %v6632_v44 = vpop.permute.xlu1 %6631  ;;  %14353 = vst [vmem:[#allocation65_spill] sm:$0xff] %v12930_v38  ;;  %v12963_v8 = vsub.f32 %v2352_v14, %v12930_v38  ;;  %v8276_v10 = vand.u32 4294901760, %v8275_v46 }
 0x9a1   : > { %v6654_v18 = vsel %vm2031_vm15, %v6653_v6, %v6632_v44 }
 0x9a2   : > { %v6655_v3 = vsel %vm2033_vm8, %v6654_v18, %v6636_v25  ;;  %v6640_v31 = vpop.permute.xlu0 %6639  ;;  %v8264_v25 = vand.u32 4294901760, %v8263_v9  ;;  %v14091_v17 = vand.u32 4294901760, %v12963_v8 }
 0x9a3   : > { %v6656_v34 = vsel %vm2035_vm9, %v6655_v3, %v6640_v31 }
 0x9a4   : > { %v12910_v57 = vand.u32 4294901760, %v6656_v34  ;;  %v8287_v62 = vsub.f32 %v12963_v8, %v14091_v17  ;;  %v12995_v63 = vpop.permute.xlu2 %6704 }
 0x9a6   : > { %v12920_v30 = vsub.f32 %v6656_v34, %v12910_v57  ;;  %8208 = vmatpush.msrb.mxu2 %v12910_v57  ;;  %8404 = vmatpush.msra.mxu1 %v12910_v57  ;;  %v8288_v44 = vand.u32 4294901760, %v8287_v62 }
 0x9a8   : > { %v12932_v40 = vpop.permute.xlu1 %6690  ;;  %8210 = vmatpush.msrb.mxu2 %v12883_v52  ;;  %8351 = vmatpush.msra.mxu0 %v12920_v30  ;;  %v14097_v2 = vand.u32 4294901760, %v12920_v30 }
 0x9a9   : > { %8406 = vmatpush.msra.mxu1 %v12883_v52  ;;  %v6739_v7 = vsel %vm276_vm0, %v6738_v29, %v12932_v40  ;;  %v6740_v31 = vrot.slane %v12932_v40, 4 }
 0x9aa   : > { %8212 = vmatpush.msrb.mxu2 %v12889_v45  ;;  %8354 = vmatpush.msra.mxu0 %v12902_v19  ;;  %v12947_v16 = vpop.permute.xlu0 %6694  ;;  %v8251_v13 = vsub.f32 %v12920_v30, %v14097_v2  ;;  %v6745_v15 = vperm.slane %v6739_v7, %v8951_v5 }
 0x9ab   : > { %8408 = vmatpush.msra.mxu1 %v12889_v45  ;;  %v6741_v55 = vsel %vm276_vm0, %v6699_v33, %v6740_v31  ;;  %v6752_v14 = vrot.slane %v12947_v16, 4 }
 0x9ac   : > { %8214 = vmatpush.msrb.mxu2 %v12899_v49  ;;  %8357 = vmatpush.msra.mxu0 %v12913_v59  ;;  %v8252_v42 = vand.u32 4294901760, %v8251_v13  ;;  %v6711_v34 = vpop.permute.xlu2 %6710  ;;  %v6788_v9 = vrot.slane %v6745_v15, 4 }
 0x9ad   : > { %8410 = vmatpush.msra.mxu1 %v12899_v49  ;;  %v6776_v1 = vrot.slane %v6711_v34, 4 }
 0x9ae   : > { %8216 = vmatpush.msrb.mxu2 %v12908_v54  ;;  %8253 = vmatpush.msrb.mxu3 %v8252_v42  ;;  %v6862_v42 = vrot.slane %v12995_v63, 4 }
 0x9af   : > { %8360 = vmatpush.msra.mxu0 %v12925_v26  ;;  %8412 = vmatpush.msra.mxu1 %v12908_v54 }
 0x9b0   : > { %v12974_v48 = vpop.permute.xlu1 %6696  ;;  %8218 = vmatpush.msrb.mxu2 %v12917_v41  ;;  %8259 = vmatpush.msrb.mxu3 %v8258_v50 }
 0x9b1   : > { %8363 = vmatpush.msra.mxu0 %v12938_v28  ;;  %8414 = vmatpush.msra.mxu1 %v12917_v41 }
 0x9b2   : > { %8265 = vmatpush.msrb.mxu3 %v8264_v25  ;;  %v12983_v27 = vpop.permute.xlu0 %6700  ;;  %8220 = vmatpush.msrb.mxu2 %v12930_v38 }
 0x9b3   : > { %8366 = vmatpush.msra.mxu0 %v12943_v37  ;;  %8416 = vmatpush.msra.mxu1 %v12930_v38  ;;  %v6850_v47 = vrot.slane %v12983_v27, 4 }
 0x9b4   : > { %8271 = vmatpush.msrb.mxu3 %v8270_v20  ;;  %v6749_v20 = vperm.slane %v6741_v55, %v8951_v5  ;;  %v6717_v31 = vpop.permute.xlu2 %6716 }
 0x9b5   : > { %8369 = vmatpush.msra.mxu0 %v12963_v8 }
 0x9b6   : > { %8277 = vmatpush.msrb.mxu3 %v8276_v10 }
 0x9b8   : > { %v6703_v6 = vpop.permute.xlu1 %6702  ;;  %8283 = vmatpush.msrb.mxu3 %v8282_v56 }
 0x9b9   : > { %v6750_v58 = vrot.slane %v6703_v6, 4  ;;  %v6753_v25 = vsel %vm276_vm0, %v6703_v6, %v6752_v14 }
 0x9ba   : > { %v6707_v0 = vpop.permute.xlu0 %6706  ;;  %8289 = vmatpush.msrb.mxu3 %v8288_v44  ;;  %v6761_v6 = vperm.slane %v6753_v25, %v8951_v5 }
 0x9bb   : > { %v6751_v18 = vsel %vm276_vm0, %v6750_v58, %v12947_v16  ;;  %v6764_v51 = vrot.slane %v6707_v0, 4 }
 0x9bc   : > { %v6757_v60 = vperm.slane %v6751_v18, %v8951_v5  ;;  %v6798_v25 = vrot.slane %v6761_v6, 4 }
 0x9be   : > { %v6786_v13 = vrot.slane %v6757_v60, 4  ;;  %v6789_v16 = vsel %vm276_vm0, %v6757_v60, %v6788_v9 }
 0x9bf   : > { %v6797_v14 = vperm.slane %v6789_v16, %v8976_v21 }
 0x9c0   : > { %v12999_v11 = vpop.permute.xlu1 %6708  ;;  %v6787_v58 = vsel %vm276_vm0, %v6786_v13, %v6745_v15  ;;  %v6800_v15 = vrot.slane %v6749_v20, 4  ;;  %v6863_v13 = vsel %vm276_vm0, %v6862_v42, %v12974_v48 }
 0x9c1   : > { %v13027_v9 = vperm.slane %v6787_v58, %v8976_v21 }
 0x9c2   : > { %v13003_v3 = vpop.permute.xlu0 %6712 }
 0x9c3   : > { %v6888_v16 = vrot.slane %v13003_v3, 4 }
 0x9c8   : > { %v6715_v50 = vpop.permute.xlu1 %6714 }
 0x9c9   : > { %v6762_v46 = vrot.slane %v6715_v50, 4  ;;  %v6765_v40 = vsel %vm276_vm0, %v6715_v50, %v6764_v51  ;;  %v6851_v50 = vsel %vm276_vm0, %v6850_v47, %v12928_v23  ;;  %v6836_v47 = vrot.slane %v13027_v9, 4 }
 0x9ca   : > { %v6773_v33 = vperm.slane %v6765_v40, %v8951_v5  ;;  %v6719_v10 = vpop.permute.xlu0 %6718 }
 0x9cb   : > { %v6763_v62 = vsel %vm276_vm0, %v6762_v46, %v6707_v0  ;;  %v6774_v56 = vrot.slane %v6719_v10, 4  ;;  %v6777_v44 = vsel %vm276_vm0, %v6719_v10, %v6776_v1 }
 0x9cc   : > { %v6769_v29 = vperm.slane %v6763_v62, %v8951_v5  ;;  %v6824_v18 = vrot.slane %v6773_v33, 4  ;;  %v6785_v7 = vperm.slane %v6777_v44, %v8951_v5  ;;  %v6840_v44 = vrot.slane %v6797_v14, 4 }
 0x9cd   : > { %v6775_v55 = vsel %vm276_vm0, %v6774_v56, %v6711_v34  ;;  %v6874_v34 = vrot.slane %v6717_v31, 4 }
 0x9ce   : > { %v6812_v60 = vrot.slane %v6769_v29, 4  ;;  %v6781_v0 = vperm.slane %v6775_v55, %v8951_v5  ;;  %v6822_v51 = vrot.slane %v6785_v7, 4  ;;  %v6825_v1 = vsel %vm276_vm0, %v6785_v7, %v6824_v18 }
 0x9cf   : > { %v13038_v58 = vperm.slane %v6825_v1, %v8976_v21  ;;  %v6799_v1 = vsel %vm276_vm0, %v6798_v25, %v6749_v20  ;;  %v6801_v20 = vsel %vm276_vm0, %v6761_v6, %v6800_v15 }
 0x9d0   : > { %v6810_v46 = vrot.slane %v6781_v0, 4  ;;  %v6721_v40 = vpop.permute.xlu1 %6720  ;;  %v6813_v10 = vsel %vm276_vm0, %v6781_v0, %v6812_v60  ;;  %v6823_v18 = vsel %vm276_vm0, %v6822_v51, %v6773_v33  ;;  %v6809_v6 = vperm.slane %v6801_v20, %v8976_v21 }
 0x9d1   : > { %v6886_v62 = vrot.slane %v6721_v40, 4  ;;  %v6821_v56 = vperm.slane %v6813_v10, %v8976_v21  ;;  %v6869_v10 = vperm.slane %v6863_v13, %v8951_v5  ;;  %v6889_v33 = vsel %vm276_vm0, %v6721_v40, %v6888_v16 }
 0x9d2   : > { %v6811_v42 = vsel %vm276_vm0, %v6810_v46, %v6769_v29  ;;  %v6875_v29 = vsel %vm276_vm0, %v6874_v34, %v12999_v11  ;;  %v6857_v13 = vperm.slane %v6851_v50, %v8951_v5  ;;  %v6864_v34 = vrot.slane %v12974_v48, 4 }
 0x9d3   : > { %v6887_v7 = vsel %vm276_vm0, %v6886_v62, %v13003_v3  ;;  %v6841_v55 = vsel %vm276_vm0, %v6821_v56, %v6840_v44  ;;  %v6838_v60 = vrot.slane %v6821_v56, 4  ;;  %v13047_v0 = vperm.slane %v6811_v42, %v8976_v21 }
 0x9d4   : > { %v6893_v46 = vperm.slane %v6887_v7, %v8951_v5  ;;  %6971 = vrot.lane.b32.xlu1 %v6841_v55, %s8877_s7  ;;  %v6829_v62 = vperm.slane %v6823_v18, %v8976_v21  ;;  %v6876_v40 = vrot.slane %v12999_v11, 4  ;;  %v6805_v16 = vperm.slane %v6799_v1, %v8976_v21 }
 0x9d5   : > { %v6839_v3 = vsel %vm276_vm0, %v6838_v60, %v6797_v14  ;;  %v6837_v51 = vsel %vm276_vm0, %v13047_v0, %v6836_v47  ;;  %v6846_v14 = vrot.slane %v13038_v58, 4  ;;  %v6898_v56 = vrot.slane %v6869_v10, 4 }
 0x9d6   : > { %v6922_v25 = vrot.slane %v6893_v46, 4  ;;  %6967 = vrot.lane.b32.xlu0 %v6839_v3, %s8876_s30  ;;  %6963 = vrot.lane.b32.xlu2 %v6837_v51, %s8879_s9  ;;  %v6881_v44 = vperm.slane %v6875_v29, %v8951_v5  ;;  %v6897_v50 = vperm.slane %v6889_v33, %v8951_v5  ;;  %v6842_v15 = vrot.slane %v6829_v62, 4 }
 0x9d7   : > { %v6899_v42 = vsel %vm276_vm0, %v6898_v56, %v6857_v13  ;;  %v6865_v48 = vsel %vm276_vm0, %v12995_v63, %v6864_v34  ;;  %v6877_v11 = vsel %vm276_vm0, %v6717_v31, %v6876_v40  ;;  %v6847_v18 = vsel %vm276_vm0, %v6846_v14, %v6809_v6 }
 0x9d8   : > { %v6923_v47 = vsel %vm276_vm0, %v6922_v25, %v6881_v44  ;;  %v6844_v7 = vrot.slane %v6805_v16, 4  ;;  %v6852_v55 = vrot.slane %v12928_v23, 4  ;;  %v6934_v60 = vrot.slane %v6897_v50, 4 }
 0x9d9   : > { %v6843_v29 = vsel %vm276_vm0, %v6842_v15, %v6805_v16  ;;  %v6905_v33 = vperm.slane %v6899_v42, %v8976_v21  ;;  %v6929_v3 = vperm.slane %v6923_v47, %v8976_v21  ;;  %v6873_v63 = vperm.slane %v6865_v48, %v8951_v5 }
 0x9da   : > { %v6845_v1 = vsel %vm276_vm0, %v6829_v62, %v6844_v7  ;;  %v6885_v31 = vperm.slane %v6877_v11, %v8951_v5  ;;  %v6900_v23 = vrot.slane %v6857_v13, 4  ;;  %v6924_v51 = vrot.slane %v6881_v44, 4 }
 0x9db   : > { %v6853_v62 = vsel %vm276_vm0, %v12983_v27, %v6852_v55  ;;  %v6948_v25 = vrot.slane %v6905_v33, 4  ;;  %v6946_v34 = vrot.slane %v6929_v3, 4  ;;  %v6910_v40 = vrot.slane %v6873_v63, 4 }
 0x9dc   : > { %6983 = vrot.lane.b32.xlu1 %v6847_v18, %s8875_s29  ;;  %v6935_v20 = vsel %vm276_vm0, %v6934_v60, %v6885_v31  ;;  %v6925_v14 = vsel %vm276_vm0, %v6893_v46, %v6924_v51  ;;  %v6848_v56 = vrot.slane %v6809_v6, 4  ;;  %v6861_v42 = vperm.slane %v6853_v62, %v8951_v5 }
 0x9dd   : > { %v6949_v16 = vsel %vm276_vm0, %v6929_v3, %v6948_v25  ;;  %v6941_v15 = vperm.slane %v6935_v20, %v8976_v21  ;;  %v6901_v13 = vsel %vm276_vm0, %v6869_v10, %v6900_v23  ;;  %v6947_v44 = vsel %vm276_vm0, %v6946_v34, %v6905_v33  ;;  %v7422_v25 = vld [vmem:[#allocation2 + $0x32] sm:$0xff]  ;;  %v7420_v34 = vld [vmem:[#allocation2 + $0x1a] sm:$0xff] }
 0x9de   : > { %6979 = vrot.lane.b32.xlu0 %v6845_v1, %s8878_s8  ;;  %6975 = vrot.lane.b32.xlu2 %v6843_v29, %s8874_s28  ;;  %v6849_v27 = vsel %vm276_vm0, %v13038_v58, %v6848_v56  ;;  %v6933_v47 = vperm.slane %v6925_v14, %v8976_v21  ;;  %v6911_v46 = vsel %vm276_vm0, %v6910_v40, %v6861_v42  ;;  %v6936_v11 = vrot.slane %v6885_v31, 4  ;;  %v7428_v40 = vld [vmem:[#allocation2 + $0x7a] sm:$0xff]  ;;  %v7426_v14 = vld [vmem:[#allocation2 + $0x62] sm:$0xff]  ;;  %v7425_v56 = vld [vmem:[#allocation2 + $0x52] sm:$0xff] }
 0x9df   : > { %v6954_v6 = vrot.slane %v6941_v15, 4  ;;  %v6909_v48 = vperm.slane %v6901_v13, %v8976_v21  ;;  %v6917_v18 = vperm.slane %v6911_v46, %v8976_v21  ;;  %v6912_v60 = vrot.slane %v6861_v42, 4  ;;  %v7418_v42 = vld [vmem:[#allocation2 + $0x2] sm:$0xff] }
 0x9e0   : > { %v6950_v10 = vrot.slane %v6933_v47, 4  ;;  %v6937_v7 = vsel %vm276_vm0, %v6897_v50, %v6936_v11  ;;  %v7424_v50 = vld [vmem:[#allocation2 + $0x4a] sm:$0xff]  ;;  %v7429_v46 = vld [vmem:[#allocation2 + $0x82] sm:$0xff]  ;;  %v7423_v11 = vld [vmem:[#allocation2 + $0x3a] sm:$0xff] }
 0x9e1   : > { %v6955_v55 = vsel %vm276_vm0, %v6954_v6, %v6917_v18  ;;  %v6952_v58 = vrot.slane %v6909_v48, 4  ;;  %v6945_v1 = vperm.slane %v6937_v7, %v8976_v21  ;;  %v6913_v3 = vsel %vm276_vm0, %v6873_v63, %v6912_v60  ;;  %v7430_v63 = vld [vmem:[#allocation2 + $0x92] sm:$0xff]  ;;  %v7419_v6 = vld [vmem:[#allocation2 + $0xa] sm:$0xff] }
 0x9e2   : > { %v6951_v33 = vsel %vm276_vm0, %v6950_v10, %v6909_v48  ;;  %v6921_v23 = vperm.slane %v6913_v3, %v8976_v21  ;;  %v6956_v51 = vrot.slane %v6917_v18, 4  ;;  %v7427_v48 = vld [vmem:[#allocation2 + $0x6a] sm:$0xff]  ;;  %v7810_v10 = vld [vmem:[%s9414_s14 + $0x92] sm:$0xff]  ;;  %v6834_v60 = vrot.slane %v13047_v0, 4  ;;  %v7808_v3 = vld [vmem:[%s9414_s14 + $0x7a] sm:$0xff] }
 0x9e3   : > { %v6953_v29 = vsel %vm276_vm0, %v6933_v47, %v6952_v58  ;;  %v6958_v31 = vrot.slane %v6945_v1, 4  ;;  %v7431_v47 = vld [vmem:[#allocation2 + $0x9a] sm:$0xff]  ;;  %v7044_v18 = vld [vmem:[%s9414_s14 + $0x4a] sm:$0xff] }
 0x9e4   : > { %6995 = vrot.lane.b32.xlu1 %v6949_v16, %s8882_s17  ;;  %v6957_v62 = vsel %vm276_vm0, %v6941_v15, %v6956_v51  ;;  %v7432_v16 = vld [vmem:[#allocation2 + $0xaa] sm:$0xff]  ;;  %v7433_v15 = vld [vmem:[#allocation2 + $0xb2] sm:$0xff]  ;;  %v6960_v13 = vrot.slane %v6921_v23, 4  ;;  %v7800_v58 = vld [vmem:[%s9414_s14 + $0x1a] sm:$0xff] }
 0x9e5   : > { %v6959_v20 = vsel %vm276_vm0, %v6958_v31, %v6921_v23  ;;  %v7812_v7 = vld [vmem:[%s9414_s14 + $0xaa] sm:$0xff]  ;;  %v7806_v31 = vld [vmem:[%s9414_s14 + $0x62] sm:$0xff] }
 0x9e6   : > { %6991 = vrot.lane.b32.xlu0 %v6947_v44, %s8883_s18  ;;  %6987 = vrot.lane.b32.xlu2 %v6849_v27, %s8880_s10  ;;  %v13130_v44 = vsel %vm276_vm0, %v6945_v1, %v6960_v13  ;;  %v7421_v27 = vld [vmem:[#allocation2 + $0x22] sm:$0xff] }
 0x9ec   : > { %7007 = vrot.lane.b32.xlu1 %v6955_v55, %s8884_s19  ;;  %v7802_v55 = vld [vmem:[%s9414_s14 + $0x32] sm:$0xff] }
 0x9ee   : > { %7003 = vrot.lane.b32.xlu0 %v6953_v29, %s8885_s20  ;;  %6999 = vrot.lane.b32.xlu2 %v6951_v33, %s8886_s23  ;;  %v6835_v29 = vsel %vm276_vm0, %v6834_v60, %v13027_v9 }
 0x9f4   : > { %7462 = vrot.lane.b32.xlu1 %v7424_v50, %s8890_s13  ;;  %v7798_v50 = vld [vmem:[%s9414_s14 + $0x2] sm:$0xff] }
 0x9f6   : > { %7015 = vrot.lane.b32.xlu0 %v6959_v20, %s8888_s25  ;;  %7011 = vrot.lane.b32.xlu2 %v6957_v62, %s8889_s26 }
 0x9fc   : > { %7458 = vrot.lane.b32.xlu1 %v7422_v25, %s8890_s13 }
 0x9fe   : > { %7454 = vrot.lane.b32.xlu0 %v7420_v34, %s8890_s13  ;;  %7474 = vrot.lane.b32.xlu2 %v7430_v63, %s8890_s13  ;;  %v8859_v63 = vld [vmem:[%s9414_s14 + $0x52] sm:$0xff] }
 0xa04   : > { %7470 = vrot.lane.b32.xlu1 %v7428_v40, %s8890_s13 }
 0xa06   : > { %7466 = vrot.lane.b32.xlu0 %v7426_v14, %s8890_s13  ;;  %7478 = vrot.lane.b32.xlu2 %v7432_v16, %s8890_s13  ;;  %v8860_v14 = vld [vmem:[%s9414_s14 + $0xb2] sm:$0xff] }
 0xa0c   : > { %7464 = vrot.lane.b32.xlu1 %v7425_v56, %s8890_s13 }
 0xa0e   : > { %7480 = vrot.lane.b32.xlu0 %v7433_v15, %s8890_s13  ;;  %7450 = vrot.lane.b32.xlu2 %v7418_v42, %s8890_s13 }
 0xa14   : > { %7456 = vrot.lane.b32.xlu1 %v7421_v27, %s8890_s13  ;;  %v8861_v27 = vld [vmem:[%s9414_s14 + $0x9a] sm:$0xff] }
 0xa16   : > { %7476 = vrot.lane.b32.xlu0 %v7431_v47, %s8890_s13  ;;  %7472 = vrot.lane.b32.xlu2 %v7429_v46, %s8890_s13  ;;  %v8862_v46 = vld [vmem:[%s9414_s14 + $0x82] sm:$0xff] }
 0xa1c   : > { %7452 = vrot.lane.b32.xlu1 %v7419_v6, %s8890_s13 }
 0xa1e   : > { %7468 = vrot.lane.b32.xlu0 %v7427_v48, %s8890_s13  ;;  %7460 = vrot.lane.b32.xlu2 %v7423_v11, %s8890_s13 }
 0xa24   : > { %7082 = vrot.lane.b32.xlu1 %v7044_v18, %s8872_s27 }
 0xa26   : > { %7854 = vrot.lane.b32.xlu0 %v7810_v10, %s8890_s13  ;;  %7842 = vrot.lane.b32.xlu2 %v7044_v18, %s8890_s13  ;;  %v7803_v18 = vld [vmem:[%s9414_s14 + $0x3a] sm:$0xff] }
 0xa2c   : > { %7858 = vrot.lane.b32.xlu1 %v7812_v7, %s8890_s13 }
 0xa2e   : > { %7838 = vrot.lane.b32.xlu0 %v7802_v55, %s8890_s13  ;;  %7834 = vrot.lane.b32.xlu2 %v7800_v58, %s8890_s13 }
 0xa30   : > { %v6964_v1 = vpop.permute.xlu2 %6963 }
 0xa31   : > { %v7022_v33 = vsel %vm360_vm1, %v6835_v29, %v6964_v1 }
 0xa34   : > { %7850 = vrot.lane.b32.xlu1 %v7808_v3, %s8890_s13 }
 0xa36   : > { %7846 = vrot.lane.b32.xlu0 %v7806_v31, %s8890_s13  ;;  %7094 = vrot.lane.b32.xlu2 %v7810_v10, %s8872_s27 }
 0xa38   : > { %v6976_v0 = vpop.permute.xlu2 %6975 }
 0xa3c   : > { %7098 = vrot.lane.b32.xlu1 %v7812_v7, %s8872_s27  ;;  %v7801_v7 = vld [vmem:[%s9414_s14 + $0x22] sm:$0xff] }
 0xa3e   : > { %7078 = vrot.lane.b32.xlu0 %v7802_v55, %s8872_s27  ;;  %7074 = vrot.lane.b32.xlu2 %v7800_v58, %s8872_s27  ;;  %v7045_v58 = vld [vmem:[%s9414_s14 + $0x52] sm:$0xff] }
 0xa40   : > { %v6988_v9 = vpop.permute.xlu2 %6987 }
 0xa44   : > { %7090 = vrot.lane.b32.xlu1 %v7808_v3, %s8872_s27  ;;  %v7807_v3 = vld [vmem:[%s9414_s14 + $0x6a] sm:$0xff] }
 0xa46   : > { %v6972_v23 = vpop.permute.xlu1 %6971  ;;  %7086 = vrot.lane.b32.xlu0 %v7806_v31, %s8872_s27  ;;  %7830 = vrot.lane.b32.xlu2 %v7798_v50, %s8890_s13 }
 0xa48   : > { %v6968_v51 = vpop.permute.xlu0 %6967  ;;  %v7000_v20 = vpop.permute.xlu2 %6999 }
 0xa49   : > { %v7023_v62 = vsel %vm362_vm2, %v7022_v33, %v6968_v51 }
 0xa4a   : > { %v7024_v25 = vsel %vm364_vm3, %v7023_v62, %v6972_v23 }
 0xa4b   : > { %v7025_v34 = vsel %vm366_vm4, %v7024_v25, %v6976_v0  ;;  %v7051_v0 = vld [vmem:[%s9414_s14 + $0x9a] sm:$0xff]  ;;  %v7799_v25 = vld [vmem:[%s9414_s14 + $0xa] sm:$0xff] }
 0xa4c   : > { %7844 = vrot.lane.b32.xlu1 %v8859_v63, %s8890_s13 }
 0xa4e   : > { %v6984_v40 = vpop.permute.xlu1 %6983  ;;  %7860 = vrot.lane.b32.xlu0 %v8860_v14, %s8890_s13  ;;  %7070 = vrot.lane.b32.xlu2 %v7798_v50, %s8872_s27  ;;  %v7049_v50 = vld [vmem:[%s9414_s14 + $0x82] sm:$0xff] }
 0xa50   : > { %v6980_v16 = vpop.permute.xlu0 %6979  ;;  %v7012_v56 = vpop.permute.xlu2 %7011 }
 0xa51   : > { %v7026_v15 = vsel %vm368_vm5, %v7025_v34, %v6980_v16 }
 0xa52   : > { %v7027_v42 = vsel %vm370_vm6, %v7026_v15, %v6984_v40 }
 0xa53   : > { %v7028_v13 = vsel %vm372_vm7, %v7027_v42, %v6988_v9 }
 0xa54   : > { %7856 = vrot.lane.b32.xlu1 %v8861_v27, %s8890_s13 }
 0xa56   : > { %v6996_v47 = vpop.permute.xlu1 %6995  ;;  %7852 = vrot.lane.b32.xlu0 %v8862_v46, %s8890_s13  ;;  %7100 = vrot.lane.b32.xlu2 %v8860_v14, %s8872_s27 }
 0xa58   : > { %v6992_v6 = vpop.permute.xlu0 %6991  ;;  %v13181_v48 = vpop.permute.xlu2 %7474 }
 0xa59   : > { %v7029_v11 = vsel %vm2021_vm10, %v7028_v13, %v6992_v6 }
 0xa5a   : > { %v7030_v10 = vsel %vm2023_vm11, %v7029_v11, %v6996_v47 }
 0xa5b   : > { %v7031_v55 = vsel %vm2025_vm12, %v7030_v10, %v7000_v20 }
 0xa5c   : > { %7840 = vrot.lane.b32.xlu1 %v7803_v18, %s8890_s13 }
 0xa5e   : > { %v7008_v60 = vpop.permute.xlu1 %7007  ;;  %7836 = vrot.lane.b32.xlu0 %v7801_v7, %s8890_s13  ;;  %7084 = vrot.lane.b32.xlu2 %v7045_v58, %s8872_s27 }
 0xa60   : > { %v7004_v1 = vpop.permute.xlu0 %7003  ;;  %v7479_v29 = vpop.permute.xlu2 %7478 }
 0xa61   : > { %v7032_v33 = vsel %vm2027_vm13, %v7031_v55, %v7004_v1  ;;  %v7534_v6 = vrot.slane %v7479_v29, 4 }
 0xa62   : > { %v7033_v31 = vsel %vm2029_vm14, %v7032_v33, %v7008_v60 }
 0xa63   : > { %v7034_v9 = vsel %vm2031_vm15, %v7033_v31, %v7012_v56 }
 0xa64   : > { %7848 = vrot.lane.b32.xlu1 %v7807_v3, %s8890_s13 }
 0xa66   : > { %v7463_v23 = vpop.permute.xlu1 %7462  ;;  %7096 = vrot.lane.b32.xlu0 %v7051_v0, %s8872_s27  ;;  %7092 = vrot.lane.b32.xlu2 %v7049_v50, %s8872_s27 }
 0xa67   : > { %v7510_v63 = vrot.slane %v7463_v23, 4 }
 0xa68   : > { %v7016_v51 = vpop.permute.xlu0 %7015  ;;  %v7451_v20 = vpop.permute.xlu2 %7450 }
 0xa69   : > { %v13202_v62 = vsel %vm2033_vm8, %v7034_v9, %v7016_v51  ;;  %v7500_v11 = vrot.slane %v7451_v20, 4 }
 0xa6c   : > { %7832 = vrot.lane.b32.xlu1 %v7799_v25, %s8890_s13 }
 0xa6e   : > { %v7459_v34 = vpop.permute.xlu1 %7458  ;;  %7080 = vrot.lane.b32.xlu0 %v7803_v18, %s8872_s27  ;;  %7076 = vrot.lane.b32.xlu2 %v7801_v7, %s8872_s27  ;;  %v7522_v7 = vrot.slane %v13181_v48, 4 }
 0xa6f   : > { %v7498_v40 = vrot.slane %v7459_v34, 4  ;;  %v7501_v1 = vsel %vm276_vm0, %v7459_v34, %v7500_v11 }
 0xa70   : > { %v7455_v14 = vpop.permute.xlu0 %7454  ;;  %v13208_v16 = vpop.permute.xlu2 %7472 }
 0xa71   : > { %v7499_v56 = vsel %vm276_vm0, %v7498_v40, %v7451_v20  ;;  %v7511_v15 = vsel %vm276_vm0, %v7510_v63, %v7455_v14  ;;  %v7512_v27 = vrot.slane %v7455_v14, 4 }
 0xa72   : > { %v7505_v42 = vperm.slane %v7499_v56, %v8951_v5  ;;  %v7517_v13 = vperm.slane %v7511_v15, %v8951_v5 }
 0xa73   : > { %v7513_v55 = vsel %vm276_vm0, %v7463_v23, %v7512_v27 }
 0xa74   : > { %v7548_v47 = vrot.slane %v7505_v42, 4  ;;  %v7546_v46 = vrot.slane %v7517_v13, 4  ;;  %v7521_v23 = vperm.slane %v7513_v55, %v8951_v5 }
 0xa76   : > { %v7547_v18 = vsel %vm276_vm0, %v7546_v46, %v7505_v42  ;;  %v7471_v10 = vpop.permute.xlu1 %7470  ;;  %7072 = vrot.lane.b32.xlu0 %v7799_v25, %s8872_s27  ;;  %7088 = vrot.lane.b32.xlu2 %v7807_v3, %s8872_s27  ;;  %v7549_v33 = vsel %vm276_vm0, %v7517_v13, %v7548_v47  ;;  %v7509_v13 = vperm.slane %v7501_v1, %v8951_v5  ;;  %v7558_v46 = vrot.slane %v7521_v23, 4 }
 0xa77   : > { %v7535_v58 = vsel %vm276_vm0, %v7534_v6, %v7471_v10  ;;  %v7536_v60 = vrot.slane %v7471_v10, 4  ;;  %v13228_v20 = vperm.slane %v7547_v18, %v8976_v21  ;;  %v7557_v40 = vperm.slane %v7549_v33, %v8976_v21 }
 0xa78   : > { %v7541_v31 = vperm.slane %v7535_v58, %v8951_v5  ;;  %v7467_v0 = vpop.permute.xlu0 %7466  ;;  %v13223_v9 = vpop.permute.xlu2 %7460 }
 0xa79   : > { %v7537_v50 = vsel %vm276_vm0, %v7479_v29, %v7536_v60  ;;  %v7523_v3 = vsel %vm276_vm0, %v7522_v7, %v7467_v0  ;;  %v7524_v51 = vrot.slane %v7467_v0, 4  ;;  %v7596_v47 = vrot.slane %v13228_v20, 4 }
 0xa7a   : > { %v7545_v25 = vperm.slane %v7537_v50, %v8951_v5  ;;  %v7570_v34 = vrot.slane %v7541_v31, 4  ;;  %v7529_v63 = vperm.slane %v7523_v3, %v8951_v5  ;;  %v7600_v55 = vrot.slane %v7557_v40, 4 }
 0xa7b   : > { %v7525_v14 = vsel %vm276_vm0, %v13181_v48, %v7524_v51  ;;  %v7559_v3 = vsel %vm276_vm0, %v7558_v46, %v7509_v13 }
 0xa7c   : > { %v7582_v56 = vrot.slane %v7545_v25, 4  ;;  %v7533_v29 = vperm.slane %v7525_v14, %v8951_v5  ;;  %v7571_v15 = vsel %vm276_vm0, %v7570_v34, %v7529_v63  ;;  %v7572_v42 = vrot.slane %v7529_v63, 4 }
 0xa7d   : > { %v13240_v27 = vperm.slane %v7571_v15, %v8976_v21 }
 0xa7e   : > { %v7584_v6 = vrot.slane %v7533_v29, 4  ;;  %v7465_v11 = vpop.permute.xlu1 %7464  ;;  %v7573_v18 = vsel %vm276_vm0, %v7541_v31, %v7572_v42  ;;  %v7583_v48 = vsel %vm276_vm0, %v7582_v56, %v7533_v29  ;;  %v7560_v31 = vrot.slane %v7509_v13, 4 }
 0xa7f   : > { %v7597_v10 = vsel %vm276_vm0, %v13240_v27, %v7596_v47  ;;  %v7581_v7 = vperm.slane %v7573_v18, %v8976_v21  ;;  %v7589_v58 = vperm.slane %v7583_v48, %v8976_v21  ;;  %v7565_v56 = vperm.slane %v7559_v3, %v8976_v21 }
 0xa80   : > { %v7481_v60 = vpop.permute.xlu0 %7480  ;;  %7723 = vrot.lane.b32.xlu1 %v7597_v10, %s8879_s9  ;;  %v13250_v1 = vpop.permute.xlu2 %7842  ;;  %v7585_v33 = vsel %vm276_vm0, %v7545_v25, %v7584_v6  ;;  %v7561_v14 = vsel %vm276_vm0, %v7521_v23, %v7560_v31  ;;  %v7622_v15 = vrot.slane %v7465_v11, 4  ;;  %v7648_v18 = vrot.slane %v13208_v16, 4 }
 0xa81   : > { %v7601_v0 = vsel %vm276_vm0, %v7581_v7, %v7600_v55  ;;  %v7598_v50 = vrot.slane %v7581_v7, 4  ;;  %v7593_v51 = vperm.slane %v7585_v33, %v8976_v21  ;;  %v7602_v34 = vrot.slane %v7589_v58, 4 }
 0xa82   : > { %7731 = vrot.lane.b32.xlu0 %v7601_v0, %s8877_s7  ;;  %v7646_v42 = vrot.slane %v7481_v60, 4  ;;  %v7569_v6 = vperm.slane %v7561_v14, %v8976_v21  ;;  %v7604_v48 = vrot.slane %v7565_v56, 4  ;;  %v7610_v10 = vrot.slane %v13223_v9, 4 }
 0xa83   : > { %v7599_v63 = vsel %vm276_vm0, %v7598_v50, %v7557_v40  ;;  %v7606_v25 = vrot.slane %v7593_v51, 4  ;;  %v7603_v47 = vsel %vm276_vm0, %v7602_v34, %v7565_v56  ;;  %v7649_v50 = vsel %vm276_vm0, %v7481_v60, %v7648_v18 }
 0xa84   : > { %7727 = vrot.lane.b32.xlu2 %v7599_v63, %s8876_s30  ;;  %v7647_v7 = vsel %vm276_vm0, %v7646_v42, %v13208_v16  ;;  %v7605_v0 = vsel %vm276_vm0, %v7589_v58, %v7604_v48  ;;  %v7608_v31 = vrot.slane %v7569_v6, 4  ;;  %v7657_v60 = vperm.slane %v7649_v50, %v8951_v5 }
 0xa85   : > { %v7607_v23 = vsel %vm276_vm0, %v7606_v25, %v7569_v6  ;;  %v7653_v3 = vperm.slane %v7647_v7, %v8951_v5 }
 0xa86   : > { %v7457_v29 = vpop.permute.xlu1 %7456  ;;  %v7609_v25 = vsel %vm276_vm0, %v7593_v51, %v7608_v31 }
 0xa87   : > { %v7623_v40 = vsel %vm276_vm0, %v7622_v15, %v7457_v29  ;;  %v7624_v55 = vrot.slane %v7457_v29, 4 }
 0xa88   : > { %v7477_v13 = vpop.permute.xlu0 %7476  ;;  %7735 = vrot.lane.b32.xlu1 %v7603_v47, %s8874_s28  ;;  %v13264_v46 = vpop.permute.xlu2 %7834  ;;  %v7629_v33 = vperm.slane %v7623_v40, %v8951_v5 }
 0xa89   : > { %v7634_v63 = vrot.slane %v7477_v13, 4  ;;  %v7625_v16 = vsel %vm276_vm0, %v7465_v11, %v7624_v55 }
 0xa8a   : > { %7743 = vrot.lane.b32.xlu0 %v7607_v23, %s8875_s29  ;;  %v7658_v29 = vrot.slane %v7629_v33, 4  ;;  %v7682_v23 = vrot.slane %v7653_v3, 4  ;;  %v7633_v48 = vperm.slane %v7625_v16, %v8951_v5 }
 0xa8c   : > { %7739 = vrot.lane.b32.xlu2 %v7605_v0, %s8878_s8  ;;  %v7670_v16 = vrot.slane %v7633_v48, 4 }
 0xa8e   : > { %v7453_v34 = vpop.permute.xlu1 %7452 }
 0xa8f   : > { %v7611_v14 = vsel %vm276_vm0, %v7610_v10, %v7453_v34  ;;  %v7612_v56 = vrot.slane %v7453_v34, 4 }
 0xa90   : > { %v7617_v15 = vperm.slane %v7611_v14, %v8951_v5  ;;  %v7469_v58 = vpop.permute.xlu0 %7468  ;;  %7747 = vrot.lane.b32.xlu1 %v7609_v25, %s8880_s10  ;;  %v13283_v42 = vpop.permute.xlu2 %7094 }
 0xa91   : > { %v7613_v47 = vsel %vm276_vm0, %v13223_v9, %v7612_v56  ;;  %v7635_v6 = vsel %vm276_vm0, %v7634_v63, %v7469_v58  ;;  %v7636_v40 = vrot.slane %v7469_v58, 4  ;;  %v7694_v63 = vrot.slane %v7657_v60, 4 }
 0xa92   : > { %v7659_v51 = vsel %vm276_vm0, %v7658_v29, %v7617_v15  ;;  %v7660_v11 = vrot.slane %v7617_v15, 4  ;;  %v7641_v18 = vperm.slane %v7635_v6, %v8951_v5  ;;  %v7621_v55 = vperm.slane %v7613_v47, %v8951_v5 }
 0xa93   : > { %v7665_v10 = vperm.slane %v7659_v51, %v8976_v21  ;;  %v7637_v7 = vsel %vm276_vm0, %v7477_v13, %v7636_v40 }
 0xa94   : > { %v7645_v0 = vperm.slane %v7637_v7, %v8951_v5  ;;  %v7683_v9 = vsel %vm276_vm0, %v7682_v23, %v7641_v18  ;;  %v7684_v31 = vrot.slane %v7641_v18, 4  ;;  %v7661_v25 = vsel %vm276_vm0, %v7629_v33, %v7660_v11 }
 0xa95   : > { %v7689_v50 = vperm.slane %v7683_v9, %v8976_v21  ;;  %v7708_v34 = vrot.slane %v7665_v10, 4  ;;  %v7672_v58 = vrot.slane %v7621_v55, 4  ;;  %v7669_v23 = vperm.slane %v7661_v25, %v8976_v21 }
 0xa96   : > { %v7685_v14 = vsel %vm276_vm0, %v7653_v3, %v7684_v31  ;;  %v13299_v56 = vpop.permute.xlu1 %7082  ;;  %v7695_v40 = vsel %vm276_vm0, %v7694_v63, %v7645_v0  ;;  %v7671_v33 = vsel %vm276_vm0, %v7670_v16, %v7621_v55  ;;  %v7696_v51 = vrot.slane %v7645_v0, 4 }
 0xa97   : > { %v7709_v13 = vsel %vm276_vm0, %v7689_v50, %v7708_v34  ;;  %v7706_v29 = vrot.slane %v7689_v50, 4  ;;  %v7693_v15 = vperm.slane %v7685_v14, %v8976_v21  ;;  %v7701_v18 = vperm.slane %v7695_v40, %v8976_v21 }
 0xa98   : > { %v13304_v47 = vpop.permute.xlu0 %7854  ;;  %7755 = vrot.lane.b32.xlu0 %v7709_v13, %s8882_s17  ;;  %v13307_v6 = vpop.permute.xlu2 %7074  ;;  %v7890_v7 = vrot.slane %v13250_v1, 4  ;;  %v7677_v31 = vperm.slane %v7671_v33, %v8976_v21  ;;  %v7673_v34 = vsel %vm276_vm0, %v7633_v48, %v7672_v58  ;;  %v7697_v55 = vsel %vm276_vm0, %v7657_v60, %v7696_v51 }
 0xa99   : > { %v7707_v3 = vsel %vm276_vm0, %v7706_v29, %v7665_v10  ;;  %v7710_v11 = vrot.slane %v7693_v15, 4  ;;  %v7714_v50 = vrot.slane %v7701_v18, 4  ;;  %v7712_v10 = vrot.slane %v7669_v23, 4 }
 0xa9a   : > { %7751 = vrot.lane.b32.xlu2 %v7707_v3, %s8883_s18  ;;  %v7891_v0 = vsel %vm276_vm0, %v7890_v7, %v13264_v46  ;;  %v7681_v25 = vperm.slane %v7673_v34, %v8976_v21  ;;  %v7716_v13 = vrot.slane %v7677_v31, 4  ;;  %v7705_v58 = vperm.slane %v7697_v55, %v8976_v21 }
 0xa9b   : > { %v7711_v9 = vsel %vm276_vm0, %v7710_v11, %v7669_v23  ;;  %v7715_v14 = vsel %vm276_vm0, %v7714_v50, %v7677_v31  ;;  %v7713_v29 = vsel %vm276_vm0, %v7693_v15, %v7712_v10  ;;  %v7897_v60 = vperm.slane %v7891_v0, %v8951_v5 }
 0xa9c   : > { %7759 = vrot.lane.b32.xlu1 %v7711_v9, %s8886_s23  ;;  %v7720_v23 = vrot.slane %v7681_v25, 4  ;;  %v7717_v51 = vsel %vm276_vm0, %v7701_v18, %v7716_v13  ;;  %v7718_v15 = vrot.slane %v7705_v58, 4  ;;  %v7902_v31 = vrot.slane %v13304_v47, 4 }
 0xa9d   : > { %v7926_v7 = vrot.slane %v7897_v60, 4  ;;  %v7130_v18 = vrot.slane %v13299_v56, 4 }
 0xa9e   : > { %v7859_v63 = vpop.permute.xlu1 %7858  ;;  %v7721_v34 = vsel %vm276_vm0, %v7705_v58, %v7720_v23  ;;  %v7719_v13 = vsel %vm276_vm0, %v7718_v15, %v7681_v25 }
 0xa9f   : > { %v7914_v11 = vrot.slane %v7859_v63, 4 }
 0xaa0   : > { %v13325_v16 = vpop.permute.xlu0 %7838  ;;  %7767 = vrot.lane.b32.xlu0 %v7715_v14, %s8884_s19  ;;  %v13332_v40 = vpop.permute.xlu2 %7830 }
 0xaa1   : > { %v7878_v48 = vrot.slane %v13325_v16, 4 }
 0xaa2   : > { %7763 = vrot.lane.b32.xlu2 %v7713_v29, %s8885_s20 }
 0xaa3   : > { %v7879_v3 = vsel %vm276_vm0, %v7878_v48, %v13332_v40 }
 0xaa4   : > { %v7885_v33 = vperm.slane %v7879_v3, %v8951_v5  ;;  %7771 = vrot.lane.b32.xlu1 %v7717_v51, %s8889_s26 }
 0xaa6   : > { %v7851_v9 = vpop.permute.xlu1 %7850  ;;  %v7927_v10 = vsel %vm276_vm0, %v7926_v7, %v7885_v33  ;;  %v7928_v48 = vrot.slane %v7885_v33, 4 }
 0xaa7   : > { %v7915_v50 = vsel %vm276_vm0, %v7914_v11, %v7851_v9  ;;  %v13354_v23 = vperm.slane %v7927_v10, %v8976_v21  ;;  %v7916_v51 = vrot.slane %v7851_v9, 4 }
 0xaa8   : > { %v7921_v55 = vperm.slane %v7915_v50, %v8951_v5  ;;  %v7847_v0 = vpop.permute.xlu0 %7846  ;;  %7779 = vrot.lane.b32.xlu0 %v7721_v34, %s8887_s24  ;;  %v13351_v58 = vpop.permute.xlu2 %7070  ;;  %v7929_v50 = vsel %vm276_vm0, %v7897_v60, %v7928_v48  ;;  %v7880_v48 = vrot.slane %v13332_v40, 4 }
 0xaa9   : > { %v7903_v14 = vsel %vm276_vm0, %v7902_v31, %v7847_v0  ;;  %v7131_v31 = vsel %vm276_vm0, %v7130_v18, %v13307_v6  ;;  %v7904_v34 = vrot.slane %v7847_v0, 4  ;;  %v7976_v9 = vrot.slane %v13354_v23, 4 }
 0xaaa   : > { %v7950_v29 = vrot.slane %v7921_v55, 4  ;;  %v7909_v3 = vperm.slane %v7903_v14, %v8951_v5  ;;  %7775 = vrot.lane.b32.xlu2 %v7719_v13, %s8888_s25  ;;  %v7892_v14 = vrot.slane %v13264_v46, 4  ;;  %v7137_v18 = vperm.slane %v7131_v31, %v8951_v5 }
 0xaab   : > { %v7917_v13 = vsel %vm276_vm0, %v7859_v63, %v7916_v51  ;;  %v7937_v60 = vperm.slane %v7929_v50, %v8976_v21  ;;  %v7905_v46 = vsel %vm276_vm0, %v13304_v47, %v7904_v34 }
 0xaac   : > { %v7951_v11 = vsel %vm276_vm0, %v7950_v29, %v7909_v3  ;;  %v7952_v7 = vrot.slane %v7909_v3, 4  ;;  %7019 = vrot.lane.b32.xlu1 %v13130_v44, %s8887_s24  ;;  %v7166_v51 = vrot.slane %v7137_v18, 4  ;;  %v7893_v40 = vsel %vm276_vm0, %v13250_v1, %v7892_v14 }
 0xaad   : > { %v13362_v25 = vperm.slane %v7951_v11, %v8976_v21  ;;  %v7925_v11 = vperm.slane %v7917_v13, %v8951_v5  ;;  %v7913_v47 = vperm.slane %v7905_v46, %v8951_v5  ;;  %v7881_v13 = vsel %vm276_vm0, %v13325_v16, %v7880_v48 }
 0xaae   : > { %v7953_v33 = vsel %vm276_vm0, %v7921_v55, %v7952_v7  ;;  %v7099_v15 = vpop.permute.xlu1 %7098  ;;  %v7901_v16 = vperm.slane %v7893_v40, %v8951_v5 }
 0xaaf   : > { %v7961_v10 = vperm.slane %v7953_v33, %v8976_v21  ;;  %v7977_v55 = vsel %vm276_vm0, %v13362_v25, %v7976_v9  ;;  %v7154_v33 = vrot.slane %v7099_v15, 4  ;;  %v7980_v9 = vrot.slane %v7937_v60, 4 }
 0xab0   : > { %v13371_v44 = vpop.permute.xlu0 %7078  ;;  %v13387_v31 = vpop.permute.xlu2 %7100  ;;  %v7964_v48 = vrot.slane %v7913_v47, 4 }
 0xab1   : > { %v7118_v29 = vrot.slane %v13371_v44, 4  ;;  %v7978_v0 = vrot.slane %v7961_v10, 4  ;;  %v7981_v14 = vsel %vm276_vm0, %v7961_v10, %v7980_v9  ;;  %v7132_v10 = vrot.slane %v13307_v6, 4 }
 0xab2   : > { %8103 = vrot.lane.b32.xlu2 %v7977_v55, %s8879_s9  ;;  %v7142_v55 = vrot.slane %v13283_v42, 4 }
 0xab3   : > { %v7119_v63 = vsel %vm276_vm0, %v7118_v29, %v13351_v58  ;;  %v7979_v3 = vsel %vm276_vm0, %v7978_v0, %v7937_v60 }
 0xab4   : > { %v7125_v7 = vperm.slane %v7119_v63, %v8951_v5  ;;  %8107 = vrot.lane.b32.xlu0 %v7979_v3, %s8876_s30  ;;  %v7962_v3 = vrot.slane %v7925_v11, 4 }
 0xab6   : > { %v7168_v50 = vrot.slane %v7125_v7, 4  ;;  %v7091_v34 = vpop.permute.xlu1 %7090  ;;  %v7167_v29 = vsel %vm276_vm0, %v7166_v51, %v7125_v7 }
 0xab7   : > { %v7155_v0 = vsel %vm276_vm0, %v7154_v33, %v7091_v34  ;;  %v7156_v63 = vrot.slane %v7091_v34, 4  ;;  %v13403_v43 = vperm.slane %v7167_v29, %v8976_v21 }
 0xab8   : > { %v7161_v17 = vperm.slane %v7155_v0, %v8951_v5  ;;  %v7087_v1 = vpop.permute.xlu0 %7086  ;;  %v7169_v46 = vsel %vm276_vm0, %v7137_v18, %v7168_v50  ;;  %v7889_v18 = vperm.slane %v7881_v13, %v8951_v5  ;;  %v7120_v0 = vrot.slane %v13351_v58, 4 }
 0xab9   : > { %v7157_v60 = vsel %vm276_vm0, %v7099_v15, %v7156_v63  ;;  %v7143_v51 = vsel %vm276_vm0, %v7142_v55, %v7087_v1  ;;  %v7144_v7 = vrot.slane %v7087_v1, 4  ;;  %v7177_v50 = vperm.slane %v7169_v46, %v8976_v21  ;;  %v13422_v1 = vpop.permute.xlu2 %7084 }
 0xaba   : > { %v7190_v33 = vrot.slane %v7161_v17, 4  ;;  %v7149_v34 = vperm.slane %v7143_v51, %v8951_v5  ;;  %8111 = vrot.lane.b32.xlu2 %v7981_v14, %s8877_s7  ;;  %v7165_v9 = vperm.slane %v7157_v60, %v8951_v5  ;;  %v7963_v55 = vsel %vm276_vm0, %v7962_v3, %v7913_v47 }
 0xabb   : > { %v7145_v15 = vsel %vm276_vm0, %v13283_v42, %v7144_v7  ;;  %v7216_v6 = vrot.slane %v13403_v43, 4  ;;  %v7965_v46 = vsel %vm276_vm0, %v7925_v11, %v7964_v48  ;;  %v7220_v3 = vrot.slane %v7177_v50, 4 }
 0xabc   : > { %v7191_v29 = vsel %vm276_vm0, %v7190_v33, %v7149_v34  ;;  %v7192_v40 = vrot.slane %v7149_v34, 4  ;;  %v7153_v13 = vperm.slane %v7145_v15, %v8951_v5  ;;  %v7969_v60 = vperm.slane %v7963_v55, %v8976_v21 }
 0xabd   : > { %v13418_v63 = vperm.slane %v7191_v29, %v8976_v21  ;;  %v7938_v51 = vrot.slane %v7901_v16, 4  ;;  %v7133_v7 = vsel %vm276_vm0, %v13299_v56, %v7132_v10  ;;  %v7940_v33 = vrot.slane %v7889_v18, 4 }
 0xabe   : > { %v13424_v42 = vpop.permute.xlu1 %7844  ;;  %v7193_v14 = vsel %vm276_vm0, %v7161_v17, %v7192_v40  ;;  %v7202_v34 = vrot.slane %v7165_v9, 4  ;;  %v7121_v17 = vsel %vm276_vm0, %v13371_v44, %v7120_v0  ;;  %v7973_v29 = vperm.slane %v7965_v46, %v8976_v21 }
 0xabf   : > { %v7217_v47 = vsel %vm276_vm0, %v13418_v63, %v7216_v6  ;;  %v7201_v58 = vperm.slane %v7193_v14, %v8976_v21  ;;  %v7204_v40 = vrot.slane %v7153_v13, 4  ;;  %v7939_v55 = vsel %vm276_vm0, %v7938_v51, %v7889_v18 }
 0xac0   : > { %v13434_v15 = vpop.permute.xlu0 %7860  ;;  %7343 = vrot.lane.b32.xlu1 %v7217_v47, %s8879_s9  ;;  %v7982_v10 = vrot.slane %v7969_v60, 4  ;;  %v7141_v6 = vperm.slane %v7133_v7, %v8951_v5  ;;  %v7129_v14 = vperm.slane %v7121_v17, %v8951_v5  ;;  %v7941_v44 = vsel %vm276_vm0, %v7901_v16, %v7940_v33  ;;  %s8782_s9 = sshll.u32 %s14454_s22, 3 }
 0xac1   : > { %v7221_v11 = vsel %vm276_vm0, %v7201_v58, %v7220_v3  ;;  %v7218_v48 = vrot.slane %v7201_v58, 4  ;;  %v7203_v0 = vsel %vm276_vm0, %v7202_v34, %v7153_v13  ;;  %v7945_v46 = vperm.slane %v7939_v55, %v8976_v21  ;;  %s269_s16 = scalar_lea.vmem %s14086_s6, %s8782_s9 }
 0xac2   : > { %7351 = vrot.lane.b32.xlu2 %v7221_v11, %s8877_s7  ;;  %v7986_v47 = vrot.slane %v7973_v29, 4  ;;  %v7205_v18 = vsel %vm276_vm0, %v7165_v9, %v7204_v40  ;;  %v7949_v3 = vperm.slane %v7941_v44, %v8976_v21  ;;  %v7209_v51 = vperm.slane %v7203_v0, %v8976_v21  ;;  %v13456_v11 = vpop.permute.xlu2 %7092 }
 0xac3   : > { %v7219_v56 = vsel %vm276_vm0, %v7218_v48, %v7177_v50  ;;  %v7983_v50 = vsel %vm276_vm0, %v7982_v10, %v7945_v46  ;;  %v7178_v7 = vrot.slane %v7141_v6, 4  ;;  %v7180_v17 = vrot.slane %v7129_v14, 4 }
 0xac4   : > { %7347 = vrot.lane.b32.xlu0 %v7219_v56, %s8876_s30  ;;  %v7987_v13 = vsel %vm276_vm0, %v7986_v47, %v7949_v3  ;;  %v7984_v33 = vrot.slane %v7945_v46, 4  ;;  %v7213_v34 = vperm.slane %v7205_v18, %v8976_v21  ;;  %v7222_v40 = vrot.slane %v7209_v51, 4 }
 0xac5   : > { %v7179_v9 = vsel %vm276_vm0, %v7178_v7, %v7129_v14  ;;  %v7181_v55 = vsel %vm276_vm0, %v7141_v6, %v7180_v17  ;;  %v8026_v14 = vrot.slane %v13434_v15, 4 }
 0xac6   : > { %v13450_v58 = vpop.permute.xlu1 %7856  ;;  %v7985_v48 = vsel %vm276_vm0, %v7969_v60, %v7984_v33  ;;  %v7185_v56 = vperm.slane %v7179_v9, %v8976_v21  ;;  %v7226_v10 = vrot.slane %v7213_v34, 4  ;;  %v7189_v46 = vperm.slane %v7181_v55, %v8976_v21 }
 0xac7   : > { %v8014_v17 = vrot.slane %v13450_v58, 4 }
 0xac8   : > { %v13458_v16 = vpop.permute.xlu0 %7852  ;;  %8115 = vrot.lane.b32.xlu1 %v7983_v50, %s8874_s28  ;;  %v7223_v0 = vsel %vm276_vm0, %v7222_v40, %v7185_v56  ;;  %v7227_v60 = vsel %vm276_vm0, %v7226_v10, %v7189_v46  ;;  %v7224_v18 = vrot.slane %v7185_v56, 4  ;;  %v8002_v40 = vrot.slane %v13424_v42, 4 }
 0xac9   : > { %v8027_v6 = vsel %vm276_vm0, %v8026_v14, %v13458_v16 }
 0xaca   : > { %8123 = vrot.lane.b32.xlu2 %v7987_v13, %s8875_s29  ;;  %v13476_v50 = vpop.permute.xlu2 %7076  ;;  %v7225_v7 = vsel %vm276_vm0, %v7209_v51, %v7224_v18  ;;  %v7988_v13 = vrot.slane %v7949_v3, 4  ;;  %v8033_v33 = vperm.slane %v8027_v6, %v8951_v5 }
 0xacc   : > { %8119 = vrot.lane.b32.xlu0 %v7985_v48, %s8878_s8  ;;  %v7266_v48 = vrot.slane %v13387_v31, 4  ;;  %v7989_v56 = vsel %vm276_vm0, %v7973_v29, %v7988_v13  ;;  %v8062_v14 = vrot.slane %v8033_v33, 4 }
 0xace   : > { %v13469_v44 = vpop.permute.xlu1 %7840  ;;  %v7267_v6 = vsel %vm276_vm0, %v7266_v48, %v13456_v11  ;;  %v8028_v48 = vrot.slane %v13458_v16, 4 }
 0xad0   : > { %v7837_v47 = vpop.permute.xlu0 %7836  ;;  %7355 = vrot.lane.b32.xlu1 %v7223_v0, %s8874_s28 }
 0xad1   : > { %v8003_v3 = vsel %vm276_vm0, %v8002_v40, %v7837_v47  ;;  %v7990_v40 = vrot.slane %v13469_v44, 4 }
 0xad2   : > { %7363 = vrot.lane.b32.xlu2 %v7227_v60, %s8875_s29  ;;  %v13498_v18 = vpop.permute.xlu2 %7088 }
 0xad4   : > { %7359 = vrot.lane.b32.xlu0 %v7225_v7, %s8878_s8  ;;  %v7242_v7 = vrot.slane %v13422_v1, 4 }
 0xad6   : > { %v13485_v9 = vpop.permute.xlu1 %7848 }
 0xad7   : > { %v8015_v55 = vsel %vm276_vm0, %v8014_v17, %v13485_v9  ;;  %v8009_v17 = vperm.slane %v8003_v3, %v8951_v5 }
 0xad8   : > { %v8021_v51 = vperm.slane %v8015_v55, %v8951_v5  ;;  %v13493_v10 = vpop.permute.xlu0 %7096  ;;  %8127 = vrot.lane.b32.xlu1 %v7989_v56, %s8880_s10  ;;  %v7228_v55 = vrot.slane %v7189_v46, 4  ;;  %v7273_v56 = vperm.slane %v7267_v6, %v8951_v5 }
 0xad9   : > { %v7254_v0 = vrot.slane %v13493_v10, 4  ;;  %v8038_v46 = vrot.slane %v8009_v17, 4 }
 0xada   : > { %v8064_v60 = vrot.slane %v8021_v51, 4  ;;  %v8063_v13 = vsel %vm276_vm0, %v8062_v14, %v8021_v51  ;;  %v7229_v3 = vsel %vm276_vm0, %v7213_v34, %v7228_v55  ;;  %v7243_v51 = vsel %vm276_vm0, %v7242_v7, %v13476_v50 }
 0xadb   : > { %v7255_v29 = vsel %vm276_vm0, %v7254_v0, %v13498_v18  ;;  %v8069_v0 = vperm.slane %v8063_v13, %v8976_v21  ;;  %v8004_v14 = vrot.slane %v7837_v47, 4  ;;  %v7302_v16 = vrot.slane %v7273_v56, 4 }
 0xadc   : > { %v8065_v4 = vsel %vm276_vm0, %v8033_v33, %v8064_v60  ;;  %v7261_v12 = vperm.slane %v7255_v29, %v8951_v5  ;;  %v7249_v34 = vperm.slane %v7243_v51, %v8951_v5  ;;  %v7268_v51 = vrot.slane %v13456_v11, 4 }
 0xadd   : > { %v13520_v33 = vperm.slane %v8065_v4, %v8976_v21  ;;  %v8086_v47 = vrot.slane %v8069_v0, 4  ;;  %v8005_v55 = vsel %vm276_vm0, %v13424_v42, %v8004_v14  ;;  %v8016_v4 = vrot.slane %v13485_v9, 4 }
 0xade   : > { %v7833_v35 = vpop.permute.xlu1 %7832  ;;  %v7304_v60 = vrot.slane %v7261_v12, 4  ;;  %v7244_v11 = vrot.slane %v13476_v50, 4 }
 0xadf   : > { %v7991_v24 = vsel %vm276_vm0, %v7990_v40, %v7833_v35  ;;  %v7992_v40 = vrot.slane %v7833_v35, 4  ;;  %v8090_v35 = vrot.slane %v13520_v33, 4 }
 0xae0   : > { %v7997_v6 = vperm.slane %v7991_v24, %v8951_v5  ;;  %v7081_v2 = vpop.permute.xlu0 %7080  ;;  %7367 = vrot.lane.b32.xlu1 %v7229_v3, %s8880_s10  ;;  %v8029_v24 = vsel %vm276_vm0, %v13434_v15, %v8028_v48  ;;  %v7303_v15 = vsel %vm276_vm0, %v7302_v16, %v7261_v12  ;;  %v7305_v42 = vsel %vm276_vm0, %v7273_v56, %v7304_v60 }
 0xae1   : > { %v7993_v9 = vsel %vm276_vm0, %v13469_v44, %v7992_v40  ;;  %v7974_v44 = vrot.slane %v13362_v25, 4  ;;  %v7278_v56 = vrot.slane %v7249_v34, 4  ;;  %v7309_v60 = vperm.slane %v7303_v15, %v8976_v21  ;;  %v14354_v25 = vld [vmem:[#allocation97_spill] sm:$0xff] }
 0xae2   : > { %v8039_v29 = vsel %vm276_vm0, %v8038_v46, %v7997_v6  ;;  %v8040_v13 = vrot.slane %v7997_v6, 4  ;;  %v13560_v50 = vperm.slane %v7993_v9, %v8951_v5  ;;  %v13564_v40 = vperm.slane %v7305_v42, %v8976_v21 }
 0xae3   : > { %v8045_v7 = vperm.slane %v8039_v29, %v8976_v21  ;;  %v13546_v29 = vperm.slane %v8029_v24, %v8951_v5  ;;  %v7269_v24 = vsel %vm276_vm0, %v13387_v31, %v7268_v51  ;;  %v7256_v15 = vrot.slane %v13498_v18, 4 }
 0xae4   : > { %v8041_v3 = vsel %vm276_vm0, %v8009_v17, %v8040_v13  ;;  %v7230_v17 = vrot.slane %v7081_v2, 4  ;;  %v7326_v9 = vrot.slane %v7309_v60, 4  ;;  %v7330_v51 = vrot.slane %v13564_v40, 4 }
 0xae5   : > { %v8087_v38 = vsel %vm276_vm0, %v8086_v47, %v8045_v7  ;;  %v8088_v46 = vrot.slane %v8045_v7, 4  ;;  %v13533_v6 = vperm.slane %v8041_v3, %v8976_v21  ;;  %v13568_v7 = vsel %vm276_vm0, %v7974_v44, %v13354_v23  ;;  %v14355_v47 = vld [vmem:[#allocation78_spill] sm:$0xff] }
 0xae6   : > { %8131 = vrot.lane.b32.xlu0 %v8087_v38, %s8883_s18  ;;  %v13550_v38 = vperm.slane %v8005_v55, %v8951_v5  ;;  %v7245_v23 = vsel %vm276_vm0, %v13422_v1, %v7244_v11  ;;  %v14356_v11 = vld [vmem:[#allocation100_spill] sm:$0xff] }
 0xae7   : > { %v8089_v48 = vsel %vm276_vm0, %v8069_v0, %v8088_v46  ;;  %v8091_v14 = vsel %vm276_vm0, %v8090_v35, %v13533_v6  ;;  %v8017_v0 = vsel %vm276_vm0, %v13450_v58, %v8016_v4  ;;  %v4174_v58 = vsel %vm360_vm1, %v14355_v47, %v14354_v25 }
 0xae8   : > { %v7073_v12 = vpop.permute.xlu0 %7072  ;;  %8135 = vrot.lane.b32.xlu2 %v8089_v48, %s8882_s17  ;;  %8139 = vrot.lane.b32.xlu1 %v8091_v14, %s8886_s23  ;;  %v8050_v4 = vrot.slane %v13550_v38, 4  ;;  %v13577_v3 = vperm.slane %v8017_v0, %v8951_v5  ;;  %v4175_v44 = vsel %vm362_vm2, %v4174_v58, %v14356_v11  ;;  %v7257_v0 = vsel %vm276_vm0, %v13493_v10, %v7256_v15  ;;  %v14357_v58 = vld [vmem:[#allocation93_spill] sm:$0xff]  ;;  %v13614_v10 = vpop.permute.xlu2 %7727  ;;  %v14358_v15 = vld [vmem:[#allocation80_spill] sm:$0xff] }
 0xae9   : > { %v7231_v16 = vsel %vm276_vm0, %v7230_v17, %v7073_v12  ;;  %v7232_v55 = vrot.slane %v7073_v12, 4  ;;  %v8074_v17 = vrot.slane %v13546_v29, 4  ;;  %v13607_v25 = vperm.slane %v7269_v24, %v8951_v5  ;;  %v14362_v11 = vld [vmem:[#allocation124_spill] sm:$0xff] }
 0xaea   : > { %v7237_v13 = vperm.slane %v7231_v16, %v8951_v5  ;;  %v8051_v48 = vsel %vm276_vm0, %v8050_v4, %v13560_v50  ;;  %v13619_v24 = vperm.slane %v7257_v0, %v8951_v5  ;;  %v5630_v0 = vsel %vm360_vm1, %v12092_v61, %v12172_v36  ;;  %v14365_v61 = vld [vmem:[#allocation79_spill] sm:$0xff] }
 0xaeb   : > { %v7233_v14 = vsel %vm276_vm0, %v7081_v2, %v7232_v55  ;;  %v4176_v55 = vsel %vm364_vm3, %v4175_v44, %v14357_v58  ;;  %v14363_v44 = vld [vmem:[#allocation89_spill] sm:$0xff] }
 0xaec   : > { %v7279_v46 = vsel %vm276_vm0, %v7278_v56, %v7237_v13  ;;  %v7280_v35 = vrot.slane %v7237_v13, 4  ;;  %v7253_v56 = vperm.slane %v7245_v23, %v8951_v5  ;;  %v8057_v13 = vperm.slane %v8051_v48, %v8976_v21 }
 0xaed   : > { %v7285_v42 = vperm.slane %v7279_v46, %v8976_v21  ;;  %v7241_v47 = vperm.slane %v7233_v14, %v8951_v5  ;;  %v8092_v46 = vrot.slane %v13533_v6, 4  ;;  %v14361_v14 = vld [vmem:[#allocation102_spill] sm:$0xff] }
 0xaee   : > { %v7281_v31 = vsel %vm276_vm0, %v7249_v34, %v7280_v35  ;;  %v8075_v34 = vsel %vm276_vm0, %v8074_v17, %v13577_v3  ;;  %v7290_v35 = vrot.slane %v7253_v56, 4  ;;  %v8096_v23 = vrot.slane %v8057_v13, 4  ;;  %v14360_v17 = vld [vmem:[#allocation99_spill] sm:$0xff] }
 0xaef   : > { %v7327_v12 = vsel %vm276_vm0, %v7326_v9, %v7285_v42  ;;  %v13592_v1 = vperm.slane %v7281_v31, %v8976_v21  ;;  %v7328_v18 = vrot.slane %v7285_v42, 4  ;;  %v14359_v42 = vld [vmem:[#allocation77_spill] sm:$0xff]  ;;  %v4177_v31 = vsel %vm366_vm4, %v4176_v55, %v14360_v17 }
 0xaf0   : > { %7371 = vrot.lane.b32.xlu0 %v7327_v12, %s8883_s18  ;;  %v2014_v9 = vsel %vm360_vm1, %v14359_v42, %v14358_v15  ;;  %v7291_v48 = vsel %vm276_vm0, %v7290_v35, %v7241_v47  ;;  %v4178_v6 = vsel %vm368_vm5, %v4177_v31, %v14361_v14  ;;  %v8093_v12 = vsel %vm276_vm0, %v13520_v33, %v8092_v46  ;;  %v14364_v35 = vld [vmem:[#allocation105_spill] sm:$0xff]  ;;  %v14367_v31 = vld [vmem:[#allocation84_spill] sm:$0xff] }
 0xaf1   : > { %v7331_v2 = vsel %vm276_vm0, %v7330_v51, %v13592_v1  ;;  %v7329_v16 = vsel %vm276_vm0, %v7309_v60, %v7328_v18  ;;  %v8081_v60 = vperm.slane %v8075_v34, %v8976_v21  ;;  %v7314_v51 = vrot.slane %v13607_v25, 4 }
 0xaf2   : > { %7379 = vrot.lane.b32.xlu1 %v7331_v2, %s8886_s23  ;;  %7375 = vrot.lane.b32.xlu2 %v7329_v16, %s8882_s17  ;;  %v7724_v4 = vpop.permute.xlu1 %7723  ;;  %v7214_v18 = vrot.slane %v13418_v63, 4  ;;  %v3478_v34 = vsel %vm360_vm1, %v14363_v44, %v14362_v11  ;;  %v8076_v2 = vrot.slane %v13577_v3, 4  ;;  %v7297_v55 = vperm.slane %v7291_v48, %v8976_v21  ;;  %v14366_v3 = vld [vmem:[#allocation110_spill] sm:$0xff]  ;;  %v14368_v48 = vld [vmem:[#allocation96_spill] sm:$0xff]  ;;  %v14372_v44 = vld [vmem:[#allocation125_spill] sm:$0xff] }
 0xaf3   : > { %v8094_v5 = vrot.slane %v8081_v60, 4  ;;  %v7315_v16 = vsel %vm276_vm0, %v7314_v51, %v13619_v24  ;;  %v8097_v33 = vsel %vm276_vm0, %v8081_v60, %v8096_v23  ;;  %v2718_v36 = vsel %vm360_vm1, %v14365_v61, %v14364_v35 }
 0xaf4   : > { %v7732_v58 = vpop.permute.xlu0 %7731  ;;  %v13648_v46 = vsel %vm276_vm0, %v7214_v18, %v13403_v43  ;;  %v3479_v15 = vsel %vm362_vm2, %v3478_v34, %v14366_v3  ;;  %v8052_v42 = vrot.slane %v13560_v50, 4  ;;  %v7292_v17 = vrot.slane %v7241_v47, 4  ;;  %v14369_v47 = vld [vmem:[#allocation117_spill] sm:$0xff] }
 0xaf5   : > { %v8095_v63 = vsel %vm276_vm0, %v8094_v5, %v8057_v13  ;;  %v5631_v13 = vsel %vm362_vm2, %v5630_v0, %v12174_v32  ;;  %v7594_v43 = vrot.slane %v13240_v27, 4  ;;  %v7332_v60 = vrot.slane %v13592_v1, 4  ;;  %v14371_v5 = vld [vmem:[#allocation103_spill] sm:$0xff]  ;;  %v7740_v32 = vpop.permute.xlu2 %7739 }
 0xaf6   : > { %v7321_v23 = vperm.slane %v7315_v16, %v8976_v21  ;;  %v2015_v51 = vsel %vm362_vm2, %v2014_v9, %v14367_v31  ;;  %v4179_v50 = vsel %vm370_vm6, %v4178_v6, %v14368_v48  ;;  %v2719_v14 = vsel %vm362_vm2, %v2718_v36, %v14369_v47  ;;  %v14374_v36 = vld [vmem:[#allocation86_spill] sm:$0xff] }
 0xaf7   : > { %v7336_v27 = vrot.slane %v7297_v55, 4  ;;  %v8077_v1 = vsel %vm276_vm0, %v13546_v29, %v8076_v2  ;;  %v3480_v34 = vsel %vm364_vm3, %v3479_v15, %v14372_v44  ;;  %v5632_v9 = vsel %vm364_vm3, %v5631_v13, %v12166_v53  ;;  %v14375_v15 = vld [vmem:[#allocation167_spill] sm:$0xff]  ;;  %v14377_v13 = vld [vmem:[#allocation114_spill] sm:$0xff] }
 0xaf8   : > { %8143 = vrot.lane.b32.xlu0 %v8093_v12, %s8885_s20  ;;  %v14370_v12 = vld [vmem:[#allocation135_spill] sm:$0xff]  ;;  %v8053_v6 = vsel %vm276_vm0, %v13550_v38, %v8052_v42  ;;  %v7293_v0 = vsel %vm276_vm0, %v7253_v56, %v7292_v17  ;;  %v5633_v16 = vsel %vm366_vm4, %v5632_v9, %v12178_v39  ;;  %v7333_v29 = vsel %vm276_vm0, %v13564_v40, %v7332_v60  ;;  %v14379_v31 = vld [vmem:[#allocation106_spill] sm:$0xff] }
 0xaf9   : > { %v4870_v18 = vsel %vm360_vm1, %v14371_v5, %v14370_v12  ;;  %v7334_v2 = vrot.slane %v7321_v23, 4  ;;  %v7316_v53 = vrot.slane %v13619_v24, 4  ;;  %v8085_v38 = vperm.slane %v8077_v1, %v8976_v21  ;;  %v14380_v48 = vld [vmem:[#allocation126_spill] sm:$0xff] }
 0xafa   : > { %8151 = vrot.lane.b32.xlu1 %v8097_v33, %s8889_s26  ;;  %8147 = vrot.lane.b32.xlu2 %v8095_v63, %s8884_s19  ;;  %v7736_v11 = vpop.permute.xlu1 %7735  ;;  %v7595_v33 = vsel %vm276_vm0, %v7594_v43, %v13228_v20  ;;  %v14373_v63 = vld [vmem:[#allocation134_spill] sm:$0xff]  ;;  %v7337_v39 = vsel %vm276_vm0, %v7321_v23, %v7336_v27  ;;  %v8061_v20 = vperm.slane %v8053_v6, %v8976_v21  ;;  %v14378_v43 = vld [vmem:[#allocation137_spill] sm:$0xff] }
 0xafb   : > { %v4871_v35 = vsel %vm362_vm2, %v4870_v18, %v14373_v63  ;;  %v7782_v61 = vsel %vm360_vm1, %v7595_v33, %v7724_v4  ;;  %v7335_v56 = vsel %vm276_vm0, %v7334_v2, %v7297_v55  ;;  %v7301_v40 = vperm.slane %v7293_v0, %v8976_v21  ;;  %v14376_v4 = vld [vmem:[#allocation101_spill] sm:$0xff]  ;;  %v14381_v12 = vld [vmem:[#allocation138_spill] sm:$0xff]  ;;  %v14382_v18 = vld [vmem:[#allocation164_spill] sm:$0xff] }
 0xafc   : > { %v2016_v3 = vsel %vm364_vm3, %v2015_v51, %v14374_v36  ;;  %v5634_v24 = vsel %vm368_vm5, %v5633_v16, %v14375_v15  ;;  %v7744_v42 = vpop.permute.xlu0 %7743  ;;  %v4180_v17 = vsel %vm372_vm7, %v4179_v50, %v14376_v4  ;;  %v2720_v55 = vsel %vm364_vm3, %v2719_v14, %v14377_v13  ;;  %v14384_v0 = vld [vmem:[#allocation169_spill] sm:$0xff]  ;;  %v14388_v36 = vld [vmem:[#allocation119_spill] sm:$0xff] }
 0xafd   : > { %v4872_v60 = vsel %vm364_vm3, %v4871_v35, %v14378_v43  ;;  %v7783_v23 = vsel %vm362_vm2, %v7782_v61, %v13614_v10  ;;  %v2721_v51 = vsel %vm366_vm4, %v2720_v55, %v14379_v31  ;;  %v3481_v47 = vsel %vm366_vm4, %v3480_v34, %v14380_v48  ;;  %v7752_v27 = vpop.permute.xlu2 %7751  ;;  %v14383_v10 = vld [vmem:[#allocation111_spill] sm:$0xff]  ;;  %v14385_v33 = vld [vmem:[#allocation81_spill] sm:$0xff]  ;;  %v14392_v43 = vld [vmem:[#allocation88_spill] sm:$0xff] }
 0xafe   : > { %v4873_v5 = vsel %vm366_vm4, %v4872_v60, %v14381_v12  ;;  %v7317_v50 = vsel %vm276_vm0, %v13607_v25, %v7316_v53  ;;  %v5635_v14 = vsel %vm370_vm6, %v5634_v24, %v14382_v18  ;;  %v8098_v1 = vrot.slane %v8085_v38, 4  ;;  %v14386_v53 = vld [vmem:[#allocation87_spill] sm:$0xff]  ;;  %v14398_v18 = vld [vmem:[#allocation165_spill] sm:$0xff] }
 0xaff   : > { %v7340_v44 = vrot.slane %v7301_v40, 4  ;;  %v8100_v9 = vrot.slane %v8061_v20, 4  ;;  %v3482_v6 = vsel %vm368_vm5, %v3481_v47, %v14383_v10  ;;  %v5636_v16 = vsel %vm372_vm7, %v5635_v14, %v14384_v0  ;;  %v14395_v47 = vld [vmem:[#allocation116_spill] sm:$0xff] }
 0xb00   : > { %7383 = vrot.lane.b32.xlu0 %v7333_v29, %s8885_s20  ;;  %v7784_v34 = vsel %vm364_vm3, %v7783_v23, %v7732_v58  ;;  %v2017_v29 = vsel %vm366_vm4, %v2016_v3, %v14385_v33  ;;  %v8099_v63 = vsel %vm276_vm0, %v8098_v1, %v8061_v20  ;;  %v7325_v35 = vperm.slane %v7317_v50, %v8976_v21  ;;  %v14389_v58 = vld [vmem:[#allocation136_spill] sm:$0xff]  ;;  %v14391_v20 = vld [vmem:[#allocation170_spill] sm:$0xff]  ;;  %v14399_v1 = vld [vmem:[#allocation139_spill] sm:$0xff] }
 0xb01   : > { %v7785_v25 = vsel %vm366_vm4, %v7784_v34, %v7736_v11  ;;  %v2018_v61 = vsel %vm368_vm5, %v2017_v29, %v14386_v53  ;;  %v2722_v15 = vsel %vm368_vm5, %v2721_v51, %v14388_v36  ;;  %v4874_v24 = vsel %vm368_vm5, %v4873_v5, %v14389_v58  ;;  %v14390_v11 = vld [vmem:[#allocation127_spill] sm:$0xff]  ;;  %v14393_v23 = vld [vmem:[#allocation50_spill] sm:$0xff]  ;;  %v14394_v51 = vld [vmem:[#allocation140_spill] sm:$0xff] }
 0xb02   : > { %7391 = vrot.lane.b32.xlu1 %v7337_v39, %s8889_s26  ;;  %7387 = vrot.lane.b32.xlu2 %v7335_v56, %s8884_s19  ;;  %v7748_v2 = vpop.permute.xlu1 %7747  ;;  %v14387_v39 = vld [vmem:[#allocation58_spill] sm:$0xff]  ;;  %v3483_v3 = vsel %vm370_vm6, %v3482_v6, %v14390_v11  ;;  %v5637_v21 = vsel %vm2021_vm10, %v5636_v16, %v14391_v20  ;;  %v7341_v4 = vsel %vm276_vm0, %v7325_v35, %v7340_v44  ;;  %v14397_v5 = vld [vmem:[#allocation141_spill] sm:$0xff]  ;;  %v7338_v0 = vrot.slane %v7325_v35, 4  ;;  %v14402_v33 = vld [vmem:[#allocation107_spill] sm:$0xff] }
 0xb03   : > { %v4181_v56 = vsel %vm2021_vm10, %v4180_v17, %v14387_v39  ;;  %v8101_v13 = vsel %vm276_vm0, %v8085_v38, %v8100_v9  ;;  %v7786_v17 = vsel %vm368_vm5, %v7785_v25, %v7740_v32  ;;  %v2019_v60 = vsel %vm370_vm6, %v2018_v61, %v14392_v43  ;;  %v14396_v38 = vld [vmem:[#allocation128_spill] sm:$0xff]  ;;  %v14400_v9 = vld [vmem:[#allocation171_spill] sm:$0xff]  ;;  %v14401_v16 = vld [vmem:[#allocation57_spill] sm:$0xff] }
 0xb04   : > { %v4182_v31 = vsel %vm2023_vm11, %v4181_v56, %v14393_v23  ;;  %v4875_v48 = vsel %vm370_vm6, %v4874_v24, %v14394_v51  ;;  %v2723_v12 = vsel %vm370_vm6, %v2722_v15, %v14395_v47  ;;  %v3484_v32 = vsel %vm372_vm7, %v3483_v3, %v14396_v38  ;;  %v14403_v25 = vld [vmem:[#allocation143_spill] sm:$0xff]  ;;  %v14405_v56 = vld [vmem:[#allocation104_spill] sm:$0xff]  ;;  %v14407_v11 = vld [vmem:[#allocation61_spill] sm:$0xff] }
 0xb05   : > { %v4876_v50 = vsel %vm372_vm7, %v4875_v48, %v14397_v5  ;;  %v5638_v14 = vsel %vm2023_vm11, %v5637_v21, %v14398_v18  ;;  %v7787_v6 = vsel %vm370_vm6, %v7786_v17, %v7744_v42  ;;  %v4183_v34 = vsel %vm2025_vm12, %v4182_v31, %v14401_v16  ;;  %v14404_v61 = vld [vmem:[#allocation83_spill] sm:$0xff]  ;;  %v7764_v15 = vpop.permute.xlu2 %7763  ;;  %v14406_v58 = vld [vmem:[#allocation172_spill] sm:$0xff]  ;;  %v14410_v17 = vld [vmem:[#allocation82_spill] sm:$0xff] }
 0xb06   : > { %v4877_v44 = vsel %vm2021_vm10, %v4876_v50, %v14399_v1  ;;  %v5639_v10 = vsel %vm2025_vm12, %v5638_v14, %v14400_v9  ;;  %v2724_v29 = vsel %vm372_vm7, %v2723_v12, %v14402_v33  ;;  %v7788_v53 = vsel %vm372_vm7, %v7787_v6, %v7748_v2  ;;  %v14408_v20 = vld [vmem:[#allocation115_spill] sm:$0xff]  ;;  %v14409_v21 = vld [vmem:[#allocation144_spill] sm:$0xff]  ;;  %v14413_v47 = vld [vmem:[#allocation166_spill] sm:$0xff] }
 0xb07   : > { %v2020_v39 = vsel %vm372_vm7, %v2019_v60, %v14404_v61  ;;  %v3485_v36 = vsel %vm2021_vm10, %v3484_v32, %v14405_v56  ;;  %v7339_v35 = vsel %vm276_vm0, %v7338_v0, %v7301_v40  ;;  %v5640_v24 = vsel %vm2027_vm13, %v5639_v10, %v14406_v58  ;;  %v14411_v40 = vld [vmem:[#allocation129_spill] sm:$0xff]  ;;  %v14412_v51 = vld [vmem:[#allocation92_spill] sm:$0xff]  ;;  %v14414_v32 = vld [vmem:[#allocation118_spill] sm:$0xff] }
 0xb08   : > { %8155 = vrot.lane.b32.xlu0 %v8099_v63, %s8888_s25  ;;  %v4878_v63 = vsel %vm2023_vm11, %v4877_v44, %v14403_v25  ;;  %v4184_v3 = vsel %vm2027_vm13, %v4183_v34, %v14407_v11  ;;  %v2725_v2 = vsel %vm2021_vm10, %v2724_v29, %v14408_v20  ;;  %v2022_v43 = vsel %vm2021_vm10, %v2020_v39, %v14410_v17  ;;  %v14415_v5 = vld [vmem:[#allocation142_spill] sm:$0xff]  ;;  %v14416_v18 = vld [vmem:[#allocation173_spill] sm:$0xff]  ;;  %v14418_v44 = vld [vmem:[#allocation108_spill] sm:$0xff] }
 0xb09   : > { %v3486_v60 = vsel %vm2023_vm11, %v3485_v36, %v14411_v40  ;;  %v2024_v48 = vsel %vm2023_vm11, %v2022_v43, %v14412_v51  ;;  %v5641_v12 = vsel %vm2029_vm14, %v5640_v24, %v14413_v47  ;;  %v14417_v1 = vld [vmem:[#allocation53_spill] sm:$0xff]  ;;  %v14419_v10 = vld [vmem:[#allocation130_spill] sm:$0xff]  ;;  %v14422_v29 = vld [vmem:[#allocation112_spill] sm:$0xff] }
 0xb0a   : > { %v7756_v55 = vpop.permute.xlu0 %7755  ;;  %7399 = vrot.lane.b32.xlu1 %v7341_v4, %s8887_s24  ;;  %8159 = vrot.lane.b32.xlu2 %v8101_v13, %s8887_s24  ;;  %v4879_v4 = vsel %vm2025_vm12, %v4878_v63, %v14409_v21  ;;  %v7789_v13 = vsel %vm2021_vm10, %v7788_v53, %v7752_v27  ;;  %v2726_v27 = vsel %vm2023_vm11, %v2725_v2, %v14414_v32  ;;  %v14420_v0 = vld [vmem:[#allocation145_spill] sm:$0xff]  ;;  %v14423_v53 = vld [vmem:[#allocation174_spill] sm:$0xff]  ;;  %v14424_v36 = vld [vmem:[#allocation60_spill] sm:$0xff]  ;;  %v13845_v32 = vand.u32 4294901760, %v12704_v22 }
 0xb0b   : > { %v7790_v23 = vsel %vm2023_vm11, %v7789_v13, %v7756_v55  ;;  %v4880_v50 = vsel %vm2027_vm13, %v4879_v4, %v14415_v5  ;;  %v5642_v14 = vsel %vm2031_vm15, %v5641_v12, %v14416_v18  ;;  %v4185_v55 = vsel %vm2029_vm14, %v4184_v3, %v14417_v1  ;;  %v14421_v34 = vld [vmem:[#allocation85_spill] sm:$0xff]  ;;  %v14426_v24 = vld [vmem:[#allocation146_spill] sm:$0xff]  ;;  %v14427_v20 = vld [vmem:[#allocation91_spill] sm:$0xff] }
 0xb0c   : > { %v2727_v9 = vsel %vm2025_vm12, %v2726_v27, %v14418_v44  ;;  %v3487_v6 = vsel %vm2025_vm12, %v3486_v60, %v14419_v10  ;;  %v4881_v16 = vsel %vm2029_vm14, %v4880_v50, %v14420_v0  ;;  %v2026_v33 = vsel %vm2025_vm12, %v2024_v48, %v14421_v34  ;;  %v14428_v2 = vld [vmem:[#allocation131_spill] sm:$0xff]  ;;  %v14430_v43 = vld [vmem:[#allocation168_spill] sm:$0xff]  ;;  %v14434_v5 = vld [vmem:[#allocation109_spill] sm:$0xff] }
 0xb0d   : > { %v3488_v25 = vsel %vm2027_vm13, %v3487_v6, %v14422_v29  ;;  %v5643_v61 = vsel %vm2033_vm8, %v5642_v14, %v14423_v53  ;;  %v4882_v11 = vsel %vm2031_vm15, %v4881_v16, %v14426_v24  ;;  %v7776_v4 = vpop.permute.xlu2 %7775  ;;  %v14429_v13 = vld [vmem:[#allocation95_spill] sm:$0xff]  ;;  %v14432_v48 = vld [vmem:[#allocation120_spill] sm:$0xff]  ;;  %v14438_v0 = vld [vmem:[#allocation90_spill] sm:$0xff] }
 0xb0e   : > { %v7760_v42 = vpop.permute.xlu1 %7759  ;;  %v3489_v21 = vsel %vm2029_vm14, %v3488_v25, %v14428_v2  ;;  %v5644_v40 = vsel %vm2035_vm9, %v5643_v61, %v14430_v43  ;;  %v14433_v12 = vld [vmem:[#allocation147_spill] sm:$0xff]  ;;  %v14435_v18 = vld [vmem:[#allocation132_spill] sm:$0xff]  ;;  %v13875_v61 = vsub.f32 %v12704_v22, %v13845_v32  ;;  %v14444_v2 = vld [vmem:[#allocation122_spill] sm:$0xff] }
 0xb0f   : > { %v7791_v38 = vsel %vm2025_vm12, %v7790_v23, %v7760_v42  ;;  %v4186_v42 = vsel %vm2031_vm15, %v4185_v55, %v14424_v36  ;;  %v3490_v14 = vsel %vm2031_vm15, %v3489_v21, %v14435_v18  ;;  %v14436_v1 = vld [vmem:[#allocation148_spill] sm:$0xff]  ;;  %v13858_v6 = vand.u32 4294901760, %v5644_v40  ;;  %v14440_v25 = vld [vmem:[#allocation123_spill] sm:$0xff] }
 0xb10   : > { %7395 = vrot.lane.b32.xlu0 %v7339_v35, %s8888_s25  ;;  %v7792_v63 = vsel %vm2027_vm13, %v7791_v38, %v7764_v15  ;;  %v14425_v35 = vld [vmem:[#allocation121_spill] sm:$0xff]  ;;  %v2028_v15 = vsel %vm2027_vm13, %v2026_v33, %v14427_v20  ;;  %v4883_v38 = vsel %vm2033_vm8, %v4882_v11, %v14433_v12  ;;  %v14439_v33 = vld [vmem:[#allocation56_spill] sm:$0xff]  ;;  %v14443_v20 = vld [vmem:[#allocation98_spill] sm:$0xff]  ;;  %v8304_v43 = vand.u32 4294901760, %v13875_v61 }
 0xb11   : > { %v2728_v58 = vsel %vm2027_vm13, %v2727_v9, %v14425_v35  ;;  %v2030_v17 = vsel %vm2029_vm14, %v2028_v15, %v14429_v13  ;;  %v4884_v55 = vsel %vm2035_vm9, %v4883_v38, %v14436_v1  ;;  %v14437_v9 = vld [vmem:[#allocation113_spill] sm:$0xff] }
 0xb12   : > { %v7768_v31 = vpop.permute.xlu0 %7767  ;;  %v2729_v47 = vsel %vm2029_vm14, %v2728_v58, %v14432_v48  ;;  %v3491_v10 = vsel %vm2033_vm8, %v3490_v14, %v14437_v9  ;;  %v2032_v16 = vsel %vm2031_vm15, %v2030_v17, %v14438_v0  ;;  %v13871_v53 = vand.u32 4294901760, %v4884_v55  ;;  %v14442_v58 = vld [vmem:[#allocation94_spill] sm:$0xff] }
 0xb13   : > { %v7793_v39 = vsel %vm2029_vm14, %v7792_v63, %v7768_v31  ;;  %v14431_v31 = vld [vmem:[#allocation63_spill] sm:$0xff]  ;;  %v2730_v50 = vsel %vm2031_vm15, %v2729_v47, %v14434_v5  ;;  %v2034_v24 = vsel %vm2033_vm8, %v2032_v16, %v14442_v58  ;;  %v8305_v38 = vsub.f32 %v13875_v61, %v8304_v43 }
 0xb14   : > { %v4187_v51 = vsel %vm2033_vm8, %v4186_v42, %v14431_v31  ;;  %v2731_v63 = vsel %vm2033_vm8, %v2730_v50, %v14440_v25  ;;  %v2036_v15 = vsel %vm2035_vm9, %v2034_v24, %v14443_v20  ;;  %v13902_v13 = vsub.f32 %v4884_v55, %v13871_v53 }
 0xb15   : > { %v4188_v29 = vsel %vm2035_vm9, %v4187_v51, %v14439_v33  ;;  %v13921_v47 = vand.u32 4294901760, %v2036_v15  ;;  %v8306_v9 = vand.u32 4294901760, %v8305_v38  ;;  %v14445_v24 = vand.u32 4294901760, %v12920_v30 }
 0xb16   : > { %v7772_v56 = vpop.permute.xlu1 %7771  ;;  %v13890_v22 = vand.u32 4294901760, %v4188_v29  ;;  %v8316_v5 = vand.u32 4294901760, %v13902_v13  ;;  %v14448_v30 = vand.u32 4294901760, %v12925_v26 }
 0xb17   : > { %v7794_v3 = vsel %vm2031_vm15, %v7793_v39, %v7772_v56  ;;  %v14441_v56 = vld [vmem:[#allocation133_spill] sm:$0xff]  ;;  %v13948_v55 = vsub.f32 %v2036_v15, %v13921_v47 }
 0xb18   : > { %v7795_v23 = vsel %vm2033_vm8, %v7794_v3, %v7776_v4  ;;  %v3492_v36 = vsel %vm2035_vm9, %v3491_v10, %v14441_v56  ;;  %v13888_v3 = vsub.f32 %v5644_v40, %v13858_v6  ;;  %v13918_v51 = vsub.f32 %v4188_v29, %v13890_v22 }
 0xb19   : > { %v13899_v4 = vand.u32 4294901760, %v3492_v36  ;;  %v8317_v10 = vsub.f32 %v13902_v13, %v8316_v5  ;;  %v8340_v56 = vand.u32 4294901760, %v13948_v55 }
 0xb1a   : > { %v7780_v60 = vpop.permute.xlu0 %7779  ;;  %v8310_v48 = vand.u32 4294901760, %v13888_v3  ;;  %v8322_v1 = vand.u32 4294901760, %v13918_v51 }
 0xb1b   : > { %v7796_v27 = vsel %vm2035_vm9, %v7795_v23, %v7780_v60  ;;  %v13912_v23 = vpop.permute.xlu2 %8103  ;;  %v8341_v15 = vsub.f32 %v13948_v55, %v8340_v56 }
 0xb1c   : > { %v13854_v44 = vand.u32 4294901760, %v7796_v27  ;;  %v8311_v18 = vsub.f32 %v13888_v3, %v8310_v48  ;;  %v8323_v33 = vsub.f32 %v13918_v51, %v8322_v1 }
 0xb1e   : > { %v13863_v34 = vsub.f32 %v7796_v27, %v13854_v44  ;;  %8222 = vmatpush.msrb.mxu2 %v13854_v44  ;;  %8418 = vmatpush.msra.mxu1 %v13854_v44  ;;  %v7020_v39 = vpop.permute.xlu1 %7019  ;;  %v13933_v27 = vsub.f32 %v3492_v36, %v13899_v4  ;;  %v8312_v16 = vand.u32 4294901760, %v8311_v18  ;;  %v8324_v36 = vand.u32 4294901760, %v8323_v33 }
 0xb1f   : > { %v7036_v42 = vsel %vm2035_vm9, %v13202_v62, %v7020_v39  ;;  %v2732_v62 = vsel %vm2035_vm9, %v2731_v63, %v14444_v2  ;;  %v8318_v63 = vand.u32 4294901760, %v8317_v10  ;;  %v14446_v2 = vand.u32 4294901760, %v12902_v19 }
 0xb20   : > { %8372 = vmatpush.msra.mxu0 %v13863_v34  ;;  %v8292_v35 = vand.u32 4294901760, %v13863_v34  ;;  %v13885_v11 = vand.u32 4294901760, %v7036_v42  ;;  %v13910_v60 = vand.u32 4294901760, %v2732_v62  ;;  %v8328_v0 = vand.u32 4294901760, %v13933_v27 }
 0xb21   : > { %v14449_v19 = vand.u32 4294901760, %v12938_v28  ;;  %v14450_v18 = vand.u32 4294901760, %v12943_v37 }
 0xb22   : > { %v8293_v21 = vsub.f32 %v13863_v34, %v8292_v35  ;;  %v13905_v17 = vsub.f32 %v7036_v42, %v13885_v11  ;;  %8224 = vmatpush.msrb.mxu2 %v13885_v11  ;;  %8420 = vmatpush.msra.mxu1 %v13885_v11  ;;  %v13943_v14 = vsub.f32 %v2732_v62, %v13910_v60 }
 0xb23   : > { %v13964_v25 = vpop.permute.xlu2 %8111  ;;  %v8329_v39 = vsub.f32 %v13933_v27, %v8328_v0  ;;  %v8162_v34 = vsel %vm360_vm1, %v13568_v7, %v13912_v23 }
 0xb24   : > { %v8294_v40 = vand.u32 4294901760, %v8293_v21  ;;  %8226 = vmatpush.msrb.mxu2 %v13845_v32  ;;  %8375 = vmatpush.msra.mxu0 %v13905_v17  ;;  %v8298_v31 = vand.u32 4294901760, %v13905_v17  ;;  %v8334_v29 = vand.u32 4294901760, %v13943_v14 }
 0xb25   : > { %8422 = vmatpush.msra.mxu1 %v13845_v32  ;;  %v8330_v20 = vand.u32 4294901760, %v8329_v39 }
 0xb26   : > { %8295 = vmatpush.msrb.mxu3 %v8294_v40  ;;  %8228 = vmatpush.msrb.mxu2 %v13858_v6  ;;  %v8299_v12 = vsub.f32 %v13905_v17, %v8298_v31  ;;  %v8335_v42 = vsub.f32 %v13943_v14, %v8334_v29  ;;  %v8108_v21 = vpop.permute.xlu0 %8107  ;;  %v14447_v40 = vand.u32 4294901760, %v12913_v59 }
 0xb27   : > { %8378 = vmatpush.msra.mxu0 %v13875_v61  ;;  %8424 = vmatpush.msra.mxu1 %v13858_v6 }
 0xb28   : > { %8230 = vmatpush.msrb.mxu2 %v13871_v53  ;;  %v8300_v50 = vand.u32 4294901760, %v8299_v12  ;;  %v8336_v62 = vand.u32 4294901760, %v8335_v42  ;;  %v8342_v12 = vand.u32 4294901760, %v8341_v15 }
 0xb29   : > { %8381 = vmatpush.msra.mxu0 %v13888_v3  ;;  %8426 = vmatpush.msra.mxu1 %v13871_v53 }
 0xb2a   : > { %8232 = vmatpush.msrb.mxu2 %v13890_v22  ;;  %8301 = vmatpush.msrb.mxu3 %v8300_v50 }
 0xb2b   : > { %8384 = vmatpush.msra.mxu0 %v13902_v13  ;;  %8428 = vmatpush.msra.mxu1 %v13890_v22  ;;  %v13987_v38 = vpop.permute.xlu2 %7351 }
 0xb2c   : > { %8234 = vmatpush.msrb.mxu2 %v13899_v4  ;;  %8307 = vmatpush.msrb.mxu3 %v8306_v9 }
 0xb2d   : > { %8387 = vmatpush.msra.mxu0 %v13918_v51  ;;  %8430 = vmatpush.msra.mxu1 %v13899_v4 }
 0xb2e   : > { %8236 = vmatpush.msrb.mxu2 %v13910_v60  ;;  %8313 = vmatpush.msrb.mxu3 %v8312_v16 }
 0xb2f   : > { %8390 = vmatpush.msra.mxu0 %v13933_v27  ;;  %8432 = vmatpush.msra.mxu1 %v13910_v60 }
 0xb30   : > { %8238 = vmatpush.msrb.mxu2 %v13921_v47  ;;  %8319 = vmatpush.msrb.mxu3 %v8318_v63 }
 0xb31   : > { %8393 = vmatpush.msra.mxu0 %v13943_v14  ;;  %8434 = vmatpush.msra.mxu1 %v13921_v47  ;;  %v14451_v14 = vand.u32 4294901760, %v12963_v8 }
 0xb32   : > { %v13977_v58 = vpop.permute.xlu1 %7343  ;;  %8445 = vmatpush.msra.mxu2 %v14445_v24  ;;  %8325 = vmatpush.msrb.mxu3 %v8324_v36 }
 0xb33   : > { %8396 = vmatpush.msra.mxu0 %v13948_v55  ;;  %v8124_v26 = vpop.permute.xlu2 %8123  ;;  %v7402_v7 = vsel %vm360_vm1, %v13648_v46, %v13977_v58  ;;  %v8179_v46 = vld [vmem:[%s14083_s3 + $0x8] sm:$0xff] }
 0xb34   : > { %8449 = vmatpush.msra.mxu2 %v14446_v2  ;;  %8331 = vmatpush.msrb.mxu3 %v8330_v20  ;;  %v8205_v33 = vsel %vm362_vm2, %v8179_v46, 0 }
 0xb35   : > { %v8566_v36 = vand.u32 4294901760, %v8205_v33 }
 0xb36   : > { %8453 = vmatpush.msra.mxu2 %v14447_v40  ;;  %8337 = vmatpush.msrb.mxu3 %v8336_v62  ;;  %v7348_v59 = vpop.permute.xlu0 %7347 }
 0xb37   : > { %v7403_v51 = vsel %vm362_vm2, %v7402_v7, %v7348_v59  ;;  %v8567_v20 = vsub.f32 %v8205_v33, %v8566_v36  ;;  %v8198_v59 = vld [vmem:[%s14085_s5] sm:$0xff] }
 0xb38   : > { %8457 = vmatpush.msra.mxu2 %v14448_v30  ;;  %8343 = vmatpush.msrb.mxu3 %v8342_v12 }
 0xb39   : > { %8201 = vperm.xlu2 %8850, %v8198_v59  }
 0xb3a   : > { %8512 = vmatpush.msra.mxu3 %v12910_v57  ;;  %v8116_v50 = vpop.permute.xlu1 %8115  ;;  %8461 = vmatpush.msra.mxu2 %v14449_v19 }
 0xb3c   : > { %8514 = vmatpush.msra.mxu3 %v12883_v52  ;;  %8465 = vmatpush.msra.mxu2 %v14450_v18  ;;  %v14452_v52 = vld [vmem:[#allocation65_spill] sm:$0xff] }
 0xb3e   : > { %8516 = vmatpush.msra.mxu3 %v12889_v45  ;;  %8469 = vmatpush.msra.mxu2 %v14451_v14  ;;  %v8120_v45 = vpop.permute.xlu0 %8119 }
 0xb40   : > { %8518 = vmatpush.msra.mxu3 %v12899_v49  ;;  %8473 = vmatpush.msra.mxu2 %v8292_v35  ;;  %v8163_v35 = vsel %vm362_vm2, %v8162_v34, %v8108_v21 }
 0xb42   : > { %8520 = vmatpush.msra.mxu3 %v12908_v54  ;;  %v7356_v57 = vpop.permute.xlu1 %7355  ;;  %8477 = vmatpush.msra.mxu2 %v8298_v31  ;;  %v7364_v54 = vpop.permute.xlu2 %7363 }
 0xb44   : > { %8522 = vmatpush.msra.mxu3 %v12917_v41  ;;  %8481 = vmatpush.msra.mxu2 %v8304_v43 }
 0xb46   : > { %8524 = vmatpush.msra.mxu3 %v14452_v52  ;;  %8485 = vmatpush.msra.mxu2 %v8310_v48  ;;  %v7360_v41 = vpop.permute.xlu0 %7359 }
 0xb48   : > { %8526 = vmatpush.msra.mxu3 %v13854_v44  ;;  %8489 = vmatpush.msra.mxu2 %v8316_v5  ;;  %v7404_v5 = vsel %vm364_vm3, %v7403_v51, %v13987_v38 }
 0xb4a   : > { %8528 = vmatpush.msra.mxu3 %v13885_v11  ;;  %v8128_v49 = vpop.permute.xlu1 %8127  ;;  %8493 = vmatpush.msra.mxu2 %v8322_v1  ;;  %v8136_v37 = vpop.permute.xlu2 %8135  ;;  %v7405_v1 = vsel %vm366_vm4, %v7404_v5, %v7356_v57 }
 0xb4b   : > { %v7406_v9 = vsel %vm368_vm5, %v7405_v1, %v7360_v41 }
 0xb4c   : > { %8530 = vmatpush.msra.mxu3 %v13845_v32  ;;  %8497 = vmatpush.msra.mxu2 %v8328_v0 }
 0xb4e   : > { %8532 = vmatpush.msra.mxu3 %v13858_v6  ;;  %8501 = vmatpush.msra.mxu2 %v8334_v29  ;;  %v8178_v6 = vld [vmem:[%s14083_s3] sm:$0xff]  ;;  %v7407_v29 = vsel %vm370_vm6, %v7406_v9, %v7364_v54 }
 0xb4f   : > { %v8239_v61 = vand.u32 4294901760, %v8178_v6 }
 0xb50   : > { %8534 = vmatpush.msra.mxu3 %v13871_v53  ;;  %8505 = vmatpush.msra.mxu2 %v8340_v56 }
 0xb51   : > { %v8240_v11 = vsub.f32 %v8178_v6, %v8239_v61  ;;  %8345 = vmatmul.f32.vlgmr.msrb.gmra.mxu3 %v8239_v61 }
 0xb52   : > { %8536 = vmatpush.msra.mxu3 %v13890_v22  ;;  %v7368_v28 = vpop.permute.xlu1 %7367  ;;  %v7376_v32 = vpop.permute.xlu2 %7375  ;;  %v8164_v22 = vsel %vm364_vm3, %v8163_v35, %v13964_v25 }
 0xb53   : > { %8399 = vmatmul.f32.vlgmr.msra.gmra.mxu0 %v8240_v11  ;;  %v8165_v13 = vsel %vm366_vm4, %v8164_v22, %v8116_v50  ;;  %v7408_v63 = vsel %vm372_vm7, %v7407_v29, %v7368_v28  ;;  %v8568_v50 = vand.u32 4294901760, %v8567_v20 }
 0xb54   : > { %8538 = vmatpush.msra.mxu3 %v13899_v4  ;;  %v8241_v4 = vand.u32 4294901760, %v8240_v11  ;;  %v8166_v43 = vsel %vm368_vm5, %v8165_v13, %v8120_v45 }
 0xb55   : > { %v8167_v48 = vsel %vm370_vm6, %v8166_v43, %v8124_v26  ;;  %v8569_v57 = vsub.f32 %v8567_v20, %v8568_v50 }
 0xb56   : > { %8540 = vmatpush.msra.mxu3 %v13910_v60  ;;  %v8242_v60 = vsub.f32 %v8240_v11, %v8241_v4  ;;  %8438 = vmatmul.f32.vlgmr.msra.gmra.mxu1 %v8241_v4 }
 0xb58   : > { %8542 = vmatpush.msra.mxu3 %v13921_v47  ;;  %v8132_v8 = vpop.permute.xlu0 %8131  ;;  %v8243_v31 = vand.u32 4294901760, %v8242_v60  ;;  %v8168_v47 = vsel %vm372_vm7, %v8167_v48, %v8128_v49 }
 0xb59   : > { %8544 = vmatmul.f32.vlgmr.msra.gmra.mxu3 %v8239_v61  ;;  %v8169_v27 = vsel %vm2021_vm10, %v8168_v47, %v8132_v8  ;;  %v8570_v8 = vand.u32 4294901760, %v8569_v57 }
 0xb5a   : > { %v8140_v44 = vpop.permute.xlu1 %8139  ;;  %v8148_v17 = vpop.permute.xlu2 %8147  ;;  %8244 = vmatmul.f32.vlgmr.msrb.gmra.mxu2 %v8243_v31  ;;  %v8170_v10 = vsel %vm2023_vm11, %v8169_v27, %v8136_v37 }
 0xb5b   : > { %v8171_v25 = vsel %vm2025_vm12, %v8170_v10, %v8140_v44 }
 0xb62   : > { %v7372_v53 = vpop.permute.xlu0 %7371  ;;  %v7388_v0 = vpop.permute.xlu2 %7387  ;;  %8507 = vmatmul.f32.vlgmr.msra.gmra.mxu2 %v8239_v61 }
 0xb63   : > { %v7409_v56 = vsel %vm2021_vm10, %v7408_v63, %v7372_v53 }
 0xb64   : > { %v7380_v3 = vpop.permute.xlu1 %7379  ;;  %v7410_v58 = vsel %vm2023_vm11, %v7409_v56, %v7376_v32 }
 0xb65   : > { %v7411_v62 = vsel %vm2025_vm12, %v7410_v58, %v7380_v3 }
 0xb6a   : > { %v8144_v23 = vpop.permute.xlu0 %8143  ;;  %v8160_v21 = vpop.permute.xlu2 %8159 }
 0xb6b   : > { %v8172_v39 = vsel %vm2027_vm13, %v8171_v25, %v8144_v23 }
 0xb6c   : > { %v8152_v55 = vpop.permute.xlu1 %8151  ;;  %v8173_v42 = vsel %vm2029_vm14, %v8172_v39, %v8148_v17 }
 0xb6d   : > { %v8174_v15 = vsel %vm2031_vm15, %v8173_v42, %v8152_v55 }
 0xb72   : > { %v7384_v16 = vpop.permute.xlu0 %7383 }
 0xb73   : > { %v7412_v12 = vsel %vm2027_vm13, %v7411_v62, %v7384_v16 }
 0xb74   : > { %v7392_v24 = vpop.permute.xlu1 %7391  ;;  %v7413_v19 = vsel %vm2029_vm14, %v7412_v12, %v7388_v0 }
 0xb75   : > { %v7414_v26 = vsel %vm2031_vm15, %v7413_v19, %v7392_v24 }
 0xb7a   : > { %v8156_v2 = vpop.permute.xlu0 %8155 }
 0xb7b   : > { %v8175_v40 = vsel %vm2033_vm8, %v8174_v15, %v8156_v2 }
 0xb7c   : > { %v8176_v38 = vsel %vm2035_vm9, %v8175_v40, %v8160_v21  ;;  %v7400_v45 = vpop.permute.xlu1 %7399 }
 0xb7d   : > { %v8562_v30 = vand.u32 4294901760, %v8176_v38 }
 0xb7f   : > { %v8590_v18 = vsub.f32 %v8176_v38, %v8562_v30  ;;  %8563 = vmatpush.msrb.mxu0 %v8562_v30 }
 0xb81   : > { %v8591_v14 = vand.u32 4294901760, %v8590_v18 }
 0xb82   : > { %v7396_v52 = vpop.permute.xlu0 %7395 }
 0xb83   : > { %v7415_v49 = vsel %vm2033_vm8, %v7414_v26, %v7396_v52  ;;  %v8592_v54 = vsub.f32 %v8590_v18, %v8591_v14 }
 0xb84   : > { %v7416_v41 = vsel %vm2035_vm9, %v7415_v49, %v7400_v45 }
 0xb85   : > { %v8564_v28 = vand.u32 4294901760, %v7416_v41  ;;  %v8593_v37 = vand.u32 4294901760, %v8592_v54 }
 0xb87   : > { %8565 = vmatpush.msrb.mxu0 %v8564_v28  ;;  %8594 = vmatpush.msrb.mxu1 %v8593_v37  ;;  %v8596_v32 = vsub.f32 %v7416_v41, %v8564_v28 }
 0xb88   : > { %8571 = vmatmul.f32.vlgmr.msrb.gmra.mxu0 %v8570_v8 }
 0xb89   : > { %8622 = vmatpush.msra.mxu0 %v8590_v18  ;;  %v8597_v44 = vand.u32 4294901760, %v8596_v32 }
 0xb8b   : > { %8625 = vmatpush.msra.mxu0 %v8596_v32  ;;  %v8598_v6 = vsub.f32 %v8596_v32, %v8597_v44 }
 0xb8d   : > { %8674 = vmatpush.msrb.mxu0 %v8591_v14  ;;  %v8599_v34 = vand.u32 4294901760, %v8598_v6 }
 0xb8f   : > { %8678 = vmatpush.msrb.mxu0 %v8597_v44  ;;  %8600 = vmatpush.msrb.mxu1 %v8599_v34 }
 0xb90   : > { %8602 = vmatmul.f32.vlgmr.msrb.gmra.mxu1 %v8566_v36  ;;  %8628 = vmatmul.f32.vlgmr.msra.gmra.mxu0 %v8567_v20 }
 0xb91   : > { %8647 = vmatpush.msra.mxu1 %v8562_v30 }
 0xb93   : > { %8649 = vmatpush.msra.mxu1 %v8564_v28  ;;  %v8202_v53 = vpop.permute.xlu2 %8201 }
 0xb95   : > { %8699 = vmatpush.msrb.mxu1 %v8562_v30 }
 0xb97   : > { %8701 = vmatpush.msrb.mxu1 %v8564_v28 }
 0xb98   : > { %8653 = vmatmul.f32.vlgmr.msra.gmra.mxu1 %v8568_v50  ;;  %8680 = vmatmul.f32.vlgmr.msrb.gmra.mxu0 %v8566_v36 }
 0xba0   : > { %8703 = vmatmul.f32.vlgmr.msrb.gmra.mxu1 %v8566_v36 }
 0xbd0   : > { %v8400_v22 = vpop.f32.mrf.mxu0 }
 0xbd3   : > { %v8439_v13 = vpop.f32.mrf.mxu1 }
 0xbd4   : > { %v8346_v11 = vpop.f32.mrf.mxu3 }
 0xbdc   : > { %v8545_v23 = vpop.f32.mrf.mxu3 }
 0xbdd   : > { %v8245_v61 = vpop.f32.mrf.mxu2 }
 0xbde   : > { %v8246_v35 = vadd.f32 %v8245_v61, %v8202_v53 }
 0xbe0   : > { %v8347_v3 = vadd.f32 %v8346_v11, %v8246_v35 }
 0xbe2   : > { %v8401_v4 = vadd.f32 %v8400_v22, %v8347_v3 }
 0xbe4   : > { %v8440_v17 = vadd.f32 %v8439_v13, %v8401_v4 }
 0xbe5   : > { %v8508_v43 = vpop.f32.mrf.mxu2 }
 0xbe6   : > { %v8509_v7 = vadd.f32 %v8508_v43, %v8440_v17 }
 0xbe8   : > { %v8546_v31 = vadd.f32 %v8545_v23, %v8509_v7 }
 0xc05   : > { %v8572_v60 = vpop.f32.mrf.mxu0 }
 0xc06   : > { %v8573_v48 = vadd.f32 %v8572_v60, %v8546_v31 }
 0xc0d   : > { %v8603_v51 = vpop.f32.mrf.mxu1  ;;  %v8629_v47 = vpop.f32.mrf.mxu0 }
 0xc0e   : > { %v8604_v27 = vadd.f32 %v8603_v51, %v8573_v48 }
 0xc10   : > { %v8630_v1 = vadd.f32 %v8629_v47, %v8604_v27 }
 0xc15   : > { %v8654_v5 = vpop.f32.mrf.mxu1  ;;  %v8681_v46 = vpop.f32.mrf.mxu0 }
 0xc16   : > { %v8655_v55 = vadd.f32 %v8654_v5, %v8630_v1 }
 0xc18   : > { %v8682_v9 = vadd.f32 %v8681_v46, %v8655_v55 }
 0xc1d   : > { %v8704_v10 = vpop.f32.mrf.mxu1 }
 0xc1e   : > { %v8705_v0 = vadd.f32 %v8704_v10, %v8682_v9 }
 0xc20   : > { %v8707_v16 = vmax.f32 %v8705_v0, 0.0 }
 0xc22   : > { %8708 = vst [vmem:[%s269_s16] sm:$0xff] %v8707_v16 }
 0xc23 PF: > { %s16_s21 = sadd.s32 1, %s8869_s21  }
 0xc24   : > { %p13_p4 = scmp.ge.s32.totalorder %s16_s21, 4  }
 0xc26   :  { %15 = sbr.rel (!%p13_p4) target bundleno = 1 (0x1), region = 80 }

</bundles_post_ra>
